<compile_context>
chip_gen: v7x
topology: tpu7x:2x2x1
jax: 0.10.0
libtpu: 0.0.40
codegen_flags: <defaults>
</compile_context>

<pallas_src>
import functools

import jax
import jax.numpy as jnp
import numpy as np
from jax.experimental import pallas as pl
from jax.experimental.pallas import tpu as pltpu


# Conv configs of AttentionModule6: (kernel, dilation, padding), all depthwise.
_CONVS = ((5, 1, 2), (7, 1, 3), (7, 2, 6), (7, 3, 9))
_PADM = 9  # max 'same' padding over all stages


def _build_col_masks(H, W):
    """Edge masks for horizontal tap offsets in the flattened-plane layout.

    Returns (table, row) where table[row[h]] is a float32 (H*W,) vector that is
    1.0 at flat positions whose column j satisfies 0 <= j + h < W (i.e. the tap
    does not fall into the horizontal zero padding).
    """
    hs = sorted({q * d - p for (k, d, p) in _CONVS for q in range(k)})
    col = np.arange(H * W) % W
    rows = [((col + h >= 0) & (col + h < W)).astype(np.float32) for h in hs]
    return jnp.asarray(np.stack(rows, 0)), {h: i for i, h in enumerate(hs)}


def _fused_kernel(x_ref, m_ref,
                  w0_ref, b0_ref, w1_ref, b1_ref, w2_ref, b2_ref,
                  w3_ref, b3_ref, w4_ref, b4_ref,
                  o_ref, buf_ref, *, C, H, W, base, mrow):
    HW = H * W

    # Zero the padded scratch every step: the margins must read as zero padding
    # for every stage, and re-zeroing (~a dozen vreg stores) keeps the kernel
    # correct even when the parallel batch axis is sharded across TensorCores.
    buf_ref[...] = jnp.zeros_like(buf_ref)

    x2 = x_ref[0]                                    # (C, HW), lane-dense
    buf_ref[:, base:base + HW] = x2                  # interior <- input

    def dconv(w_ref, b_ref, k, dil, pad):
        # Depthwise 'same' conv on the flattened padded plane.  Output flat
        # position s = i*W + j of channel c reads buf[c, base + (i+v)*W + (j+h)]
        # for tap offsets v = p*dil - pad, h = q*dil - pad; columns falling
        # outside [0, W) (row-to-row bleed) are killed by the precomputed mask,
        # vertical overruns land in the zeroed margins.
        acc = jnp.zeros((C, HW), jnp.float32)
        for q in range(k):
            h = q * dil - pad
            m = m_ref[mrow[h]:mrow[h] + 1, :]        # (1, HW) edge mask
            for p in range(k):
                v = p * dil - pad
                start = base + v * W + h
                win = buf_ref[:, start:start + HW]   # (C, HW) constant-offset slice
                wt = w_ref[:, p * k + q:p * k + q + 1]   # (C, 1) per-channel tap
                acc = acc + (win * m) * wt
        return acc + b_ref[...]

    attn0 = dconv(w0_ref, b0_ref, *_CONVS[0])        # conv0
    buf_ref[:, base:base + HW] = attn0
    a1 = dconv(w1_ref, b1_ref, *_CONVS[1])           # conv1_1
    buf_ref[:, base:base + HW] = a1
    a2 = dconv(w2_ref, b2_ref, *_CONVS[2])           # conv1_2
    buf_ref[:, base:base + HW] = a2
    attn3 = dconv(w3_ref, b3_ref, *_CONVS[3])        # conv1_3

    a = attn0 + attn3                                # residual add

    # conv4: 1x1 channel mix.  A (C x C) x (C x HW) matmul with C=4 occupies
    # <1% of the MXU and still pays push/pop latency -> VPU broadcast-MAC.
    if C >= 128:
        y = jnp.dot(w4_ref[...], a, preferred_element_type=jnp.float32)
    else:
        y = jnp.zeros((C, HW), jnp.float32)
        for ci in range(C):
            y = y + w4_ref[:, ci:ci + 1] * a[ci:ci + 1, :]
    y = y + b4_ref[...]

    o_ref[0] = (y * x2).astype(o_ref.dtype)          # gating: attn * u


def attention_module6(x, p):
    B, C, H, W = x.shape
    HW = H * W
    masks, mrow = _build_col_masks(H, W)
    nh = masks.shape[0]

    # Flattened padded plane: [left margin | H*W interior | right margin].
    # Margins cover the worst-case tap offset (pad=9); the left margin is
    # rounded up to a lane-tile multiple so the interior writes are aligned.
    margin = _PADM * W + _PADM
    base = ((margin + 127) // 128) * 128
    L = base + HW + margin

    x2 = x.reshape(B, C, HW)                         # free reshape outside
    bcol = lambda name: p[name].reshape(C, 1)

    kern = functools.partial(_fused_kernel, C=C, H=H, W=W, base=base, mrow=mrow)
    const = lambda bb: (0, 0)

    out = pl.pallas_call(
        kern,
        out_shape=jax.ShapeDtypeStruct((B, C, HW), x.dtype),
        grid=(B,),
        in_specs=[
            pl.BlockSpec((1, C, HW), lambda bb: (bb, 0, 0)),            # x
            pl.BlockSpec((nh, HW), const),                              # edge masks
            pl.BlockSpec((C, 25), const), pl.BlockSpec((C, 1), const),  # conv0
            pl.BlockSpec((C, 49), const), pl.BlockSpec((C, 1), const),  # conv1_1
            pl.BlockSpec((C, 49), const), pl.BlockSpec((C, 1), const),  # conv1_2
            pl.BlockSpec((C, 49), const), pl.BlockSpec((C, 1), const),  # conv1_3
            pl.BlockSpec((C, C), const), pl.BlockSpec((C, 1), const),   # conv4
        ],
        out_specs=pl.BlockSpec((1, C, HW), lambda bb: (bb, 0, 0)),
        scratch_shapes=[pltpu.VMEM((C, L), jnp.float32)],
        compiler_params=pltpu.CompilerParams(
            dimension_semantics=("parallel",)),      # keep both TCs busy (v7x)
    )(x2, masks,
      p["w0"], bcol("b0"), p["w1"], bcol("b1"),
      p["w2"], bcol("b2"), p["w3"], bcol("b3"),
      p["w4"], bcol("b4"))
    return out.reshape(B, C, H, W)


# -------------------------- reference (pure JAX) ---------------------------- #

def _ref_forward(x, p):
    def dw(xx, w, bias, k, dil, pad):
        y = jax.lax.conv_general_dilated(
            xx, w.reshape(xx.shape[1], 1, k, k), (1, 1),
            [(pad, pad), (pad, pad)], rhs_dilation=(dil, dil),
            dimension_numbers=("NCHW", "OIHW", "NCHW"),
            feature_group_count=xx.shape[1])
        return y + bias[None, :, None, None]

    u = x
    a = dw(x, p["w0"], p["b0"], 5, 1, 2)
    a1 = dw(a, p["w1"], p["b1"], 7, 1, 3)
    a2 = dw(a1, p["w2"], p["b2"], 7, 2, 6)
    a3 = dw(a2, p["w3"], p["b3"], 7, 3, 9)
    a = a + a3
    y = jax.lax.conv_general_dilated(
        a, p["w4"][:, :, None, None], (1, 1), [(0, 0), (0, 0)],
        dimension_numbers=("NCHW", "OIHW", "NCHW"))
    y = y + p["b4"][None, :, None, None]
    return y * u


# ----------------------------------- main ----------------------------------- #

def _init_params(key, dim):
    ks = jax.random.split(key, 10)

    def uinit(k, shape, fan_in):
        bound = 1.0 / np.sqrt(fan_in)
        return jax.random.uniform(k, shape, jnp.float32, -bound, bound)

    return {
        # depthwise weights flattened to (C, k*k); fan_in = k*k (groups=dim)
        "w0": uinit(ks[0], (dim, 25), 25), "b0": uinit(ks[1], (dim,), 25),
        "w1": uinit(ks[2], (dim, 49), 49), "b1": uinit(ks[3], (dim,), 49),
        "w2": uinit(ks[4], (dim, 49), 49), "b2": uinit(ks[5], (dim,), 49),
        "w3": uinit(ks[6], (dim, 49), 49), "b3": uinit(ks[7], (dim,), 49),
        # 1x1 conv: (C_out, C_in) and bias (C,)
        "w4": uinit(ks[8], (dim, dim), dim), "b4": uinit(ks[9], (dim,), dim),
    }


if __name__ == "__main__":
    B, C, H, W = 2, 4, 16, 16
    key = jax.random.PRNGKey(0)
    kx, kp = jax.random.split(key)
    x = jax.random.normal(kx, (B, C, H, W), jnp.float32)
    params = _init_params(kp, C)

    fwd = jax.jit(attention_module6)
    out = jax.block_until_ready(fwd(x, params))
    ref = jax.block_until_ready(_ref_forward(x, params))
    np.testing.assert_allclose(np.asarray(out), np.asarray(ref),
                               rtol=1e-4, atol=1e-4)
    print("KERNEL_OK")
</pallas_src>

<mosaic_0001>
module attributes {stable_mosaic.version = 11 : i64} {
  func.func @_fused_kernel(%arg0: i32, %arg1: memref<1x4x256xf32, #tpu.memory_space<vmem>>, %arg2: memref<13x256xf32, #tpu.memory_space<vmem>>, %arg3: memref<4x25xf32, #tpu.memory_space<vmem>>, %arg4: memref<4x1xf32, #tpu.memory_space<vmem>>, %arg5: memref<4x49xf32, #tpu.memory_space<vmem>>, %arg6: memref<4x1xf32, #tpu.memory_space<vmem>>, %arg7: memref<4x49xf32, #tpu.memory_space<vmem>>, %arg8: memref<4x1xf32, #tpu.memory_space<vmem>>, %arg9: memref<4x49xf32, #tpu.memory_space<vmem>>, %arg10: memref<4x1xf32, #tpu.memory_space<vmem>>, %arg11: memref<4x4xf32, #tpu.memory_space<vmem>>, %arg12: memref<4x1xf32, #tpu.memory_space<vmem>>, %arg13: memref<1x4x256xf32, #tpu.memory_space<vmem>>, %arg14: memref<4x665xf32, #tpu.memory_space<vmem>>) attributes {dimension_semantics = [#tpu.dimension_semantics<parallel>], iteration_bounds = array<i64: 2>, scalar_prefetch = 0 : i64, scratch_operands = 1 : i64, tpu.core_type = #tpu.core_type<tc>, window_params = [{transform_indices = @transform_0, window_bounds = array<i64: 1, 4, 256>}, {pipeline_mode = #tpu.pipeline_mode<synchronous>, transform_indices = @transform_1, window_bounds = array<i64: 13, 256>}, {pipeline_mode = #tpu.pipeline_mode<synchronous>, transform_indices = @transform_2, window_bounds = array<i64: 4, 25>}, {pipeline_mode = #tpu.pipeline_mode<synchronous>, transform_indices = @transform_3, window_bounds = array<i64: 4, 1>}, {pipeline_mode = #tpu.pipeline_mode<synchronous>, transform_indices = @transform_4, window_bounds = array<i64: 4, 49>}, {pipeline_mode = #tpu.pipeline_mode<synchronous>, transform_indices = @transform_5, window_bounds = array<i64: 4, 1>}, {pipeline_mode = #tpu.pipeline_mode<synchronous>, transform_indices = @transform_6, window_bounds = array<i64: 4, 49>}, {pipeline_mode = #tpu.pipeline_mode<synchronous>, transform_indices = @transform_7, window_bounds = array<i64: 4, 1>}, {pipeline_mode = #tpu.pipeline_mode<synchronous>, transform_indices = @transform_8, window_bounds = array<i64: 4, 49>}, {pipeline_mode = #tpu.pipeline_mode<synchronous>, transform_indices = @transform_9, window_bounds = array<i64: 4, 1>}, {pipeline_mode = #tpu.pipeline_mode<synchronous>, transform_indices = @transform_10, window_bounds = array<i64: 4, 4>}, {pipeline_mode = #tpu.pipeline_mode<synchronous>, transform_indices = @transform_11, window_bounds = array<i64: 4, 1>}, {transform_indices = @transform_12, window_bounds = array<i64: 1, 4, 256>}]} {
    %cst = arith.constant 0.000000e+00 : f32
    %0 = vector.broadcast %cst : f32 to vector<4x665xf32>
    %c0 = arith.constant 0 : index
    %c0_0 = arith.constant 0 : index
    %1 = vector.load %arg14[%c0, %c0_0] : memref<4x665xf32, #tpu.memory_space<vmem>>, vector<4x665xf32>
    tpu.vector_store %arg14[%c0, %c0_0], %0 {strides = array<i32>} : memref<4x665xf32, #tpu.memory_space<vmem>>, vector<4x665xf32>,
    %c0_1 = arith.constant 0 : index
    %c0_2 = arith.constant 0 : index
    %c0_3 = arith.constant 0 : index
    %2 = vector.load %arg1[%c0_1, %c0_2, %c0_3] : memref<1x4x256xf32, #tpu.memory_space<vmem>>, vector<1x4x256xf32>
    %3 = vector.shape_cast %2 : vector<1x4x256xf32> to vector<4x256xf32>
    %c0_4 = arith.constant 0 : index
    %c256 = arith.constant 256 : index
    %4 = vector.load %arg14[%c0_4, %c256] : memref<4x665xf32, #tpu.memory_space<vmem>>, vector<4x256xf32>
    tpu.vector_store %arg14[%c0_4, %c256], %3 {strides = array<i32>} : memref<4x665xf32, #tpu.memory_space<vmem>>, vector<4x256xf32>,
    %cst_5 = arith.constant 0.000000e+00 : f32
    %5 = vector.broadcast %cst_5 : f32 to vector<4x256xf32>
    %c4 = arith.constant 4 : index
    %c0_6 = arith.constant 0 : index
    %6 = vector.load %arg2[%c4, %c0_6] : memref<13x256xf32, #tpu.memory_space<vmem>>, vector<1x256xf32>
    %c0_7 = arith.constant 0 : index
    %c222 = arith.constant 222 : index
    %7 = vector.load %arg14[%c0_7, %c222] : memref<4x665xf32, #tpu.memory_space<vmem>>, vector<4x256xf32>
    %c0_8 = arith.constant 0 : index
    %c0_9 = arith.constant 0 : index
    %8 = vector.load %arg3[%c0_8, %c0_9] : memref<4x25xf32, #tpu.memory_space<vmem>>, vector<4x1xf32>
    %9 = vector.broadcast %6 : vector<1x256xf32> to vector<4x256xf32>
    %10 = arith.mulf %7, %9 : vector<4x256xf32>
    %11 = vector.broadcast %8 : vector<4x1xf32> to vector<4x256xf32>
    %12 = arith.mulf %10, %11 : vector<4x256xf32>
    %13 = arith.addf %5, %12 : vector<4x256xf32>
    %c0_10 = arith.constant 0 : index
    %c238 = arith.constant 238 : index
    %14 = vector.load %arg14[%c0_10, %c238] : memref<4x665xf32, #tpu.memory_space<vmem>>, vector<4x256xf32>
    %c0_11 = arith.constant 0 : index
    %c5 = arith.constant 5 : index
    %15 = vector.load %arg3[%c0_11, %c5] : memref<4x25xf32, #tpu.memory_space<vmem>>, vector<4x1xf32>
    %16 = vector.broadcast %6 : vector<1x256xf32> to vector<4x256xf32>
    %17 = arith.mulf %14, %16 : vector<4x256xf32>
    %18 = vector.broadcast %15 : vector<4x1xf32> to vector<4x256xf32>
    %19 = arith.mulf %17, %18 : vector<4x256xf32>
    %20 = arith.addf %13, %19 : vector<4x256xf32>
    %c0_12 = arith.constant 0 : index
    %c254 = arith.constant 254 : index
    %21 = vector.load %arg14[%c0_12, %c254] : memref<4x665xf32, #tpu.memory_space<vmem>>, vector<4x256xf32>
    %c0_13 = arith.constant 0 : index
    %c10 = arith.constant 10 : index
    %22 = vector.load %arg3[%c0_13, %c10] : memref<4x25xf32, #tpu.memory_space<vmem>>, vector<4x1xf32>
    %23 = vector.broadcast %6 : vector<1x256xf32> to vector<4x256xf32>
    %24 = arith.mulf %21, %23 : vector<4x256xf32>
    %25 = vector.broadcast %22 : vector<4x1xf32> to vector<4x256xf32>
    %26 = arith.mulf %24, %25 : vector<4x256xf32>
    %27 = arith.addf %20, %26 : vector<4x256xf32>
    %c0_14 = arith.constant 0 : index
    %c270 = arith.constant 270 : index
    %28 = vector.load %arg14[%c0_14, %c270] : memref<4x665xf32, #tpu.memory_space<vmem>>, vector<4x256xf32>
    %c0_15 = arith.constant 0 : index
    %c15 = arith.constant 15 : index
    %29 = vector.load %arg3[%c0_15, %c15] : memref<4x25xf32, #tpu.memory_space<vmem>>, vector<4x1xf32>
    %30 = vector.broadcast %6 : vector<1x256xf32> to vector<4x256xf32>
    %31 = arith.mulf %28, %30 : vector<4x256xf32>
    %32 = vector.broadcast %29 : vector<4x1xf32> to vector<4x256xf32>
    %33 = arith.mulf %31, %32 : vector<4x256xf32>
    %34 = arith.addf %27, %33 : vector<4x256xf32>
    %c0_16 = arith.constant 0 : index
    %c286 = arith.constant 286 : index
    %35 = vector.load %arg14[%c0_16, %c286] : memref<4x665xf32, #tpu.memory_space<vmem>>, vector<4x256xf32>
    %c0_17 = arith.constant 0 : index
    %c20 = arith.constant 20 : index
    %36 = vector.load %arg3[%c0_17, %c20] : memref<4x25xf32, #tpu.memory_space<vmem>>, vector<4x1xf32>
    %37 = vector.broadcast %6 : vector<1x256xf32> to vector<4x256xf32>
    %38 = arith.mulf %35, %37 : vector<4x256xf32>
    %39 = vector.broadcast %36 : vector<4x1xf32> to vector<4x256xf32>
    %40 = arith.mulf %38, %39 : vector<4x256xf32>
    %41 = arith.addf %34, %40 : vector<4x256xf32>
    %c5_18 = arith.constant 5 : index
    %c0_19 = arith.constant 0 : index
    %42 = vector.load %arg2[%c5_18, %c0_19] : memref<13x256xf32, #tpu.memory_space<vmem>>, vector<1x256xf32>
    %c0_20 = arith.constant 0 : index
    %c223 = arith.constant 223 : index
    %43 = vector.load %arg14[%c0_20, %c223] : memref<4x665xf32, #tpu.memory_space<vmem>>, vector<4x256xf32>
    %c0_21 = arith.constant 0 : index
    %c1 = arith.constant 1 : index
    %44 = vector.load %arg3[%c0_21, %c1] : memref<4x25xf32, #tpu.memory_space<vmem>>, vector<4x1xf32>
    %45 = vector.broadcast %42 : vector<1x256xf32> to vector<4x256xf32>
    %46 = arith.mulf %43, %45 : vector<4x256xf32>
    %47 = vector.broadcast %44 : vector<4x1xf32> to vector<4x256xf32>
    %48 = arith.mulf %46, %47 : vector<4x256xf32>
    %49 = arith.addf %41, %48 : vector<4x256xf32>
    %c0_22 = arith.constant 0 : index
    %c239 = arith.constant 239 : index
    %50 = vector.load %arg14[%c0_22, %c239] : memref<4x665xf32, #tpu.memory_space<vmem>>, vector<4x256xf32>
    %c0_23 = arith.constant 0 : index
    %c6 = arith.constant 6 : index
    %51 = vector.load %arg3[%c0_23, %c6] : memref<4x25xf32, #tpu.memory_space<vmem>>, vector<4x1xf32>
    %52 = vector.broadcast %42 : vector<1x256xf32> to vector<4x256xf32>
    %53 = arith.mulf %50, %52 : vector<4x256xf32>
    %54 = vector.broadcast %51 : vector<4x1xf32> to vector<4x256xf32>
    %55 = arith.mulf %53, %54 : vector<4x256xf32>
    %56 = arith.addf %49, %55 : vector<4x256xf32>
    %c0_24 = arith.constant 0 : index
    %c255 = arith.constant 255 : index
    %57 = vector.load %arg14[%c0_24, %c255] : memref<4x665xf32, #tpu.memory_space<vmem>>, vector<4x256xf32>
    %c0_25 = arith.constant 0 : index
    %c11 = arith.constant 11 : index
    %58 = vector.load %arg3[%c0_25, %c11] : memref<4x25xf32, #tpu.memory_space<vmem>>, vector<4x1xf32>
    %59 = vector.broadcast %42 : vector<1x256xf32> to vector<4x256xf32>
    %60 = arith.mulf %57, %59 : vector<4x256xf32>
    %61 = vector.broadcast %58 : vector<4x1xf32> to vector<4x256xf32>
    %62 = arith.mulf %60, %61 : vector<4x256xf32>
    %63 = arith.addf %56, %62 : vector<4x256xf32>
    %c0_26 = arith.constant 0 : index
    %c271 = arith.constant 271 : index
    %64 = vector.load %arg14[%c0_26, %c271] : memref<4x665xf32, #tpu.memory_space<vmem>>, vector<4x256xf32>
    %c0_27 = arith.constant 0 : index
    %c16 = arith.constant 16 : index
    %65 = vector.load %arg3[%c0_27, %c16] : memref<4x25xf32, #tpu.memory_space<vmem>>, vector<4x1xf32>
    %66 = vector.broadcast %42 : vector<1x256xf32> to vector<4x256xf32>
    %67 = arith.mulf %64, %66 : vector<4x256xf32>
    %68 = vector.broadcast %65 : vector<4x1xf32> to vector<4x256xf32>
    %69 = arith.mulf %67, %68 : vector<4x256xf32>
    %70 = arith.addf %63, %69 : vector<4x256xf32>
    %c0_28 = arith.constant 0 : index
    %c287 = arith.constant 287 : index
    %71 = vector.load %arg14[%c0_28, %c287] : memref<4x665xf32, #tpu.memory_space<vmem>>, vector<4x256xf32>
    %c0_29 = arith.constant 0 : index
    %c21 = arith.constant 21 : index
    %72 = vector.load %arg3[%c0_29, %c21] : memref<4x25xf32, #tpu.memory_space<vmem>>, vector<4x1xf32>
    %73 = vector.broadcast %42 : vector<1x256xf32> to vector<4x256xf32>
    %74 = arith.mulf %71, %73 : vector<4x256xf32>
    %75 = vector.broadcast %72 : vector<4x1xf32> to vector<4x256xf32>
    %76 = arith.mulf %74, %75 : vector<4x256xf32>
    %77 = arith.addf %70, %76 : vector<4x256xf32>
    %c6_30 = arith.constant 6 : index
    %c0_31 = arith.constant 0 : index
    %78 = vector.load %arg2[%c6_30, %c0_31] : memref<13x256xf32, #tpu.memory_space<vmem>>, vector<1x256xf32>
    %c0_32 = arith.constant 0 : index
    %c224 = arith.constant 224 : index
    %79 = vector.load %arg14[%c0_32, %c224] : memref<4x665xf32, #tpu.memory_space<vmem>>, vector<4x256xf32>
    %c0_33 = arith.constant 0 : index
    %c2 = arith.constant 2 : index
    %80 = vector.load %arg3[%c0_33, %c2] : memref<4x25xf32, #tpu.memory_space<vmem>>, vector<4x1xf32>
    %81 = vector.broadcast %78 : vector<1x256xf32> to vector<4x256xf32>
    %82 = arith.mulf %79, %81 : vector<4x256xf32>
    %83 = vector.broadcast %80 : vector<4x1xf32> to vector<4x256xf32>
    %84 = arith.mulf %82, %83 : vector<4x256xf32>
    %85 = arith.addf %77, %84 : vector<4x256xf32>
    %c0_34 = arith.constant 0 : index
    %c240 = arith.constant 240 : index
    %86 = vector.load %arg14[%c0_34, %c240] : memref<4x665xf32, #tpu.memory_space<vmem>>, vector<4x256xf32>
    %c0_35 = arith.constant 0 : index
    %c7 = arith.constant 7 : index
    %87 = vector.load %arg3[%c0_35, %c7] : memref<4x25xf32, #tpu.memory_space<vmem>>, vector<4x1xf32>
    %88 = vector.broadcast %78 : vector<1x256xf32> to vector<4x256xf32>
    %89 = arith.mulf %86, %88 : vector<4x256xf32>
    %90 = vector.broadcast %87 : vector<4x1xf32> to vector<4x256xf32>
    %91 = arith.mulf %89, %90 : vector<4x256xf32>
    %92 = arith.addf %85, %91 : vector<4x256xf32>
    %c0_36 = arith.constant 0 : index
    %c256_37 = arith.constant 256 : index
    %93 = vector.load %arg14[%c0_36, %c256_37] : memref<4x665xf32, #tpu.memory_space<vmem>>, vector<4x256xf32>
    %c0_38 = arith.constant 0 : index
    %c12 = arith.constant 12 : index
    %94 = vector.load %arg3[%c0_38, %c12] : memref<4x25xf32, #tpu.memory_space<vmem>>, vector<4x1xf32>
    %95 = vector.broadcast %78 : vector<1x256xf32> to vector<4x256xf32>
    %96 = arith.mulf %93, %95 : vector<4x256xf32>
    %97 = vector.broadcast %94 : vector<4x1xf32> to vector<4x256xf32>
    %98 = arith.mulf %96, %97 : vector<4x256xf32>
    %99 = arith.addf %92, %98 : vector<4x256xf32>
    %c0_39 = arith.constant 0 : index
    %c272 = arith.constant 272 : index
    %100 = vector.load %arg14[%c0_39, %c272] : memref<4x665xf32, #tpu.memory_space<vmem>>, vector<4x256xf32>
    %c0_40 = arith.constant 0 : index
    %c17 = arith.constant 17 : index
    %101 = vector.load %arg3[%c0_40, %c17] : memref<4x25xf32, #tpu.memory_space<vmem>>, vector<4x1xf32>
    %102 = vector.broadcast %78 : vector<1x256xf32> to vector<4x256xf32>
    %103 = arith.mulf %100, %102 : vector<4x256xf32>
    %104 = vector.broadcast %101 : vector<4x1xf32> to vector<4x256xf32>
    %105 = arith.mulf %103, %104 : vector<4x256xf32>
    %106 = arith.addf %99, %105 : vector<4x256xf32>
    %c0_41 = arith.constant 0 : index
    %c288 = arith.constant 288 : index
    %107 = vector.load %arg14[%c0_41, %c288] : memref<4x665xf32, #tpu.memory_space<vmem>>, vector<4x256xf32>
    %c0_42 = arith.constant 0 : index
    %c22 = arith.constant 22 : index
    %108 = vector.load %arg3[%c0_42, %c22] : memref<4x25xf32, #tpu.memory_space<vmem>>, vector<4x1xf32>
    %109 = vector.broadcast %78 : vector<1x256xf32> to vector<4x256xf32>
    %110 = arith.mulf %107, %109 : vector<4x256xf32>
    %111 = vector.broadcast %108 : vector<4x1xf32> to vector<4x256xf32>
    %112 = arith.mulf %110, %111 : vector<4x256xf32>
    %113 = arith.addf %106, %112 : vector<4x256xf32>
    %c7_43 = arith.constant 7 : index
    %c0_44 = arith.constant 0 : index
    %114 = vector.load %arg2[%c7_43, %c0_44] : memref<13x256xf32, #tpu.memory_space<vmem>>, vector<1x256xf32>
    %c0_45 = arith.constant 0 : index
    %c225 = arith.constant 225 : index
    %115 = vector.load %arg14[%c0_45, %c225] : memref<4x665xf32, #tpu.memory_space<vmem>>, vector<4x256xf32>
    %c0_46 = arith.constant 0 : index
    %c3 = arith.constant 3 : index
    %116 = vector.load %arg3[%c0_46, %c3] : memref<4x25xf32, #tpu.memory_space<vmem>>, vector<4x1xf32>
    %117 = vector.broadcast %114 : vector<1x256xf32> to vector<4x256xf32>
    %118 = arith.mulf %115, %117 : vector<4x256xf32>
    %119 = vector.broadcast %116 : vector<4x1xf32> to vector<4x256xf32>
    %120 = arith.mulf %118, %119 : vector<4x256xf32>
    %121 = arith.addf %113, %120 : vector<4x256xf32>
    %c0_47 = arith.constant 0 : index
    %c241 = arith.constant 241 : index
    %122 = vector.load %arg14[%c0_47, %c241] : memref<4x665xf32, #tpu.memory_space<vmem>>, vector<4x256xf32>
    %c0_48 = arith.constant 0 : index
    %c8 = arith.constant 8 : index
    %123 = vector.load %arg3[%c0_48, %c8] : memref<4x25xf32, #tpu.memory_space<vmem>>, vector<4x1xf32>
    %124 = vector.broadcast %114 : vector<1x256xf32> to vector<4x256xf32>
    %125 = arith.mulf %122, %124 : vector<4x256xf32>
    %126 = vector.broadcast %123 : vector<4x1xf32> to vector<4x256xf32>
    %127 = arith.mulf %125, %126 : vector<4x256xf32>
    %128 = arith.addf %121, %127 : vector<4x256xf32>
    %c0_49 = arith.constant 0 : index
    %c257 = arith.constant 257 : index
    %129 = vector.load %arg14[%c0_49, %c257] : memref<4x665xf32, #tpu.memory_space<vmem>>, vector<4x256xf32>
    %c0_50 = arith.constant 0 : index
    %c13 = arith.constant 13 : index
    %130 = vector.load %arg3[%c0_50, %c13] : memref<4x25xf32, #tpu.memory_space<vmem>>, vector<4x1xf32>
    %131 = vector.broadcast %114 : vector<1x256xf32> to vector<4x256xf32>
    %132 = arith.mulf %129, %131 : vector<4x256xf32>
    %133 = vector.broadcast %130 : vector<4x1xf32> to vector<4x256xf32>
    %134 = arith.mulf %132, %133 : vector<4x256xf32>
    %135 = arith.addf %128, %134 : vector<4x256xf32>
    %c0_51 = arith.constant 0 : index
    %c273 = arith.constant 273 : index
    %136 = vector.load %arg14[%c0_51, %c273] : memref<4x665xf32, #tpu.memory_space<vmem>>, vector<4x256xf32>
    %c0_52 = arith.constant 0 : index
    %c18 = arith.constant 18 : index
    %137 = vector.load %arg3[%c0_52, %c18] : memref<4x25xf32, #tpu.memory_space<vmem>>, vector<4x1xf32>
    %138 = vector.broadcast %114 : vector<1x256xf32> to vector<4x256xf32>
    %139 = arith.mulf %136, %138 : vector<4x256xf32>
    %140 = vector.broadcast %137 : vector<4x1xf32> to vector<4x256xf32>
    %141 = arith.mulf %139, %140 : vector<4x256xf32>
    %142 = arith.addf %135, %141 : vector<4x256xf32>
    %c0_53 = arith.constant 0 : index
    %c289 = arith.constant 289 : index
    %143 = vector.load %arg14[%c0_53, %c289] : memref<4x665xf32, #tpu.memory_space<vmem>>, vector<4x256xf32>
    %c0_54 = arith.constant 0 : index
    %c23 = arith.constant 23 : index
    %144 = vector.load %arg3[%c0_54, %c23] : memref<4x25xf32, #tpu.memory_space<vmem>>, vector<4x1xf32>
    %145 = vector.broadcast %114 : vector<1x256xf32> to vector<4x256xf32>
    %146 = arith.mulf %143, %145 : vector<4x256xf32>
    %147 = vector.broadcast %144 : vector<4x1xf32> to vector<4x256xf32>
    %148 = arith.mulf %146, %147 : vector<4x256xf32>
    %149 = arith.addf %142, %148 : vector<4x256xf32>
    %c8_55 = arith.constant 8 : index
    %c0_56 = arith.constant 0 : index
    %150 = vector.load %arg2[%c8_55, %c0_56] : memref<13x256xf32, #tpu.memory_space<vmem>>, vector<1x256xf32>
    %c0_57 = arith.constant 0 : index
    %c226 = arith.constant 226 : index
    %151 = vector.load %arg14[%c0_57, %c226] : memref<4x665xf32, #tpu.memory_space<vmem>>, vector<4x256xf32>
    %c0_58 = arith.constant 0 : index
    %c4_59 = arith.constant 4 : index
    %152 = vector.load %arg3[%c0_58, %c4_59] : memref<4x25xf32, #tpu.memory_space<vmem>>, vector<4x1xf32>
    %153 = vector.broadcast %150 : vector<1x256xf32> to vector<4x256xf32>
    %154 = arith.mulf %151, %153 : vector<4x256xf32>
    %155 = vector.broadcast %152 : vector<4x1xf32> to vector<4x256xf32>
    %156 = arith.mulf %154, %155 : vector<4x256xf32>
    %157 = arith.addf %149, %156 : vector<4x256xf32>
    %c0_60 = arith.constant 0 : index
    %c242 = arith.constant 242 : index
    %158 = vector.load %arg14[%c0_60, %c242] : memref<4x665xf32, #tpu.memory_space<vmem>>, vector<4x256xf32>
    %c0_61 = arith.constant 0 : index
    %c9 = arith.constant 9 : index
    %159 = vector.load %arg3[%c0_61, %c9] : memref<4x25xf32, #tpu.memory_space<vmem>>, vector<4x1xf32>
    %160 = vector.broadcast %150 : vector<1x256xf32> to vector<4x256xf32>
    %161 = arith.mulf %158, %160 : vector<4x256xf32>
    %162 = vector.broadcast %159 : vector<4x1xf32> to vector<4x256xf32>
    %163 = arith.mulf %161, %162 : vector<4x256xf32>
    %164 = arith.addf %157, %163 : vector<4x256xf32>
    %c0_62 = arith.constant 0 : index
    %c258 = arith.constant 258 : index
    %165 = vector.load %arg14[%c0_62, %c258] : memref<4x665xf32, #tpu.memory_space<vmem>>, vector<4x256xf32>
    %c0_63 = arith.constant 0 : index
    %c14 = arith.constant 14 : index
    %166 = vector.load %arg3[%c0_63, %c14] : memref<4x25xf32, #tpu.memory_space<vmem>>, vector<4x1xf32>
    %167 = vector.broadcast %150 : vector<1x256xf32> to vector<4x256xf32>
    %168 = arith.mulf %165, %167 : vector<4x256xf32>
    %169 = vector.broadcast %166 : vector<4x1xf32> to vector<4x256xf32>
    %170 = arith.mulf %168, %169 : vector<4x256xf32>
    %171 = arith.addf %164, %170 : vector<4x256xf32>
    %c0_64 = arith.constant 0 : index
    %c274 = arith.constant 274 : index
    %172 = vector.load %arg14[%c0_64, %c274] : memref<4x665xf32, #tpu.memory_space<vmem>>, vector<4x256xf32>
    %c0_65 = arith.constant 0 : index
    %c19 = arith.constant 19 : index
    %173 = vector.load %arg3[%c0_65, %c19] : memref<4x25xf32, #tpu.memory_space<vmem>>, vector<4x1xf32>
    %174 = vector.broadcast %150 : vector<1x256xf32> to vector<4x256xf32>
    %175 = arith.mulf %172, %174 : vector<4x256xf32>
    %176 = vector.broadcast %173 : vector<4x1xf32> to vector<4x256xf32>
    %177 = arith.mulf %175, %176 : vector<4x256xf32>
    %178 = arith.addf %171, %177 : vector<4x256xf32>
    %c0_66 = arith.constant 0 : index
    %c290 = arith.constant 290 : index
    %179 = vector.load %arg14[%c0_66, %c290] : memref<4x665xf32, #tpu.memory_space<vmem>>, vector<4x256xf32>
    %c0_67 = arith.constant 0 : index
    %c24 = arith.constant 24 : index
    %180 = vector.load %arg3[%c0_67, %c24] : memref<4x25xf32, #tpu.memory_space<vmem>>, vector<4x1xf32>
    %181 = vector.broadcast %150 : vector<1x256xf32> to vector<4x256xf32>
    %182 = arith.mulf %179, %181 : vector<4x256xf32>
    %183 = vector.broadcast %180 : vector<4x1xf32> to vector<4x256xf32>
    %184 = arith.mulf %182, %183 : vector<4x256xf32>
    %185 = arith.addf %178, %184 : vector<4x256xf32>
    %c0_68 = arith.constant 0 : index
    %c0_69 = arith.constant 0 : index
    %186 = vector.load %arg4[%c0_68, %c0_69] : memref<4x1xf32, #tpu.memory_space<vmem>>, vector<4x1xf32>
    %187 = vector.broadcast %186 : vector<4x1xf32> to vector<4x256xf32>
    %188 = arith.addf %185, %187 : vector<4x256xf32>
    %c0_70 = arith.constant 0 : index
    %c256_71 = arith.constant 256 : index
    %189 = vector.load %arg14[%c0_70, %c256_71] : memref<4x665xf32, #tpu.memory_space<vmem>>, vector<4x256xf32>
    tpu.vector_store %arg14[%c0_70, %c256_71], %188 {strides = array<i32>} : memref<4x665xf32, #tpu.memory_space<vmem>>, vector<4x256xf32>,
    %cst_72 = arith.constant 0.000000e+00 : f32
    %190 = vector.broadcast %cst_72 : f32 to vector<4x256xf32>
    %c3_73 = arith.constant 3 : index
    %c0_74 = arith.constant 0 : index
    %191 = vector.load %arg2[%c3_73, %c0_74] : memref<13x256xf32, #tpu.memory_space<vmem>>, vector<1x256xf32>
    %c0_75 = arith.constant 0 : index
    %c205 = arith.constant 205 : index
    %192 = vector.load %arg14[%c0_75, %c205] : memref<4x665xf32, #tpu.memory_space<vmem>>, vector<4x256xf32>
    %c0_76 = arith.constant 0 : index
    %c0_77 = arith.constant 0 : index
    %193 = vector.load %arg5[%c0_76, %c0_77] : memref<4x49xf32, #tpu.memory_space<vmem>>, vector<4x1xf32>
    %194 = vector.broadcast %191 : vector<1x256xf32> to vector<4x256xf32>
    %195 = arith.mulf %192, %194 : vector<4x256xf32>
    %196 = vector.broadcast %193 : vector<4x1xf32> to vector<4x256xf32>
    %197 = arith.mulf %195, %196 : vector<4x256xf32>
    %198 = arith.addf %190, %197 : vector<4x256xf32>
    %c0_78 = arith.constant 0 : index
    %c221 = arith.constant 221 : index
    %199 = vector.load %arg14[%c0_78, %c221] : memref<4x665xf32, #tpu.memory_space<vmem>>, vector<4x256xf32>
    %c0_79 = arith.constant 0 : index
    %c7_80 = arith.constant 7 : index
    %200 = vector.load %arg5[%c0_79, %c7_80] : memref<4x49xf32, #tpu.memory_space<vmem>>, vector<4x1xf32>
    %201 = vector.broadcast %191 : vector<1x256xf32> to vector<4x256xf32>
    %202 = arith.mulf %199, %201 : vector<4x256xf32>
    %203 = vector.broadcast %200 : vector<4x1xf32> to vector<4x256xf32>
    %204 = arith.mulf %202, %203 : vector<4x256xf32>
    %205 = arith.addf %198, %204 : vector<4x256xf32>
    %c0_81 = arith.constant 0 : index
    %c237 = arith.constant 237 : index
    %206 = vector.load %arg14[%c0_81, %c237] : memref<4x665xf32, #tpu.memory_space<vmem>>, vector<4x256xf32>
    %c0_82 = arith.constant 0 : index
    %c14_83 = arith.constant 14 : index
    %207 = vector.load %arg5[%c0_82, %c14_83] : memref<4x49xf32, #tpu.memory_space<vmem>>, vector<4x1xf32>
    %208 = vector.broadcast %191 : vector<1x256xf32> to vector<4x256xf32>
    %209 = arith.mulf %206, %208 : vector<4x256xf32>
    %210 = vector.broadcast %207 : vector<4x1xf32> to vector<4x256xf32>
    %211 = arith.mulf %209, %210 : vector<4x256xf32>
    %212 = arith.addf %205, %211 : vector<4x256xf32>
    %c0_84 = arith.constant 0 : index
    %c253 = arith.constant 253 : index
    %213 = vector.load %arg14[%c0_84, %c253] : memref<4x665xf32, #tpu.memory_space<vmem>>, vector<4x256xf32>
    %c0_85 = arith.constant 0 : index
    %c21_86 = arith.constant 21 : index
    %214 = vector.load %arg5[%c0_85, %c21_86] : memref<4x49xf32, #tpu.memory_space<vmem>>, vector<4x1xf32>
    %215 = vector.broadcast %191 : vector<1x256xf32> to vector<4x256xf32>
    %216 = arith.mulf %213, %215 : vector<4x256xf32>
    %217 = vector.broadcast %214 : vector<4x1xf32> to vector<4x256xf32>
    %218 = arith.mulf %216, %217 : vector<4x256xf32>
    %219 = arith.addf %212, %218 : vector<4x256xf32>
    %c0_87 = arith.constant 0 : index
    %c269 = arith.constant 269 : index
    %220 = vector.load %arg14[%c0_87, %c269] : memref<4x665xf32, #tpu.memory_space<vmem>>, vector<4x256xf32>
    %c0_88 = arith.constant 0 : index
    %c28 = arith.constant 28 : index
    %221 = vector.load %arg5[%c0_88, %c28] : memref<4x49xf32, #tpu.memory_space<vmem>>, vector<4x1xf32>
    %222 = vector.broadcast %191 : vector<1x256xf32> to vector<4x256xf32>
    %223 = arith.mulf %220, %222 : vector<4x256xf32>
    %224 = vector.broadcast %221 : vector<4x1xf32> to vector<4x256xf32>
    %225 = arith.mulf %223, %224 : vector<4x256xf32>
    %226 = arith.addf %219, %225 : vector<4x256xf32>
    %c0_89 = arith.constant 0 : index
    %c285 = arith.constant 285 : index
    %227 = vector.load %arg14[%c0_89, %c285] : memref<4x665xf32, #tpu.memory_space<vmem>>, vector<4x256xf32>
    %c0_90 = arith.constant 0 : index
    %c35 = arith.constant 35 : index
    %228 = vector.load %arg5[%c0_90, %c35] : memref<4x49xf32, #tpu.memory_space<vmem>>, vector<4x1xf32>
    %229 = vector.broadcast %191 : vector<1x256xf32> to vector<4x256xf32>
    %230 = arith.mulf %227, %229 : vector<4x256xf32>
    %231 = vector.broadcast %228 : vector<4x1xf32> to vector<4x256xf32>
    %232 = arith.mulf %230, %231 : vector<4x256xf32>
    %233 = arith.addf %226, %232 : vector<4x256xf32>
    %c0_91 = arith.constant 0 : index
    %c301 = arith.constant 301 : index
    %234 = vector.load %arg14[%c0_91, %c301] : memref<4x665xf32, #tpu.memory_space<vmem>>, vector<4x256xf32>
    %c0_92 = arith.constant 0 : index
    %c42 = arith.constant 42 : index
    %235 = vector.load %arg5[%c0_92, %c42] : memref<4x49xf32, #tpu.memory_space<vmem>>, vector<4x1xf32>
    %236 = vector.broadcast %191 : vector<1x256xf32> to vector<4x256xf32>
    %237 = arith.mulf %234, %236 : vector<4x256xf32>
    %238 = vector.broadcast %235 : vector<4x1xf32> to vector<4x256xf32>
    %239 = arith.mulf %237, %238 : vector<4x256xf32>
    %240 = arith.addf %233, %239 : vector<4x256xf32>
    %c4_93 = arith.constant 4 : index
    %c0_94 = arith.constant 0 : index
    %241 = vector.load %arg2[%c4_93, %c0_94] : memref<13x256xf32, #tpu.memory_space<vmem>>, vector<1x256xf32>
    %c0_95 = arith.constant 0 : index
    %c206 = arith.constant 206 : index
    %242 = vector.load %arg14[%c0_95, %c206] : memref<4x665xf32, #tpu.memory_space<vmem>>, vector<4x256xf32>
    %c0_96 = arith.constant 0 : index
    %c1_97 = arith.constant 1 : index
    %243 = vector.load %arg5[%c0_96, %c1_97] : memref<4x49xf32, #tpu.memory_space<vmem>>, vector<4x1xf32>
    %244 = vector.broadcast %241 : vector<1x256xf32> to vector<4x256xf32>
    %245 = arith.mulf %242, %244 : vector<4x256xf32>
    %246 = vector.broadcast %243 : vector<4x1xf32> to vector<4x256xf32>
    %247 = arith.mulf %245, %246 : vector<4x256xf32>
    %248 = arith.addf %240, %247 : vector<4x256xf32>
    %c0_98 = arith.constant 0 : index
    %c222_99 = arith.constant 222 : index
    %249 = vector.load %arg14[%c0_98, %c222_99] : memref<4x665xf32, #tpu.memory_space<vmem>>, vector<4x256xf32>
    %c0_100 = arith.constant 0 : index
    %c8_101 = arith.constant 8 : index
    %250 = vector.load %arg5[%c0_100, %c8_101] : memref<4x49xf32, #tpu.memory_space<vmem>>, vector<4x1xf32>
    %251 = vector.broadcast %241 : vector<1x256xf32> to vector<4x256xf32>
    %252 = arith.mulf %249, %251 : vector<4x256xf32>
    %253 = vector.broadcast %250 : vector<4x1xf32> to vector<4x256xf32>
    %254 = arith.mulf %252, %253 : vector<4x256xf32>
    %255 = arith.addf %248, %254 : vector<4x256xf32>
    %c0_102 = arith.constant 0 : index
    %c238_103 = arith.constant 238 : index
    %256 = vector.load %arg14[%c0_102, %c238_103] : memref<4x665xf32, #tpu.memory_space<vmem>>, vector<4x256xf32>
    %c0_104 = arith.constant 0 : index
    %c15_105 = arith.constant 15 : index
    %257 = vector.load %arg5[%c0_104, %c15_105] : memref<4x49xf32, #tpu.memory_space<vmem>>, vector<4x1xf32>
    %258 = vector.broadcast %241 : vector<1x256xf32> to vector<4x256xf32>
    %259 = arith.mulf %256, %258 : vector<4x256xf32>
    %260 = vector.broadcast %257 : vector<4x1xf32> to vector<4x256xf32>
    %261 = arith.mulf %259, %260 : vector<4x256xf32>
    %262 = arith.addf %255, %261 : vector<4x256xf32>
    %c0_106 = arith.constant 0 : index
    %c254_107 = arith.constant 254 : index
    %263 = vector.load %arg14[%c0_106, %c254_107] : memref<4x665xf32, #tpu.memory_space<vmem>>, vector<4x256xf32>
    %c0_108 = arith.constant 0 : index
    %c22_109 = arith.constant 22 : index
    %264 = vector.load %arg5[%c0_108, %c22_109] : memref<4x49xf32, #tpu.memory_space<vmem>>, vector<4x1xf32>
    %265 = vector.broadcast %241 : vector<1x256xf32> to vector<4x256xf32>
    %266 = arith.mulf %263, %265 : vector<4x256xf32>
    %267 = vector.broadcast %264 : vector<4x1xf32> to vector<4x256xf32>
    %268 = arith.mulf %266, %267 : vector<4x256xf32>
    %269 = arith.addf %262, %268 : vector<4x256xf32>
    %c0_110 = arith.constant 0 : index
    %c270_111 = arith.constant 270 : index
    %270 = vector.load %arg14[%c0_110, %c270_111] : memref<4x665xf32, #tpu.memory_space<vmem>>, vector<4x256xf32>
    %c0_112 = arith.constant 0 : index
    %c29 = arith.constant 29 : index
    %271 = vector.load %arg5[%c0_112, %c29] : memref<4x49xf32, #tpu.memory_space<vmem>>, vector<4x1xf32>
    %272 = vector.broadcast %241 : vector<1x256xf32> to vector<4x256xf32>
    %273 = arith.mulf %270, %272 : vector<4x256xf32>
    %274 = vector.broadcast %271 : vector<4x1xf32> to vector<4x256xf32>
    %275 = arith.mulf %273, %274 : vector<4x256xf32>
    %276 = arith.addf %269, %275 : vector<4x256xf32>
    %c0_113 = arith.constant 0 : index
    %c286_114 = arith.constant 286 : index
    %277 = vector.load %arg14[%c0_113, %c286_114] : memref<4x665xf32, #tpu.memory_space<vmem>>, vector<4x256xf32>
    %c0_115 = arith.constant 0 : index
    %c36 = arith.constant 36 : index
    %278 = vector.load %arg5[%c0_115, %c36] : memref<4x49xf32, #tpu.memory_space<vmem>>, vector<4x1xf32>
    %279 = vector.broadcast %241 : vector<1x256xf32> to vector<4x256xf32>
    %280 = arith.mulf %277, %279 : vector<4x256xf32>
    %281 = vector.broadcast %278 : vector<4x1xf32> to vector<4x256xf32>
    %282 = arith.mulf %280, %281 : vector<4x256xf32>
    %283 = arith.addf %276, %282 : vector<4x256xf32>
    %c0_116 = arith.constant 0 : index
    %c302 = arith.constant 302 : index
    %284 = vector.load %arg14[%c0_116, %c302] : memref<4x665xf32, #tpu.memory_space<vmem>>, vector<4x256xf32>
    %c0_117 = arith.constant 0 : index
    %c43 = arith.constant 43 : index
    %285 = vector.load %arg5[%c0_117, %c43] : memref<4x49xf32, #tpu.memory_space<vmem>>, vector<4x1xf32>
    %286 = vector.broadcast %241 : vector<1x256xf32> to vector<4x256xf32>
    %287 = arith.mulf %284, %286 : vector<4x256xf32>
    %288 = vector.broadcast %285 : vector<4x1xf32> to vector<4x256xf32>
    %289 = arith.mulf %287, %288 : vector<4x256xf32>
    %290 = arith.addf %283, %289 : vector<4x256xf32>
    %c5_118 = arith.constant 5 : index
    %c0_119 = arith.constant 0 : index
    %291 = vector.load %arg2[%c5_118, %c0_119] : memref<13x256xf32, #tpu.memory_space<vmem>>, vector<1x256xf32>
    %c0_120 = arith.constant 0 : index
    %c207 = arith.constant 207 : index
    %292 = vector.load %arg14[%c0_120, %c207] : memref<4x665xf32, #tpu.memory_space<vmem>>, vector<4x256xf32>
    %c0_121 = arith.constant 0 : index
    %c2_122 = arith.constant 2 : index
    %293 = vector.load %arg5[%c0_121, %c2_122] : memref<4x49xf32, #tpu.memory_space<vmem>>, vector<4x1xf32>
    %294 = vector.broadcast %291 : vector<1x256xf32> to vector<4x256xf32>
    %295 = arith.mulf %292, %294 : vector<4x256xf32>
    %296 = vector.broadcast %293 : vector<4x1xf32> to vector<4x256xf32>
    %297 = arith.mulf %295, %296 : vector<4x256xf32>
    %298 = arith.addf %290, %297 : vector<4x256xf32>
    %c0_123 = arith.constant 0 : index
    %c223_124 = arith.constant 223 : index
    %299 = vector.load %arg14[%c0_123, %c223_124] : memref<4x665xf32, #tpu.memory_space<vmem>>, vector<4x256xf32>
    %c0_125 = arith.constant 0 : index
    %c9_126 = arith.constant 9 : index
    %300 = vector.load %arg5[%c0_125, %c9_126] : memref<4x49xf32, #tpu.memory_space<vmem>>, vector<4x1xf32>
    %301 = vector.broadcast %291 : vector<1x256xf32> to vector<4x256xf32>
    %302 = arith.mulf %299, %301 : vector<4x256xf32>
    %303 = vector.broadcast %300 : vector<4x1xf32> to vector<4x256xf32>
    %304 = arith.mulf %302, %303 : vector<4x256xf32>
    %305 = arith.addf %298, %304 : vector<4x256xf32>
    %c0_127 = arith.constant 0 : index
    %c239_128 = arith.constant 239 : index
    %306 = vector.load %arg14[%c0_127, %c239_128] : memref<4x665xf32, #tpu.memory_space<vmem>>, vector<4x256xf32>
    %c0_129 = arith.constant 0 : index
    %c16_130 = arith.constant 16 : index
    %307 = vector.load %arg5[%c0_129, %c16_130] : memref<4x49xf32, #tpu.memory_space<vmem>>, vector<4x1xf32>
    %308 = vector.broadcast %291 : vector<1x256xf32> to vector<4x256xf32>
    %309 = arith.mulf %306, %308 : vector<4x256xf32>
    %310 = vector.broadcast %307 : vector<4x1xf32> to vector<4x256xf32>
    %311 = arith.mulf %309, %310 : vector<4x256xf32>
    %312 = arith.addf %305, %311 : vector<4x256xf32>
    %c0_131 = arith.constant 0 : index
    %c255_132 = arith.constant 255 : index
    %313 = vector.load %arg14[%c0_131, %c255_132] : memref<4x665xf32, #tpu.memory_space<vmem>>, vector<4x256xf32>
    %c0_133 = arith.constant 0 : index
    %c23_134 = arith.constant 23 : index
    %314 = vector.load %arg5[%c0_133, %c23_134] : memref<4x49xf32, #tpu.memory_space<vmem>>, vector<4x1xf32>
    %315 = vector.broadcast %291 : vector<1x256xf32> to vector<4x256xf32>
    %316 = arith.mulf %313, %315 : vector<4x256xf32>
    %317 = vector.broadcast %314 : vector<4x1xf32> to vector<4x256xf32>
    %318 = arith.mulf %316, %317 : vector<4x256xf32>
    %319 = arith.addf %312, %318 : vector<4x256xf32>
    %c0_135 = arith.constant 0 : index
    %c271_136 = arith.constant 271 : index
    %320 = vector.load %arg14[%c0_135, %c271_136] : memref<4x665xf32, #tpu.memory_space<vmem>>, vector<4x256xf32>
    %c0_137 = arith.constant 0 : index
    %c30 = arith.constant 30 : index
    %321 = vector.load %arg5[%c0_137, %c30] : memref<4x49xf32, #tpu.memory_space<vmem>>, vector<4x1xf32>
    %322 = vector.broadcast %291 : vector<1x256xf32> to vector<4x256xf32>
    %323 = arith.mulf %320, %322 : vector<4x256xf32>
    %324 = vector.broadcast %321 : vector<4x1xf32> to vector<4x256xf32>
    %325 = arith.mulf %323, %324 : vector<4x256xf32>
    %326 = arith.addf %319, %325 : vector<4x256xf32>
    %c0_138 = arith.constant 0 : index
    %c287_139 = arith.constant 287 : index
    %327 = vector.load %arg14[%c0_138, %c287_139] : memref<4x665xf32, #tpu.memory_space<vmem>>, vector<4x256xf32>
    %c0_140 = arith.constant 0 : index
    %c37 = arith.constant 37 : index
    %328 = vector.load %arg5[%c0_140, %c37] : memref<4x49xf32, #tpu.memory_space<vmem>>, vector<4x1xf32>
    %329 = vector.broadcast %291 : vector<1x256xf32> to vector<4x256xf32>
    %330 = arith.mulf %327, %329 : vector<4x256xf32>
    %331 = vector.broadcast %328 : vector<4x1xf32> to vector<4x256xf32>
    %332 = arith.mulf %330, %331 : vector<4x256xf32>
    %333 = arith.addf %326, %332 : vector<4x256xf32>
    %c0_141 = arith.constant 0 : index
    %c303 = arith.constant 303 : index
    %334 = vector.load %arg14[%c0_141, %c303] : memref<4x665xf32, #tpu.memory_space<vmem>>, vector<4x256xf32>
    %c0_142 = arith.constant 0 : index
    %c44 = arith.constant 44 : index
    %335 = vector.load %arg5[%c0_142, %c44] : memref<4x49xf32, #tpu.memory_space<vmem>>, vector<4x1xf32>
    %336 = vector.broadcast %291 : vector<1x256xf32> to vector<4x256xf32>
    %337 = arith.mulf %334, %336 : vector<4x256xf32>
    %338 = vector.broadcast %335 : vector<4x1xf32> to vector<4x256xf32>
    %339 = arith.mulf %337, %338 : vector<4x256xf32>
    %340 = arith.addf %333, %339 : vector<4x256xf32>
    %c6_143 = arith.constant 6 : index
    %c0_144 = arith.constant 0 : index
    %341 = vector.load %arg2[%c6_143, %c0_144] : memref<13x256xf32, #tpu.memory_space<vmem>>, vector<1x256xf32>
    %c0_145 = arith.constant 0 : index
    %c208 = arith.constant 208 : index
    %342 = vector.load %arg14[%c0_145, %c208] : memref<4x665xf32, #tpu.memory_space<vmem>>, vector<4x256xf32>
    %c0_146 = arith.constant 0 : index
    %c3_147 = arith.constant 3 : index
    %343 = vector.load %arg5[%c0_146, %c3_147] : memref<4x49xf32, #tpu.memory_space<vmem>>, vector<4x1xf32>
    %344 = vector.broadcast %341 : vector<1x256xf32> to vector<4x256xf32>
    %345 = arith.mulf %342, %344 : vector<4x256xf32>
    %346 = vector.broadcast %343 : vector<4x1xf32> to vector<4x256xf32>
    %347 = arith.mulf %345, %346 : vector<4x256xf32>
    %348 = arith.addf %340, %347 : vector<4x256xf32>
    %c0_148 = arith.constant 0 : index
    %c224_149 = arith.constant 224 : index
    %349 = vector.load %arg14[%c0_148, %c224_149] : memref<4x665xf32, #tpu.memory_space<vmem>>, vector<4x256xf32>
    %c0_150 = arith.constant 0 : index
    %c10_151 = arith.constant 10 : index
    %350 = vector.load %arg5[%c0_150, %c10_151] : memref<4x49xf32, #tpu.memory_space<vmem>>, vector<4x1xf32>
    %351 = vector.broadcast %341 : vector<1x256xf32> to vector<4x256xf32>
    %352 = arith.mulf %349, %351 : vector<4x256xf32>
    %353 = vector.broadcast %350 : vector<4x1xf32> to vector<4x256xf32>
    %354 = arith.mulf %352, %353 : vector<4x256xf32>
    %355 = arith.addf %348, %354 : vector<4x256xf32>
    %c0_152 = arith.constant 0 : index
    %c240_153 = arith.constant 240 : index
    %356 = vector.load %arg14[%c0_152, %c240_153] : memref<4x665xf32, #tpu.memory_space<vmem>>, vector<4x256xf32>
    %c0_154 = arith.constant 0 : index
    %c17_155 = arith.constant 17 : index
    %357 = vector.load %arg5[%c0_154, %c17_155] : memref<4x49xf32, #tpu.memory_space<vmem>>, vector<4x1xf32>
    %358 = vector.broadcast %341 : vector<1x256xf32> to vector<4x256xf32>
    %359 = arith.mulf %356, %358 : vector<4x256xf32>
    %360 = vector.broadcast %357 : vector<4x1xf32> to vector<4x256xf32>
    %361 = arith.mulf %359, %360 : vector<4x256xf32>
    %362 = arith.addf %355, %361 : vector<4x256xf32>
    %c0_156 = arith.constant 0 : index
    %c256_157 = arith.constant 256 : index
    %363 = vector.load %arg14[%c0_156, %c256_157] : memref<4x665xf32, #tpu.memory_space<vmem>>, vector<4x256xf32>
    %c0_158 = arith.constant 0 : index
    %c24_159 = arith.constant 24 : index
    %364 = vector.load %arg5[%c0_158, %c24_159] : memref<4x49xf32, #tpu.memory_space<vmem>>, vector<4x1xf32>
    %365 = vector.broadcast %341 : vector<1x256xf32> to vector<4x256xf32>
    %366 = arith.mulf %363, %365 : vector<4x256xf32>
    %367 = vector.broadcast %364 : vector<4x1xf32> to vector<4x256xf32>
    %368 = arith.mulf %366, %367 : vector<4x256xf32>
    %369 = arith.addf %362, %368 : vector<4x256xf32>
    %c0_160 = arith.constant 0 : index
    %c272_161 = arith.constant 272 : index
    %370 = vector.load %arg14[%c0_160, %c272_161] : memref<4x665xf32, #tpu.memory_space<vmem>>, vector<4x256xf32>
    %c0_162 = arith.constant 0 : index
    %c31 = arith.constant 31 : index
    %371 = vector.load %arg5[%c0_162, %c31] : memref<4x49xf32, #tpu.memory_space<vmem>>, vector<4x1xf32>
    %372 = vector.broadcast %341 : vector<1x256xf32> to vector<4x256xf32>
    %373 = arith.mulf %370, %372 : vector<4x256xf32>
    %374 = vector.broadcast %371 : vector<4x1xf32> to vector<4x256xf32>
    %375 = arith.mulf %373, %374 : vector<4x256xf32>
    %376 = arith.addf %369, %375 : vector<4x256xf32>
    %c0_163 = arith.constant 0 : index
    %c288_164 = arith.constant 288 : index
    %377 = vector.load %arg14[%c0_163, %c288_164] : memref<4x665xf32, #tpu.memory_space<vmem>>, vector<4x256xf32>
    %c0_165 = arith.constant 0 : index
    %c38 = arith.constant 38 : index
    %378 = vector.load %arg5[%c0_165, %c38] : memref<4x49xf32, #tpu.memory_space<vmem>>, vector<4x1xf32>
    %379 = vector.broadcast %341 : vector<1x256xf32> to vector<4x256xf32>
    %380 = arith.mulf %377, %379 : vector<4x256xf32>
    %381 = vector.broadcast %378 : vector<4x1xf32> to vector<4x256xf32>
    %382 = arith.mulf %380, %381 : vector<4x256xf32>
    %383 = arith.addf %376, %382 : vector<4x256xf32>
    %c0_166 = arith.constant 0 : index
    %c304 = arith.constant 304 : index
    %384 = vector.load %arg14[%c0_166, %c304] : memref<4x665xf32, #tpu.memory_space<vmem>>, vector<4x256xf32>
    %c0_167 = arith.constant 0 : index
    %c45 = arith.constant 45 : index
    %385 = vector.load %arg5[%c0_167, %c45] : memref<4x49xf32, #tpu.memory_space<vmem>>, vector<4x1xf32>
    %386 = vector.broadcast %341 : vector<1x256xf32> to vector<4x256xf32>
    %387 = arith.mulf %384, %386 : vector<4x256xf32>
    %388 = vector.broadcast %385 : vector<4x1xf32> to vector<4x256xf32>
    %389 = arith.mulf %387, %388 : vector<4x256xf32>
    %390 = arith.addf %383, %389 : vector<4x256xf32>
    %c7_168 = arith.constant 7 : index
    %c0_169 = arith.constant 0 : index
    %391 = vector.load %arg2[%c7_168, %c0_169] : memref<13x256xf32, #tpu.memory_space<vmem>>, vector<1x256xf32>
    %c0_170 = arith.constant 0 : index
    %c209 = arith.constant 209 : index
    %392 = vector.load %arg14[%c0_170, %c209] : memref<4x665xf32, #tpu.memory_space<vmem>>, vector<4x256xf32>
    %c0_171 = arith.constant 0 : index
    %c4_172 = arith.constant 4 : index
    %393 = vector.load %arg5[%c0_171, %c4_172] : memref<4x49xf32, #tpu.memory_space<vmem>>, vector<4x1xf32>
    %394 = vector.broadcast %391 : vector<1x256xf32> to vector<4x256xf32>
    %395 = arith.mulf %392, %394 : vector<4x256xf32>
    %396 = vector.broadcast %393 : vector<4x1xf32> to vector<4x256xf32>
    %397 = arith.mulf %395, %396 : vector<4x256xf32>
    %398 = arith.addf %390, %397 : vector<4x256xf32>
    %c0_173 = arith.constant 0 : index
    %c225_174 = arith.constant 225 : index
    %399 = vector.load %arg14[%c0_173, %c225_174] : memref<4x665xf32, #tpu.memory_space<vmem>>, vector<4x256xf32>
    %c0_175 = arith.constant 0 : index
    %c11_176 = arith.constant 11 : index
    %400 = vector.load %arg5[%c0_175, %c11_176] : memref<4x49xf32, #tpu.memory_space<vmem>>, vector<4x1xf32>
    %401 = vector.broadcast %391 : vector<1x256xf32> to vector<4x256xf32>
    %402 = arith.mulf %399, %401 : vector<4x256xf32>
    %403 = vector.broadcast %400 : vector<4x1xf32> to vector<4x256xf32>
    %404 = arith.mulf %402, %403 : vector<4x256xf32>
    %405 = arith.addf %398, %404 : vector<4x256xf32>
    %c0_177 = arith.constant 0 : index
    %c241_178 = arith.constant 241 : index
    %406 = vector.load %arg14[%c0_177, %c241_178] : memref<4x665xf32, #tpu.memory_space<vmem>>, vector<4x256xf32>
    %c0_179 = arith.constant 0 : index
    %c18_180 = arith.constant 18 : index
    %407 = vector.load %arg5[%c0_179, %c18_180] : memref<4x49xf32, #tpu.memory_space<vmem>>, vector<4x1xf32>
    %408 = vector.broadcast %391 : vector<1x256xf32> to vector<4x256xf32>
    %409 = arith.mulf %406, %408 : vector<4x256xf32>
    %410 = vector.broadcast %407 : vector<4x1xf32> to vector<4x256xf32>
    %411 = arith.mulf %409, %410 : vector<4x256xf32>
    %412 = arith.addf %405, %411 : vector<4x256xf32>
    %c0_181 = arith.constant 0 : index
    %c257_182 = arith.constant 257 : index
    %413 = vector.load %arg14[%c0_181, %c257_182] : memref<4x665xf32, #tpu.memory_space<vmem>>, vector<4x256xf32>
    %c0_183 = arith.constant 0 : index
    %c25 = arith.constant 25 : index
    %414 = vector.load %arg5[%c0_183, %c25] : memref<4x49xf32, #tpu.memory_space<vmem>>, vector<4x1xf32>
    %415 = vector.broadcast %391 : vector<1x256xf32> to vector<4x256xf32>
    %416 = arith.mulf %413, %415 : vector<4x256xf32>
    %417 = vector.broadcast %414 : vector<4x1xf32> to vector<4x256xf32>
    %418 = arith.mulf %416, %417 : vector<4x256xf32>
    %419 = arith.addf %412, %418 : vector<4x256xf32>
    %c0_184 = arith.constant 0 : index
    %c273_185 = arith.constant 273 : index
    %420 = vector.load %arg14[%c0_184, %c273_185] : memref<4x665xf32, #tpu.memory_space<vmem>>, vector<4x256xf32>
    %c0_186 = arith.constant 0 : index
    %c32 = arith.constant 32 : index
    %421 = vector.load %arg5[%c0_186, %c32] : memref<4x49xf32, #tpu.memory_space<vmem>>, vector<4x1xf32>
    %422 = vector.broadcast %391 : vector<1x256xf32> to vector<4x256xf32>
    %423 = arith.mulf %420, %422 : vector<4x256xf32>
    %424 = vector.broadcast %421 : vector<4x1xf32> to vector<4x256xf32>
    %425 = arith.mulf %423, %424 : vector<4x256xf32>
    %426 = arith.addf %419, %425 : vector<4x256xf32>
    %c0_187 = arith.constant 0 : index
    %c289_188 = arith.constant 289 : index
    %427 = vector.load %arg14[%c0_187, %c289_188] : memref<4x665xf32, #tpu.memory_space<vmem>>, vector<4x256xf32>
    %c0_189 = arith.constant 0 : index
    %c39 = arith.constant 39 : index
    %428 = vector.load %arg5[%c0_189, %c39] : memref<4x49xf32, #tpu.memory_space<vmem>>, vector<4x1xf32>
    %429 = vector.broadcast %391 : vector<1x256xf32> to vector<4x256xf32>
    %430 = arith.mulf %427, %429 : vector<4x256xf32>
    %431 = vector.broadcast %428 : vector<4x1xf32> to vector<4x256xf32>
    %432 = arith.mulf %430, %431 : vector<4x256xf32>
    %433 = arith.addf %426, %432 : vector<4x256xf32>
    %c0_190 = arith.constant 0 : index
    %c305 = arith.constant 305 : index
    %434 = vector.load %arg14[%c0_190, %c305] : memref<4x665xf32, #tpu.memory_space<vmem>>, vector<4x256xf32>
    %c0_191 = arith.constant 0 : index
    %c46 = arith.constant 46 : index
    %435 = vector.load %arg5[%c0_191, %c46] : memref<4x49xf32, #tpu.memory_space<vmem>>, vector<4x1xf32>
    %436 = vector.broadcast %391 : vector<1x256xf32> to vector<4x256xf32>
    %437 = arith.mulf %434, %436 : vector<4x256xf32>
    %438 = vector.broadcast %435 : vector<4x1xf32> to vector<4x256xf32>
    %439 = arith.mulf %437, %438 : vector<4x256xf32>
    %440 = arith.addf %433, %439 : vector<4x256xf32>
    %c8_192 = arith.constant 8 : index
    %c0_193 = arith.constant 0 : index
    %441 = vector.load %arg2[%c8_192, %c0_193] : memref<13x256xf32, #tpu.memory_space<vmem>>, vector<1x256xf32>
    %c0_194 = arith.constant 0 : index
    %c210 = arith.constant 210 : index
    %442 = vector.load %arg14[%c0_194, %c210] : memref<4x665xf32, #tpu.memory_space<vmem>>, vector<4x256xf32>
    %c0_195 = arith.constant 0 : index
    %c5_196 = arith.constant 5 : index
    %443 = vector.load %arg5[%c0_195, %c5_196] : memref<4x49xf32, #tpu.memory_space<vmem>>, vector<4x1xf32>
    %444 = vector.broadcast %441 : vector<1x256xf32> to vector<4x256xf32>
    %445 = arith.mulf %442, %444 : vector<4x256xf32>
    %446 = vector.broadcast %443 : vector<4x1xf32> to vector<4x256xf32>
    %447 = arith.mulf %445, %446 : vector<4x256xf32>
    %448 = arith.addf %440, %447 : vector<4x256xf32>
    %c0_197 = arith.constant 0 : index
    %c226_198 = arith.constant 226 : index
    %449 = vector.load %arg14[%c0_197, %c226_198] : memref<4x665xf32, #tpu.memory_space<vmem>>, vector<4x256xf32>
    %c0_199 = arith.constant 0 : index
    %c12_200 = arith.constant 12 : index
    %450 = vector.load %arg5[%c0_199, %c12_200] : memref<4x49xf32, #tpu.memory_space<vmem>>, vector<4x1xf32>
    %451 = vector.broadcast %441 : vector<1x256xf32> to vector<4x256xf32>
    %452 = arith.mulf %449, %451 : vector<4x256xf32>
    %453 = vector.broadcast %450 : vector<4x1xf32> to vector<4x256xf32>
    %454 = arith.mulf %452, %453 : vector<4x256xf32>
    %455 = arith.addf %448, %454 : vector<4x256xf32>
    %c0_201 = arith.constant 0 : index
    %c242_202 = arith.constant 242 : index
    %456 = vector.load %arg14[%c0_201, %c242_202] : memref<4x665xf32, #tpu.memory_space<vmem>>, vector<4x256xf32>
    %c0_203 = arith.constant 0 : index
    %c19_204 = arith.constant 19 : index
    %457 = vector.load %arg5[%c0_203, %c19_204] : memref<4x49xf32, #tpu.memory_space<vmem>>, vector<4x1xf32>
    %458 = vector.broadcast %441 : vector<1x256xf32> to vector<4x256xf32>
    %459 = arith.mulf %456, %458 : vector<4x256xf32>
    %460 = vector.broadcast %457 : vector<4x1xf32> to vector<4x256xf32>
    %461 = arith.mulf %459, %460 : vector<4x256xf32>
    %462 = arith.addf %455, %461 : vector<4x256xf32>
    %c0_205 = arith.constant 0 : index
    %c258_206 = arith.constant 258 : index
    %463 = vector.load %arg14[%c0_205, %c258_206] : memref<4x665xf32, #tpu.memory_space<vmem>>, vector<4x256xf32>
    %c0_207 = arith.constant 0 : index
    %c26 = arith.constant 26 : index
    %464 = vector.load %arg5[%c0_207, %c26] : memref<4x49xf32, #tpu.memory_space<vmem>>, vector<4x1xf32>
    %465 = vector.broadcast %441 : vector<1x256xf32> to vector<4x256xf32>
    %466 = arith.mulf %463, %465 : vector<4x256xf32>
    %467 = vector.broadcast %464 : vector<4x1xf32> to vector<4x256xf32>
    %468 = arith.mulf %466, %467 : vector<4x256xf32>
    %469 = arith.addf %462, %468 : vector<4x256xf32>
    %c0_208 = arith.constant 0 : index
    %c274_209 = arith.constant 274 : index
    %470 = vector.load %arg14[%c0_208, %c274_209] : memref<4x665xf32, #tpu.memory_space<vmem>>, vector<4x256xf32>
    %c0_210 = arith.constant 0 : index
    %c33 = arith.constant 33 : index
    %471 = vector.load %arg5[%c0_210, %c33] : memref<4x49xf32, #tpu.memory_space<vmem>>, vector<4x1xf32>
    %472 = vector.broadcast %441 : vector<1x256xf32> to vector<4x256xf32>
    %473 = arith.mulf %470, %472 : vector<4x256xf32>
    %474 = vector.broadcast %471 : vector<4x1xf32> to vector<4x256xf32>
    %475 = arith.mulf %473, %474 : vector<4x256xf32>
    %476 = arith.addf %469, %475 : vector<4x256xf32>
    %c0_211 = arith.constant 0 : index
    %c290_212 = arith.constant 290 : index
    %477 = vector.load %arg14[%c0_211, %c290_212] : memref<4x665xf32, #tpu.memory_space<vmem>>, vector<4x256xf32>
    %c0_213 = arith.constant 0 : index
    %c40 = arith.constant 40 : index
    %478 = vector.load %arg5[%c0_213, %c40] : memref<4x49xf32, #tpu.memory_space<vmem>>, vector<4x1xf32>
    %479 = vector.broadcast %441 : vector<1x256xf32> to vector<4x256xf32>
    %480 = arith.mulf %477, %479 : vector<4x256xf32>
    %481 = vector.broadcast %478 : vector<4x1xf32> to vector<4x256xf32>
    %482 = arith.mulf %480, %481 : vector<4x256xf32>
    %483 = arith.addf %476, %482 : vector<4x256xf32>
    %c0_214 = arith.constant 0 : index
    %c306 = arith.constant 306 : index
    %484 = vector.load %arg14[%c0_214, %c306] : memref<4x665xf32, #tpu.memory_space<vmem>>, vector<4x256xf32>
    %c0_215 = arith.constant 0 : index
    %c47 = arith.constant 47 : index
    %485 = vector.load %arg5[%c0_215, %c47] : memref<4x49xf32, #tpu.memory_space<vmem>>, vector<4x1xf32>
    %486 = vector.broadcast %441 : vector<1x256xf32> to vector<4x256xf32>
    %487 = arith.mulf %484, %486 : vector<4x256xf32>
    %488 = vector.broadcast %485 : vector<4x1xf32> to vector<4x256xf32>
    %489 = arith.mulf %487, %488 : vector<4x256xf32>
    %490 = arith.addf %483, %489 : vector<4x256xf32>
    %c9_216 = arith.constant 9 : index
    %c0_217 = arith.constant 0 : index
    %491 = vector.load %arg2[%c9_216, %c0_217] : memref<13x256xf32, #tpu.memory_space<vmem>>, vector<1x256xf32>
    %c0_218 = arith.constant 0 : index
    %c211 = arith.constant 211 : index
    %492 = vector.load %arg14[%c0_218, %c211] : memref<4x665xf32, #tpu.memory_space<vmem>>, vector<4x256xf32>
    %c0_219 = arith.constant 0 : index
    %c6_220 = arith.constant 6 : index
    %493 = vector.load %arg5[%c0_219, %c6_220] : memref<4x49xf32, #tpu.memory_space<vmem>>, vector<4x1xf32>
    %494 = vector.broadcast %491 : vector<1x256xf32> to vector<4x256xf32>
    %495 = arith.mulf %492, %494 : vector<4x256xf32>
    %496 = vector.broadcast %493 : vector<4x1xf32> to vector<4x256xf32>
    %497 = arith.mulf %495, %496 : vector<4x256xf32>
    %498 = arith.addf %490, %497 : vector<4x256xf32>
    %c0_221 = arith.constant 0 : index
    %c227 = arith.constant 227 : index
    %499 = vector.load %arg14[%c0_221, %c227] : memref<4x665xf32, #tpu.memory_space<vmem>>, vector<4x256xf32>
    %c0_222 = arith.constant 0 : index
    %c13_223 = arith.constant 13 : index
    %500 = vector.load %arg5[%c0_222, %c13_223] : memref<4x49xf32, #tpu.memory_space<vmem>>, vector<4x1xf32>
    %501 = vector.broadcast %491 : vector<1x256xf32> to vector<4x256xf32>
    %502 = arith.mulf %499, %501 : vector<4x256xf32>
    %503 = vector.broadcast %500 : vector<4x1xf32> to vector<4x256xf32>
    %504 = arith.mulf %502, %503 : vector<4x256xf32>
    %505 = arith.addf %498, %504 : vector<4x256xf32>
    %c0_224 = arith.constant 0 : index
    %c243 = arith.constant 243 : index
    %506 = vector.load %arg14[%c0_224, %c243] : memref<4x665xf32, #tpu.memory_space<vmem>>, vector<4x256xf32>
    %c0_225 = arith.constant 0 : index
    %c20_226 = arith.constant 20 : index
    %507 = vector.load %arg5[%c0_225, %c20_226] : memref<4x49xf32, #tpu.memory_space<vmem>>, vector<4x1xf32>
    %508 = vector.broadcast %491 : vector<1x256xf32> to vector<4x256xf32>
    %509 = arith.mulf %506, %508 : vector<4x256xf32>
    %510 = vector.broadcast %507 : vector<4x1xf32> to vector<4x256xf32>
    %511 = arith.mulf %509, %510 : vector<4x256xf32>
    %512 = arith.addf %505, %511 : vector<4x256xf32>
    %c0_227 = arith.constant 0 : index
    %c259 = arith.constant 259 : index
    %513 = vector.load %arg14[%c0_227, %c259] : memref<4x665xf32, #tpu.memory_space<vmem>>, vector<4x256xf32>
    %c0_228 = arith.constant 0 : index
    %c27 = arith.constant 27 : index
    %514 = vector.load %arg5[%c0_228, %c27] : memref<4x49xf32, #tpu.memory_space<vmem>>, vector<4x1xf32>
    %515 = vector.broadcast %491 : vector<1x256xf32> to vector<4x256xf32>
    %516 = arith.mulf %513, %515 : vector<4x256xf32>
    %517 = vector.broadcast %514 : vector<4x1xf32> to vector<4x256xf32>
    %518 = arith.mulf %516, %517 : vector<4x256xf32>
    %519 = arith.addf %512, %518 : vector<4x256xf32>
    %c0_229 = arith.constant 0 : index
    %c275 = arith.constant 275 : index
    %520 = vector.load %arg14[%c0_229, %c275] : memref<4x665xf32, #tpu.memory_space<vmem>>, vector<4x256xf32>
    %c0_230 = arith.constant 0 : index
    %c34 = arith.constant 34 : index
    %521 = vector.load %arg5[%c0_230, %c34] : memref<4x49xf32, #tpu.memory_space<vmem>>, vector<4x1xf32>
    %522 = vector.broadcast %491 : vector<1x256xf32> to vector<4x256xf32>
    %523 = arith.mulf %520, %522 : vector<4x256xf32>
    %524 = vector.broadcast %521 : vector<4x1xf32> to vector<4x256xf32>
    %525 = arith.mulf %523, %524 : vector<4x256xf32>
    %526 = arith.addf %519, %525 : vector<4x256xf32>
    %c0_231 = arith.constant 0 : index
    %c291 = arith.constant 291 : index
    %527 = vector.load %arg14[%c0_231, %c291] : memref<4x665xf32, #tpu.memory_space<vmem>>, vector<4x256xf32>
    %c0_232 = arith.constant 0 : index
    %c41 = arith.constant 41 : index
    %528 = vector.load %arg5[%c0_232, %c41] : memref<4x49xf32, #tpu.memory_space<vmem>>, vector<4x1xf32>
    %529 = vector.broadcast %491 : vector<1x256xf32> to vector<4x256xf32>
    %530 = arith.mulf %527, %529 : vector<4x256xf32>
    %531 = vector.broadcast %528 : vector<4x1xf32> to vector<4x256xf32>
    %532 = arith.mulf %530, %531 : vector<4x256xf32>
    %533 = arith.addf %526, %532 : vector<4x256xf32>
    %c0_233 = arith.constant 0 : index
    %c307 = arith.constant 307 : index
    %534 = vector.load %arg14[%c0_233, %c307] : memref<4x665xf32, #tpu.memory_space<vmem>>, vector<4x256xf32>
    %c0_234 = arith.constant 0 : index
    %c48 = arith.constant 48 : index
    %535 = vector.load %arg5[%c0_234, %c48] : memref<4x49xf32, #tpu.memory_space<vmem>>, vector<4x1xf32>
    %536 = vector.broadcast %491 : vector<1x256xf32> to vector<4x256xf32>
    %537 = arith.mulf %534, %536 : vector<4x256xf32>
    %538 = vector.broadcast %535 : vector<4x1xf32> to vector<4x256xf32>
    %539 = arith.mulf %537, %538 : vector<4x256xf32>
    %540 = arith.addf %533, %539 : vector<4x256xf32>
    %c0_235 = arith.constant 0 : index
    %c0_236 = arith.constant 0 : index
    %541 = vector.load %arg6[%c0_235, %c0_236] : memref<4x1xf32, #tpu.memory_space<vmem>>, vector<4x1xf32>
    %542 = vector.broadcast %541 : vector<4x1xf32> to vector<4x256xf32>
    %543 = arith.addf %540, %542 : vector<4x256xf32>
    %c0_237 = arith.constant 0 : index
    %c256_238 = arith.constant 256 : index
    %544 = vector.load %arg14[%c0_237, %c256_238] : memref<4x665xf32, #tpu.memory_space<vmem>>, vector<4x256xf32>
    tpu.vector_store %arg14[%c0_237, %c256_238], %543 {strides = array<i32>} : memref<4x665xf32, #tpu.memory_space<vmem>>, vector<4x256xf32>,
    %cst_239 = arith.constant 0.000000e+00 : f32
    %545 = vector.broadcast %cst_239 : f32 to vector<4x256xf32>
    %c1_240 = arith.constant 1 : index
    %c0_241 = arith.constant 0 : index
    %546 = vector.load %arg2[%c1_240, %c0_241] : memref<13x256xf32, #tpu.memory_space<vmem>>, vector<1x256xf32>
    %c0_242 = arith.constant 0 : index
    %c154 = arith.constant 154 : index
    %547 = vector.load %arg14[%c0_242, %c154] : memref<4x665xf32, #tpu.memory_space<vmem>>, vector<4x256xf32>
    %c0_243 = arith.constant 0 : index
    %c0_244 = arith.constant 0 : index
    %548 = vector.load %arg7[%c0_243, %c0_244] : memref<4x49xf32, #tpu.memory_space<vmem>>, vector<4x1xf32>
    %549 = vector.broadcast %546 : vector<1x256xf32> to vector<4x256xf32>
    %550 = arith.mulf %547, %549 : vector<4x256xf32>
    %551 = vector.broadcast %548 : vector<4x1xf32> to vector<4x256xf32>
    %552 = arith.mulf %550, %551 : vector<4x256xf32>
    %553 = arith.addf %545, %552 : vector<4x256xf32>
    %c0_245 = arith.constant 0 : index
    %c186 = arith.constant 186 : index
    %554 = vector.load %arg14[%c0_245, %c186] : memref<4x665xf32, #tpu.memory_space<vmem>>, vector<4x256xf32>
    %c0_246 = arith.constant 0 : index
    %c7_247 = arith.constant 7 : index
    %555 = vector.load %arg7[%c0_246, %c7_247] : memref<4x49xf32, #tpu.memory_space<vmem>>, vector<4x1xf32>
    %556 = vector.broadcast %546 : vector<1x256xf32> to vector<4x256xf32>
    %557 = arith.mulf %554, %556 : vector<4x256xf32>
    %558 = vector.broadcast %555 : vector<4x1xf32> to vector<4x256xf32>
    %559 = arith.mulf %557, %558 : vector<4x256xf32>
    %560 = arith.addf %553, %559 : vector<4x256xf32>
    %c0_248 = arith.constant 0 : index
    %c218 = arith.constant 218 : index
    %561 = vector.load %arg14[%c0_248, %c218] : memref<4x665xf32, #tpu.memory_space<vmem>>, vector<4x256xf32>
    %c0_249 = arith.constant 0 : index
    %c14_250 = arith.constant 14 : index
    %562 = vector.load %arg7[%c0_249, %c14_250] : memref<4x49xf32, #tpu.memory_space<vmem>>, vector<4x1xf32>
    %563 = vector.broadcast %546 : vector<1x256xf32> to vector<4x256xf32>
    %564 = arith.mulf %561, %563 : vector<4x256xf32>
    %565 = vector.broadcast %562 : vector<4x1xf32> to vector<4x256xf32>
    %566 = arith.mulf %564, %565 : vector<4x256xf32>
    %567 = arith.addf %560, %566 : vector<4x256xf32>
    %c0_251 = arith.constant 0 : index
    %c250 = arith.constant 250 : index
    %568 = vector.load %arg14[%c0_251, %c250] : memref<4x665xf32, #tpu.memory_space<vmem>>, vector<4x256xf32>
    %c0_252 = arith.constant 0 : index
    %c21_253 = arith.constant 21 : index
    %569 = vector.load %arg7[%c0_252, %c21_253] : memref<4x49xf32, #tpu.memory_space<vmem>>, vector<4x1xf32>
    %570 = vector.broadcast %546 : vector<1x256xf32> to vector<4x256xf32>
    %571 = arith.mulf %568, %570 : vector<4x256xf32>
    %572 = vector.broadcast %569 : vector<4x1xf32> to vector<4x256xf32>
    %573 = arith.mulf %571, %572 : vector<4x256xf32>
    %574 = arith.addf %567, %573 : vector<4x256xf32>
    %c0_254 = arith.constant 0 : index
    %c282 = arith.constant 282 : index
    %575 = vector.load %arg14[%c0_254, %c282] : memref<4x665xf32, #tpu.memory_space<vmem>>, vector<4x256xf32>
    %c0_255 = arith.constant 0 : index
    %c28_256 = arith.constant 28 : index
    %576 = vector.load %arg7[%c0_255, %c28_256] : memref<4x49xf32, #tpu.memory_space<vmem>>, vector<4x1xf32>
    %577 = vector.broadcast %546 : vector<1x256xf32> to vector<4x256xf32>
    %578 = arith.mulf %575, %577 : vector<4x256xf32>
    %579 = vector.broadcast %576 : vector<4x1xf32> to vector<4x256xf32>
    %580 = arith.mulf %578, %579 : vector<4x256xf32>
    %581 = arith.addf %574, %580 : vector<4x256xf32>
    %c0_257 = arith.constant 0 : index
    %c314 = arith.constant 314 : index
    %582 = vector.load %arg14[%c0_257, %c314] : memref<4x665xf32, #tpu.memory_space<vmem>>, vector<4x256xf32>
    %c0_258 = arith.constant 0 : index
    %c35_259 = arith.constant 35 : index
    %583 = vector.load %arg7[%c0_258, %c35_259] : memref<4x49xf32, #tpu.memory_space<vmem>>, vector<4x1xf32>
    %584 = vector.broadcast %546 : vector<1x256xf32> to vector<4x256xf32>
    %585 = arith.mulf %582, %584 : vector<4x256xf32>
    %586 = vector.broadcast %583 : vector<4x1xf32> to vector<4x256xf32>
    %587 = arith.mulf %585, %586 : vector<4x256xf32>
    %588 = arith.addf %581, %587 : vector<4x256xf32>
    %c0_260 = arith.constant 0 : index
    %c346 = arith.constant 346 : index
    %589 = vector.load %arg14[%c0_260, %c346] : memref<4x665xf32, #tpu.memory_space<vmem>>, vector<4x256xf32>
    %c0_261 = arith.constant 0 : index
    %c42_262 = arith.constant 42 : index
    %590 = vector.load %arg7[%c0_261, %c42_262] : memref<4x49xf32, #tpu.memory_space<vmem>>, vector<4x1xf32>
    %591 = vector.broadcast %546 : vector<1x256xf32> to vector<4x256xf32>
    %592 = arith.mulf %589, %591 : vector<4x256xf32>
    %593 = vector.broadcast %590 : vector<4x1xf32> to vector<4x256xf32>
    %594 = arith.mulf %592, %593 : vector<4x256xf32>
    %595 = arith.addf %588, %594 : vector<4x256xf32>
    %c2_263 = arith.constant 2 : index
    %c0_264 = arith.constant 0 : index
    %596 = vector.load %arg2[%c2_263, %c0_264] : memref<13x256xf32, #tpu.memory_space<vmem>>, vector<1x256xf32>
    %c0_265 = arith.constant 0 : index
    %c156 = arith.constant 156 : index
    %597 = vector.load %arg14[%c0_265, %c156] : memref<4x665xf32, #tpu.memory_space<vmem>>, vector<4x256xf32>
    %c0_266 = arith.constant 0 : index
    %c1_267 = arith.constant 1 : index
    %598 = vector.load %arg7[%c0_266, %c1_267] : memref<4x49xf32, #tpu.memory_space<vmem>>, vector<4x1xf32>
    %599 = vector.broadcast %596 : vector<1x256xf32> to vector<4x256xf32>
    %600 = arith.mulf %597, %599 : vector<4x256xf32>
    %601 = vector.broadcast %598 : vector<4x1xf32> to vector<4x256xf32>
    %602 = arith.mulf %600, %601 : vector<4x256xf32>
    %603 = arith.addf %595, %602 : vector<4x256xf32>
    %c0_268 = arith.constant 0 : index
    %c188 = arith.constant 188 : index
    %604 = vector.load %arg14[%c0_268, %c188] : memref<4x665xf32, #tpu.memory_space<vmem>>, vector<4x256xf32>
    %c0_269 = arith.constant 0 : index
    %c8_270 = arith.constant 8 : index
    %605 = vector.load %arg7[%c0_269, %c8_270] : memref<4x49xf32, #tpu.memory_space<vmem>>, vector<4x1xf32>
    %606 = vector.broadcast %596 : vector<1x256xf32> to vector<4x256xf32>
    %607 = arith.mulf %604, %606 : vector<4x256xf32>
    %608 = vector.broadcast %605 : vector<4x1xf32> to vector<4x256xf32>
    %609 = arith.mulf %607, %608 : vector<4x256xf32>
    %610 = arith.addf %603, %609 : vector<4x256xf32>
    %c0_271 = arith.constant 0 : index
    %c220 = arith.constant 220 : index
    %611 = vector.load %arg14[%c0_271, %c220] : memref<4x665xf32, #tpu.memory_space<vmem>>, vector<4x256xf32>
    %c0_272 = arith.constant 0 : index
    %c15_273 = arith.constant 15 : index
    %612 = vector.load %arg7[%c0_272, %c15_273] : memref<4x49xf32, #tpu.memory_space<vmem>>, vector<4x1xf32>
    %613 = vector.broadcast %596 : vector<1x256xf32> to vector<4x256xf32>
    %614 = arith.mulf %611, %613 : vector<4x256xf32>
    %615 = vector.broadcast %612 : vector<4x1xf32> to vector<4x256xf32>
    %616 = arith.mulf %614, %615 : vector<4x256xf32>
    %617 = arith.addf %610, %616 : vector<4x256xf32>
    %c0_274 = arith.constant 0 : index
    %c252 = arith.constant 252 : index
    %618 = vector.load %arg14[%c0_274, %c252] : memref<4x665xf32, #tpu.memory_space<vmem>>, vector<4x256xf32>
    %c0_275 = arith.constant 0 : index
    %c22_276 = arith.constant 22 : index
    %619 = vector.load %arg7[%c0_275, %c22_276] : memref<4x49xf32, #tpu.memory_space<vmem>>, vector<4x1xf32>
    %620 = vector.broadcast %596 : vector<1x256xf32> to vector<4x256xf32>
    %621 = arith.mulf %618, %620 : vector<4x256xf32>
    %622 = vector.broadcast %619 : vector<4x1xf32> to vector<4x256xf32>
    %623 = arith.mulf %621, %622 : vector<4x256xf32>
    %624 = arith.addf %617, %623 : vector<4x256xf32>
    %c0_277 = arith.constant 0 : index
    %c284 = arith.constant 284 : index
    %625 = vector.load %arg14[%c0_277, %c284] : memref<4x665xf32, #tpu.memory_space<vmem>>, vector<4x256xf32>
    %c0_278 = arith.constant 0 : index
    %c29_279 = arith.constant 29 : index
    %626 = vector.load %arg7[%c0_278, %c29_279] : memref<4x49xf32, #tpu.memory_space<vmem>>, vector<4x1xf32>
    %627 = vector.broadcast %596 : vector<1x256xf32> to vector<4x256xf32>
    %628 = arith.mulf %625, %627 : vector<4x256xf32>
    %629 = vector.broadcast %626 : vector<4x1xf32> to vector<4x256xf32>
    %630 = arith.mulf %628, %629 : vector<4x256xf32>
    %631 = arith.addf %624, %630 : vector<4x256xf32>
    %c0_280 = arith.constant 0 : index
    %c316 = arith.constant 316 : index
    %632 = vector.load %arg14[%c0_280, %c316] : memref<4x665xf32, #tpu.memory_space<vmem>>, vector<4x256xf32>
    %c0_281 = arith.constant 0 : index
    %c36_282 = arith.constant 36 : index
    %633 = vector.load %arg7[%c0_281, %c36_282] : memref<4x49xf32, #tpu.memory_space<vmem>>, vector<4x1xf32>
    %634 = vector.broadcast %596 : vector<1x256xf32> to vector<4x256xf32>
    %635 = arith.mulf %632, %634 : vector<4x256xf32>
    %636 = vector.broadcast %633 : vector<4x1xf32> to vector<4x256xf32>
    %637 = arith.mulf %635, %636 : vector<4x256xf32>
    %638 = arith.addf %631, %637 : vector<4x256xf32>
    %c0_283 = arith.constant 0 : index
    %c348 = arith.constant 348 : index
    %639 = vector.load %arg14[%c0_283, %c348] : memref<4x665xf32, #tpu.memory_space<vmem>>, vector<4x256xf32>
    %c0_284 = arith.constant 0 : index
    %c43_285 = arith.constant 43 : index
    %640 = vector.load %arg7[%c0_284, %c43_285] : memref<4x49xf32, #tpu.memory_space<vmem>>, vector<4x1xf32>
    %641 = vector.broadcast %596 : vector<1x256xf32> to vector<4x256xf32>
    %642 = arith.mulf %639, %641 : vector<4x256xf32>
    %643 = vector.broadcast %640 : vector<4x1xf32> to vector<4x256xf32>
    %644 = arith.mulf %642, %643 : vector<4x256xf32>
    %645 = arith.addf %638, %644 : vector<4x256xf32>
    %c4_286 = arith.constant 4 : index
    %c0_287 = arith.constant 0 : index
    %646 = vector.load %arg2[%c4_286, %c0_287] : memref<13x256xf32, #tpu.memory_space<vmem>>, vector<1x256xf32>
    %c0_288 = arith.constant 0 : index
    %c158 = arith.constant 158 : index
    %647 = vector.load %arg14[%c0_288, %c158] : memref<4x665xf32, #tpu.memory_space<vmem>>, vector<4x256xf32>
    %c0_289 = arith.constant 0 : index
    %c2_290 = arith.constant 2 : index
    %648 = vector.load %arg7[%c0_289, %c2_290] : memref<4x49xf32, #tpu.memory_space<vmem>>, vector<4x1xf32>
    %649 = vector.broadcast %646 : vector<1x256xf32> to vector<4x256xf32>
    %650 = arith.mulf %647, %649 : vector<4x256xf32>
    %651 = vector.broadcast %648 : vector<4x1xf32> to vector<4x256xf32>
    %652 = arith.mulf %650, %651 : vector<4x256xf32>
    %653 = arith.addf %645, %652 : vector<4x256xf32>
    %c0_291 = arith.constant 0 : index
    %c190 = arith.constant 190 : index
    %654 = vector.load %arg14[%c0_291, %c190] : memref<4x665xf32, #tpu.memory_space<vmem>>, vector<4x256xf32>
    %c0_292 = arith.constant 0 : index
    %c9_293 = arith.constant 9 : index
    %655 = vector.load %arg7[%c0_292, %c9_293] : memref<4x49xf32, #tpu.memory_space<vmem>>, vector<4x1xf32>
    %656 = vector.broadcast %646 : vector<1x256xf32> to vector<4x256xf32>
    %657 = arith.mulf %654, %656 : vector<4x256xf32>
    %658 = vector.broadcast %655 : vector<4x1xf32> to vector<4x256xf32>
    %659 = arith.mulf %657, %658 : vector<4x256xf32>
    %660 = arith.addf %653, %659 : vector<4x256xf32>
    %c0_294 = arith.constant 0 : index
    %c222_295 = arith.constant 222 : index
    %661 = vector.load %arg14[%c0_294, %c222_295] : memref<4x665xf32, #tpu.memory_space<vmem>>, vector<4x256xf32>
    %c0_296 = arith.constant 0 : index
    %c16_297 = arith.constant 16 : index
    %662 = vector.load %arg7[%c0_296, %c16_297] : memref<4x49xf32, #tpu.memory_space<vmem>>, vector<4x1xf32>
    %663 = vector.broadcast %646 : vector<1x256xf32> to vector<4x256xf32>
    %664 = arith.mulf %661, %663 : vector<4x256xf32>
    %665 = vector.broadcast %662 : vector<4x1xf32> to vector<4x256xf32>
    %666 = arith.mulf %664, %665 : vector<4x256xf32>
    %667 = arith.addf %660, %666 : vector<4x256xf32>
    %c0_298 = arith.constant 0 : index
    %c254_299 = arith.constant 254 : index
    %668 = vector.load %arg14[%c0_298, %c254_299] : memref<4x665xf32, #tpu.memory_space<vmem>>, vector<4x256xf32>
    %c0_300 = arith.constant 0 : index
    %c23_301 = arith.constant 23 : index
    %669 = vector.load %arg7[%c0_300, %c23_301] : memref<4x49xf32, #tpu.memory_space<vmem>>, vector<4x1xf32>
    %670 = vector.broadcast %646 : vector<1x256xf32> to vector<4x256xf32>
    %671 = arith.mulf %668, %670 : vector<4x256xf32>
    %672 = vector.broadcast %669 : vector<4x1xf32> to vector<4x256xf32>
    %673 = arith.mulf %671, %672 : vector<4x256xf32>
    %674 = arith.addf %667, %673 : vector<4x256xf32>
    %c0_302 = arith.constant 0 : index
    %c286_303 = arith.constant 286 : index
    %675 = vector.load %arg14[%c0_302, %c286_303] : memref<4x665xf32, #tpu.memory_space<vmem>>, vector<4x256xf32>
    %c0_304 = arith.constant 0 : index
    %c30_305 = arith.constant 30 : index
    %676 = vector.load %arg7[%c0_304, %c30_305] : memref<4x49xf32, #tpu.memory_space<vmem>>, vector<4x1xf32>
    %677 = vector.broadcast %646 : vector<1x256xf32> to vector<4x256xf32>
    %678 = arith.mulf %675, %677 : vector<4x256xf32>
    %679 = vector.broadcast %676 : vector<4x1xf32> to vector<4x256xf32>
    %680 = arith.mulf %678, %679 : vector<4x256xf32>
    %681 = arith.addf %674, %680 : vector<4x256xf32>
    %c0_306 = arith.constant 0 : index
    %c318 = arith.constant 318 : index
    %682 = vector.load %arg14[%c0_306, %c318] : memref<4x665xf32, #tpu.memory_space<vmem>>, vector<4x256xf32>
    %c0_307 = arith.constant 0 : index
    %c37_308 = arith.constant 37 : index
    %683 = vector.load %arg7[%c0_307, %c37_308] : memref<4x49xf32, #tpu.memory_space<vmem>>, vector<4x1xf32>
    %684 = vector.broadcast %646 : vector<1x256xf32> to vector<4x256xf32>
    %685 = arith.mulf %682, %684 : vector<4x256xf32>
    %686 = vector.broadcast %683 : vector<4x1xf32> to vector<4x256xf32>
    %687 = arith.mulf %685, %686 : vector<4x256xf32>
    %688 = arith.addf %681, %687 : vector<4x256xf32>
    %c0_309 = arith.constant 0 : index
    %c350 = arith.constant 350 : index
    %689 = vector.load %arg14[%c0_309, %c350] : memref<4x665xf32, #tpu.memory_space<vmem>>, vector<4x256xf32>
    %c0_310 = arith.constant 0 : index
    %c44_311 = arith.constant 44 : index
    %690 = vector.load %arg7[%c0_310, %c44_311] : memref<4x49xf32, #tpu.memory_space<vmem>>, vector<4x1xf32>
    %691 = vector.broadcast %646 : vector<1x256xf32> to vector<4x256xf32>
    %692 = arith.mulf %689, %691 : vector<4x256xf32>
    %693 = vector.broadcast %690 : vector<4x1xf32> to vector<4x256xf32>
    %694 = arith.mulf %692, %693 : vector<4x256xf32>
    %695 = arith.addf %688, %694 : vector<4x256xf32>
    %c6_312 = arith.constant 6 : index
    %c0_313 = arith.constant 0 : index
    %696 = vector.load %arg2[%c6_312, %c0_313] : memref<13x256xf32, #tpu.memory_space<vmem>>, vector<1x256xf32>
    %c0_314 = arith.constant 0 : index
    %c160 = arith.constant 160 : index
    %697 = vector.load %arg14[%c0_314, %c160] : memref<4x665xf32, #tpu.memory_space<vmem>>, vector<4x256xf32>
    %c0_315 = arith.constant 0 : index
    %c3_316 = arith.constant 3 : index
    %698 = vector.load %arg7[%c0_315, %c3_316] : memref<4x49xf32, #tpu.memory_space<vmem>>, vector<4x1xf32>
    %699 = vector.broadcast %696 : vector<1x256xf32> to vector<4x256xf32>
    %700 = arith.mulf %697, %699 : vector<4x256xf32>
    %701 = vector.broadcast %698 : vector<4x1xf32> to vector<4x256xf32>
    %702 = arith.mulf %700, %701 : vector<4x256xf32>
    %703 = arith.addf %695, %702 : vector<4x256xf32>
    %c0_317 = arith.constant 0 : index
    %c192 = arith.constant 192 : index
    %704 = vector.load %arg14[%c0_317, %c192] : memref<4x665xf32, #tpu.memory_space<vmem>>, vector<4x256xf32>
    %c0_318 = arith.constant 0 : index
    %c10_319 = arith.constant 10 : index
    %705 = vector.load %arg7[%c0_318, %c10_319] : memref<4x49xf32, #tpu.memory_space<vmem>>, vector<4x1xf32>
    %706 = vector.broadcast %696 : vector<1x256xf32> to vector<4x256xf32>
    %707 = arith.mulf %704, %706 : vector<4x256xf32>
    %708 = vector.broadcast %705 : vector<4x1xf32> to vector<4x256xf32>
    %709 = arith.mulf %707, %708 : vector<4x256xf32>
    %710 = arith.addf %703, %709 : vector<4x256xf32>
    %c0_320 = arith.constant 0 : index
    %c224_321 = arith.constant 224 : index
    %711 = vector.load %arg14[%c0_320, %c224_321] : memref<4x665xf32, #tpu.memory_space<vmem>>, vector<4x256xf32>
    %c0_322 = arith.constant 0 : index
    %c17_323 = arith.constant 17 : index
    %712 = vector.load %arg7[%c0_322, %c17_323] : memref<4x49xf32, #tpu.memory_space<vmem>>, vector<4x1xf32>
    %713 = vector.broadcast %696 : vector<1x256xf32> to vector<4x256xf32>
    %714 = arith.mulf %711, %713 : vector<4x256xf32>
    %715 = vector.broadcast %712 : vector<4x1xf32> to vector<4x256xf32>
    %716 = arith.mulf %714, %715 : vector<4x256xf32>
    %717 = arith.addf %710, %716 : vector<4x256xf32>
    %c0_324 = arith.constant 0 : index
    %c256_325 = arith.constant 256 : index
    %718 = vector.load %arg14[%c0_324, %c256_325] : memref<4x665xf32, #tpu.memory_space<vmem>>, vector<4x256xf32>
    %c0_326 = arith.constant 0 : index
    %c24_327 = arith.constant 24 : index
    %719 = vector.load %arg7[%c0_326, %c24_327] : memref<4x49xf32, #tpu.memory_space<vmem>>, vector<4x1xf32>
    %720 = vector.broadcast %696 : vector<1x256xf32> to vector<4x256xf32>
    %721 = arith.mulf %718, %720 : vector<4x256xf32>
    %722 = vector.broadcast %719 : vector<4x1xf32> to vector<4x256xf32>
    %723 = arith.mulf %721, %722 : vector<4x256xf32>
    %724 = arith.addf %717, %723 : vector<4x256xf32>
    %c0_328 = arith.constant 0 : index
    %c288_329 = arith.constant 288 : index
    %725 = vector.load %arg14[%c0_328, %c288_329] : memref<4x665xf32, #tpu.memory_space<vmem>>, vector<4x256xf32>
    %c0_330 = arith.constant 0 : index
    %c31_331 = arith.constant 31 : index
    %726 = vector.load %arg7[%c0_330, %c31_331] : memref<4x49xf32, #tpu.memory_space<vmem>>, vector<4x1xf32>
    %727 = vector.broadcast %696 : vector<1x256xf32> to vector<4x256xf32>
    %728 = arith.mulf %725, %727 : vector<4x256xf32>
    %729 = vector.broadcast %726 : vector<4x1xf32> to vector<4x256xf32>
    %730 = arith.mulf %728, %729 : vector<4x256xf32>
    %731 = arith.addf %724, %730 : vector<4x256xf32>
    %c0_332 = arith.constant 0 : index
    %c320 = arith.constant 320 : index
    %732 = vector.load %arg14[%c0_332, %c320] : memref<4x665xf32, #tpu.memory_space<vmem>>, vector<4x256xf32>
    %c0_333 = arith.constant 0 : index
    %c38_334 = arith.constant 38 : index
    %733 = vector.load %arg7[%c0_333, %c38_334] : memref<4x49xf32, #tpu.memory_space<vmem>>, vector<4x1xf32>
    %734 = vector.broadcast %696 : vector<1x256xf32> to vector<4x256xf32>
    %735 = arith.mulf %732, %734 : vector<4x256xf32>
    %736 = vector.broadcast %733 : vector<4x1xf32> to vector<4x256xf32>
    %737 = arith.mulf %735, %736 : vector<4x256xf32>
    %738 = arith.addf %731, %737 : vector<4x256xf32>
    %c0_335 = arith.constant 0 : index
    %c352 = arith.constant 352 : index
    %739 = vector.load %arg14[%c0_335, %c352] : memref<4x665xf32, #tpu.memory_space<vmem>>, vector<4x256xf32>
    %c0_336 = arith.constant 0 : index
    %c45_337 = arith.constant 45 : index
    %740 = vector.load %arg7[%c0_336, %c45_337] : memref<4x49xf32, #tpu.memory_space<vmem>>, vector<4x1xf32>
    %741 = vector.broadcast %696 : vector<1x256xf32> to vector<4x256xf32>
    %742 = arith.mulf %739, %741 : vector<4x256xf32>
    %743 = vector.broadcast %740 : vector<4x1xf32> to vector<4x256xf32>
    %744 = arith.mulf %742, %743 : vector<4x256xf32>
    %745 = arith.addf %738, %744 : vector<4x256xf32>
    %c8_338 = arith.constant 8 : index
    %c0_339 = arith.constant 0 : index
    %746 = vector.load %arg2[%c8_338, %c0_339] : memref<13x256xf32, #tpu.memory_space<vmem>>, vector<1x256xf32>
    %c0_340 = arith.constant 0 : index
    %c162 = arith.constant 162 : index
    %747 = vector.load %arg14[%c0_340, %c162] : memref<4x665xf32, #tpu.memory_space<vmem>>, vector<4x256xf32>
    %c0_341 = arith.constant 0 : index
    %c4_342 = arith.constant 4 : index
    %748 = vector.load %arg7[%c0_341, %c4_342] : memref<4x49xf32, #tpu.memory_space<vmem>>, vector<4x1xf32>
    %749 = vector.broadcast %746 : vector<1x256xf32> to vector<4x256xf32>
    %750 = arith.mulf %747, %749 : vector<4x256xf32>
    %751 = vector.broadcast %748 : vector<4x1xf32> to vector<4x256xf32>
    %752 = arith.mulf %750, %751 : vector<4x256xf32>
    %753 = arith.addf %745, %752 : vector<4x256xf32>
    %c0_343 = arith.constant 0 : index
    %c194 = arith.constant 194 : index
    %754 = vector.load %arg14[%c0_343, %c194] : memref<4x665xf32, #tpu.memory_space<vmem>>, vector<4x256xf32>
    %c0_344 = arith.constant 0 : index
    %c11_345 = arith.constant 11 : index
    %755 = vector.load %arg7[%c0_344, %c11_345] : memref<4x49xf32, #tpu.memory_space<vmem>>, vector<4x1xf32>
    %756 = vector.broadcast %746 : vector<1x256xf32> to vector<4x256xf32>
    %757 = arith.mulf %754, %756 : vector<4x256xf32>
    %758 = vector.broadcast %755 : vector<4x1xf32> to vector<4x256xf32>
    %759 = arith.mulf %757, %758 : vector<4x256xf32>
    %760 = arith.addf %753, %759 : vector<4x256xf32>
    %c0_346 = arith.constant 0 : index
    %c226_347 = arith.constant 226 : index
    %761 = vector.load %arg14[%c0_346, %c226_347] : memref<4x665xf32, #tpu.memory_space<vmem>>, vector<4x256xf32>
    %c0_348 = arith.constant 0 : index
    %c18_349 = arith.constant 18 : index
    %762 = vector.load %arg7[%c0_348, %c18_349] : memref<4x49xf32, #tpu.memory_space<vmem>>, vector<4x1xf32>
    %763 = vector.broadcast %746 : vector<1x256xf32> to vector<4x256xf32>
    %764 = arith.mulf %761, %763 : vector<4x256xf32>
    %765 = vector.broadcast %762 : vector<4x1xf32> to vector<4x256xf32>
    %766 = arith.mulf %764, %765 : vector<4x256xf32>
    %767 = arith.addf %760, %766 : vector<4x256xf32>
    %c0_350 = arith.constant 0 : index
    %c258_351 = arith.constant 258 : index
    %768 = vector.load %arg14[%c0_350, %c258_351] : memref<4x665xf32, #tpu.memory_space<vmem>>, vector<4x256xf32>
    %c0_352 = arith.constant 0 : index
    %c25_353 = arith.constant 25 : index
    %769 = vector.load %arg7[%c0_352, %c25_353] : memref<4x49xf32, #tpu.memory_space<vmem>>, vector<4x1xf32>
    %770 = vector.broadcast %746 : vector<1x256xf32> to vector<4x256xf32>
    %771 = arith.mulf %768, %770 : vector<4x256xf32>
    %772 = vector.broadcast %769 : vector<4x1xf32> to vector<4x256xf32>
    %773 = arith.mulf %771, %772 : vector<4x256xf32>
    %774 = arith.addf %767, %773 : vector<4x256xf32>
    %c0_354 = arith.constant 0 : index
    %c290_355 = arith.constant 290 : index
    %775 = vector.load %arg14[%c0_354, %c290_355] : memref<4x665xf32, #tpu.memory_space<vmem>>, vector<4x256xf32>
    %c0_356 = arith.constant 0 : index
    %c32_357 = arith.constant 32 : index
    %776 = vector.load %arg7[%c0_356, %c32_357] : memref<4x49xf32, #tpu.memory_space<vmem>>, vector<4x1xf32>
    %777 = vector.broadcast %746 : vector<1x256xf32> to vector<4x256xf32>
    %778 = arith.mulf %775, %777 : vector<4x256xf32>
    %779 = vector.broadcast %776 : vector<4x1xf32> to vector<4x256xf32>
    %780 = arith.mulf %778, %779 : vector<4x256xf32>
    %781 = arith.addf %774, %780 : vector<4x256xf32>
    %c0_358 = arith.constant 0 : index
    %c322 = arith.constant 322 : index
    %782 = vector.load %arg14[%c0_358, %c322] : memref<4x665xf32, #tpu.memory_space<vmem>>, vector<4x256xf32>
    %c0_359 = arith.constant 0 : index
    %c39_360 = arith.constant 39 : index
    %783 = vector.load %arg7[%c0_359, %c39_360] : memref<4x49xf32, #tpu.memory_space<vmem>>, vector<4x1xf32>
    %784 = vector.broadcast %746 : vector<1x256xf32> to vector<4x256xf32>
    %785 = arith.mulf %782, %784 : vector<4x256xf32>
    %786 = vector.broadcast %783 : vector<4x1xf32> to vector<4x256xf32>
    %787 = arith.mulf %785, %786 : vector<4x256xf32>
    %788 = arith.addf %781, %787 : vector<4x256xf32>
    %c0_361 = arith.constant 0 : index
    %c354 = arith.constant 354 : index
    %789 = vector.load %arg14[%c0_361, %c354] : memref<4x665xf32, #tpu.memory_space<vmem>>, vector<4x256xf32>
    %c0_362 = arith.constant 0 : index
    %c46_363 = arith.constant 46 : index
    %790 = vector.load %arg7[%c0_362, %c46_363] : memref<4x49xf32, #tpu.memory_space<vmem>>, vector<4x1xf32>
    %791 = vector.broadcast %746 : vector<1x256xf32> to vector<4x256xf32>
    %792 = arith.mulf %789, %791 : vector<4x256xf32>
    %793 = vector.broadcast %790 : vector<4x1xf32> to vector<4x256xf32>
    %794 = arith.mulf %792, %793 : vector<4x256xf32>
    %795 = arith.addf %788, %794 : vector<4x256xf32>
    %c10_364 = arith.constant 10 : index
    %c0_365 = arith.constant 0 : index
    %796 = vector.load %arg2[%c10_364, %c0_365] : memref<13x256xf32, #tpu.memory_space<vmem>>, vector<1x256xf32>
    %c0_366 = arith.constant 0 : index
    %c164 = arith.constant 164 : index
    %797 = vector.load %arg14[%c0_366, %c164] : memref<4x665xf32, #tpu.memory_space<vmem>>, vector<4x256xf32>
    %c0_367 = arith.constant 0 : index
    %c5_368 = arith.constant 5 : index
    %798 = vector.load %arg7[%c0_367, %c5_368] : memref<4x49xf32, #tpu.memory_space<vmem>>, vector<4x1xf32>
    %799 = vector.broadcast %796 : vector<1x256xf32> to vector<4x256xf32>
    %800 = arith.mulf %797, %799 : vector<4x256xf32>
    %801 = vector.broadcast %798 : vector<4x1xf32> to vector<4x256xf32>
    %802 = arith.mulf %800, %801 : vector<4x256xf32>
    %803 = arith.addf %795, %802 : vector<4x256xf32>
    %c0_369 = arith.constant 0 : index
    %c196 = arith.constant 196 : index
    %804 = vector.load %arg14[%c0_369, %c196] : memref<4x665xf32, #tpu.memory_space<vmem>>, vector<4x256xf32>
    %c0_370 = arith.constant 0 : index
    %c12_371 = arith.constant 12 : index
    %805 = vector.load %arg7[%c0_370, %c12_371] : memref<4x49xf32, #tpu.memory_space<vmem>>, vector<4x1xf32>
    %806 = vector.broadcast %796 : vector<1x256xf32> to vector<4x256xf32>
    %807 = arith.mulf %804, %806 : vector<4x256xf32>
    %808 = vector.broadcast %805 : vector<4x1xf32> to vector<4x256xf32>
    %809 = arith.mulf %807, %808 : vector<4x256xf32>
    %810 = arith.addf %803, %809 : vector<4x256xf32>
    %c0_372 = arith.constant 0 : index
    %c228 = arith.constant 228 : index
    %811 = vector.load %arg14[%c0_372, %c228] : memref<4x665xf32, #tpu.memory_space<vmem>>, vector<4x256xf32>
    %c0_373 = arith.constant 0 : index
    %c19_374 = arith.constant 19 : index
    %812 = vector.load %arg7[%c0_373, %c19_374] : memref<4x49xf32, #tpu.memory_space<vmem>>, vector<4x1xf32>
    %813 = vector.broadcast %796 : vector<1x256xf32> to vector<4x256xf32>
    %814 = arith.mulf %811, %813 : vector<4x256xf32>
    %815 = vector.broadcast %812 : vector<4x1xf32> to vector<4x256xf32>
    %816 = arith.mulf %814, %815 : vector<4x256xf32>
    %817 = arith.addf %810, %816 : vector<4x256xf32>
    %c0_375 = arith.constant 0 : index
    %c260 = arith.constant 260 : index
    %818 = vector.load %arg14[%c0_375, %c260] : memref<4x665xf32, #tpu.memory_space<vmem>>, vector<4x256xf32>
    %c0_376 = arith.constant 0 : index
    %c26_377 = arith.constant 26 : index
    %819 = vector.load %arg7[%c0_376, %c26_377] : memref<4x49xf32, #tpu.memory_space<vmem>>, vector<4x1xf32>
    %820 = vector.broadcast %796 : vector<1x256xf32> to vector<4x256xf32>
    %821 = arith.mulf %818, %820 : vector<4x256xf32>
    %822 = vector.broadcast %819 : vector<4x1xf32> to vector<4x256xf32>
    %823 = arith.mulf %821, %822 : vector<4x256xf32>
    %824 = arith.addf %817, %823 : vector<4x256xf32>
    %c0_378 = arith.constant 0 : index
    %c292 = arith.constant 292 : index
    %825 = vector.load %arg14[%c0_378, %c292] : memref<4x665xf32, #tpu.memory_space<vmem>>, vector<4x256xf32>
    %c0_379 = arith.constant 0 : index
    %c33_380 = arith.constant 33 : index
    %826 = vector.load %arg7[%c0_379, %c33_380] : memref<4x49xf32, #tpu.memory_space<vmem>>, vector<4x1xf32>
    %827 = vector.broadcast %796 : vector<1x256xf32> to vector<4x256xf32>
    %828 = arith.mulf %825, %827 : vector<4x256xf32>
    %829 = vector.broadcast %826 : vector<4x1xf32> to vector<4x256xf32>
    %830 = arith.mulf %828, %829 : vector<4x256xf32>
    %831 = arith.addf %824, %830 : vector<4x256xf32>
    %c0_381 = arith.constant 0 : index
    %c324 = arith.constant 324 : index
    %832 = vector.load %arg14[%c0_381, %c324] : memref<4x665xf32, #tpu.memory_space<vmem>>, vector<4x256xf32>
    %c0_382 = arith.constant 0 : index
    %c40_383 = arith.constant 40 : index
    %833 = vector.load %arg7[%c0_382, %c40_383] : memref<4x49xf32, #tpu.memory_space<vmem>>, vector<4x1xf32>
    %834 = vector.broadcast %796 : vector<1x256xf32> to vector<4x256xf32>
    %835 = arith.mulf %832, %834 : vector<4x256xf32>
    %836 = vector.broadcast %833 : vector<4x1xf32> to vector<4x256xf32>
    %837 = arith.mulf %835, %836 : vector<4x256xf32>
    %838 = arith.addf %831, %837 : vector<4x256xf32>
    %c0_384 = arith.constant 0 : index
    %c356 = arith.constant 356 : index
    %839 = vector.load %arg14[%c0_384, %c356] : memref<4x665xf32, #tpu.memory_space<vmem>>, vector<4x256xf32>
    %c0_385 = arith.constant 0 : index
    %c47_386 = arith.constant 47 : index
    %840 = vector.load %arg7[%c0_385, %c47_386] : memref<4x49xf32, #tpu.memory_space<vmem>>, vector<4x1xf32>
    %841 = vector.broadcast %796 : vector<1x256xf32> to vector<4x256xf32>
    %842 = arith.mulf %839, %841 : vector<4x256xf32>
    %843 = vector.broadcast %840 : vector<4x1xf32> to vector<4x256xf32>
    %844 = arith.mulf %842, %843 : vector<4x256xf32>
    %845 = arith.addf %838, %844 : vector<4x256xf32>
    %c11_387 = arith.constant 11 : index
    %c0_388 = arith.constant 0 : index
    %846 = vector.load %arg2[%c11_387, %c0_388] : memref<13x256xf32, #tpu.memory_space<vmem>>, vector<1x256xf32>
    %c0_389 = arith.constant 0 : index
    %c166 = arith.constant 166 : index
    %847 = vector.load %arg14[%c0_389, %c166] : memref<4x665xf32, #tpu.memory_space<vmem>>, vector<4x256xf32>
    %c0_390 = arith.constant 0 : index
    %c6_391 = arith.constant 6 : index
    %848 = vector.load %arg7[%c0_390, %c6_391] : memref<4x49xf32, #tpu.memory_space<vmem>>, vector<4x1xf32>
    %849 = vector.broadcast %846 : vector<1x256xf32> to vector<4x256xf32>
    %850 = arith.mulf %847, %849 : vector<4x256xf32>
    %851 = vector.broadcast %848 : vector<4x1xf32> to vector<4x256xf32>
    %852 = arith.mulf %850, %851 : vector<4x256xf32>
    %853 = arith.addf %845, %852 : vector<4x256xf32>
    %c0_392 = arith.constant 0 : index
    %c198 = arith.constant 198 : index
    %854 = vector.load %arg14[%c0_392, %c198] : memref<4x665xf32, #tpu.memory_space<vmem>>, vector<4x256xf32>
    %c0_393 = arith.constant 0 : index
    %c13_394 = arith.constant 13 : index
    %855 = vector.load %arg7[%c0_393, %c13_394] : memref<4x49xf32, #tpu.memory_space<vmem>>, vector<4x1xf32>
    %856 = vector.broadcast %846 : vector<1x256xf32> to vector<4x256xf32>
    %857 = arith.mulf %854, %856 : vector<4x256xf32>
    %858 = vector.broadcast %855 : vector<4x1xf32> to vector<4x256xf32>
    %859 = arith.mulf %857, %858 : vector<4x256xf32>
    %860 = arith.addf %853, %859 : vector<4x256xf32>
    %c0_395 = arith.constant 0 : index
    %c230 = arith.constant 230 : index
    %861 = vector.load %arg14[%c0_395, %c230] : memref<4x665xf32, #tpu.memory_space<vmem>>, vector<4x256xf32>
    %c0_396 = arith.constant 0 : index
    %c20_397 = arith.constant 20 : index
    %862 = vector.load %arg7[%c0_396, %c20_397] : memref<4x49xf32, #tpu.memory_space<vmem>>, vector<4x1xf32>
    %863 = vector.broadcast %846 : vector<1x256xf32> to vector<4x256xf32>
    %864 = arith.mulf %861, %863 : vector<4x256xf32>
    %865 = vector.broadcast %862 : vector<4x1xf32> to vector<4x256xf32>
    %866 = arith.mulf %864, %865 : vector<4x256xf32>
    %867 = arith.addf %860, %866 : vector<4x256xf32>
    %c0_398 = arith.constant 0 : index
    %c262 = arith.constant 262 : index
    %868 = vector.load %arg14[%c0_398, %c262] : memref<4x665xf32, #tpu.memory_space<vmem>>, vector<4x256xf32>
    %c0_399 = arith.constant 0 : index
    %c27_400 = arith.constant 27 : index
    %869 = vector.load %arg7[%c0_399, %c27_400] : memref<4x49xf32, #tpu.memory_space<vmem>>, vector<4x1xf32>
    %870 = vector.broadcast %846 : vector<1x256xf32> to vector<4x256xf32>
    %871 = arith.mulf %868, %870 : vector<4x256xf32>
    %872 = vector.broadcast %869 : vector<4x1xf32> to vector<4x256xf32>
    %873 = arith.mulf %871, %872 : vector<4x256xf32>
    %874 = arith.addf %867, %873 : vector<4x256xf32>
    %c0_401 = arith.constant 0 : index
    %c294 = arith.constant 294 : index
    %875 = vector.load %arg14[%c0_401, %c294] : memref<4x665xf32, #tpu.memory_space<vmem>>, vector<4x256xf32>
    %c0_402 = arith.constant 0 : index
    %c34_403 = arith.constant 34 : index
    %876 = vector.load %arg7[%c0_402, %c34_403] : memref<4x49xf32, #tpu.memory_space<vmem>>, vector<4x1xf32>
    %877 = vector.broadcast %846 : vector<1x256xf32> to vector<4x256xf32>
    %878 = arith.mulf %875, %877 : vector<4x256xf32>
    %879 = vector.broadcast %876 : vector<4x1xf32> to vector<4x256xf32>
    %880 = arith.mulf %878, %879 : vector<4x256xf32>
    %881 = arith.addf %874, %880 : vector<4x256xf32>
    %c0_404 = arith.constant 0 : index
    %c326 = arith.constant 326 : index
    %882 = vector.load %arg14[%c0_404, %c326] : memref<4x665xf32, #tpu.memory_space<vmem>>, vector<4x256xf32>
    %c0_405 = arith.constant 0 : index
    %c41_406 = arith.constant 41 : index
    %883 = vector.load %arg7[%c0_405, %c41_406] : memref<4x49xf32, #tpu.memory_space<vmem>>, vector<4x1xf32>
    %884 = vector.broadcast %846 : vector<1x256xf32> to vector<4x256xf32>
    %885 = arith.mulf %882, %884 : vector<4x256xf32>
    %886 = vector.broadcast %883 : vector<4x1xf32> to vector<4x256xf32>
    %887 = arith.mulf %885, %886 : vector<4x256xf32>
    %888 = arith.addf %881, %887 : vector<4x256xf32>
    %c0_407 = arith.constant 0 : index
    %c358 = arith.constant 358 : index
    %889 = vector.load %arg14[%c0_407, %c358] : memref<4x665xf32, #tpu.memory_space<vmem>>, vector<4x256xf32>
    %c0_408 = arith.constant 0 : index
    %c48_409 = arith.constant 48 : index
    %890 = vector.load %arg7[%c0_408, %c48_409] : memref<4x49xf32, #tpu.memory_space<vmem>>, vector<4x1xf32>
    %891 = vector.broadcast %846 : vector<1x256xf32> to vector<4x256xf32>
    %892 = arith.mulf %889, %891 : vector<4x256xf32>
    %893 = vector.broadcast %890 : vector<4x1xf32> to vector<4x256xf32>
    %894 = arith.mulf %892, %893 : vector<4x256xf32>
    %895 = arith.addf %888, %894 : vector<4x256xf32>
    %c0_410 = arith.constant 0 : index
    %c0_411 = arith.constant 0 : index
    %896 = vector.load %arg8[%c0_410, %c0_411] : memref<4x1xf32, #tpu.memory_space<vmem>>, vector<4x1xf32>
    %897 = vector.broadcast %896 : vector<4x1xf32> to vector<4x256xf32>
    %898 = arith.addf %895, %897 : vector<4x256xf32>
    %c0_412 = arith.constant 0 : index
    %c256_413 = arith.constant 256 : index
    %899 = vector.load %arg14[%c0_412, %c256_413] : memref<4x665xf32, #tpu.memory_space<vmem>>, vector<4x256xf32>
    tpu.vector_store %arg14[%c0_412, %c256_413], %898 {strides = array<i32>} : memref<4x665xf32, #tpu.memory_space<vmem>>, vector<4x256xf32>,
    %cst_414 = arith.constant 0.000000e+00 : f32
    %900 = vector.broadcast %cst_414 : f32 to vector<4x256xf32>
    %c0_415 = arith.constant 0 : index
    %c0_416 = arith.constant 0 : index
    %901 = vector.load %arg2[%c0_415, %c0_416] : memref<13x256xf32, #tpu.memory_space<vmem>>, vector<1x256xf32>
    %c0_417 = arith.constant 0 : index
    %c103 = arith.constant 103 : index
    %902 = vector.load %arg14[%c0_417, %c103] : memref<4x665xf32, #tpu.memory_space<vmem>>, vector<4x256xf32>
    %c0_418 = arith.constant 0 : index
    %c0_419 = arith.constant 0 : index
    %903 = vector.load %arg9[%c0_418, %c0_419] : memref<4x49xf32, #tpu.memory_space<vmem>>, vector<4x1xf32>
    %904 = vector.broadcast %901 : vector<1x256xf32> to vector<4x256xf32>
    %905 = arith.mulf %902, %904 : vector<4x256xf32>
    %906 = vector.broadcast %903 : vector<4x1xf32> to vector<4x256xf32>
    %907 = arith.mulf %905, %906 : vector<4x256xf32>
    %908 = arith.addf %900, %907 : vector<4x256xf32>
    %c0_420 = arith.constant 0 : index
    %c151 = arith.constant 151 : index
    %909 = vector.load %arg14[%c0_420, %c151] : memref<4x665xf32, #tpu.memory_space<vmem>>, vector<4x256xf32>
    %c0_421 = arith.constant 0 : index
    %c7_422 = arith.constant 7 : index
    %910 = vector.load %arg9[%c0_421, %c7_422] : memref<4x49xf32, #tpu.memory_space<vmem>>, vector<4x1xf32>
    %911 = vector.broadcast %901 : vector<1x256xf32> to vector<4x256xf32>
    %912 = arith.mulf %909, %911 : vector<4x256xf32>
    %913 = vector.broadcast %910 : vector<4x1xf32> to vector<4x256xf32>
    %914 = arith.mulf %912, %913 : vector<4x256xf32>
    %915 = arith.addf %908, %914 : vector<4x256xf32>
    %c0_423 = arith.constant 0 : index
    %c199 = arith.constant 199 : index
    %916 = vector.load %arg14[%c0_423, %c199] : memref<4x665xf32, #tpu.memory_space<vmem>>, vector<4x256xf32>
    %c0_424 = arith.constant 0 : index
    %c14_425 = arith.constant 14 : index
    %917 = vector.load %arg9[%c0_424, %c14_425] : memref<4x49xf32, #tpu.memory_space<vmem>>, vector<4x1xf32>
    %918 = vector.broadcast %901 : vector<1x256xf32> to vector<4x256xf32>
    %919 = arith.mulf %916, %918 : vector<4x256xf32>
    %920 = vector.broadcast %917 : vector<4x1xf32> to vector<4x256xf32>
    %921 = arith.mulf %919, %920 : vector<4x256xf32>
    %922 = arith.addf %915, %921 : vector<4x256xf32>
    %c0_426 = arith.constant 0 : index
    %c247 = arith.constant 247 : index
    %923 = vector.load %arg14[%c0_426, %c247] : memref<4x665xf32, #tpu.memory_space<vmem>>, vector<4x256xf32>
    %c0_427 = arith.constant 0 : index
    %c21_428 = arith.constant 21 : index
    %924 = vector.load %arg9[%c0_427, %c21_428] : memref<4x49xf32, #tpu.memory_space<vmem>>, vector<4x1xf32>
    %925 = vector.broadcast %901 : vector<1x256xf32> to vector<4x256xf32>
    %926 = arith.mulf %923, %925 : vector<4x256xf32>
    %927 = vector.broadcast %924 : vector<4x1xf32> to vector<4x256xf32>
    %928 = arith.mulf %926, %927 : vector<4x256xf32>
    %929 = arith.addf %922, %928 : vector<4x256xf32>
    %c0_429 = arith.constant 0 : index
    %c295 = arith.constant 295 : index
    %930 = vector.load %arg14[%c0_429, %c295] : memref<4x665xf32, #tpu.memory_space<vmem>>, vector<4x256xf32>
    %c0_430 = arith.constant 0 : index
    %c28_431 = arith.constant 28 : index
    %931 = vector.load %arg9[%c0_430, %c28_431] : memref<4x49xf32, #tpu.memory_space<vmem>>, vector<4x1xf32>
    %932 = vector.broadcast %901 : vector<1x256xf32> to vector<4x256xf32>
    %933 = arith.mulf %930, %932 : vector<4x256xf32>
    %934 = vector.broadcast %931 : vector<4x1xf32> to vector<4x256xf32>
    %935 = arith.mulf %933, %934 : vector<4x256xf32>
    %936 = arith.addf %929, %935 : vector<4x256xf32>
    %c0_432 = arith.constant 0 : index
    %c343 = arith.constant 343 : index
    %937 = vector.load %arg14[%c0_432, %c343] : memref<4x665xf32, #tpu.memory_space<vmem>>, vector<4x256xf32>
    %c0_433 = arith.constant 0 : index
    %c35_434 = arith.constant 35 : index
    %938 = vector.load %arg9[%c0_433, %c35_434] : memref<4x49xf32, #tpu.memory_space<vmem>>, vector<4x1xf32>
    %939 = vector.broadcast %901 : vector<1x256xf32> to vector<4x256xf32>
    %940 = arith.mulf %937, %939 : vector<4x256xf32>
    %941 = vector.broadcast %938 : vector<4x1xf32> to vector<4x256xf32>
    %942 = arith.mulf %940, %941 : vector<4x256xf32>
    %943 = arith.addf %936, %942 : vector<4x256xf32>
    %c0_435 = arith.constant 0 : index
    %c391 = arith.constant 391 : index
    %944 = vector.load %arg14[%c0_435, %c391] : memref<4x665xf32, #tpu.memory_space<vmem>>, vector<4x256xf32>
    %c0_436 = arith.constant 0 : index
    %c42_437 = arith.constant 42 : index
    %945 = vector.load %arg9[%c0_436, %c42_437] : memref<4x49xf32, #tpu.memory_space<vmem>>, vector<4x1xf32>
    %946 = vector.broadcast %901 : vector<1x256xf32> to vector<4x256xf32>
    %947 = arith.mulf %944, %946 : vector<4x256xf32>
    %948 = vector.broadcast %945 : vector<4x1xf32> to vector<4x256xf32>
    %949 = arith.mulf %947, %948 : vector<4x256xf32>
    %950 = arith.addf %943, %949 : vector<4x256xf32>
    %c1_438 = arith.constant 1 : index
    %c0_439 = arith.constant 0 : index
    %951 = vector.load %arg2[%c1_438, %c0_439] : memref<13x256xf32, #tpu.memory_space<vmem>>, vector<1x256xf32>
    %c0_440 = arith.constant 0 : index
    %c106 = arith.constant 106 : index
    %952 = vector.load %arg14[%c0_440, %c106] : memref<4x665xf32, #tpu.memory_space<vmem>>, vector<4x256xf32>
    %c0_441 = arith.constant 0 : index
    %c1_442 = arith.constant 1 : index
    %953 = vector.load %arg9[%c0_441, %c1_442] : memref<4x49xf32, #tpu.memory_space<vmem>>, vector<4x1xf32>
    %954 = vector.broadcast %951 : vector<1x256xf32> to vector<4x256xf32>
    %955 = arith.mulf %952, %954 : vector<4x256xf32>
    %956 = vector.broadcast %953 : vector<4x1xf32> to vector<4x256xf32>
    %957 = arith.mulf %955, %956 : vector<4x256xf32>
    %958 = arith.addf %950, %957 : vector<4x256xf32>
    %c0_443 = arith.constant 0 : index
    %c154_444 = arith.constant 154 : index
    %959 = vector.load %arg14[%c0_443, %c154_444] : memref<4x665xf32, #tpu.memory_space<vmem>>, vector<4x256xf32>
    %c0_445 = arith.constant 0 : index
    %c8_446 = arith.constant 8 : index
    %960 = vector.load %arg9[%c0_445, %c8_446] : memref<4x49xf32, #tpu.memory_space<vmem>>, vector<4x1xf32>
    %961 = vector.broadcast %951 : vector<1x256xf32> to vector<4x256xf32>
    %962 = arith.mulf %959, %961 : vector<4x256xf32>
    %963 = vector.broadcast %960 : vector<4x1xf32> to vector<4x256xf32>
    %964 = arith.mulf %962, %963 : vector<4x256xf32>
    %965 = arith.addf %958, %964 : vector<4x256xf32>
    %c0_447 = arith.constant 0 : index
    %c202 = arith.constant 202 : index
    %966 = vector.load %arg14[%c0_447, %c202] : memref<4x665xf32, #tpu.memory_space<vmem>>, vector<4x256xf32>
    %c0_448 = arith.constant 0 : index
    %c15_449 = arith.constant 15 : index
    %967 = vector.load %arg9[%c0_448, %c15_449] : memref<4x49xf32, #tpu.memory_space<vmem>>, vector<4x1xf32>
    %968 = vector.broadcast %951 : vector<1x256xf32> to vector<4x256xf32>
    %969 = arith.mulf %966, %968 : vector<4x256xf32>
    %970 = vector.broadcast %967 : vector<4x1xf32> to vector<4x256xf32>
    %971 = arith.mulf %969, %970 : vector<4x256xf32>
    %972 = arith.addf %965, %971 : vector<4x256xf32>
    %c0_450 = arith.constant 0 : index
    %c250_451 = arith.constant 250 : index
    %973 = vector.load %arg14[%c0_450, %c250_451] : memref<4x665xf32, #tpu.memory_space<vmem>>, vector<4x256xf32>
    %c0_452 = arith.constant 0 : index
    %c22_453 = arith.constant 22 : index
    %974 = vector.load %arg9[%c0_452, %c22_453] : memref<4x49xf32, #tpu.memory_space<vmem>>, vector<4x1xf32>
    %975 = vector.broadcast %951 : vector<1x256xf32> to vector<4x256xf32>
    %976 = arith.mulf %973, %975 : vector<4x256xf32>
    %977 = vector.broadcast %974 : vector<4x1xf32> to vector<4x256xf32>
    %978 = arith.mulf %976, %977 : vector<4x256xf32>
    %979 = arith.addf %972, %978 : vector<4x256xf32>
    %c0_454 = arith.constant 0 : index
    %c298 = arith.constant 298 : index
    %980 = vector.load %arg14[%c0_454, %c298] : memref<4x665xf32, #tpu.memory_space<vmem>>, vector<4x256xf32>
    %c0_455 = arith.constant 0 : index
    %c29_456 = arith.constant 29 : index
    %981 = vector.load %arg9[%c0_455, %c29_456] : memref<4x49xf32, #tpu.memory_space<vmem>>, vector<4x1xf32>
    %982 = vector.broadcast %951 : vector<1x256xf32> to vector<4x256xf32>
    %983 = arith.mulf %980, %982 : vector<4x256xf32>
    %984 = vector.broadcast %981 : vector<4x1xf32> to vector<4x256xf32>
    %985 = arith.mulf %983, %984 : vector<4x256xf32>
    %986 = arith.addf %979, %985 : vector<4x256xf32>
    %c0_457 = arith.constant 0 : index
    %c346_458 = arith.constant 346 : index
    %987 = vector.load %arg14[%c0_457, %c346_458] : memref<4x665xf32, #tpu.memory_space<vmem>>, vector<4x256xf32>
    %c0_459 = arith.constant 0 : index
    %c36_460 = arith.constant 36 : index
    %988 = vector.load %arg9[%c0_459, %c36_460] : memref<4x49xf32, #tpu.memory_space<vmem>>, vector<4x1xf32>
    %989 = vector.broadcast %951 : vector<1x256xf32> to vector<4x256xf32>
    %990 = arith.mulf %987, %989 : vector<4x256xf32>
    %991 = vector.broadcast %988 : vector<4x1xf32> to vector<4x256xf32>
    %992 = arith.mulf %990, %991 : vector<4x256xf32>
    %993 = arith.addf %986, %992 : vector<4x256xf32>
    %c0_461 = arith.constant 0 : index
    %c394 = arith.constant 394 : index
    %994 = vector.load %arg14[%c0_461, %c394] : memref<4x665xf32, #tpu.memory_space<vmem>>, vector<4x256xf32>
    %c0_462 = arith.constant 0 : index
    %c43_463 = arith.constant 43 : index
    %995 = vector.load %arg9[%c0_462, %c43_463] : memref<4x49xf32, #tpu.memory_space<vmem>>, vector<4x1xf32>
    %996 = vector.broadcast %951 : vector<1x256xf32> to vector<4x256xf32>
    %997 = arith.mulf %994, %996 : vector<4x256xf32>
    %998 = vector.broadcast %995 : vector<4x1xf32> to vector<4x256xf32>
    %999 = arith.mulf %997, %998 : vector<4x256xf32>
    %1000 = arith.addf %993, %999 : vector<4x256xf32>
    %c3_464 = arith.constant 3 : index
    %c0_465 = arith.constant 0 : index
    %1001 = vector.load %arg2[%c3_464, %c0_465] : memref<13x256xf32, #tpu.memory_space<vmem>>, vector<1x256xf32>
    %c0_466 = arith.constant 0 : index
    %c109 = arith.constant 109 : index
    %1002 = vector.load %arg14[%c0_466, %c109] : memref<4x665xf32, #tpu.memory_space<vmem>>, vector<4x256xf32>
    %c0_467 = arith.constant 0 : index
    %c2_468 = arith.constant 2 : index
    %1003 = vector.load %arg9[%c0_467, %c2_468] : memref<4x49xf32, #tpu.memory_space<vmem>>, vector<4x1xf32>
    %1004 = vector.broadcast %1001 : vector<1x256xf32> to vector<4x256xf32>
    %1005 = arith.mulf %1002, %1004 : vector<4x256xf32>
    %1006 = vector.broadcast %1003 : vector<4x1xf32> to vector<4x256xf32>
    %1007 = arith.mulf %1005, %1006 : vector<4x256xf32>
    %1008 = arith.addf %1000, %1007 : vector<4x256xf32>
    %c0_469 = arith.constant 0 : index
    %c157 = arith.constant 157 : index
    %1009 = vector.load %arg14[%c0_469, %c157] : memref<4x665xf32, #tpu.memory_space<vmem>>, vector<4x256xf32>
    %c0_470 = arith.constant 0 : index
    %c9_471 = arith.constant 9 : index
    %1010 = vector.load %arg9[%c0_470, %c9_471] : memref<4x49xf32, #tpu.memory_space<vmem>>, vector<4x1xf32>
    %1011 = vector.broadcast %1001 : vector<1x256xf32> to vector<4x256xf32>
    %1012 = arith.mulf %1009, %1011 : vector<4x256xf32>
    %1013 = vector.broadcast %1010 : vector<4x1xf32> to vector<4x256xf32>
    %1014 = arith.mulf %1012, %1013 : vector<4x256xf32>
    %1015 = arith.addf %1008, %1014 : vector<4x256xf32>
    %c0_472 = arith.constant 0 : index
    %c205_473 = arith.constant 205 : index
    %1016 = vector.load %arg14[%c0_472, %c205_473] : memref<4x665xf32, #tpu.memory_space<vmem>>, vector<4x256xf32>
    %c0_474 = arith.constant 0 : index
    %c16_475 = arith.constant 16 : index
    %1017 = vector.load %arg9[%c0_474, %c16_475] : memref<4x49xf32, #tpu.memory_space<vmem>>, vector<4x1xf32>
    %1018 = vector.broadcast %1001 : vector<1x256xf32> to vector<4x256xf32>
    %1019 = arith.mulf %1016, %1018 : vector<4x256xf32>
    %1020 = vector.broadcast %1017 : vector<4x1xf32> to vector<4x256xf32>
    %1021 = arith.mulf %1019, %1020 : vector<4x256xf32>
    %1022 = arith.addf %1015, %1021 : vector<4x256xf32>
    %c0_476 = arith.constant 0 : index
    %c253_477 = arith.constant 253 : index
    %1023 = vector.load %arg14[%c0_476, %c253_477] : memref<4x665xf32, #tpu.memory_space<vmem>>, vector<4x256xf32>
    %c0_478 = arith.constant 0 : index
    %c23_479 = arith.constant 23 : index
    %1024 = vector.load %arg9[%c0_478, %c23_479] : memref<4x49xf32, #tpu.memory_space<vmem>>, vector<4x1xf32>
    %1025 = vector.broadcast %1001 : vector<1x256xf32> to vector<4x256xf32>
    %1026 = arith.mulf %1023, %1025 : vector<4x256xf32>
    %1027 = vector.broadcast %1024 : vector<4x1xf32> to vector<4x256xf32>
    %1028 = arith.mulf %1026, %1027 : vector<4x256xf32>
    %1029 = arith.addf %1022, %1028 : vector<4x256xf32>
    %c0_480 = arith.constant 0 : index
    %c301_481 = arith.constant 301 : index
    %1030 = vector.load %arg14[%c0_480, %c301_481] : memref<4x665xf32, #tpu.memory_space<vmem>>, vector<4x256xf32>
    %c0_482 = arith.constant 0 : index
    %c30_483 = arith.constant 30 : index
    %1031 = vector.load %arg9[%c0_482, %c30_483] : memref<4x49xf32, #tpu.memory_space<vmem>>, vector<4x1xf32>
    %1032 = vector.broadcast %1001 : vector<1x256xf32> to vector<4x256xf32>
    %1033 = arith.mulf %1030, %1032 : vector<4x256xf32>
    %1034 = vector.broadcast %1031 : vector<4x1xf32> to vector<4x256xf32>
    %1035 = arith.mulf %1033, %1034 : vector<4x256xf32>
    %1036 = arith.addf %1029, %1035 : vector<4x256xf32>
    %c0_484 = arith.constant 0 : index
    %c349 = arith.constant 349 : index
    %1037 = vector.load %arg14[%c0_484, %c349] : memref<4x665xf32, #tpu.memory_space<vmem>>, vector<4x256xf32>
    %c0_485 = arith.constant 0 : index
    %c37_486 = arith.constant 37 : index
    %1038 = vector.load %arg9[%c0_485, %c37_486] : memref<4x49xf32, #tpu.memory_space<vmem>>, vector<4x1xf32>
    %1039 = vector.broadcast %1001 : vector<1x256xf32> to vector<4x256xf32>
    %1040 = arith.mulf %1037, %1039 : vector<4x256xf32>
    %1041 = vector.broadcast %1038 : vector<4x1xf32> to vector<4x256xf32>
    %1042 = arith.mulf %1040, %1041 : vector<4x256xf32>
    %1043 = arith.addf %1036, %1042 : vector<4x256xf32>
    %c0_487 = arith.constant 0 : index
    %c397 = arith.constant 397 : index
    %1044 = vector.load %arg14[%c0_487, %c397] : memref<4x665xf32, #tpu.memory_space<vmem>>, vector<4x256xf32>
    %c0_488 = arith.constant 0 : index
    %c44_489 = arith.constant 44 : index
    %1045 = vector.load %arg9[%c0_488, %c44_489] : memref<4x49xf32, #tpu.memory_space<vmem>>, vector<4x1xf32>
    %1046 = vector.broadcast %1001 : vector<1x256xf32> to vector<4x256xf32>
    %1047 = arith.mulf %1044, %1046 : vector<4x256xf32>
    %1048 = vector.broadcast %1045 : vector<4x1xf32> to vector<4x256xf32>
    %1049 = arith.mulf %1047, %1048 : vector<4x256xf32>
    %1050 = arith.addf %1043, %1049 : vector<4x256xf32>
    %c6_490 = arith.constant 6 : index
    %c0_491 = arith.constant 0 : index
    %1051 = vector.load %arg2[%c6_490, %c0_491] : memref<13x256xf32, #tpu.memory_space<vmem>>, vector<1x256xf32>
    %c0_492 = arith.constant 0 : index
    %c112 = arith.constant 112 : index
    %1052 = vector.load %arg14[%c0_492, %c112] : memref<4x665xf32, #tpu.memory_space<vmem>>, vector<4x256xf32>
    %c0_493 = arith.constant 0 : index
    %c3_494 = arith.constant 3 : index
    %1053 = vector.load %arg9[%c0_493, %c3_494] : memref<4x49xf32, #tpu.memory_space<vmem>>, vector<4x1xf32>
    %1054 = vector.broadcast %1051 : vector<1x256xf32> to vector<4x256xf32>
    %1055 = arith.mulf %1052, %1054 : vector<4x256xf32>
    %1056 = vector.broadcast %1053 : vector<4x1xf32> to vector<4x256xf32>
    %1057 = arith.mulf %1055, %1056 : vector<4x256xf32>
    %1058 = arith.addf %1050, %1057 : vector<4x256xf32>
    %c0_495 = arith.constant 0 : index
    %c160_496 = arith.constant 160 : index
    %1059 = vector.load %arg14[%c0_495, %c160_496] : memref<4x665xf32, #tpu.memory_space<vmem>>, vector<4x256xf32>
    %c0_497 = arith.constant 0 : index
    %c10_498 = arith.constant 10 : index
    %1060 = vector.load %arg9[%c0_497, %c10_498] : memref<4x49xf32, #tpu.memory_space<vmem>>, vector<4x1xf32>
    %1061 = vector.broadcast %1051 : vector<1x256xf32> to vector<4x256xf32>
    %1062 = arith.mulf %1059, %1061 : vector<4x256xf32>
    %1063 = vector.broadcast %1060 : vector<4x1xf32> to vector<4x256xf32>
    %1064 = arith.mulf %1062, %1063 : vector<4x256xf32>
    %1065 = arith.addf %1058, %1064 : vector<4x256xf32>
    %c0_499 = arith.constant 0 : index
    %c208_500 = arith.constant 208 : index
    %1066 = vector.load %arg14[%c0_499, %c208_500] : memref<4x665xf32, #tpu.memory_space<vmem>>, vector<4x256xf32>
    %c0_501 = arith.constant 0 : index
    %c17_502 = arith.constant 17 : index
    %1067 = vector.load %arg9[%c0_501, %c17_502] : memref<4x49xf32, #tpu.memory_space<vmem>>, vector<4x1xf32>
    %1068 = vector.broadcast %1051 : vector<1x256xf32> to vector<4x256xf32>
    %1069 = arith.mulf %1066, %1068 : vector<4x256xf32>
    %1070 = vector.broadcast %1067 : vector<4x1xf32> to vector<4x256xf32>
    %1071 = arith.mulf %1069, %1070 : vector<4x256xf32>
    %1072 = arith.addf %1065, %1071 : vector<4x256xf32>
    %c0_503 = arith.constant 0 : index
    %c256_504 = arith.constant 256 : index
    %1073 = vector.load %arg14[%c0_503, %c256_504] : memref<4x665xf32, #tpu.memory_space<vmem>>, vector<4x256xf32>
    %c0_505 = arith.constant 0 : index
    %c24_506 = arith.constant 24 : index
    %1074 = vector.load %arg9[%c0_505, %c24_506] : memref<4x49xf32, #tpu.memory_space<vmem>>, vector<4x1xf32>
    %1075 = vector.broadcast %1051 : vector<1x256xf32> to vector<4x256xf32>
    %1076 = arith.mulf %1073, %1075 : vector<4x256xf32>
    %1077 = vector.broadcast %1074 : vector<4x1xf32> to vector<4x256xf32>
    %1078 = arith.mulf %1076, %1077 : vector<4x256xf32>
    %1079 = arith.addf %1072, %1078 : vector<4x256xf32>
    %c0_507 = arith.constant 0 : index
    %c304_508 = arith.constant 304 : index
    %1080 = vector.load %arg14[%c0_507, %c304_508] : memref<4x665xf32, #tpu.memory_space<vmem>>, vector<4x256xf32>
    %c0_509 = arith.constant 0 : index
    %c31_510 = arith.constant 31 : index
    %1081 = vector.load %arg9[%c0_509, %c31_510] : memref<4x49xf32, #tpu.memory_space<vmem>>, vector<4x1xf32>
    %1082 = vector.broadcast %1051 : vector<1x256xf32> to vector<4x256xf32>
    %1083 = arith.mulf %1080, %1082 : vector<4x256xf32>
    %1084 = vector.broadcast %1081 : vector<4x1xf32> to vector<4x256xf32>
    %1085 = arith.mulf %1083, %1084 : vector<4x256xf32>
    %1086 = arith.addf %1079, %1085 : vector<4x256xf32>
    %c0_511 = arith.constant 0 : index
    %c352_512 = arith.constant 352 : index
    %1087 = vector.load %arg14[%c0_511, %c352_512] : memref<4x665xf32, #tpu.memory_space<vmem>>, vector<4x256xf32>
    %c0_513 = arith.constant 0 : index
    %c38_514 = arith.constant 38 : index
    %1088 = vector.load %arg9[%c0_513, %c38_514] : memref<4x49xf32, #tpu.memory_space<vmem>>, vector<4x1xf32>
    %1089 = vector.broadcast %1051 : vector<1x256xf32> to vector<4x256xf32>
    %1090 = arith.mulf %1087, %1089 : vector<4x256xf32>
    %1091 = vector.broadcast %1088 : vector<4x1xf32> to vector<4x256xf32>
    %1092 = arith.mulf %1090, %1091 : vector<4x256xf32>
    %1093 = arith.addf %1086, %1092 : vector<4x256xf32>
    %c0_515 = arith.constant 0 : index
    %c400 = arith.constant 400 : index
    %1094 = vector.load %arg14[%c0_515, %c400] : memref<4x665xf32, #tpu.memory_space<vmem>>, vector<4x256xf32>
    %c0_516 = arith.constant 0 : index
    %c45_517 = arith.constant 45 : index
    %1095 = vector.load %arg9[%c0_516, %c45_517] : memref<4x49xf32, #tpu.memory_space<vmem>>, vector<4x1xf32>
    %1096 = vector.broadcast %1051 : vector<1x256xf32> to vector<4x256xf32>
    %1097 = arith.mulf %1094, %1096 : vector<4x256xf32>
    %1098 = vector.broadcast %1095 : vector<4x1xf32> to vector<4x256xf32>
    %1099 = arith.mulf %1097, %1098 : vector<4x256xf32>
    %1100 = arith.addf %1093, %1099 : vector<4x256xf32>
    %c9_518 = arith.constant 9 : index
    %c0_519 = arith.constant 0 : index
    %1101 = vector.load %arg2[%c9_518, %c0_519] : memref<13x256xf32, #tpu.memory_space<vmem>>, vector<1x256xf32>
    %c0_520 = arith.constant 0 : index
    %c115 = arith.constant 115 : index
    %1102 = vector.load %arg14[%c0_520, %c115] : memref<4x665xf32, #tpu.memory_space<vmem>>, vector<4x256xf32>
    %c0_521 = arith.constant 0 : index
    %c4_522 = arith.constant 4 : index
    %1103 = vector.load %arg9[%c0_521, %c4_522] : memref<4x49xf32, #tpu.memory_space<vmem>>, vector<4x1xf32>
    %1104 = vector.broadcast %1101 : vector<1x256xf32> to vector<4x256xf32>
    %1105 = arith.mulf %1102, %1104 : vector<4x256xf32>
    %1106 = vector.broadcast %1103 : vector<4x1xf32> to vector<4x256xf32>
    %1107 = arith.mulf %1105, %1106 : vector<4x256xf32>
    %1108 = arith.addf %1100, %1107 : vector<4x256xf32>
    %c0_523 = arith.constant 0 : index
    %c163 = arith.constant 163 : index
    %1109 = vector.load %arg14[%c0_523, %c163] : memref<4x665xf32, #tpu.memory_space<vmem>>, vector<4x256xf32>
    %c0_524 = arith.constant 0 : index
    %c11_525 = arith.constant 11 : index
    %1110 = vector.load %arg9[%c0_524, %c11_525] : memref<4x49xf32, #tpu.memory_space<vmem>>, vector<4x1xf32>
    %1111 = vector.broadcast %1101 : vector<1x256xf32> to vector<4x256xf32>
    %1112 = arith.mulf %1109, %1111 : vector<4x256xf32>
    %1113 = vector.broadcast %1110 : vector<4x1xf32> to vector<4x256xf32>
    %1114 = arith.mulf %1112, %1113 : vector<4x256xf32>
    %1115 = arith.addf %1108, %1114 : vector<4x256xf32>
    %c0_526 = arith.constant 0 : index
    %c211_527 = arith.constant 211 : index
    %1116 = vector.load %arg14[%c0_526, %c211_527] : memref<4x665xf32, #tpu.memory_space<vmem>>, vector<4x256xf32>
    %c0_528 = arith.constant 0 : index
    %c18_529 = arith.constant 18 : index
    %1117 = vector.load %arg9[%c0_528, %c18_529] : memref<4x49xf32, #tpu.memory_space<vmem>>, vector<4x1xf32>
    %1118 = vector.broadcast %1101 : vector<1x256xf32> to vector<4x256xf32>
    %1119 = arith.mulf %1116, %1118 : vector<4x256xf32>
    %1120 = vector.broadcast %1117 : vector<4x1xf32> to vector<4x256xf32>
    %1121 = arith.mulf %1119, %1120 : vector<4x256xf32>
    %1122 = arith.addf %1115, %1121 : vector<4x256xf32>
    %c0_530 = arith.constant 0 : index
    %c259_531 = arith.constant 259 : index
    %1123 = vector.load %arg14[%c0_530, %c259_531] : memref<4x665xf32, #tpu.memory_space<vmem>>, vector<4x256xf32>
    %c0_532 = arith.constant 0 : index
    %c25_533 = arith.constant 25 : index
    %1124 = vector.load %arg9[%c0_532, %c25_533] : memref<4x49xf32, #tpu.memory_space<vmem>>, vector<4x1xf32>
    %1125 = vector.broadcast %1101 : vector<1x256xf32> to vector<4x256xf32>
    %1126 = arith.mulf %1123, %1125 : vector<4x256xf32>
    %1127 = vector.broadcast %1124 : vector<4x1xf32> to vector<4x256xf32>
    %1128 = arith.mulf %1126, %1127 : vector<4x256xf32>
    %1129 = arith.addf %1122, %1128 : vector<4x256xf32>
    %c0_534 = arith.constant 0 : index
    %c307_535 = arith.constant 307 : index
    %1130 = vector.load %arg14[%c0_534, %c307_535] : memref<4x665xf32, #tpu.memory_space<vmem>>, vector<4x256xf32>
    %c0_536 = arith.constant 0 : index
    %c32_537 = arith.constant 32 : index
    %1131 = vector.load %arg9[%c0_536, %c32_537] : memref<4x49xf32, #tpu.memory_space<vmem>>, vector<4x1xf32>
    %1132 = vector.broadcast %1101 : vector<1x256xf32> to vector<4x256xf32>
    %1133 = arith.mulf %1130, %1132 : vector<4x256xf32>
    %1134 = vector.broadcast %1131 : vector<4x1xf32> to vector<4x256xf32>
    %1135 = arith.mulf %1133, %1134 : vector<4x256xf32>
    %1136 = arith.addf %1129, %1135 : vector<4x256xf32>
    %c0_538 = arith.constant 0 : index
    %c355 = arith.constant 355 : index
    %1137 = vector.load %arg14[%c0_538, %c355] : memref<4x665xf32, #tpu.memory_space<vmem>>, vector<4x256xf32>
    %c0_539 = arith.constant 0 : index
    %c39_540 = arith.constant 39 : index
    %1138 = vector.load %arg9[%c0_539, %c39_540] : memref<4x49xf32, #tpu.memory_space<vmem>>, vector<4x1xf32>
    %1139 = vector.broadcast %1101 : vector<1x256xf32> to vector<4x256xf32>
    %1140 = arith.mulf %1137, %1139 : vector<4x256xf32>
    %1141 = vector.broadcast %1138 : vector<4x1xf32> to vector<4x256xf32>
    %1142 = arith.mulf %1140, %1141 : vector<4x256xf32>
    %1143 = arith.addf %1136, %1142 : vector<4x256xf32>
    %c0_541 = arith.constant 0 : index
    %c403 = arith.constant 403 : index
    %1144 = vector.load %arg14[%c0_541, %c403] : memref<4x665xf32, #tpu.memory_space<vmem>>, vector<4x256xf32>
    %c0_542 = arith.constant 0 : index
    %c46_543 = arith.constant 46 : index
    %1145 = vector.load %arg9[%c0_542, %c46_543] : memref<4x49xf32, #tpu.memory_space<vmem>>, vector<4x1xf32>
    %1146 = vector.broadcast %1101 : vector<1x256xf32> to vector<4x256xf32>
    %1147 = arith.mulf %1144, %1146 : vector<4x256xf32>
    %1148 = vector.broadcast %1145 : vector<4x1xf32> to vector<4x256xf32>
    %1149 = arith.mulf %1147, %1148 : vector<4x256xf32>
    %1150 = arith.addf %1143, %1149 : vector<4x256xf32>
    %c11_544 = arith.constant 11 : index
    %c0_545 = arith.constant 0 : index
    %1151 = vector.load %arg2[%c11_544, %c0_545] : memref<13x256xf32, #tpu.memory_space<vmem>>, vector<1x256xf32>
    %c0_546 = arith.constant 0 : index
    %c118 = arith.constant 118 : index
    %1152 = vector.load %arg14[%c0_546, %c118] : memref<4x665xf32, #tpu.memory_space<vmem>>, vector<4x256xf32>
    %c0_547 = arith.constant 0 : index
    %c5_548 = arith.constant 5 : index
    %1153 = vector.load %arg9[%c0_547, %c5_548] : memref<4x49xf32, #tpu.memory_space<vmem>>, vector<4x1xf32>
    %1154 = vector.broadcast %1151 : vector<1x256xf32> to vector<4x256xf32>
    %1155 = arith.mulf %1152, %1154 : vector<4x256xf32>
    %1156 = vector.broadcast %1153 : vector<4x1xf32> to vector<4x256xf32>
    %1157 = arith.mulf %1155, %1156 : vector<4x256xf32>
    %1158 = arith.addf %1150, %1157 : vector<4x256xf32>
    %c0_549 = arith.constant 0 : index
    %c166_550 = arith.constant 166 : index
    %1159 = vector.load %arg14[%c0_549, %c166_550] : memref<4x665xf32, #tpu.memory_space<vmem>>, vector<4x256xf32>
    %c0_551 = arith.constant 0 : index
    %c12_552 = arith.constant 12 : index
    %1160 = vector.load %arg9[%c0_551, %c12_552] : memref<4x49xf32, #tpu.memory_space<vmem>>, vector<4x1xf32>
    %1161 = vector.broadcast %1151 : vector<1x256xf32> to vector<4x256xf32>
    %1162 = arith.mulf %1159, %1161 : vector<4x256xf32>
    %1163 = vector.broadcast %1160 : vector<4x1xf32> to vector<4x256xf32>
    %1164 = arith.mulf %1162, %1163 : vector<4x256xf32>
    %1165 = arith.addf %1158, %1164 : vector<4x256xf32>
    %c0_553 = arith.constant 0 : index
    %c214 = arith.constant 214 : index
    %1166 = vector.load %arg14[%c0_553, %c214] : memref<4x665xf32, #tpu.memory_space<vmem>>, vector<4x256xf32>
    %c0_554 = arith.constant 0 : index
    %c19_555 = arith.constant 19 : index
    %1167 = vector.load %arg9[%c0_554, %c19_555] : memref<4x49xf32, #tpu.memory_space<vmem>>, vector<4x1xf32>
    %1168 = vector.broadcast %1151 : vector<1x256xf32> to vector<4x256xf32>
    %1169 = arith.mulf %1166, %1168 : vector<4x256xf32>
    %1170 = vector.broadcast %1167 : vector<4x1xf32> to vector<4x256xf32>
    %1171 = arith.mulf %1169, %1170 : vector<4x256xf32>
    %1172 = arith.addf %1165, %1171 : vector<4x256xf32>
    %c0_556 = arith.constant 0 : index
    %c262_557 = arith.constant 262 : index
    %1173 = vector.load %arg14[%c0_556, %c262_557] : memref<4x665xf32, #tpu.memory_space<vmem>>, vector<4x256xf32>
    %c0_558 = arith.constant 0 : index
    %c26_559 = arith.constant 26 : index
    %1174 = vector.load %arg9[%c0_558, %c26_559] : memref<4x49xf32, #tpu.memory_space<vmem>>, vector<4x1xf32>
    %1175 = vector.broadcast %1151 : vector<1x256xf32> to vector<4x256xf32>
    %1176 = arith.mulf %1173, %1175 : vector<4x256xf32>
    %1177 = vector.broadcast %1174 : vector<4x1xf32> to vector<4x256xf32>
    %1178 = arith.mulf %1176, %1177 : vector<4x256xf32>
    %1179 = arith.addf %1172, %1178 : vector<4x256xf32>
    %c0_560 = arith.constant 0 : index
    %c310 = arith.constant 310 : index
    %1180 = vector.load %arg14[%c0_560, %c310] : memref<4x665xf32, #tpu.memory_space<vmem>>, vector<4x256xf32>
    %c0_561 = arith.constant 0 : index
    %c33_562 = arith.constant 33 : index
    %1181 = vector.load %arg9[%c0_561, %c33_562] : memref<4x49xf32, #tpu.memory_space<vmem>>, vector<4x1xf32>
    %1182 = vector.broadcast %1151 : vector<1x256xf32> to vector<4x256xf32>
    %1183 = arith.mulf %1180, %1182 : vector<4x256xf32>
    %1184 = vector.broadcast %1181 : vector<4x1xf32> to vector<4x256xf32>
    %1185 = arith.mulf %1183, %1184 : vector<4x256xf32>
    %1186 = arith.addf %1179, %1185 : vector<4x256xf32>
    %c0_563 = arith.constant 0 : index
    %c358_564 = arith.constant 358 : index
    %1187 = vector.load %arg14[%c0_563, %c358_564] : memref<4x665xf32, #tpu.memory_space<vmem>>, vector<4x256xf32>
    %c0_565 = arith.constant 0 : index
    %c40_566 = arith.constant 40 : index
    %1188 = vector.load %arg9[%c0_565, %c40_566] : memref<4x49xf32, #tpu.memory_space<vmem>>, vector<4x1xf32>
    %1189 = vector.broadcast %1151 : vector<1x256xf32> to vector<4x256xf32>
    %1190 = arith.mulf %1187, %1189 : vector<4x256xf32>
    %1191 = vector.broadcast %1188 : vector<4x1xf32> to vector<4x256xf32>
    %1192 = arith.mulf %1190, %1191 : vector<4x256xf32>
    %1193 = arith.addf %1186, %1192 : vector<4x256xf32>
    %c0_567 = arith.constant 0 : index
    %c406 = arith.constant 406 : index
    %1194 = vector.load %arg14[%c0_567, %c406] : memref<4x665xf32, #tpu.memory_space<vmem>>, vector<4x256xf32>
    %c0_568 = arith.constant 0 : index
    %c47_569 = arith.constant 47 : index
    %1195 = vector.load %arg9[%c0_568, %c47_569] : memref<4x49xf32, #tpu.memory_space<vmem>>, vector<4x1xf32>
    %1196 = vector.broadcast %1151 : vector<1x256xf32> to vector<4x256xf32>
    %1197 = arith.mulf %1194, %1196 : vector<4x256xf32>
    %1198 = vector.broadcast %1195 : vector<4x1xf32> to vector<4x256xf32>
    %1199 = arith.mulf %1197, %1198 : vector<4x256xf32>
    %1200 = arith.addf %1193, %1199 : vector<4x256xf32>
    %c12_570 = arith.constant 12 : index
    %c0_571 = arith.constant 0 : index
    %1201 = vector.load %arg2[%c12_570, %c0_571] : memref<13x256xf32, #tpu.memory_space<vmem>>, vector<1x256xf32>
    %c0_572 = arith.constant 0 : index
    %c121 = arith.constant 121 : index
    %1202 = vector.load %arg14[%c0_572, %c121] : memref<4x665xf32, #tpu.memory_space<vmem>>, vector<4x256xf32>
    %c0_573 = arith.constant 0 : index
    %c6_574 = arith.constant 6 : index
    %1203 = vector.load %arg9[%c0_573, %c6_574] : memref<4x49xf32, #tpu.memory_space<vmem>>, vector<4x1xf32>
    %1204 = vector.broadcast %1201 : vector<1x256xf32> to vector<4x256xf32>
    %1205 = arith.mulf %1202, %1204 : vector<4x256xf32>
    %1206 = vector.broadcast %1203 : vector<4x1xf32> to vector<4x256xf32>
    %1207 = arith.mulf %1205, %1206 : vector<4x256xf32>
    %1208 = arith.addf %1200, %1207 : vector<4x256xf32>
    %c0_575 = arith.constant 0 : index
    %c169 = arith.constant 169 : index
    %1209 = vector.load %arg14[%c0_575, %c169] : memref<4x665xf32, #tpu.memory_space<vmem>>, vector<4x256xf32>
    %c0_576 = arith.constant 0 : index
    %c13_577 = arith.constant 13 : index
    %1210 = vector.load %arg9[%c0_576, %c13_577] : memref<4x49xf32, #tpu.memory_space<vmem>>, vector<4x1xf32>
    %1211 = vector.broadcast %1201 : vector<1x256xf32> to vector<4x256xf32>
    %1212 = arith.mulf %1209, %1211 : vector<4x256xf32>
    %1213 = vector.broadcast %1210 : vector<4x1xf32> to vector<4x256xf32>
    %1214 = arith.mulf %1212, %1213 : vector<4x256xf32>
    %1215 = arith.addf %1208, %1214 : vector<4x256xf32>
    %c0_578 = arith.constant 0 : index
    %c217 = arith.constant 217 : index
    %1216 = vector.load %arg14[%c0_578, %c217] : memref<4x665xf32, #tpu.memory_space<vmem>>, vector<4x256xf32>
    %c0_579 = arith.constant 0 : index
    %c20_580 = arith.constant 20 : index
    %1217 = vector.load %arg9[%c0_579, %c20_580] : memref<4x49xf32, #tpu.memory_space<vmem>>, vector<4x1xf32>
    %1218 = vector.broadcast %1201 : vector<1x256xf32> to vector<4x256xf32>
    %1219 = arith.mulf %1216, %1218 : vector<4x256xf32>
    %1220 = vector.broadcast %1217 : vector<4x1xf32> to vector<4x256xf32>
    %1221 = arith.mulf %1219, %1220 : vector<4x256xf32>
    %1222 = arith.addf %1215, %1221 : vector<4x256xf32>
    %c0_581 = arith.constant 0 : index
    %c265 = arith.constant 265 : index
    %1223 = vector.load %arg14[%c0_581, %c265] : memref<4x665xf32, #tpu.memory_space<vmem>>, vector<4x256xf32>
    %c0_582 = arith.constant 0 : index
    %c27_583 = arith.constant 27 : index
    %1224 = vector.load %arg9[%c0_582, %c27_583] : memref<4x49xf32, #tpu.memory_space<vmem>>, vector<4x1xf32>
    %1225 = vector.broadcast %1201 : vector<1x256xf32> to vector<4x256xf32>
    %1226 = arith.mulf %1223, %1225 : vector<4x256xf32>
    %1227 = vector.broadcast %1224 : vector<4x1xf32> to vector<4x256xf32>
    %1228 = arith.mulf %1226, %1227 : vector<4x256xf32>
    %1229 = arith.addf %1222, %1228 : vector<4x256xf32>
    %c0_584 = arith.constant 0 : index
    %c313 = arith.constant 313 : index
    %1230 = vector.load %arg14[%c0_584, %c313] : memref<4x665xf32, #tpu.memory_space<vmem>>, vector<4x256xf32>
    %c0_585 = arith.constant 0 : index
    %c34_586 = arith.constant 34 : index
    %1231 = vector.load %arg9[%c0_585, %c34_586] : memref<4x49xf32, #tpu.memory_space<vmem>>, vector<4x1xf32>
    %1232 = vector.broadcast %1201 : vector<1x256xf32> to vector<4x256xf32>
    %1233 = arith.mulf %1230, %1232 : vector<4x256xf32>
    %1234 = vector.broadcast %1231 : vector<4x1xf32> to vector<4x256xf32>
    %1235 = arith.mulf %1233, %1234 : vector<4x256xf32>
    %1236 = arith.addf %1229, %1235 : vector<4x256xf32>
    %c0_587 = arith.constant 0 : index
    %c361 = arith.constant 361 : index
    %1237 = vector.load %arg14[%c0_587, %c361] : memref<4x665xf32, #tpu.memory_space<vmem>>, vector<4x256xf32>
    %c0_588 = arith.constant 0 : index
    %c41_589 = arith.constant 41 : index
    %1238 = vector.load %arg9[%c0_588, %c41_589] : memref<4x49xf32, #tpu.memory_space<vmem>>, vector<4x1xf32>
    %1239 = vector.broadcast %1201 : vector<1x256xf32> to vector<4x256xf32>
    %1240 = arith.mulf %1237, %1239 : vector<4x256xf32>
    %1241 = vector.broadcast %1238 : vector<4x1xf32> to vector<4x256xf32>
    %1242 = arith.mulf %1240, %1241 : vector<4x256xf32>
    %1243 = arith.addf %1236, %1242 : vector<4x256xf32>
    %c0_590 = arith.constant 0 : index
    %c409 = arith.constant 409 : index
    %1244 = vector.load %arg14[%c0_590, %c409] : memref<4x665xf32, #tpu.memory_space<vmem>>, vector<4x256xf32>
    %c0_591 = arith.constant 0 : index
    %c48_592 = arith.constant 48 : index
    %1245 = vector.load %arg9[%c0_591, %c48_592] : memref<4x49xf32, #tpu.memory_space<vmem>>, vector<4x1xf32>
    %1246 = vector.broadcast %1201 : vector<1x256xf32> to vector<4x256xf32>
    %1247 = arith.mulf %1244, %1246 : vector<4x256xf32>
    %1248 = vector.broadcast %1245 : vector<4x1xf32> to vector<4x256xf32>
    %1249 = arith.mulf %1247, %1248 : vector<4x256xf32>
    %1250 = arith.addf %1243, %1249 : vector<4x256xf32>
    %c0_593 = arith.constant 0 : index
    %c0_594 = arith.constant 0 : index
    %1251 = vector.load %arg10[%c0_593, %c0_594] : memref<4x1xf32, #tpu.memory_space<vmem>>, vector<4x1xf32>
    %1252 = vector.broadcast %1251 : vector<4x1xf32> to vector<4x256xf32>
    %1253 = arith.addf %1250, %1252 : vector<4x256xf32>
    %1254 = arith.addf %188, %1253 : vector<4x256xf32>
    %cst_595 = arith.constant 0.000000e+00 : f32
    %1255 = vector.broadcast %cst_595 : f32 to vector<4x256xf32>
    %c0_596 = arith.constant 0 : index
    %c0_597 = arith.constant 0 : index
    %1256 = vector.load %arg11[%c0_596, %c0_597] : memref<4x4xf32, #tpu.memory_space<vmem>>, vector<4x1xf32>
    %1257 = vector.extract_strided_slice %1254 {offsets = [0, 0], sizes = [1, 256], strides = [1, 1]} : vector<4x256xf32> to vector<1x256xf32>
    %1258 = vector.broadcast %1256 : vector<4x1xf32> to vector<4x256xf32>
    %1259 = vector.broadcast %1257 : vector<1x256xf32> to vector<4x256xf32>
    %1260 = arith.mulf %1258, %1259 : vector<4x256xf32>
    %1261 = arith.addf %1255, %1260 : vector<4x256xf32>
    %c0_598 = arith.constant 0 : index
    %c1_599 = arith.constant 1 : index
    %1262 = vector.load %arg11[%c0_598, %c1_599] : memref<4x4xf32, #tpu.memory_space<vmem>>, vector<4x1xf32>
    %1263 = vector.extract_strided_slice %1254 {offsets = [1, 0], sizes = [1, 256], strides = [1, 1]} : vector<4x256xf32> to vector<1x256xf32>
    %1264 = vector.broadcast %1262 : vector<4x1xf32> to vector<4x256xf32>
    %1265 = vector.broadcast %1263 : vector<1x256xf32> to vector<4x256xf32>
    %1266 = arith.mulf %1264, %1265 : vector<4x256xf32>
    %1267 = arith.addf %1261, %1266 : vector<4x256xf32>
    %c0_600 = arith.constant 0 : index
    %c2_601 = arith.constant 2 : index
    %1268 = vector.load %arg11[%c0_600, %c2_601] : memref<4x4xf32, #tpu.memory_space<vmem>>, vector<4x1xf32>
    %1269 = vector.extract_strided_slice %1254 {offsets = [2, 0], sizes = [1, 256], strides = [1, 1]} : vector<4x256xf32> to vector<1x256xf32>
    %1270 = vector.broadcast %1268 : vector<4x1xf32> to vector<4x256xf32>
    %1271 = vector.broadcast %1269 : vector<1x256xf32> to vector<4x256xf32>
    %1272 = arith.mulf %1270, %1271 : vector<4x256xf32>
    %1273 = arith.addf %1267, %1272 : vector<4x256xf32>
    %c0_602 = arith.constant 0 : index
    %c3_603 = arith.constant 3 : index
    %1274 = vector.load %arg11[%c0_602, %c3_603] : memref<4x4xf32, #tpu.memory_space<vmem>>, vector<4x1xf32>
    %1275 = vector.extract_strided_slice %1254 {offsets = [3, 0], sizes = [1, 256], strides = [1, 1]} : vector<4x256xf32> to vector<1x256xf32>
    %1276 = vector.broadcast %1274 : vector<4x1xf32> to vector<4x256xf32>
    %1277 = vector.broadcast %1275 : vector<1x256xf32> to vector<4x256xf32>
    %1278 = arith.mulf %1276, %1277 : vector<4x256xf32>
    %1279 = arith.addf %1273, %1278 : vector<4x256xf32>
    %c0_604 = arith.constant 0 : index
    %c0_605 = arith.constant 0 : index
    %1280 = vector.load %arg12[%c0_604, %c0_605] : memref<4x1xf32, #tpu.memory_space<vmem>>, vector<4x1xf32>
    %1281 = vector.broadcast %1280 : vector<4x1xf32> to vector<4x256xf32>
    %1282 = arith.addf %1279, %1281 : vector<4x256xf32>
    %1283 = arith.mulf %1282, %3 : vector<4x256xf32>
    %c0_606 = arith.constant 0 : index
    %c0_607 = arith.constant 0 : index
    %c0_608 = arith.constant 0 : index
    %1284 = vector.load %arg13[%c0_606, %c0_607, %c0_608] : memref<1x4x256xf32, #tpu.memory_space<vmem>>, vector<1x4x256xf32>
    %1285 = vector.shape_cast %1284 : vector<1x4x256xf32> to vector<4x256xf32>
    %1286 = vector.shape_cast %1283 : vector<4x256xf32> to vector<1x4x256xf32>
    tpu.vector_store %arg13[%c0_606, %c0_607, %c0_608], %1286 {strides = array<i32>} : memref<1x4x256xf32, #tpu.memory_space<vmem>>, vector<1x4x256xf32>,
    return
  }
  func.func @transform_0(%arg0: i32) -> (i32, i32, i32) {
    %c0_i32 = arith.constant 0 : i32
    %c0_i32_0 = arith.constant 0 : i32
    %c0_i32_1 = arith.constant 0 : i32
    return %arg0, %c0_i32, %c0_i32_0 : i32, i32, i32
  }
  func.func @transform_1(%arg0: i32) -> (i32, i32) {
    %c0_i32 = arith.constant 0 : i32
    %c0_i32_0 = arith.constant 0 : i32
    %c0_i32_1 = arith.constant 0 : i32
    return %c0_i32, %c0_i32_0 : i32, i32
  }
  func.func @transform_2(%arg0: i32) -> (i32, i32) {
    %c0_i32 = arith.constant 0 : i32
    %c0_i32_0 = arith.constant 0 : i32
    %c0_i32_1 = arith.constant 0 : i32
    return %c0_i32, %c0_i32_0 : i32, i32
  }
  func.func @transform_3(%arg0: i32) -> (i32, i32) {
    %c0_i32 = arith.constant 0 : i32
    %c0_i32_0 = arith.constant 0 : i32
    %c0_i32_1 = arith.constant 0 : i32
    return %c0_i32, %c0_i32_0 : i32, i32
  }
  func.func @transform_4(%arg0: i32) -> (i32, i32) {
    %c0_i32 = arith.constant 0 : i32
    %c0_i32_0 = arith.constant 0 : i32
    %c0_i32_1 = arith.constant 0 : i32
    return %c0_i32, %c0_i32_0 : i32, i32
  }
  func.func @transform_5(%arg0: i32) -> (i32, i32) {
    %c0_i32 = arith.constant 0 : i32
    %c0_i32_0 = arith.constant 0 : i32
    %c0_i32_1 = arith.constant 0 : i32
    return %c0_i32, %c0_i32_0 : i32, i32
  }
  func.func @transform_6(%arg0: i32) -> (i32, i32) {
    %c0_i32 = arith.constant 0 : i32
    %c0_i32_0 = arith.constant 0 : i32
    %c0_i32_1 = arith.constant 0 : i32
    return %c0_i32, %c0_i32_0 : i32, i32
  }
  func.func @transform_7(%arg0: i32) -> (i32, i32) {
    %c0_i32 = arith.constant 0 : i32
    %c0_i32_0 = arith.constant 0 : i32
    %c0_i32_1 = arith.constant 0 : i32
    return %c0_i32, %c0_i32_0 : i32, i32
  }
  func.func @transform_8(%arg0: i32) -> (i32, i32) {
    %c0_i32 = arith.constant 0 : i32
    %c0_i32_0 = arith.constant 0 : i32
    %c0_i32_1 = arith.constant 0 : i32
    return %c0_i32, %c0_i32_0 : i32, i32
  }
  func.func @transform_9(%arg0: i32) -> (i32, i32) {
    %c0_i32 = arith.constant 0 : i32
    %c0_i32_0 = arith.constant 0 : i32
    %c0_i32_1 = arith.constant 0 : i32
    return %c0_i32, %c0_i32_0 : i32, i32
  }
  func.func @transform_10(%arg0: i32) -> (i32, i32) {
    %c0_i32 = arith.constant 0 : i32
    %c0_i32_0 = arith.constant 0 : i32
    %c0_i32_1 = arith.constant 0 : i32
    return %c0_i32, %c0_i32_0 : i32, i32
  }
  func.func @transform_11(%arg0: i32) -> (i32, i32) {
    %c0_i32 = arith.constant 0 : i32
    %c0_i32_0 = arith.constant 0 : i32
    %c0_i32_1 = arith.constant 0 : i32
    return %c0_i32, %c0_i32_0 : i32, i32
  }
  func.func @transform_12(%arg0: i32) -> (i32, i32, i32) {
    %c0_i32 = arith.constant 0 : i32
    %c0_i32_0 = arith.constant 0 : i32
    %c0_i32_1 = arith.constant 0 : i32
    return %arg0, %c0_i32, %c0_i32_0 : i32, i32, i32
  }
}

</mosaic_0001>

<bundles_post_ra>
// kernel: attention_module6.1
= control target key start
LH: loop header
LB: loop body
LE: loop exit
PB: predicated region body
PF: predicated region fallthrough
CT: control target
= control target key end

     0   :  { %s8207_s21 = smov 0   ;;  %s12517_s0 = inlined_call_operand.vmem [shape: f32[2,4,256], index: 0, kind: input, shape index: {}]   ;;  %s12518_s1 = inlined_call_operand.vmem [shape: f32[13,256], index: 1, kind: input, shape index: {}]   ;;  %s12519_s2 = inlined_call_operand.vmem [shape: f32[4,25], index: 2, kind: input, shape index: {}]   ;;  %s12520_s3 = inlined_call_operand.vmem [shape: f32[4,1], index: 3, kind: input, shape index: {}]   ;;  %s12521_s4 = inlined_call_operand.vmem [shape: f32[4,49], index: 4, kind: input, shape index: {}]   ;;  %s12522_s5 = inlined_call_operand.vmem [shape: f32[4,1], index: 5, kind: input, shape index: {}]   ;;  %s12523_s6 = inlined_call_operand.vmem [shape: f32[4,49], index: 6, kind: input, shape index: {}]   ;;  %s12524_s7 = inlined_call_operand.vmem [shape: f32[4,1], index: 7, kind: input, shape index: {}]   ;;  %s12525_s8 = inlined_call_operand.vmem [shape: f32[4,49], index: 8, kind: input, shape index: {}]   ;;  %s12526_s9 = inlined_call_operand.vmem [shape: f32[4,1], index: 9, kind: input, shape index: {}]   ;;  %s12527_s10 = inlined_call_operand.vmem [shape: f32[4,4], index: 10, kind: input, shape index: {}]   ;;  %s12528_s11 = inlined_call_operand.vmem [shape: f32[4,1], index: 11, kind: input, shape index: {}]   ;;  %s12529_s12 = inlined_call_operand.vmem [shape: f32[2,4,256], index: 12, kind: output, shape index: {}]  }
   0x1   :  { %13007 = sst [smem:[#allocation77_spill]] %s12517_s0 }
   0x2   :  { %13008 = sst [smem:[#allocation78_spill]] %s12519_s2 }
   0x3   :  { %13009 = sst [smem:[#allocation79_spill]] %s12520_s3 }
   0x4   :  { %13010 = sst [smem:[#allocation80_spill]] %s12521_s4 }
   0x5   :  { %13011 = sst [smem:[#allocation81_spill]] %s12522_s5 }
   0x6   :  { %13012 = sst [smem:[#allocation82_spill]] %s12526_s9 }
   0x7   :  { %13013 = sst [smem:[#allocation83_spill]] %s12527_s10 }
   0x8   :  { %13014 = sst [smem:[#allocation84_spill]] %s12528_s11 }
   0x9   :  { %13015 = sst [smem:[#allocation85_spill]] %s12529_s12 }
   0xa LB: > { %13016 = sst [smem:[#allocation3_spill]] %s7978_s21  ;;  %s7578_s22 = sadd.s32 4294967295, %s7978_s21   ;;  %s7978_s21 = sphi %s8207_s21, %s22_s21  }
   0xb   : > { %p7582_p0 = scmp.ge.s32.totalorder %s7978_s21, 1  ;;  %p362_p1 = scmp.lt.s32.totalorder %s7978_s21, 3 }
   0xd   : > { %p363_p2 = pnand %p7582_p0, %p362_p1 }
   0xf   : > { %366 = sbr.rel (%p363_p2) target bundleno = 10962 (0x2ad2), region = 68 }
  0x16   : > { %s13017_s2 = sld [smem:[#allocation78_spill]]  ;;  %v428_v2 = vlaneseq  ;;  %v12576_v3 = vmov 10   ;;  %v12561_v4 = vmov 5   ;;  %v7587_v6 = vld [vmem:[%s12518_s1 + $0x4] ss:$8 sm:$0x3] }
  0x17   : > { %7787 = vset.pattern.permute.xlu0 %v12576_v3  ;;  %7786 = vset.pattern.permute.xlu1 %v12561_v4  ;;  %v12604_v11 = vmov 15   ;;  %s12705_s29 = smov 110   ;;  %s12703_s30 = smov 94   ;;  %v7588_v13 = vld [vmem:[%s12518_s1 + $0x5] ss:$8 sm:$0x3] }
  0x18   : > { %v8223_v5 = vshrl.u32 %v428_v2, 7  ;;  %v12559_v14 = vmov 12   ;;  %s12707_s15 = smov 126   ;;  %s12536_s16 = smov 14   ;;  %v7988_v18 = vmov 0.0   ;;  %vm416_vm0 = vcmask 1043456  }
  0x19   : > { %p404_p3 = scmp.lt.s32.totalorder %s7578_s22, 1  ;;  %414 = vst [vmem:[#allocation2] sm:$0xff] %v7988_v18  ;;  %vm417_vm1 = vcmask 203780   ;;  %s12534_s19 = smov 30   ;;  %v12553_v22 = vmov 20   ;;  %v12612_v24 = vmov 1  }
  0x1a   : > { %13018 = vst [vmem:[#allocation4_spill] sm:$0xff] %v8223_v5  ;;  %v8229_v7 = vsub.s32 0, %v8223_v5  ;;  %v8232_v8 = vsub.s32 1, %v8223_v5  ;;  %vm418_vm2 = vmor %vm417_vm1, %vm416_vm0  ;;  %s13022_s0 = sld [smem:[#allocation77_spill]]  ;;  %s12590_s28 = smov 95   ;;  %v12557_v27 = vmov 6  }
  0x1b   : > { %s13749_s22 = smov (!%p404_p3, %s7578_s22), 1  ;;  %419 = vst.msk [vmem:[#allocation2 + $0x10] sm:$0xff] %vm418_vm2, %v7988_v18  ;;  %s12578_s17 = smov 111   ;;  %v7589_v26 = vld [vmem:[%s12518_s1 + $0x6] ss:$8 sm:$0x3] }
  0x1c   : > { %v505_v0 = vld [vmem:[%s13017_s2] sm:$0xf]  ;;  %13019 = vst [vmem:[#allocation5_spill] sm:$0xff] %v8229_v7  ;;  %13020 = vst [vmem:[#allocation6_spill] sm:$0xff] %v8232_v8  ;;  %v431_v9 = vrot.slane %v7587_v6, %v8229_v7  ;;  %v435_v10 = vrot.slane %v7587_v6, %v8232_v8  ;;  %v633_v15 = vrot.slane %v7588_v13, %v8229_v7  ;;  %13021 = sst [smem:[#allocation7_spill]] %s13749_s22  ;;  %s12530_s20 = sshll.u32 %s13749_s22, 3 }
  0x1d   : > { %v464_v1 = vld [vmem:[%s13017_s2] sm:$0xf]  ;;  %517 = vperm.xlu0 %7787, %v505_v0   ;;  %v637_v16 = vrot.slane %v7588_v13, %v8232_v8  ;;  %s12550_s18 = smov 127   ;;  %s12533_s27 = smov 15   ;;  %v845_v28 = vrot.slane %v7589_v26, %v8229_v7  ;;  %v849_v29 = vrot.slane %v7589_v26, %v8232_v8  ;;  %v12570_v31 = vmov 11  }
  0x1e   : > { %476 = vperm.xlu1 %7786, %v464_v1   ;;  %v436_v12 = vcombine.low %v431_v9, %v435_v10  ;;  %v546_v17 = vld [vmem:[%s13017_s2] sm:$0xf]  ;;  %s12531_s23 = smov 31   ;;  %v12587_v34 = vmov 16   ;;  %s12546_s26 = smov 96   ;;  %v12614_v36 = vmov 21  }
  0x1f   : > { %v638_v19 = vcombine.low %v633_v15, %v637_v16  ;;  %v586_v20 = vld [vmem:[%s13017_s2] sm:$0xf]  ;;  %v8293_v32 = vcombine.low %v845_v28, %v849_v29  ;;  %v12593_v39 = vmov 2   ;;  %v12572_v41 = vmov 17   ;;  %s12542_s13 = smov 16   ;;  %s12641_s14 = smov 79  }
  0x20   : > { %s408_s25 = scalar_lea.vmem %s13022_s0, %s12530_s20  ;;  %v628_v23 = vld [vmem:[%s13017_s2] sm:$0xf]  ;;  %s12544_s20 = smov 112   ;;  %v12625_v43 = vmov 7   ;;  %v12633_v46 = vmov 0   ;;  %v12602_v49 = vmov 22  }
  0x21   : > { %437 = vrot.lane.b32.xlu0 %v436_v12, %s12703_s30  ;;  %v8267_v21 = vld [vmem:[%s408_s25] sm:$0xff]  ;;  %v12583_v53 = vmov 3   ;;  %v12607_v55 = vmov 8   ;;  %v12555_v56 = vmov 13   ;;  %v8015_v57 = vmov 839922192  }
  0x22   : > { %7788 = vset.pattern.permute.xlu1 %v12604_v11  ;;  %7797 = vset.pattern.permute.xlu0 %v12559_v14  ;;  %13023 = vst [vmem:[#allocation8_spill] sm:$0xff] %v8267_v21  ;;  %421 = vst [vmem:[#allocation2 + $0x8] sm:$0xff] %v8267_v21  ;;  %v679_v25 = vld [vmem:[%s13017_s2] sm:$0xf]  ;;  %v451_v58 = vunpack.c.l.s4 %v8015_v57  ;;  %vm12895_vm3 = vcmask 900096   ;;  %vm12969_vm4 = vcmask 1031168  }
  0x23   : > { %465 = vrot.lane.b32.xlu1 %v436_v12, %s12705_s29  ;;  %v719_v30 = vld [vmem:[%s13017_s2] sm:$0xf]  ;;  %v7590_v45 = vld [vmem:[%s12518_s1 + $0x7] ss:$8 sm:$0x3]  ;;  %vm12752_vm5 = vcmask 113664  }
  0x24   : > { %v758_v33 = vld [vmem:[%s13017_s2] sm:$0xf]  ;;  %v1041_v47 = vrot.slane %v7590_v45, %v8229_v7  ;;  %v1045_v48 = vrot.slane %v7590_v45, %v8232_v8  ;;  %v452_v59 = vunpack.c.0.s8 %v451_v58  ;;  %vm12746_vm6 = vcmask 244736   ;;  %v585_v58 = vld [vmem:[#allocation2 + $0x10] sm:$0xf]  ;;  %s12709_s25 = smov 64  }
  0x25   : > { %547 = vrot.lane.b32.xlu0 %v436_v12, %s12536_s16  ;;  %v798_v35 = vld [vmem:[%s13017_s2] sm:$0xf]  ;;  %s12645_s16 = smov 32   ;;  %vm12743_vm7 = vcmask 777216   ;;  %vm12741_vm8 = vcmask 908288   ;;  %vm12740_vm9 = vcmask 1039360  }
  0x26   : > { %v927_v37 = vld [vmem:[%s13017_s2] sm:$0xf]  ;;  %v8339_v51 = vcombine.low %v1041_v47, %v1045_v48  ;;  %v8355_v62 = vsub.s32 %v452_v59, %v8223_v5  ;;  %vm762_vm10 = vcmask 121856   ;;  %vm12739_vm11 = vcmask 252928   ;;  %s12643_s24 = smov 63   ;;  %s13025_s3 = sld [smem:[#allocation79_spill]] }
  0x27   : > { %506 = vrot.lane.b32.xlu1 %v436_v12, %s12707_s15  ;;  %v840_v38 = vld [vmem:[%s13017_s2] sm:$0xf]  ;;  %vm12737_vm12 = vcmask 785408   ;;  %vm12734_vm13 = vcmask 916480   ;;  %vm12733_vm14 = vcmask 130048   ;;  %vm12731_vm15 = vcmask 261120  }
  0x28   : > { %v954_v40 = vld [vmem:[%s13017_s2] sm:$0xf]  ;;  %vm12717_vm1 = vcmask 793600   ;;  %vm12552_vm2 = vcmask 924672   ;;  %s13026_s4 = sld [smem:[#allocation80_spill]]  ;;  %s13084_s0 = smov 48  }
  0x29   : > { %587 = vrot.lane.b32.xlu0 %v436_v12, %s12534_s19  ;;  %v889_v42 = vld [vmem:[%s13017_s2] sm:$0xf]  ;;  %v463_v0 = vld [vmem:[#allocation2 + $0xc] sm:$0xf]  ;;  %v8359_v2 = vld [vmem:[#allocation2 + $0x4] sm:$0xff]  ;;  %s12548_s19 = smov 80  }
  0x2a   : > { %v426_v44 = vld [vmem:[%s13017_s2] sm:$0xf]  ;;  %s13142_s9 = smov 16   ;;  %s13148_s10 = smov 109  }
  0x2b   : > { %558 = vperm.xlu1 %7788, %v546_v17   ;;  %v994_v50 = vld [vmem:[%s13017_s2] sm:$0xf]  ;;  %s13149_s11 = smov 93   ;;  %s13151_s22 = smov 61  }
  0x2c   : > { %v1036_v52 = vld [vmem:[%s13017_s2] sm:$0xf]  ;;  %s13154_s12 = smov 45   ;;  %s13183_s21 = smov 108  }
  0x2d   : > { %639 = vrot.lane.b32.xlu0 %v638_v19, %s12590_s28  ;;  %v1087_v54 = vld [vmem:[%s13017_s2] sm:$0xf]  ;;  %s13250_s5 = sld [smem:[#allocation81_spill]] }
  0x2e   : > { %v1208_v3 = vld [vmem:[%s13017_s2] sm:$0xf] }
  0x2f   : > { %7789 = vset.pattern.permute.xlu1 %v12553_v22 }
  0x30   : > { %598 = vperm.xlu1 %7789, %v586_v20  }
  0x31   : > { %680 = vrot.lane.b32.xlu0 %v638_v19, %s12578_s17 }
  0x34   : > { %7790 = vset.pattern.permute.xlu1 %v12612_v24 }
  0x35   : > { %650 = vperm.xlu1 %7790, %v628_v23   ;;  %720 = vrot.lane.b32.xlu0 %v638_v19, %s12550_s18 }
  0x39   : > { %7791 = vset.pattern.permute.xlu1 %v12557_v27  ;;  %759 = vrot.lane.b32.xlu0 %v638_v19, %s12533_s27  ;;  %s12540_s27 = smov 97  }
  0x3a   : > { %691 = vperm.xlu1 %7791, %v679_v25   ;;  %v504_v25 = vld [vmem:[#allocation2 + $0xc] sm:$0xf] }
  0x3d   : > { %799 = vrot.lane.b32.xlu0 %v638_v19, %s12531_s23  ;;  %s12538_s23 = smov 113  }
  0x3e   : > { %7792 = vset.pattern.permute.xlu1 %v12570_v31 }
  0x3f   : > { %730 = vperm.xlu1 %7792, %v719_v30  }
  0x41   : > { %851 = vrot.lane.b32.xlu0 %v8293_v32, %s12546_s26 }
  0x43   : > { %7793 = vset.pattern.permute.xlu1 %v12587_v34 }
  0x44   : > { %770 = vperm.xlu1 %7793, %v758_v33  }
  0x45   : > { %890 = vrot.lane.b32.xlu0 %v8293_v32, %s12544_s20 }
  0x48   : > { %7794 = vset.pattern.permute.xlu1 %v12614_v36 }
  0x49   : > { %810 = vperm.xlu1 %7794, %v798_v35   ;;  %932 = vperm.xlu0 %7797, %v927_v37  }
  0x4d   : > { %7795 = vset.pattern.permute.xlu1 %v12593_v39  ;;  %7798 = vset.pattern.permute.xlu0 %v12572_v41 }
  0x4e   : > { %861 = vperm.xlu1 %7795, %v840_v38   ;;  %966 = vperm.xlu0 %7798, %v954_v40  }
  0x52   : > { %7796 = vset.pattern.permute.xlu1 %v12625_v43  ;;  %7799 = vset.pattern.permute.xlu0 %v12633_v46 }
  0x53   : > { %900 = vperm.xlu1 %7796, %v889_v42   ;;  %448 = vperm.xlu0 %7799, %v426_v44   ;;  %v545_v42 = vld [vmem:[#allocation2 + $0x10] sm:$0xf] }
  0x57   : > { %955 = vrot.lane.b32.xlu1 %v8293_v32, %s12542_s13  ;;  %995 = vrot.lane.b32.xlu0 %v8293_v32, %s12645_s16  ;;  %s12680_s13 = smov 125   ;;  %s13048_s16 = smov 14  }
  0x58   : > { %7800 = vset.pattern.permute.xlu1 %v12602_v49 }
  0x5b   : > { %1006 = vperm.xlu1 %7800, %v994_v50   ;;  %1047 = vrot.lane.b32.xlu0 %v8339_v51, %s12540_s27  ;;  %s12567_s27 = smov 62  }
  0x5f   : > { %7801 = vset.pattern.permute.xlu1 %v12583_v53  ;;  %1088 = vrot.lane.b32.xlu0 %v8339_v51, %s12538_s23  ;;  %s12682_s23 = smov 78  }
  0x60   : > { %1058 = vperm.xlu1 %7801, %v1036_v52  }
  0x64   : > { %7802 = vset.pattern.permute.xlu1 %v12607_v55  ;;  %v1342_v55 = vld [vmem:[%s13017_s2] sm:$0xf] }
  0x65   : > { %1099 = vperm.xlu1 %7802, %v1087_v54  }
  0x69   : > { %7803 = vset.pattern.permute.xlu1 %v12555_v56 }
  0x9c   : > { %v518_v60 = vpop.permute.xlu0 %517 }
  0x9d   : > { %v477_v61 = vpop.permute.xlu1 %476  ;;  %v525_v19 = vrot.slane %v518_v60, %v8355_v62 }
  0x9e   : > { %v484_v9 = vrot.slane %v477_v61, %v8355_v62 }
  0xa0   : > { %v8357_v1 = vpop.permute.xlu0 %437 }
  0xa1   : > { %v466_v63 = vpop.permute.xlu1 %465 }
  0xa2   : > { %v467_v6 = vrot.slane %v466_v63, 4 }
  0xa4   : > { %v469_v10 = vsel %vm12895_vm3, %v467_v6, %v466_v63  ;;  %v473_v12 = vmul.f32 %v467_v6, %v463_v0  ;;  %v548_v16 = vpop.permute.xlu0 %547  ;;  %v627_v6 = vld [vmem:[#allocation2 + $0xc] sm:$0xf] }
  0xa5   : > { %v472_v13 = vmul.f32 %v469_v10, %v8359_v2  ;;  %v507_v15 = vpop.permute.xlu1 %506  ;;  %v549_v20 = vrot.slane %v548_v16, 4 }
  0xa6   : > { %v508_v17 = vrot.slane %v507_v15, 4  ;;  %v487_v18 = vmul.f32 %v484_v9, %v473_v12 }
  0xa7   : > { %v486_v23 = vmul.f32 %v484_v9, %v472_v13  ;;  %v551_v33 = vsel %vm12752_vm5, %v549_v20, %v548_v16  ;;  %v555_v52 = vmul.f32 %v549_v20, %v545_v42 }
  0xa8   : > { %v510_v26 = vsel %vm12969_vm4, %v508_v17, %v507_v15  ;;  %492 = vrot.lane.b32.xlu0 %v487_v18, %s12544_s20  ;;  %v588_v29 = vpop.permute.xlu0 %587  ;;  %v514_v30 = vmul.f32 %v508_v17, %v504_v25  ;;  %v554_v44 = vmul.f32 %v551_v33, %v8267_v21 }
  0xa9   : > { %v513_v28 = vmul.f32 %v510_v26, %v8359_v2  ;;  %490 = vrot.lane.b32.xlu1 %v486_v23, %s12544_s20  ;;  %v589_v37 = vrot.slane %v588_v29, 4  ;;  %v678_v23 = vld [vmem:[#allocation2 + $0xc] sm:$0xf]  ;;  %s12678_s20 = smov 109  }
  0xaa   : > { %v559_v38 = vpop.permute.xlu1 %558  ;;  %v528_v47 = vmul.f32 %v525_v19, %v514_v30 }
  0xab   : > { %v527_v35 = vmul.f32 %v525_v19, %v513_v28  ;;  %v566_v45 = vrot.slane %v559_v38, %v8355_v62  ;;  %v591_v48 = vsel %vm12746_vm6, %v589_v37, %v588_v29  ;;  %v595_v0 = vmul.f32 %v589_v37, %v585_v58  ;;  %v757_v58 = vld [vmem:[#allocation2 + $0x10] sm:$0xf] }
  0xac   : > { %v640_v40 = vpop.permute.xlu0 %639  ;;  %v594_v60 = vmul.f32 %v591_v48, %v8267_v21  ;;  %vm12751_vm6 = vcmask 621568  }
  0xad   : > { %531 = vrot.lane.b32.xlu1 %v527_v35, %s12546_s26  ;;  %v568_v50 = vmul.f32 %v566_v45, %v554_v44  ;;  %v641_v54 = vrot.slane %v640_v40, 4  ;;  %v569_v61 = vmul.f32 %v566_v45, %v555_v52 }
  0xaf   : > { %v599_v59 = vpop.permute.xlu1 %598  ;;  %572 = vrot.lane.b32.xlu0 %v568_v50, %s12548_s19  ;;  %v643_v9 = vsel %vm12743_vm7, %v641_v54, %v640_v40  ;;  %v647_v18 = vmul.f32 %v641_v54, %v627_v6  ;;  %v718_v40 = vld [vmem:[#allocation2 + $0xc] sm:$0xf] }
  0xb0   : > { %v681_v57 = vpop.permute.xlu0 %680  ;;  %v606_v63 = vrot.slane %v599_v59, %v8355_v62  ;;  %v646_v17 = vmul.f32 %v643_v9, %v8359_v2 }
  0xb1   : > { %533 = vrot.lane.b32.xlu1 %v528_v47, %s12546_s26  ;;  %v682_v13 = vrot.slane %v681_v57, 4  ;;  %s12563_s26 = smov 1  }
  0xb2   : > { %v608_v10 = vmul.f32 %v606_v63, %v594_v60  ;;  %v609_v15 = vmul.f32 %v606_v63, %v595_v0 }
  0xb3   : > { %v684_v25 = vsel %vm12741_vm8, %v682_v13, %v681_v57  ;;  %v688_v35 = vmul.f32 %v682_v13, %v678_v23 }
  0xb4   : > { %v721_v12 = vpop.permute.xlu0 %720  ;;  %v651_v16 = vpop.permute.xlu1 %650  ;;  %612 = vrot.lane.b32.xlu0 %v608_v10, %s12709_s25  ;;  %v687_v33 = vmul.f32 %v684_v25, %v8359_v2 }
  0xb5   : > { %574 = vrot.lane.b32.xlu1 %v569_v61, %s12548_s19  ;;  %v658_v19 = vrot.slane %v651_v16, %v8355_v62  ;;  %v722_v29 = vrot.slane %v721_v12, 4  ;;  %s12713_s19 = smov 48  }
  0xb7   : > { %v660_v26 = vmul.f32 %v658_v19, %v646_v17  ;;  %v661_v28 = vmul.f32 %v658_v19, %v647_v18  ;;  %v723_v42 = vsel %vm12740_vm9, %v722_v29, %v721_v12  ;;  %v727_v52 = vmul.f32 %v722_v29, %v718_v40  ;;  %v797_v12 = vld [vmem:[#allocation2 + $0x10] sm:$0xf] }
  0xb8   : > { %v760_v20 = vpop.permute.xlu0 %759  ;;  %v726_v50 = vmul.f32 %v723_v42, %v8359_v2 }
  0xb9   : > { %614 = vrot.lane.b32.xlu1 %v609_v15, %s12709_s25  ;;  %v692_v30 = vpop.permute.xlu1 %691  ;;  %664 = vrot.lane.b32.xlu0 %v660_v26, %s12550_s18  ;;  %v761_v47 = vrot.slane %v760_v20, 4 }
  0xba   : > { %v699_v37 = vrot.slane %v692_v30, %v8355_v62 }
  0xbb   : > { %v763_v59 = vsel %vm762_vm10, %v761_v47, %v760_v20  ;;  %v767_v9 = vmul.f32 %v761_v47, %v757_v58 }
  0xbc   : > { %v800_v38 = vpop.permute.xlu0 %799  ;;  %v701_v44 = vmul.f32 %v699_v37, %v687_v33  ;;  %v702_v45 = vmul.f32 %v699_v37, %v688_v35  ;;  %v766_v6 = vmul.f32 %v763_v59, %v8267_v21 }
  0xbd   : > { %666 = vrot.lane.b32.xlu1 %v661_v28, %s12550_s18  ;;  %v801_v63 = vrot.slane %v800_v38, 4  ;;  %v839_v28 = vld [vmem:[#allocation2 + $0xc] sm:$0xf]  ;;  %s12676_s18 = smov 93  }
  0xbe   : > { %v731_v48 = vpop.permute.xlu1 %730  ;;  %705 = vrot.lane.b32.xlu0 %v701_v44, %s12578_s17 }
  0xbf   : > { %v738_v54 = vrot.slane %v731_v48, %v8355_v62  ;;  %v803_v13 = vsel %vm12739_vm11, %v801_v63, %v800_v38  ;;  %v807_v23 = vmul.f32 %v801_v63, %v797_v12  ;;  %vm12896_vm11 = vcmask 760832  }
  0xc0   : > { %v852_v57 = vpop.permute.xlu0 %851  ;;  %v806_v20 = vmul.f32 %v803_v13, %v8267_v21 }
  0xc1   : > { %707 = vrot.lane.b32.xlu1 %v702_v45, %s12578_s17  ;;  %v740_v60 = vmul.f32 %v738_v54, %v726_v50  ;;  %v741_v61 = vmul.f32 %v738_v54, %v727_v52  ;;  %v853_v18 = vrot.slane %v852_v57, 4  ;;  %v888_v45 = vld [vmem:[#allocation2 + $0xc] sm:$0xf]  ;;  %s12589_s17 = smov 33  }
  0xc3   : > { %v771_v0 = vpop.permute.xlu1 %770  ;;  %744 = vrot.lane.b32.xlu0 %v740_v60, %s12590_s28  ;;  %v854_v29 = vsel %vm12737_vm12, %v853_v18, %v852_v57  ;;  %v858_v40 = vmul.f32 %v853_v18, %v839_v28  ;;  %v929_v60 = vmul.f32 %v8293_v32, %v8267_v21  ;;  %v953_v32 = vld [vmem:[#allocation2 + $0x10] sm:$0xf] }
  0xc4   : > { %v778_v10 = vrot.slane %v771_v0, %v8355_v62  ;;  %v891_v15 = vpop.permute.xlu0 %890  ;;  %v857_v38 = vmul.f32 %v854_v29, %v8359_v2 }
  0xc5   : > { %746 = vrot.lane.b32.xlu1 %v741_v61, %s12590_s28  ;;  %v892_v35 = vrot.slane %v891_v15, 4  ;;  %s12595_s28 = smov 98  }
  0xc6   : > { %v780_v16 = vmul.f32 %v778_v10, %v766_v6  ;;  %v781_v17 = vmul.f32 %v778_v10, %v767_v9 }
  0xc7   : > { %v893_v47 = vsel %vm12734_vm13, %v892_v35, %v891_v15  ;;  %v897_v57 = vmul.f32 %v892_v35, %v888_v45 }
  0xc8   : > { %v811_v19 = vpop.permute.xlu1 %810  ;;  %784 = vrot.lane.b32.xlu0 %v780_v16, %s12641_s14  ;;  %v933_v26 = vpop.permute.xlu0 %932  ;;  %v896_v54 = vmul.f32 %v893_v47, %v8359_v2 }
  0xc9   : > { %786 = vrot.lane.b32.xlu1 %v781_v17, %s12641_s14  ;;  %v818_v25 = vrot.slane %v811_v19, %v8355_v62  ;;  %v940_v61 = vrot.slane %v933_v26, %v8355_v62  ;;  %s12660_s14 = smov 13  }
  0xcb   : > { %v820_v30 = vmul.f32 %v818_v25, %v806_v20  ;;  %v821_v33 = vmul.f32 %v818_v25, %v807_v23  ;;  %v942_v12 = vmul.f32 %v940_v61, %v929_v60 }
  0xcd   : > { %v862_v37 = vpop.permute.xlu1 %861  ;;  %824 = vrot.lane.b32.xlu0 %v820_v30, %s12643_s24  ;;  %826 = vrot.lane.b32.xlu1 %v821_v33, %s12643_s24  ;;  %v967_v44 = vpop.permute.xlu0 %966  ;;  %v993_v30 = vld [vmem:[#allocation2 + $0x10] sm:$0xf]  ;;  %s13049_s24 = smov 30  }
  0xce   : > { %v869_v42 = vrot.slane %v862_v37, %v8355_v62  ;;  %v974_v16 = vrot.slane %v967_v44, %v8355_v62 }
  0xd0   : > { %v871_v48 = vmul.f32 %v869_v42, %v857_v38  ;;  %v872_v50 = vmul.f32 %v869_v42, %v858_v40  ;;  %v1035_v38 = vld [vmem:[#allocation2 + $0xc] sm:$0xf] }
  0xd2   : > { %v901_v52 = vpop.permute.xlu1 %900  ;;  %875 = vrot.lane.b32.xlu0 %v871_v48, %s12707_s15  ;;  %877 = vrot.lane.b32.xlu1 %v872_v50, %s12707_s15  ;;  %v8414_v59 = vpop.permute.xlu0 %448 }
  0xd3   : > { %v908_v58 = vrot.slane %v901_v52, %v8355_v62 }
  0xd5   : > { %v910_v63 = vmul.f32 %v908_v58, %v896_v54  ;;  %v911_v0 = vmul.f32 %v908_v58, %v897_v57  ;;  %v1086_v57 = vld [vmem:[#allocation2 + $0xc] sm:$0xf] }
  0xd6   : > { %v956_v6 = vpop.permute.xlu1 %955  ;;  %v996_v10 = vpop.permute.xlu0 %995 }
  0xd7   : > { %v957_v9 = vrot.slane %v956_v6, 4  ;;  %914 = vrot.lane.b32.xlu0 %v910_v63, %s12705_s29  ;;  %916 = vrot.lane.b32.xlu1 %v911_v0, %s12705_s29  ;;  %v997_v15 = vrot.slane %v996_v10, 4 }
  0xd9   : > { %v959_v13 = vsel %vm12733_vm14, %v957_v9, %v956_v6  ;;  %v999_v19 = vsel %vm12731_vm15, %v997_v15, %v996_v10  ;;  %v963_v28 = vmul.f32 %v957_v9, %v953_v32  ;;  %v1003_v45 = vmul.f32 %v997_v15, %v993_v30 }
  0xda   : > { %v962_v17 = vmul.f32 %v959_v13, %v8267_v21  ;;  %v1007_v18 = vpop.permute.xlu1 %1006  ;;  %v1002_v23 = vmul.f32 %v999_v19, %v8267_v21  ;;  %v1048_v26 = vpop.permute.xlu0 %1047  ;;  %v12565_v13 = vmov 18   ;;  %vm12738_vm15 = vcmask 654336  }
  0xdb   : > { %944 = vrot.lane.b32.xlu1 %v942_v12, %s12703_s30  ;;  %v1014_v20 = vrot.slane %v1007_v18, %v8355_v62  ;;  %v1049_v29 = vrot.slane %v1048_v26, 4  ;;  %v977_v47 = vmul.f32 %v974_v16, %v963_v28  ;;  %v1128_v12 = vld [vmem:[%s13017_s2] sm:$0xf]  ;;  %vm12735_vm14 = vcmask 523264  }
  0xdc   : > { %v976_v25 = vmul.f32 %v974_v16, %v962_v17 }
  0xdd   : > { %v1016_v33 = vmul.f32 %v1014_v20, %v1002_v23  ;;  %v1051_v35 = vsel %vm12717_vm1, %v1049_v29, %v1048_v26  ;;  %v1055_v52 = vmul.f32 %v1049_v29, %v1035_v38  ;;  %v1017_v61 = vmul.f32 %v1014_v20, %v1003_v45 }
  0xde   : > { %v1054_v40 = vmul.f32 %v1051_v35, %v8359_v2  ;;  %v1089_v44 = vpop.permute.xlu0 %1088  ;;  %vm12970_vm1 = vcmask 769024  }
  0xdf   : > { %980 = vrot.lane.b32.xlu1 %v976_v25, %s12682_s23  ;;  %v1059_v37 = vpop.permute.xlu1 %1058  ;;  %1020 = vrot.lane.b32.xlu0 %v1016_v33, %s12567_s27  ;;  %v1090_v48 = vrot.slane %v1089_v44, 4 }
  0xe0   : > { %v1066_v42 = vrot.slane %v1059_v37, %v8355_v62 }
  0xe1   : > { %v1092_v54 = vsel %vm12552_vm2, %v1090_v48, %v1089_v44  ;;  %v1096_v6 = vmul.f32 %v1090_v48, %v1086_v57  ;;  %vm12569_vm2 = vcmask 7168  }
  0xe2   : > { %v1068_v50 = vmul.f32 %v1066_v42, %v1054_v40  ;;  %v1095_v58 = vmul.f32 %v1092_v54, %v8359_v2  ;;  %v1069_v0 = vmul.f32 %v1066_v42, %v1055_v52 }
  0xe3   : > { %982 = vrot.lane.b32.xlu1 %v977_v47, %s12682_s23 }
  0xe4   : > { %v1100_v60 = vpop.permute.xlu1 %1099  ;;  %1072 = vrot.lane.b32.xlu0 %v1068_v50, %s12680_s13 }
  0xe5   : > { %v1107_v63 = vrot.slane %v1100_v60, %v8355_v62 }
  0xe7   : > { %1022 = vrot.lane.b32.xlu1 %v1017_v61, %s12567_s27  ;;  %v1109_v9 = vmul.f32 %v1107_v63, %v1095_v58  ;;  %v1110_v10 = vmul.f32 %v1107_v63, %v1096_v6  ;;  %s12574_s27 = smov 17  }
  0xe9   : > { %1113 = vrot.lane.b32.xlu0 %v1109_v9, %s12678_s20  ;;  %v1127_v9 = vld [vmem:[#allocation2 + $0x10] sm:$0xf] }
  0xeb   : > { %1074 = vrot.lane.b32.xlu1 %v1069_v0, %s12680_s13 }
  0xed   : > { %1129 = vrot.lane.b32.xlu0 %v8339_v51, %s12563_s26  ;;  %s12666_s26 = smov 77  }
  0xef   : > { %1115 = vrot.lane.b32.xlu1 %v1110_v10, %s12678_s20 }
  0xf3   : > { %1140 = vperm.xlu1 %7803, %v1128_v12  }
  0xf7   : > { %7804 = vset.pattern.permute.xlu1 %v12565_v13  ;;  %v1168_v13 = vld [vmem:[%s13017_s2] sm:$0xf] }
 0x11a   : > { %v8454_v17 = vpop.permute.xlu0 %492 }
 0x11b   : > { %v8448_v15 = vpop.permute.xlu1 %490 }
 0x11f   : > { %v8450_v16 = vpop.permute.xlu1 %531 }
 0x121   : > { %v8458_v19 = vpop.permute.xlu0 %572 }
 0x123   : > { %v8452_v32 = vpop.permute.xlu1 %533 }
 0x126   : > { %v8462_v23 = vpop.permute.xlu0 %612 }
 0x127   : > { %v8456_v18 = vpop.permute.xlu1 %574 }
 0x12b   : > { %v8460_v20 = vpop.permute.xlu1 %614  ;;  %v8468_v28 = vpop.permute.xlu0 %664 }
 0x12f   : > { %v8464_v25 = vpop.permute.xlu1 %666 }
 0x130   : > { %v8472_v30 = vpop.permute.xlu0 %705 }
 0x133   : > { %v8466_v26 = vpop.permute.xlu1 %707 }
 0x135   : > { %v8476_v35 = vpop.permute.xlu0 %744 }
 0x137   : > { %v8470_v29 = vpop.permute.xlu1 %746 }
 0x13a   : > { %v8480_v38 = vpop.permute.xlu0 %784 }
 0x13b   : > { %v8474_v33 = vpop.permute.xlu1 %786 }
 0x13f   : > { %v8478_v37 = vpop.permute.xlu1 %826  ;;  %v8484_v42 = vpop.permute.xlu0 %824 }
 0x144   : > { %v8482_v40 = vpop.permute.xlu1 %877  ;;  %v8488_v45 = vpop.permute.xlu0 %875 }
 0x149   : > { %v8486_v44 = vpop.permute.xlu1 %916  ;;  %v8492_v48 = vpop.permute.xlu0 %914 }
 0x14d   : > { %v8490_v47 = vpop.permute.xlu1 %944 }
 0x151   : > { %v8494_v50 = vpop.permute.xlu1 %980  ;;  %v8496_v52 = vpop.permute.xlu0 %1020 }
 0x155   : > { %v8498_v54 = vpop.permute.xlu1 %982 }
 0x156   : > { %v8500_v57 = vpop.permute.xlu0 %1072 }
 0x159   : > { %v8502_v58 = vpop.permute.xlu1 %1022 }
 0x15b   : > { %v8504_v60 = vpop.permute.xlu0 %1113 }
 0x15d   : > { %v8506_v63 = vpop.permute.xlu1 %1074 }
 0x15f   : > { %v1130_v61 = vpop.permute.xlu0 %1129 }
 0x160   : > { %v1131_v0 = vrot.slane %v1130_v61, 4 }
 0x161   : > { %v8508_v6 = vpop.permute.xlu1 %1115 }
 0x162   : > { %v1133_v10 = vsel %vm12569_vm2, %v1131_v0, %v1130_v61  ;;  %v1137_v22 = vmul.f32 %v1131_v0, %v1127_v9  ;;  %v12585_v61 = vmov 23   ;;  %vm12580_vm2 = vcmask 138240  }
 0x163   : > { %v1136_v12 = vmul.f32 %v1133_v10, %v8267_v21 }
 0x172   : > { %v1141_v56 = vpop.permute.xlu1 %1140 }
 0x173   : > { %v1148_v27 = vrot.slane %v1141_v56, %v8355_v62 }
 0x175   : > { %v1150_v14 = vmul.f32 %v1148_v27, %v1136_v12  ;;  %v1151_v4 = vmul.f32 %v1148_v27, %v1137_v22 }
 0x177   : > { %1156 = vrot.lane.b32.xlu1 %v1151_v4, %s12676_s18  ;;  %1154 = vrot.lane.b32.xlu0 %v1150_v14, %s12676_s18  ;;  %v1167_v14 = vld [vmem:[#allocation2 + $0x10] sm:$0xf] }
 0x17b   : > { %1180 = vperm.xlu1 %7804, %v1168_v13   ;;  %1169 = vrot.lane.b32.xlu0 %v8339_v51, %s12574_s27  ;;  %s12609_s27 = smov 124  }
 0x17f   : > { %7805 = vset.pattern.permute.xlu1 %v12585_v61 }
 0x1e9   : > { %v8521_v56 = vpop.permute.xlu0 %1154  ;;  %v8523_v4 = vpop.permute.xlu1 %1156 }
 0x1ed   : > { %v1170_v22 = vpop.permute.xlu0 %1169 }
 0x1ee   : > { %v1171_v27 = vrot.slane %v1170_v22, 4 }
 0x1f0   : > { %v1173_v0 = vsel %vm12580_vm2, %v1171_v27, %v1170_v22  ;;  %v1177_v13 = vmul.f32 %v1171_v27, %v1167_v14  ;;  %v12581_v22 = vmov 4   ;;  %vm12592_vm2 = vcmask 269312  }
 0x1f1   : > { %v1176_v9 = vmul.f32 %v1173_v0, %v8267_v21 }
 0x1fa   : > { %v1181_v10 = vpop.permute.xlu1 %1180 }
 0x1fb   : > { %v1188_v12 = vrot.slane %v1181_v10, %v8355_v62 }
 0x1fd   : > { %v1190_v31 = vmul.f32 %v1188_v12, %v1176_v9  ;;  %v1191_v41 = vmul.f32 %v1188_v12, %v1177_v13 }
 0x1ff   : > { %1196 = vrot.lane.b32.xlu1 %v1191_v41, %s12666_s26  ;;  %1194 = vrot.lane.b32.xlu0 %v1190_v31, %s12666_s26  ;;  %v1207_v31 = vld [vmem:[#allocation2 + $0x10] sm:$0xf] }
 0x203   : > { %1220 = vperm.xlu1 %7805, %v1208_v3   ;;  %1209 = vrot.lane.b32.xlu0 %v8339_v51, %s12589_s17  ;;  %v7591_v3 = vld [vmem:[%s12518_s1 + $0x10] ss:$8 sm:$0x3]  ;;  %s12599_s17 = smov 61  }
 0x204   : > { %v1259_v53 = vrot.slane %v7591_v3, %v8232_v8 }
 0x207   : > { %7806 = vset.pattern.permute.xlu1 %v12581_v22  ;;  %v1255_v22 = vrot.slane %v7591_v3, %v8229_v7 }
 0x271   : > { %v8536_v27 = vpop.permute.xlu0 %1194  ;;  %v8538_v41 = vpop.permute.xlu1 %1196 }
 0x275   : > { %v1210_v14 = vpop.permute.xlu0 %1209 }
 0x276   : > { %v1211_v0 = vrot.slane %v1210_v14, 4 }
 0x278   : > { %v1213_v9 = vsel %vm12592_vm2, %v1211_v0, %v1210_v14  ;;  %v1217_v51 = vmul.f32 %v1211_v0, %v1207_v31  ;;  %v8550_v14 = vcombine.low %v1255_v22, %v1259_v53  ;;  %v1250_v0 = vld [vmem:[%s13017_s2] sm:$0xf]  ;;  %v12597_v31 = vmov 9   ;;  %v1249_v53 = vld [vmem:[#allocation2 + $0xc] sm:$0xf] }
 0x279   : > { %v1216_v13 = vmul.f32 %v1213_v9, %v8267_v21  ;;  %vm12601_vm2 = vcmask 801792  }
 0x282   : > { %v1221_v10 = vpop.permute.xlu1 %1220 }
 0x283   : > { %v1228_v12 = vrot.slane %v1221_v10, %v8355_v62 }
 0x285   : > { %v1230_v61 = vmul.f32 %v1228_v12, %v1216_v13  ;;  %v1231_v34 = vmul.f32 %v1228_v12, %v1217_v51 }
 0x287   : > { %1236 = vrot.lane.b32.xlu1 %v1231_v34, %s12599_s17  ;;  %1234 = vrot.lane.b32.xlu0 %v1230_v61, %s12599_s17  ;;  %s12606_s17 = smov 114  }
 0x28b   : > { %1272 = vperm.xlu1 %7806, %v1250_v0   ;;  %1261 = vrot.lane.b32.xlu0 %v8550_v14, %s12595_s28  ;;  %s12620_s28 = smov 108  }
 0x28f   : > { %7807 = vset.pattern.permute.xlu1 %v12597_v31  ;;  %v1301_v31 = vld [vmem:[%s13017_s2] sm:$0xf] }
 0x2f9   : > { %v8558_v9 = vpop.permute.xlu0 %1234  ;;  %v8560_v61 = vpop.permute.xlu1 %1236 }
 0x2fd   : > { %v1262_v3 = vpop.permute.xlu0 %1261 }
 0x2fe   : > { %v1263_v34 = vrot.slane %v1262_v3, 4 }
 0x300   : > { %v1265_v22 = vsel %vm12601_vm2, %v1263_v34, %v1262_v3  ;;  %v1269_v51 = vmul.f32 %v1263_v34, %v1249_v53  ;;  %v12623_v3 = vmov 14   ;;  %vm12611_vm2 = vcmask 932864  }
 0x301   : > { %v1268_v13 = vmul.f32 %v1265_v22, %v8359_v2 }
 0x30a   : > { %v1273_v10 = vpop.permute.xlu1 %1272 }
 0x30b   : > { %v1280_v12 = vrot.slane %v1273_v10, %v8355_v62 }
 0x30d   : > { %v1282_v0 = vmul.f32 %v1280_v12, %v1268_v13  ;;  %v1283_v39 = vmul.f32 %v1280_v12, %v1269_v51  ;;  %v1300_v13 = vld [vmem:[#allocation2 + $0xc] sm:$0xf] }
 0x30f   : > { %1288 = vrot.lane.b32.xlu1 %v1283_v39, %s12609_s27  ;;  %1286 = vrot.lane.b32.xlu0 %v1282_v0, %s12609_s27  ;;  %s12616_s27 = smov 2  }
 0x313   : > { %1313 = vperm.xlu1 %7807, %v1301_v31   ;;  %1302 = vrot.lane.b32.xlu0 %v8550_v14, %s12606_s17  ;;  %s12630_s17 = smov 92  }
 0x317   : > { %7808 = vset.pattern.permute.xlu1 %v12623_v3 }
 0x381   : > { %v8573_v34 = vpop.permute.xlu0 %1286  ;;  %v8575_v39 = vpop.permute.xlu1 %1288 }
 0x385   : > { %v1303_v53 = vpop.permute.xlu0 %1302 }
 0x386   : > { %v1304_v22 = vrot.slane %v1303_v53, 4 }
 0x388   : > { %v1306_v51 = vsel %vm12611_vm2, %v1304_v22, %v1303_v53  ;;  %v1310_v31 = vmul.f32 %v1304_v22, %v1300_v13  ;;  %vm12622_vm2 = vcmask 15360  }
 0x389   : > { %v1309_v10 = vmul.f32 %v1306_v51, %v8359_v2  ;;  %v12618_v2 = vmov 19   ;;  %v1341_v51 = vld [vmem:[#allocation2 + $0x10] sm:$0xf] }
 0x392   : > { %v1314_v12 = vpop.permute.xlu1 %1313 }
 0x393   : > { %v1321_v0 = vrot.slane %v1314_v12, %v8355_v62 }
 0x395   : > { %v1323_v49 = vmul.f32 %v1321_v0, %v1309_v10  ;;  %v1324_v11 = vmul.f32 %v1321_v0, %v1310_v31 }
 0x397   : > { %1329 = vrot.lane.b32.xlu1 %v1324_v11, %s12620_s28  ;;  %1327 = vrot.lane.b32.xlu0 %v1323_v49, %s12620_s28  ;;  %v1340_v49 = vld [vmem:[#allocation2 + $0x8] sm:$0xff]  ;;  %s12627_s28 = smov 18  }
 0x39b   : > { %1354 = vperm.xlu1 %7808, %v1342_v55   ;;  %1343 = vrot.lane.b32.xlu0 %v8550_v14, %s12616_s27  ;;  %s12635_s27 = smov 76  }
 0x39f   : > { %7809 = vset.pattern.permute.xlu1 %v12618_v2  ;;  %v1382_v2 = vld [vmem:[%s13017_s2] sm:$0xf] }
 0x409   : > { %v8588_v53 = vpop.permute.xlu0 %1327  ;;  %v8590_v11 = vpop.permute.xlu1 %1329 }
 0x40d   : > { %v1344_v22 = vpop.permute.xlu0 %1343 }
 0x40e   : > { %v1345_v13 = vrot.slane %v1344_v22, 4 }
 0x410   : > { %v1347_v10 = vsel %vm12622_vm2, %v1345_v13, %v1344_v22  ;;  %v1351_v55 = vmul.f32 %v1345_v13, %v1341_v51  ;;  %v12628_v22 = vmov 24   ;;  %vm12632_vm2 = vcmask 146432  }
 0x411   : > { %v1350_v31 = vmul.f32 %v1347_v10, %v1340_v49 }
 0x41a   : > { %v1355_v12 = vpop.permute.xlu1 %1354 }
 0x41b   : > { %v1362_v0 = vrot.slane %v1355_v12, %v8355_v62 }
 0x41d   : > { %v1364_v24 = vmul.f32 %v1362_v0, %v1350_v31  ;;  %v1365_v36 = vmul.f32 %v1362_v0, %v1351_v55 }
 0x41f   : > { %1370 = vrot.lane.b32.xlu1 %v1365_v36, %s12630_s17  ;;  %1368 = vrot.lane.b32.xlu0 %v1364_v24, %s12630_s17  ;;  %v1381_v24 = vld [vmem:[#allocation2 + $0x10] sm:$0xf]  ;;  %s12639_s17 = smov 34  }
 0x423   : > { %1394 = vperm.xlu1 %7809, %v1382_v2   ;;  %1383 = vrot.lane.b32.xlu0 %v8550_v14, %s12627_s28  ;;  %s12672_s28 = smov 45  }
 0x427   : > { %7810 = vset.pattern.permute.xlu1 %v12628_v22  ;;  %v1422_v22 = vld [vmem:[%s13017_s2] sm:$0xf]  ;;  %s13094_s2 = smov 34  }
 0x491   : > { %v8602_v13 = vpop.permute.xlu0 %1368  ;;  %v8604_v36 = vpop.permute.xlu1 %1370 }
 0x495   : > { %v1384_v51 = vpop.permute.xlu0 %1383 }
 0x496   : > { %v1385_v10 = vrot.slane %v1384_v51, 4 }
 0x498   : > { %v1387_v31 = vsel %vm12632_vm2, %v1385_v10, %v1384_v51  ;;  %v1391_v12 = vmul.f32 %v1385_v10, %v1381_v24  ;;  %vm12883_vm2 = vcmask 277504  }
 0x499   : > { %v1390_v55 = vmul.f32 %v1387_v31, %v1340_v49 }
 0x4a2   : > { %v1395_v2 = vpop.permute.xlu1 %1394 }
 0x4a3   : > { %v1402_v0 = vrot.slane %v1395_v2, %v8355_v62 }
 0x4a5   : > { %v1404_v3 = vmul.f32 %v1402_v0, %v1390_v55  ;;  %v1405_v43 = vmul.f32 %v1402_v0, %v1391_v12 }
 0x4a7   : > { %1410 = vrot.lane.b32.xlu1 %v1405_v43, %s12635_s27  ;;  %1408 = vrot.lane.b32.xlu0 %v1404_v3, %s12635_s27  ;;  %v1421_v43 = vld [vmem:[#allocation2 + $0x10] sm:$0xf]  ;;  %s12662_s27 = smov 60  }
 0x4ab   : > { %1434 = vperm.xlu1 %7810, %v1422_v22   ;;  %1423 = vrot.lane.b32.xlu0 %v8550_v14, %s12639_s17  ;;  %v7592_v14 = vld [vmem:[%s12518_s1 + $0x3] ss:$8 sm:$0x3]  ;;  %s12670_s17 = smov 29  }
 0x4ac   : > { %v1496_v5 = vrot.slane %v7592_v14, %v8229_v7 }
 0x4af   : > { %7811 = vset.pattern.permute.xlu1 %v12633_v46 }
 0x519   : > { %v8616_v51 = vpop.permute.xlu0 %1408  ;;  %v8618_v31 = vpop.permute.xlu1 %1410 }
 0x51a   : > { %13024 = vst [vmem:[#allocation9_spill] sm:$0xff] %v8618_v31 }
 0x51d   : > { %v1424_v10 = vpop.permute.xlu0 %1423 }
 0x51e   : > { %v1425_v24 = vrot.slane %v1424_v10, 4 }
 0x520   : > { %v1427_v3 = vsel %vm12883_vm2, %v1425_v24, %v1424_v10  ;;  %v1431_v55 = vmul.f32 %v1425_v24, %v1421_v43  ;;  %v1500_v10 = vrot.slane %v7592_v14, %v8232_v8  ;;  %v1491_v24 = vld [vmem:[%s13026_s4] sm:$0xf] }
 0x521   : > { %v1430_v2 = vmul.f32 %v1427_v3, %v1340_v49  ;;  %v1460_v49 = vld [vmem:[%s13025_s3] sm:$0xf]  ;;  %v13027_v3 = vmov 7   ;;  %s13138_s3 = smov 46  }
 0x522   : > { %v1501_v43 = vcombine.low %v1496_v5, %v1500_v10  ;;  %v1606_v5 = vld [vmem:[%s13026_s4] sm:$0xf]  ;;  %v12651_v10 = vmov 35  }
 0x523   : > { %v1645_v14 = vld [vmem:[%s13026_s4] sm:$0xf] }
 0x52a   : > { %v1435_v12 = vpop.permute.xlu1 %1434 }
 0x52b   : > { %v1442_v22 = vrot.slane %v1435_v12, %v8355_v62  ;;  %v1567_v12 = vld [vmem:[%s13026_s4] sm:$0xf] }
 0x52d   : > { %v1444_v0 = vmul.f32 %v1442_v22, %v1430_v2  ;;  %v1445_v46 = vmul.f32 %v1442_v22, %v1431_v55  ;;  %v13028_v55 = vmov 24   ;;  %v13029_v2 = vmov 14  }
 0x52e   : > { %v13030_v22 = vmov 21  }
 0x52f   : > { %1450 = vrot.lane.b32.xlu1 %v1445_v46, %s12662_s27  ;;  %1448 = vrot.lane.b32.xlu0 %v1444_v0, %s12662_s27  ;;  %v1528_v46 = vld [vmem:[%s13026_s4] sm:$0xf]  ;;  %v12647_v0 = vmov 28   ;;  %s13053_s27 = smov 32  }
 0x533   : > { %1463 = vperm.xlu0 %7799, %v1460_v49   ;;  %1512 = vperm.xlu1 %7811, %v1491_v24  }
 0x537   : > { %7812 = vset.pattern.permute.xlu1 %v13027_v3  ;;  %1502 = vrot.lane.b32.xlu0 %v1501_v43, %s12666_s26  ;;  %s13069_s26 = smov 79  }
 0x538   : > { %1539 = vperm.xlu1 %7812, %v1528_v46   ;;  %7835 = vset.pattern.permute.xlu0 %v13028_v55 }
 0x53b   : > { %1529 = vrot.lane.b32.xlu0 %v1501_v43, %s12676_s18  ;;  %s12701_s18 = smov 46  }
 0x53c   : > { %7813 = vset.pattern.permute.xlu1 %v13029_v2  ;;  %v1644_v2 = vld [vmem:[#allocation2 + $0x10] sm:$0xf] }
 0x53d   : > { %1578 = vperm.xlu1 %7813, %v1567_v12  }
 0x53f   : > { %1568 = vrot.lane.b32.xlu0 %v1501_v43, %s12678_s20  ;;  %s13068_s20 = smov 63  }
 0x541   : > { %7814 = vset.pattern.permute.xlu1 %v13030_v22 }
 0x542   : > { %1617 = vperm.xlu1 %7814, %v1606_v5  }
 0x543   : > { %1607 = vrot.lane.b32.xlu0 %v1501_v43, %s12680_s13  ;;  %s13073_s13 = smov 111  }
 0x546   : > { %7815 = vset.pattern.permute.xlu1 %v12647_v0 }
 0x547   : > { %1657 = vperm.xlu1 %7815, %v1645_v14   ;;  %1646 = vrot.lane.b32.xlu0 %v1501_v43, %s12660_s14  ;;  %s13076_s14 = smov 15  }
 0x54b   : > { %7816 = vset.pattern.permute.xlu1 %v12651_v10  ;;  %1685 = vrot.lane.b32.xlu0 %v1501_v43, %s12670_s17  ;;  %s13070_s17 = smov 95  }
 0x54f   : > { %1725 = vrot.lane.b32.xlu0 %v1501_v43, %s12672_s28  ;;  %v1724_v43 = vld [vmem:[%s13026_s4] sm:$0xf]  ;;  %s12712_s28 = smov 47  }
 0x5a1   : > { %v8659_v49 = vpop.permute.xlu1 %1450  ;;  %v8661_v24 = vpop.permute.xlu0 %1448 }
 0x5a2   : > { %13031 = vst [vmem:[#allocation10_spill] sm:$0xff] %v8659_v49  ;;  %13032 = vst [vmem:[#allocation11_spill] sm:$0xff] %v8661_v24  ;;  %v616_v24 = vrot.slane %v8462_v23, 4 }
 0x5b2   : > { %v8663_v46 = vpop.permute.xlu0 %1463  ;;  %v8665_v12 = vpop.permute.xlu1 %1512 }
 0x5b3   : > { %13033 = vst [vmem:[#allocation12_spill] sm:$0xff] %v8663_v46  ;;  %13034 = vst [vmem:[#allocation13_spill] sm:$0xff] %v8665_v12 }
 0x5b6   : > { %v8667_v5 = vpop.permute.xlu0 %1502 }
 0x5b7   : > { %13035 = vst [vmem:[#allocation14_spill] sm:$0xff] %v8667_v5  ;;  %v8669_v14 = vpop.permute.xlu1 %1539 }
 0x5b8   : > { %13036 = vst [vmem:[#allocation15_spill] sm:$0xff] %v8669_v14 }
 0x5ba   : > { %v8671_v0 = vpop.permute.xlu0 %1529 }
 0x5bb   : > { %13037 = vst [vmem:[#allocation16_spill] sm:$0xff] %v8671_v0 }
 0x5bc   : > { %v8673_v21 = vpop.permute.xlu1 %1578 }
 0x5bd   : > { %13038 = vst [vmem:[#allocation17_spill] sm:$0xff] %v8673_v21 }
 0x5be   : > { %v8675_v10 = vpop.permute.xlu0 %1568 }
 0x5bf   : > { %13039 = vst [vmem:[#allocation18_spill] sm:$0xff] %v8675_v10 }
 0x5c1   : > { %v8677_v55 = vpop.permute.xlu1 %1617 }
 0x5c2   : > { %13040 = vst [vmem:[#allocation19_spill] sm:$0xff] %v8677_v55  ;;  %v8679_v22 = vpop.permute.xlu0 %1607  ;;  %v1684_v55 = vld [vmem:[%s13026_s4] sm:$0xf] }
 0x5c3   : > { %13041 = vst [vmem:[#allocation20_spill] sm:$0xff] %v8679_v22  ;;  %v12658_v22 = vmov 42  }
 0x5c6   : > { %v8681_v3 = vpop.permute.xlu0 %1646  ;;  %v1658_v46 = vpop.permute.xlu1 %1657 }
 0x5c7   : > { %13042 = vst [vmem:[#allocation21_spill] sm:$0xff] %v8681_v3  ;;  %v12656_v12 = vrot.slane %v8681_v3, 4  ;;  %v8685_v5 = vrot.slane %v1658_v46, %v8355_v62  ;;  %v13054_v3 = vmov 8  }
 0x5c9   : > { %13043 = vst [vmem:[#allocation22_spill] sm:$0xff] %v8685_v5  ;;  %v1654_v14 = vmul.f32 %v12656_v12, %v1644_v2  ;;  %v1683_v2 = vld [vmem:[#allocation2 + $0x10] sm:$0xf] }
 0x5ca   : > { %v8696_v46 = vpop.permute.xlu0 %1685 }
 0x5cb   : > { %v1668_v21 = vmul.f32 %v8685_v5, %v1654_v14  ;;  %13044 = vst [vmem:[#allocation23_spill] sm:$0xff] %v8696_v46  ;;  %v12664_v14 = vrot.slane %v8696_v46, 4  ;;  %v1764_v46 = vld [vmem:[%s13026_s4] sm:$0xf] }
 0x5cd   : > { %1673 = vrot.lane.b32.xlu1 %v1668_v21, %s12709_s25  ;;  %v1693_v21 = vmul.f32 %v12664_v14, %v1683_v2  ;;  %v7593_v2 = vld [vmem:[%s12518_s1 + $0x4] ss:$8 sm:$0x3]  ;;  %s13128_s25 = smov 47  }
 0x5ce   : > { %v1769_v14 = vrot.slane %v7593_v2, %v8229_v7 }
 0x5d1   : > { %1696 = vperm.xlu1 %7816, %v1684_v55  }
 0x5d5   : > { %7817 = vset.pattern.permute.xlu1 %v12658_v22  ;;  %v13047_v22 = vmov 1  }
 0x63f   : > { %v8698_v10 = vpop.permute.xlu1 %1673 }
 0x640   : > { %13045 = vst [vmem:[#allocation24_spill] sm:$0xff] %v8698_v10 }
 0x650   : > { %v1697_v12 = vpop.permute.xlu1 %1696 }
 0x651   : > { %v8704_v5 = vrot.slane %v1697_v12, %v8355_v62  ;;  %v1773_v12 = vrot.slane %v7593_v2, %v8232_v8 }
 0x653   : > { %13046 = vst [vmem:[#allocation25_spill] sm:$0xff] %v8704_v5  ;;  %v1707_v55 = vmul.f32 %v8704_v5, %v1693_v21  ;;  %v1774_v10 = vcombine.low %v1769_v14, %v1773_v12  ;;  %v8723_v21 = vpop.permute.xlu0 %1725 }
 0x654   : > { %13050 = vst [vmem:[#allocation26_spill] sm:$0xff] %v8723_v21  ;;  %v12684_v2 = vrot.slane %v8723_v21, 4 }
 0x655   : > { %1712 = vrot.lane.b32.xlu1 %v1707_v55, %s12713_s19  ;;  %1775 = vrot.lane.b32.xlu0 %v1774_v10, %s12682_s23  ;;  %s13075_s23 = smov 127   ;;  %s12753_s19 = smov 81  }
 0x659   : > { %1736 = vperm.xlu1 %7817, %v1724_v43   ;;  %1814 = vrot.lane.b32.xlu0 %v1774_v10, %s12703_s30  ;;  %v1723_v43 = vld [vmem:[#allocation2 + $0x10] sm:$0xf]  ;;  %s13081_s30 = smov 96  }
 0x65a   : > { %v1733_v14 = vmul.f32 %v12684_v2, %v1723_v43  ;;  %v1852_v43 = vld [vmem:[%s13026_s4] sm:$0xf]  ;;  %v12689_v2 = vmov 29  }
 0x65d   : > { %7818 = vset.pattern.permute.xlu1 %v13047_v22  ;;  %1853 = vrot.lane.b32.xlu0 %v1774_v10, %s12705_s29  ;;  %s13077_s29 = smov 31  }
 0x661   : > { %1892 = vrot.lane.b32.xlu0 %v1774_v10, %s12707_s15  ;;  %s13096_s15 = smov 62  }
 0x665   : > { %1931 = vrot.lane.b32.xlu0 %v1774_v10, %s13048_s16  ;;  %s13157_s16 = smov 29  }
 0x669   : > { %1969 = vrot.lane.b32.xlu0 %v1774_v10, %s13049_s24 }
 0x66d   : > { %2008 = vrot.lane.b32.xlu0 %v1774_v10, %s12701_s18  ;;  %s13082_s18 = smov 112  }
 0x6c7   : > { %v8725_v55 = vpop.permute.xlu1 %1712 }
 0x6c8   : > { %13051 = vst [vmem:[#allocation27_spill] sm:$0xff] %v8725_v55  ;;  %v1813_v55 = vld [vmem:[%s13026_s4] sm:$0xf] }
 0x6d8   : > { %v1737_v12 = vpop.permute.xlu1 %1736 }
 0x6d9   : > { %v8731_v22 = vrot.slane %v1737_v12, %v8355_v62  ;;  %v13055_v12 = vmov 15  }
 0x6db   : > { %13052 = vst [vmem:[#allocation28_spill] sm:$0xff] %v8731_v22  ;;  %v1747_v5 = vmul.f32 %v8731_v22, %v1733_v14  ;;  %v13056_v14 = vmov 22  }
 0x6dd   : > { %1752 = vrot.lane.b32.xlu1 %v1747_v5, %s13053_s27  ;;  %v1891_v5 = vld [vmem:[%s13026_s4] sm:$0xf] }
 0x6e1   : > { %1785 = vperm.xlu1 %7818, %v1764_v46   ;;  %v1930_v46 = vld [vmem:[%s13026_s4] sm:$0xf] }
 0x6e5   : > { %7819 = vset.pattern.permute.xlu1 %v13054_v3 }
 0x6e6   : > { %1824 = vperm.xlu1 %7819, %v1813_v55   ;;  %v12691_v55 = vmov 36  }
 0x6ea   : > { %7820 = vset.pattern.permute.xlu1 %v13055_v12  ;;  %v8755_v12 = vpop.permute.xlu0 %1775 }
 0x6eb   : > { %1863 = vperm.xlu1 %7820, %v1852_v43   ;;  %13057 = vst [vmem:[#allocation29_spill] sm:$0xff] %v8755_v12 }
 0x6ee   : > { %v8759_v3 = vpop.permute.xlu0 %1814 }
 0x6ef   : > { %7821 = vset.pattern.permute.xlu1 %v13056_v14  ;;  %13059 = vst [vmem:[#allocation31_spill] sm:$0xff] %v8759_v3 }
 0x6f0   : > { %1902 = vperm.xlu1 %7821, %v1891_v5  }
 0x6f2   : > { %v8763_v5 = vpop.permute.xlu0 %1853 }
 0x6f3   : > { %13061 = vst [vmem:[#allocation33_spill] sm:$0xff] %v8763_v5  ;;  %v576_v5 = vrot.slane %v8458_v19, 4 }
 0x6f4   : > { %7822 = vset.pattern.permute.xlu1 %v12689_v2 }
 0x6f5   : > { %1941 = vperm.xlu1 %7822, %v1930_v46  }
 0x6f6   : > { %v8767_v21 = vpop.permute.xlu0 %1892 }
 0x6f7   : > { %13063 = vst [vmem:[#allocation35_spill] sm:$0xff] %v8767_v21 }
 0x6f9   : > { %7823 = vset.pattern.permute.xlu1 %v12691_v55  ;;  %v1929_v55 = vld [vmem:[#allocation2 + $0x10] sm:$0xf] }
 0x6fa   : > { %v8771_v46 = vpop.permute.xlu0 %1931 }
 0x6fb   : > { %13065 = vst [vmem:[#allocation37_spill] sm:$0xff] %v8771_v46  ;;  %v12695_v12 = vrot.slane %v8771_v46, 4 }
 0x74f   : > { %v8757_v43 = vpop.permute.xlu1 %1752 }
 0x750   : > { %13058 = vst [vmem:[#allocation30_spill] sm:$0xff] %v8757_v43  ;;  %v1938_v43 = vmul.f32 %v12695_v12, %v1929_v55 }
 0x760   : > { %v8761_v22 = vpop.permute.xlu1 %1785 }
 0x761   : > { %13060 = vst [vmem:[#allocation32_spill] sm:$0xff] %v8761_v22 }
 0x765   : > { %v8765_v14 = vpop.permute.xlu1 %1824 }
 0x766   : > { %13062 = vst [vmem:[#allocation34_spill] sm:$0xff] %v8765_v14 }
 0x76a   : > { %v8769_v0 = vpop.permute.xlu1 %1863 }
 0x76b   : > { %13064 = vst [vmem:[#allocation36_spill] sm:$0xff] %v8769_v0  ;;  %v1968_v0 = vld [vmem:[%s13026_s4] sm:$0xf] }
 0x76f   : > { %v8773_v2 = vpop.permute.xlu1 %1902 }
 0x770   : > { %13066 = vst [vmem:[#allocation38_spill] sm:$0xff] %v8773_v2  ;;  %v12696_v2 = vmov 43  }
 0x774   : > { %v1942_v3 = vpop.permute.xlu1 %1941 }
 0x775   : > { %v8779_v22 = vrot.slane %v1942_v3, %v8355_v62  ;;  %v7594_v3 = vld [vmem:[%s12518_s1 + $0x5] ss:$8 sm:$0x3] }
 0x776   : > { %v2052_v55 = vrot.slane %v7594_v3, %v8229_v7 }
 0x777   : > { %13067 = vst [vmem:[#allocation39_spill] sm:$0xff] %v8779_v22  ;;  %v1952_v14 = vmul.f32 %v8779_v22, %v1938_v43  ;;  %v2056_v43 = vrot.slane %v7594_v3, %v8232_v8 }
 0x779   : > { %1957 = vrot.lane.b32.xlu1 %v1952_v14, %s13068_s20  ;;  %v2057_v14 = vcombine.low %v2052_v55, %v2056_v43  ;;  %v2007_v43 = vld [vmem:[%s13026_s4] sm:$0xf] }
 0x77b   : > { %2058 = vrot.lane.b32.xlu0 %v2057_v14, %s13069_s26 }
 0x77d   : > { %1979 = vperm.xlu1 %7823, %v1968_v0   ;;  %v8795_v0 = vpop.permute.xlu0 %1969 }
 0x77e   : > { %13071 = vst [vmem:[#allocation40_spill] sm:$0xff] %v8795_v0  ;;  %v12711_v10 = vrot.slane %v8795_v0, 4 }
 0x77f   : > { %2097 = vrot.lane.b32.xlu0 %v2057_v14, %s13070_s17 }
 0x781   : > { %7824 = vset.pattern.permute.xlu1 %v12696_v2  ;;  %v1967_v2 = vld [vmem:[#allocation2 + $0x10] sm:$0xf] }
 0x782   : > { %v1976_v22 = vmul.f32 %v12711_v10, %v1967_v2  ;;  %v7595_v2 = vld [vmem:[%s12518_s1 + $0x6] ss:$8 sm:$0x3] }
 0x783   : > { %2136 = vrot.lane.b32.xlu0 %v2057_v14, %s13073_s13 }
 0x787   : > { %2175 = vrot.lane.b32.xlu0 %v2057_v14, %s13075_s23 }
 0x78b   : > { %2214 = vrot.lane.b32.xlu0 %v2057_v14, %s13076_s14  ;;  %s13080_s14 = smov 80  }
 0x78f   : > { %2252 = vrot.lane.b32.xlu0 %v2057_v14, %s13077_s29 }
 0x793   : > { %2290 = vrot.lane.b32.xlu0 %v2057_v14, %s12712_s28  ;;  %v2454_v14 = vld [vmem:[%s13026_s4] sm:$0xf] }
 0x7eb   : > { %v8797_v12 = vpop.permute.xlu1 %1957 }
 0x7ec   : > { %13072 = vst [vmem:[#allocation41_spill] sm:$0xff] %v8797_v12 }
 0x7fc   : > { %v1980_v46 = vpop.permute.xlu1 %1979 }
 0x7fd   : > { %v8804_v3 = vrot.slane %v1980_v46, %v8355_v62  ;;  %v13078_v46 = vmov 2  }
 0x7ff   : > { %13074 = vst [vmem:[#allocation42_spill] sm:$0xff] %v8804_v3  ;;  %v1990_v55 = vmul.f32 %v8804_v3, %v1976_v22  ;;  %v2333_v22 = vrot.slane %v7595_v2, %v8229_v7  ;;  %v536_v3 = vrot.slane %v8452_v32, 4 }
 0x801   : > { %1995 = vrot.lane.b32.xlu1 %v1990_v55, %s12712_s28  ;;  %v2337_v55 = vrot.slane %v7595_v2, %v8232_v8  ;;  %v2481_v2 = vld [vmem:[%s13026_s4] sm:$0xf]  ;;  %s13108_s28 = smov 64  }
 0x803   : > { %v8821_v10 = vcombine.low %v2333_v22, %v2337_v55  ;;  %v13083_v22 = vmov 0   ;;  %v7596_v55 = vld [vmem:[%s12518_s1 + $0x7] ss:$8 sm:$0x3] }
 0x805   : > { %2019 = vperm.xlu1 %7824, %v2007_v43   ;;  %13079 = vst [vmem:[#allocation43_spill] sm:$0xff] %v8821_v10  ;;  %2339 = vrot.lane.b32.xlu0 %v8821_v10, %s13080_s14  ;;  %v12715_v43 = vmov 31  }
 0x809   : > { %7825 = vset.pattern.permute.xlu1 %v13078_v46  ;;  %2378 = vrot.lane.b32.xlu0 %v8821_v10, %s13081_s30  ;;  %v495_v46 = vrot.slane %v8454_v17, 4 }
 0x80d   : > { %2417 = vrot.lane.b32.xlu0 %v8821_v10, %s13082_s18 }
 0x811   : > { %2459 = vperm.xlu0 %7835, %v2454_v14   ;;  %v2601_v14 = vrot.slane %v7596_v55, %v8229_v7 }
 0x815   : > { %7836 = vset.pattern.permute.xlu0 %v12715_v43  ;;  %v2605_v43 = vrot.slane %v7596_v55, %v8232_v8 }
 0x816   : > { %2492 = vperm.xlu0 %7836, %v2481_v2   ;;  %v439_v2 = vrot.slane %v8357_v1, 4 }
 0x817   : > { %v8846_v12 = vcombine.low %v2601_v14, %v2605_v43  ;;  %v456_v43 = vrot.slane %v8414_v59, %v8355_v62  ;;  %v535_v14 = vrot.slane %v8450_v16, 4 }
 0x818   : > { %v441_v7 = vsel %vm12970_vm1, %v439_v2, %v8357_v1 }
 0x819   : > { %13085 = vst [vmem:[#allocation44_spill] sm:$0xff] %v8846_v12  ;;  %v537_v21 = vsel %vm416_vm0, %v535_v14, %v536_v3  ;;  %v669_v3 = vrot.slane %v8464_v25, 4 }
 0x81a   : > { %2520 = vrot.lane.b32.xlu0 %v8821_v10, %s13053_s27 }
 0x81b   : > { %7860 = vset.pattern.permute.xlu0 %v13083_v22  ;;  %v494_v22 = vrot.slane %v8448_v15, 4 }
 0x81d   : > { %v496_v55 = vsel %vm416_vm0, %v494_v22, %v495_v46  ;;  %v539_v46 = vsel %vm12737_vm12, %v8450_v16, %v537_v21  ;;  %v710_v16 = vrot.slane %v8466_v26, 4  ;;  %v748_v21 = vrot.slane %v8476_v35, 4 }
 0x81e   : > { %2558 = vrot.lane.b32.xlu0 %v8821_v10, %s13084_s0  ;;  %v425_v10 = vld [vmem:[#allocation2 + $0xc] sm:$0xf]  ;;  %v498_v31 = vsel %vm12734_vm13, %v8448_v15, %v496_v55  ;;  %v619_v15 = vsel %vm12735_vm14, %v616_v24, %v8460_v20  ;;  %v749_v20 = vrot.slane %v8470_v29, 4  ;;  %v788_v55 = vrot.slane %v8480_v38, 4 }
 0x81f   : > { %v445_v8 = vmul.f32 %v439_v2, %v425_v10  ;;  %v618_v2 = vsel %vm12735_vm14, %v616_v24, %v8462_v23  ;;  %vm12744_vm13 = vcmask 646144   ;;  %vm12736_vm14 = vcmask 515072  }
 0x820   : > { %vm12742_vm12 = vcmask 506880  }
 0x821   : > { %v459_v49 = vmul.f32 %v456_v43, %v445_v8 }
 0x822   : > { %2607 = vrot.lane.b32.xlu0 %v8846_v12, %s12753_s19  ;;  %v7966_v12 = vld [vmem:[#allocation2 + $0x4] sm:$0xff]  ;;  %s13136_s19 = smov 78  }
 0x823   : > { %v444_v0 = vmul.f32 %v7966_v12, %v441_v7  ;;  %v502_v59 = vadd.f32 %v8454_v17, %v459_v49  ;;  %v579_v7 = vsel %vm12738_vm15, %v576_v5, %v8456_v18  ;;  %v709_v17 = vrot.slane %v8472_v30, 4 }
 0x825   : > { %v458_v1 = vmul.f32 %v456_v43, %v444_v0  ;;  %v543_v12 = vadd.f32 %v8452_v32, %v502_v59  ;;  %v668_v0 = vrot.slane %v8468_v28, 4  ;;  %v711_v43 = vsel %vm416_vm0, %v709_v17, %v710_v16 }
 0x826   : > { %v828_v59 = vrot.slane %v8484_v42, 4  ;;  %v712_v23 = vsel %vm12741_vm8, %v8472_v30, %v711_v43  ;;  %v918_v30 = vrot.slane %v8492_v48, 4  ;;  %v2006_v43 = vld [vmem:[#allocation2 + $0x10] sm:$0xf]  ;;  %vm12745_vm8 = vcmask 629760  }
 0x827   : > { %v501_v10 = vadd.f32 %v498_v31, %v458_v1  ;;  %v583_v22 = vadd.f32 %v579_v7, %v543_v12  ;;  %v578_v31 = vsel %vm12738_vm15, %v576_v5, %v8458_v19  ;;  %v670_v32 = vsel %vm416_vm0, %v668_v0, %v669_v3 }
 0x828   : > { %v672_v14 = vsel %vm12740_vm9, %v8468_v28, %v670_v32  ;;  %v750_v1 = vsel %vm416_vm0, %v748_v21, %v749_v20  ;;  %v879_v28 = vrot.slane %v8488_v45, 4  ;;  %v8917_v32 = vpop.permute.xlu0 %2008  ;;  %vm12899_vm15 = vcmask 1022976  }
 0x829   : > { %v542_v8 = vadd.f32 %v539_v46, %v501_v10  ;;  %v623_v49 = vadd.f32 %v619_v15, %v583_v22  ;;  %v791_v10 = vsel %vm12744_vm13, %v788_v55, %v8474_v33  ;;  %v751_v12 = vsel %vm12743_vm7, %v8476_v35, %v750_v1 }
 0x82a   : > { %v919_v15 = vrot.slane %v8486_v44, 4  ;;  %v790_v33 = vsel %vm12744_vm13, %v788_v55, %v8480_v38  ;;  %v1024_v55 = vrot.slane %v8496_v52, 4  ;;  %v1077_v1 = vrot.slane %v8506_v63, 4 }
 0x82b   : > { %v582_v18 = vadd.f32 %v578_v31, %v542_v8  ;;  %v676_v19 = vadd.f32 %v8464_v25, %v623_v49  ;;  %v880_v25 = vrot.slane %v8482_v40, 4  ;;  %vm1120_vm9 = vcmask 891904  }
 0x82c   : > { %v920_v16 = vsel %vm416_vm0, %v918_v30, %v919_v15  ;;  %v1198_v30 = vrot.slane %v8536_v27, 4  ;;  %vm1293_vm7 = vcmask 1014784   ;;  %vm12749_vm13 = vcmask 752640  }
 0x82d   : > { %v622_v5 = vadd.f32 %v618_v2, %v582_v18  ;;  %v716_v46 = vadd.f32 %v8466_v26, %v676_v19  ;;  %v831_v26 = vsel %vm12736_vm14, %v828_v59, %v8478_v37  ;;  %v881_v22 = vsel %vm416_vm0, %v879_v28, %v880_v25 }
 0x82e   : > { %v882_v37 = vsel %vm12969_vm4, %v8488_v45, %v881_v22  ;;  %v921_v38 = vsel %vm12895_vm3, %v8492_v48, %v920_v16  ;;  %v946_v18 = vrot.slane %v8490_v47, 4  ;;  %v2010_v48 = vrot.slane %v8917_v32, 4 }
 0x82f   : > { %v675_v24 = vadd.f32 %v672_v14, %v622_v5  ;;  %v755_v7 = vadd.f32 %v8470_v29, %v716_v46  ;;  %v830_v29 = vsel %vm12736_vm14, %v828_v59, %v8484_v42  ;;  %v984_v42 = vrot.slane %v8494_v50, 4 }
 0x830   : > { %vm12893_vm14 = vcmask 637952   ;;  %v947_v14 = vsel %vm12970_vm1, %v946_v18, %v8490_v47  ;;  %v1076_v5 = vrot.slane %v8500_v57, 4  ;;  %v2016_v59 = vmul.f32 %v2010_v48, %v2006_v43 }
 0x831   : > { %v715_v8 = vadd.f32 %v712_v23, %v675_v24  ;;  %v795_v0 = vadd.f32 %v791_v10, %v755_v7  ;;  %v1117_v47 = vrot.slane %v8504_v60, 4  ;;  %v1118_v10 = vrot.slane %v8508_v6, 4 }
 0x832   : > { %v1078_v7 = vsel %vm416_vm0, %v1076_v5, %v1077_v1  ;;  %v1238_v22 = vrot.slane %v8558_v9, 4  ;;  %v13087_v5 = vld [vmem:[#allocation11_spill] sm:$0xff] }
 0x833   : > { %v754_v3 = vadd.f32 %v751_v12, %v715_v8  ;;  %v835_v17 = vadd.f32 %v831_v26, %v795_v0  ;;  %v1158_v12 = vrot.slane %v8521_v56, 4  ;;  %v1119_v26 = vsel %vm416_vm0, %v1117_v47, %v1118_v10  ;;  %v2047_v0 = vld [vmem:[%s13026_s4] sm:$0xf] }
 0x834   : > { %v13090_v47 = vld [vmem:[#allocation10_spill] sm:$0xff] }
 0x835   : > { %v794_v35 = vadd.f32 %v790_v33, %v754_v3  ;;  %v886_v49 = vadd.f32 %v8482_v40, %v835_v17  ;;  %v987_v40 = vsel %vm12893_vm14, %v984_v42, %v8498_v54  ;;  %v986_v54 = vsel %vm12893_vm14, %v984_v42, %v8494_v50 }
 0x836   : > { %v1026_v50 = vsel %vm12742_vm12, %v1024_v55, %v8496_v52  ;;  %v1080_v33 = vsel %vm12899_vm15, %v8500_v57, %v1078_v7  ;;  %v1161_v52 = vsel %vm12896_vm11, %v1158_v12, %v8523_v4  ;;  %v1121_v17 = vsel %vm1120_vm9, %v8504_v60, %v1119_v26  ;;  %v2096_v60 = vld [vmem:[%s13026_s4] sm:$0xf] }
 0x837   : > { %v834_v31 = vadd.f32 %v830_v29, %v794_v35  ;;  %v925_v20 = vadd.f32 %v8486_v44, %v886_v49  ;;  %v1027_v44 = vsel %vm12742_vm12, %v1024_v55, %v8502_v58  ;;  %vm12747_vm12 = vcmask 498688  }
 0x838   : > { %v1201_v57 = vsel %vm12745_vm8, %v1198_v30, %v8538_v41  ;;  %v1160_v35 = vsel %vm12896_vm11, %v1158_v12, %v8521_v56  ;;  %v1290_v4 = vrot.slane %v8573_v34, 4  ;;  %v1200_v41 = vsel %vm12745_vm8, %v1198_v30, %v8536_v27 }
 0x839   : > { %v885_v21 = vadd.f32 %v882_v37, %v834_v31  ;;  %v951_v19 = vadd.f32 %v946_v18, %v925_v20  ;;  %v1291_v37 = vrot.slane %v8575_v39, 4  ;;  %v1331_v56 = vrot.slane %v8588_v53, 4 }
 0x83a   : > { %v13086_v42 = vmov 9   ;;  %v1240_v27 = vsel %vm12747_vm12, %v1238_v22, %v8558_v9  ;;  %vm12758_vm8 = vcmask 883712   ;;  %v1452_v9 = vrot.slane %v13087_v5, 4 }
 0x83b   : > { %v924_v45 = vadd.f32 %v921_v38, %v885_v21  ;;  %v991_v46 = vadd.f32 %v987_v40, %v951_v19  ;;  %v1332_v38 = vrot.slane %v8590_v11, 4  ;;  %v1372_v21 = vrot.slane %v8602_v13, 4 }
 0x83d   : > { %v950_v24 = vadd.f32 %v947_v14, %v924_v45  ;;  %v1031_v58 = vadd.f32 %v1027_v44, %v991_v46  ;;  %v1412_v45 = vrot.slane %v8616_v51, 4  ;;  %v1333_v40 = vsel %vm416_vm0, %v1331_v56, %v1332_v38  ;;  %v2135_v14 = vld [vmem:[%s13026_s4] sm:$0xf]  ;;  %v13089_v46 = vld [vmem:[#allocation9_spill] sm:$0xff] }
 0x83e   : > { %v1375_v44 = vsel %vm12749_vm13, %v1372_v21, %v8604_v36  ;;  %v1374_v36 = vsel %vm12749_vm13, %v1372_v21, %v8602_v13  ;;  %vm12898_vm13 = vcmask 367616  }
 0x83f   : > { %v990_v25 = vadd.f32 %v986_v54, %v950_v24  ;;  %v1084_v15 = vadd.f32 %v8506_v63, %v1031_v58  ;;  %v1335_v54 = vsel %vm12758_vm8, %v8588_v53, %v1333_v40  ;;  %v13091_v53 = vld [vmem:[#allocation12_spill] sm:$0xff]  ;;  %v1414_v12 = vsel %vm12751_vm6, %v1412_v45, %v8616_v51  ;;  %v2213_v51 = vld [vmem:[%s13026_s4] sm:$0xf] }
 0x840   : > { %v1471_v7 = vrot.slane %v13091_v53, %v8355_v62  ;;  %vm13145_vm8 = vcmask 785408  }
 0x841   : > { %v1030_v3 = vadd.f32 %v1026_v50, %v990_v25  ;;  %v1125_v29 = vadd.f32 %v8508_v6, %v1084_v15  ;;  %v1241_v6 = vsel %vm12747_vm12, %v1238_v22, %v8560_v61  ;;  %v1292_v61 = vsel %vm416_vm0, %v1290_v4, %v1291_v37  ;;  %v9026_v22 = vpop.permute.xlu0 %2058 }
 0x842   : > { %v1294_v19 = vsel %vm1293_vm7, %v8573_v34, %v1292_v61  ;;  %vm12748_vm12 = vcmask 490496  }
 0x843   : > { %v1083_v63 = vadd.f32 %v1080_v33, %v1030_v3  ;;  %v1165_v16 = vadd.f32 %v1161_v52, %v1125_v29  ;;  %v1455_v10 = vsel %vm12748_vm12, %v1452_v9, %v13090_v47  ;;  %v1454_v13 = vsel %vm12748_vm12, %v1452_v9, %v13087_v5 }
 0x844   : > { %v12763_v52 = vmov 37   ;;  %vm12968_vm12 = vcmask 236544  }
 0x845   : > { %v1124_v31 = vadd.f32 %v1121_v17, %v1083_v63  ;;  %v1205_v49 = vadd.f32 %v1201_v57, %v1165_v16  ;;  %v9032_v63 = vpop.permute.xlu0 %2097 }
 0x847   : > { %v1164_v18 = vadd.f32 %v1160_v35, %v1124_v31  ;;  %v1245_v20 = vadd.f32 %v1241_v6, %v1205_v49 }
 0x849   : > { %v1204_v43 = vadd.f32 %v1200_v41, %v1164_v18  ;;  %v1298_v55 = vadd.f32 %v8575_v39, %v1245_v20  ;;  %v13088_v39 = vmov 16   ;;  %v9036_v35 = vpop.permute.xlu0 %2136  ;;  %v2212_v41 = vld [vmem:[#allocation2 + $0x10] sm:$0xf] }
 0x84b   : > { %v1244_v1 = vadd.f32 %v1240_v27, %v1204_v43 }
 0x84d   : > { %v1297_v24 = vadd.f32 %v1294_v19, %v1244_v1  ;;  %v9040_v37 = vpop.permute.xlu0 %2175  ;;  %v13097_v19 = vld [vmem:[#allocation16_spill] sm:$0xff]  ;;  %v13098_v1 = vld [vmem:[#allocation18_spill] sm:$0xff] }
 0x84f   : > { %v1338_v58 = vadd.f32 %v1335_v54, %v1297_v24 }
 0x851   : > { %v1378_v50 = vadd.f32 %v1374_v36, %v1338_v58  ;;  %v2215_v6 = vpop.permute.xlu0 %2214 }
 0x853   : > { %v1418_v30 = vadd.f32 %v1414_v12, %v1378_v50  ;;  %v13102_v12 = vld [vmem:[#allocation19_spill] sm:$0xff] }
 0x854   : > { %v9091_v50 = vrot.slane %v13102_v12, %v8355_v62 }
 0x855   : > { %v1458_v33 = vadd.f32 %v1454_v13, %v1418_v30 }
 0x857   : > { %v9018_v3 = vadd.f32 %v1471_v7, %v1458_v33 }
 0x859   : > { %13095 = vst [vmem:[#allocation9_spill] sm:$0xff] %v9018_v3 }
 0x873   : > { %v8921_v2 = vpop.permute.xlu1 %1995 }
 0x884   : > { %v2020_v23 = vpop.permute.xlu1 %2019 }
 0x885   : > { %v8940_v28 = vrot.slane %v2020_v23, %v8355_v62  ;;  %v1415_v23 = vsel %vm12751_vm6, %v1412_v45, %v13089_v46  ;;  %v13099_v46 = vld [vmem:[#allocation15_spill] sm:$0xff]  ;;  %vm12894_vm6 = vcmask 375808  }
 0x887   : > { %v2030_v8 = vmul.f32 %v8940_v28, %v2016_v59  ;;  %v1339_v59 = vadd.f32 %v8590_v11, %v1298_v55  ;;  %v2174_v11 = vld [vmem:[%s13026_s4] sm:$0xf] }
 0x889   : > { %2035 = vrot.lane.b32.xlu1 %v2030_v8, %s13077_s29  ;;  %v1379_v34 = vadd.f32 %v1375_v44, %v1339_v59  ;;  %v13092_v8 = vmov 23   ;;  %v1531_v44 = vrot.slane %v13097_v19, 4  ;;  %v1570_v59 = vrot.slane %v13098_v1, 4 }
 0x88b   : > { %v1419_v25 = vadd.f32 %v1415_v23, %v1379_v34  ;;  %v1532_v9 = vsel %vm12896_vm11, %v1531_v44, %v13097_v19  ;;  %v9069_v23 = vrot.slane %v13099_v46, %v8355_v62  ;;  %v1571_v24 = vsel %vm1120_vm9, %v1570_v59, %v13098_v1  ;;  %v13100_v34 = vld [vmem:[#allocation20_spill] sm:$0xff] }
 0x88c   : > { %v12780_v36 = vrot.slane %v13100_v34, 4 }
 0x88d   : > { %2068 = vperm.xlu1 %7825, %v2047_v0   ;;  %v1459_v26 = vadd.f32 %v1455_v10, %v1419_v25  ;;  %v12765_v0 = vmov 30  }
 0x88e   : > { %v1610_v25 = vsel %vm12899_vm15, %v12780_v36, %v13100_v34 }
 0x88f   : > { %v9013_v15 = vadd.f32 %v1471_v7, %v1459_v26  ;;  %v13103_v26 = vld [vmem:[#allocation21_spill] sm:$0xff] }
 0x890   : > { %v13104_v13 = vrot.slane %v13103_v26, 4 }
 0x891   : > { %7826 = vset.pattern.permute.xlu1 %v13086_v42  ;;  %13093 = vst [vmem:[#allocation11_spill] sm:$0xff] %v9013_v15 }
 0x892   : > { %2107 = vperm.xlu1 %7826, %v2096_v60   ;;  %v2216_v60 = vrot.slane %v2215_v6, 4 }
 0x894   : > { %v2217_v18 = vsel %vm762_vm10, %v2216_v60, %v2215_v6  ;;  %v2221_v21 = vmul.f32 %v2216_v60, %v2212_v41  ;;  %vm12750_vm10 = vcmask 105472   ;;  %v13105_v6 = vld [vmem:[#allocation23_spill] sm:$0xff] }
 0x895   : > { %v1650_v30 = vsel %vm12750_vm10, %v13104_v13, %v13103_v26  ;;  %v13106_v60 = vrot.slane %v13105_v6, 4  ;;  %vm13125_vm10 = vcmask 244736  }
 0x896   : > { %7827 = vset.pattern.permute.xlu1 %v13088_v39 }
 0x897   : > { %2146 = vperm.xlu1 %7827, %v2135_v14   ;;  %v2251_v14 = vld [vmem:[%s13026_s4] sm:$0xf]  ;;  %v1689_v41 = vsel %vm12968_vm12, %v13106_v60, %v13105_v6  ;;  %v13118_v6 = vld [vmem:[#allocation35_spill] sm:$0xff] }
 0x898   : > { %v12774_v60 = vrot.slane %v13118_v6, 4 }
 0x89b   : > { %7828 = vset.pattern.permute.xlu1 %v13092_v8 }
 0x89c   : > { %2185 = vperm.xlu1 %7828, %v2174_v11   ;;  %v13101_v11 = vld [vmem:[#allocation17_spill] sm:$0xff] }
 0x89d   : > { %v9080_v58 = vrot.slane %v13101_v11, %v8355_v62  ;;  %v13115_v11 = vld [vmem:[#allocation32_spill] sm:$0xff] }
 0x8a0   : > { %1479 = vrot.lane.b32.xlu1 %v9013_v15, %s13094_s2 }
 0x8a1   : > { %7829 = vset.pattern.permute.xlu1 %v12765_v0 }
 0x8a4   : > { %1477 = vrot.lane.b32.xlu1 %v9018_v3, %s13094_s2 }
 0x8a8   : > { %2224 = vperm.xlu1 %7829, %v2213_v51  }
 0x8ac   : > { %7830 = vset.pattern.permute.xlu1 %v12763_v52 }
 0x8fb   : > { %v9028_v29 = vpop.permute.xlu1 %2035 }
 0x90c   : > { %v9030_v17 = vpop.permute.xlu1 %2068 }
 0x911   : > { %v9034_v57 = vpop.permute.xlu1 %2107 }
 0x916   : > { %v9038_v16 = vpop.permute.xlu1 %2146 }
 0x91b   : > { %v9042_v4 = vpop.permute.xlu1 %2185 }
 0x91f   : > { %v1480_v31 = vpop.permute.xlu1 %1479 }
 0x920   : > { %v1482_v38 = vrot.slane %v1480_v31, 4  ;;  %v12761_v31 = vmov 44  }
 0x923   : > { %v1478_v49 = vpop.permute.xlu1 %1477 }
 0x924   : > { %v1481_v56 = vrot.slane %v1478_v49, 4 }
 0x926   : > { %v1483_v20 = vsel %vm416_vm0, %v1481_v56, %v1482_v38  ;;  %v13107_v38 = vld [vmem:[#allocation22_spill] sm:$0xff] }
 0x927   : > { %v9047_v61 = vsel %vm12883_vm2, %v1478_v49, %v1483_v20  ;;  %v2225_v43 = vpop.permute.xlu1 %2224 }
 0x928   : > { %1486 = vst [vmem:[#allocation2 + $0x8] sm:$0xff] %v9047_v61  ;;  %v2220_v27 = vmul.f32 %v2217_v18, %v9047_v61  ;;  %v2232_v45 = vrot.slane %v2225_v43, %v8355_v62  ;;  %v1653_v33 = vmul.f32 %v1650_v30, %v9047_v61  ;;  %v1692_v49 = vmul.f32 %v1689_v41, %v9047_v61  ;;  %v13109_v18 = vld [vmem:[#allocation26_spill] sm:$0xff]  ;;  %v13111_v43 = vld [vmem:[#allocation29_spill] sm:$0xff] }
 0x929   : > { %v13117_v30 = vld [vmem:[#allocation34_spill] sm:$0xff]  ;;  %v13160_v19 = vrot.slane %v13111_v43, 4 }
 0x92a   : > { %v9052_v55 = vmul.f32 %v2232_v45, %v2220_v27  ;;  %v2235_v40 = vmul.f32 %v2232_v45, %v2221_v21  ;;  %v1667_v56 = vmul.f32 %v13107_v38, %v1653_v33  ;;  %v13110_v21 = vrot.slane %v13109_v18, 4  ;;  %v13119_v38 = vld [vmem:[#allocation36_spill] sm:$0xff] }
 0x92b   : > { %v12779_v27 = vrot.slane %v13111_v43, 4  ;;  %v9138_v33 = vrot.slane %v13117_v30, %v8355_v62  ;;  %v13126_v30 = vld [vmem:[#allocation39_spill] sm:$0xff] }
 0x92c   : > { %2240 = vrot.lane.b32.xlu1 %v2235_v40, %s13096_s15  ;;  %v1729_v20 = vsel %vm12898_vm13, %v13110_v21, %v13109_v18  ;;  %v13112_v40 = vld [vmem:[#allocation25_spill] sm:$0xff]  ;;  %v1895_v18 = vsel %vm12969_vm4, %v12774_v60, %v13118_v6 }
 0x92d   : > { %v1732_v45 = vmul.f32 %v1729_v20, %v9047_v61 }
 0x92f   : > { %v9059_v5 = vld [vmem:[#allocation2 + $0x4] sm:$0xff]  ;;  %v1527_v36 = vld [vmem:[#allocation2 + $0xc] sm:$0xf] }
 0x930   : > { %2262 = vperm.xlu1 %7830, %v2251_v14   ;;  %v1535_v54 = vmul.f32 %v1532_v9, %v9059_v5  ;;  %v1574_v47 = vmul.f32 %v1571_v24, %v9059_v5  ;;  %v1613_v53 = vmul.f32 %v1610_v25, %v9059_v5  ;;  %v1706_v14 = vmul.f32 %v13112_v40, %v1692_v49 }
 0x931   : > { %v1778_v9 = vsel %vm12893_vm14, %v12779_v27, %v13111_v43  ;;  %v9126_v25 = vrot.slane %v13115_v11, %v8355_v62  ;;  %v1898_v21 = vmul.f32 %v1895_v18, %v9059_v5  ;;  %v13123_v11 = vld [vmem:[#allocation40_spill] sm:$0xff]  ;;  %v13127_v18 = vld [vmem:[#allocation42_spill] sm:$0xff]  ;;  %v1890_v43 = vld [vmem:[#allocation2 + $0xc] sm:$0xf] }
 0x932   : > { %v1549_v10 = vmul.f32 %v9069_v23, %v1535_v54  ;;  %v1588_v7 = vmul.f32 %v9080_v58, %v1574_v47  ;;  %v1627_v51 = vmul.f32 %v9091_v50, %v1613_v53  ;;  %v13113_v54 = vld [vmem:[#allocation31_spill] sm:$0xff]  ;;  %v1781_v24 = vmul.f32 %v1778_v9, %v9059_v5  ;;  %v13114_v47 = vld [vmem:[#allocation28_spill] sm:$0xff] }
 0x933   : > { %v12776_v46 = vrot.slane %v13113_v54, 4 }
 0x934   : > { %1553 = vrot.lane.b32.xlu0 %v1549_v10, %s13082_s18  ;;  %7831 = vset.pattern.permute.xlu1 %v12761_v31  ;;  %v1746_v10 = vmul.f32 %v13114_v47, %v1732_v45  ;;  %v1795_v13 = vmul.f32 %v9126_v25, %v1781_v24  ;;  %v13120_v45 = vld [vmem:[#allocation38_spill] sm:$0xff] }
 0x935   : > { %v1817_v53 = vsel %vm12970_vm1, %v12776_v46, %v13113_v54  ;;  %v9161_v40 = vrot.slane %v13120_v45, %v8355_v62  ;;  %v12771_v45 = vrot.slane %v9032_v63, 4  ;;  %v2518_v46 = vld [vmem:[#allocation2 + $0x10] sm:$0xf] }
 0x936   : > { %v1820_v26 = vmul.f32 %v1817_v53, %v9059_v5  ;;  %v13124_v53 = vrot.slane %v13123_v11, 4 }
 0x938   : > { %1592 = vrot.lane.b32.xlu0 %v1588_v7, %s13081_s30  ;;  %v13116_v7 = vld [vmem:[#allocation33_spill] sm:$0xff]  ;;  %v1834_v49 = vmul.f32 %v9138_v33, %v1820_v26  ;;  %v1972_v26 = vsel %vm13125_vm10, %v13124_v53, %v13123_v11  ;;  %vm13129_vm10 = vcmask 646144   ;;  %v12769_v11 = vrot.slane %v9040_v37, 4 }
 0x939   : > { %v12775_v12 = vrot.slane %v13116_v7, 4 }
 0x93c   : > { %1631 = vrot.lane.b32.xlu0 %v1627_v51, %s13080_s14  ;;  %v1856_v51 = vsel %vm12895_vm3, %v12775_v12, %v13116_v7 }
 0x93d   : > { %v1859_v41 = vmul.f32 %v1856_v51, %v9059_v5 }
 0x940   : > { %1671 = vrot.lane.b32.xlu0 %v1667_v56, %s13108_s28  ;;  %v9150_v56 = vrot.slane %v13119_v38, %v8355_v62 }
 0x942   : > { %v1873_v20 = vmul.f32 %v9150_v56, %v1859_v41  ;;  %v2012_v41 = vsel %vm12894_vm6, %v2010_v48, %v8917_v32  ;;  %v9195_v32 = vrot.slane %v9030_v17, %v8355_v62 }
 0x943   : > { %v2015_v38 = vmul.f32 %v2012_v41, %v9047_v61  ;;  %v9230_v41 = vrot.slane %v9042_v4, %v8355_v62 }
 0x944   : > { %1710 = vrot.lane.b32.xlu0 %v1706_v14, %s13084_s0  ;;  %v13121_v14 = vld [vmem:[#allocation37_spill] sm:$0xff]  ;;  %s13171_s0 = smov 77  }
 0x945   : > { %v13122_v9 = vrot.slane %v13121_v14, 4 }
 0x947   : > { %v1934_v24 = vsel %vm12752_vm5, %v13122_v9, %v13121_v14  ;;  %v2029_v9 = vmul.f32 %v8940_v28, %v2015_v38  ;;  %vm13130_vm5 = vcmask 777216   ;;  %v9207_v28 = vrot.slane %v9034_v57, %v8355_v62  ;;  %v2253_v38 = vpop.permute.xlu0 %2252 }
 0x948   : > { %1750 = vrot.lane.b32.xlu0 %v1746_v10, %s13053_s27  ;;  %v1937_v47 = vmul.f32 %v1934_v24, %v9047_v61  ;;  %v1912_v10 = vmul.f32 %v9161_v40, %v1898_v21  ;;  %v2100_v48 = vsel %vm13130_vm5, %v12771_v45, %v9032_v63  ;;  %v12770_v24 = vrot.slane %v9036_v35, 4 }
 0x949   : > { %vm13134_vm5 = vcmask 1039360  }
 0x94a   : > { %v1951_v51 = vmul.f32 %v13126_v30, %v1937_v47  ;;  %v2103_v47 = vmul.f32 %v2100_v48, %v9059_v5  ;;  %v2178_v57 = vsel %vm13134_vm5, %v12769_v11, %v9040_v37  ;;  %vm1998_vm5 = vcmask 384000  }
 0x94b   : > { %v2181_v30 = vmul.f32 %v2178_v57, %v9059_v5 }
 0x94c   : > { %1799 = vrot.lane.b32.xlu0 %v1795_v13, %s13075_s23  ;;  %v1975_v13 = vmul.f32 %v1972_v26, %v9047_v61  ;;  %v2117_v26 = vmul.f32 %v9207_v28, %v2103_v47 }
 0x94e   : > { %v1989_v21 = vmul.f32 %v13127_v18, %v1975_v13  ;;  %v9219_v13 = vrot.slane %v9038_v16, %v8355_v62  ;;  %v2195_v16 = vmul.f32 %v9230_v41, %v2181_v30  ;;  %v2254_v18 = vrot.slane %v2253_v38, 4  ;;  %v2288_v30 = vld [vmem:[#allocation2 + $0x10] sm:$0xf] }
 0x950   : > { %1838 = vrot.lane.b32.xlu0 %v1834_v49, %s13073_s13  ;;  %v12772_v49 = vrot.slane %v9026_v22, 4 }
 0x954   : > { %1877 = vrot.lane.b32.xlu0 %v1873_v20, %s13070_s17  ;;  %v2061_v20 = vsel %vm13129_vm10, %v12772_v49, %v9026_v22  ;;  %vm13132_vm10 = vcmask 908288  }
 0x955   : > { %v2064_v14 = vmul.f32 %v2061_v20, %v9059_v5  ;;  %v2139_v17 = vsel %vm13132_vm10, %v12770_v24, %v9036_v35  ;;  %vm13137_vm10 = vcmask 252928   ;;  %v2480_v24 = vld [vmem:[#allocation2 + $0x10] sm:$0xf] }
 0x956   : > { %v2142_v53 = vmul.f32 %v2139_v17, %v9059_v5 }
 0x958   : > { %1916 = vrot.lane.b32.xlu0 %v1912_v10, %s13069_s26  ;;  %v2078_v10 = vmul.f32 %v9195_v32, %v2064_v14  ;;  %v2255_v14 = vsel %vm13137_vm10, %v2254_v18, %v2253_v38  ;;  %vm13144_vm10 = vcmask 654336  }
 0x959   : > { %v2258_v4 = vmul.f32 %v2255_v14, %v9047_v61 }
 0x95c   : > { %1955 = vrot.lane.b32.xlu0 %v1951_v51, %s13068_s20  ;;  %s13131_s20 = smov 126   ;;  %v2156_v51 = vmul.f32 %v9219_v13, %v2142_v53  ;;  %v13139_v53 = vmov 3  }
 0x960   : > { %1993 = vrot.lane.b32.xlu0 %v1989_v21, %s13128_s25  ;;  %s13135_s25 = smov 94   ;;  %v2250_v21 = vld [vmem:[#allocation2 + $0x10] sm:$0xf] }
 0x964   : > { %2033 = vrot.lane.b32.xlu0 %v2029_v9, %s13077_s29  ;;  %s13133_s29 = smov 110   ;;  %v2259_v9 = vmul.f32 %v2254_v18, %v2250_v21 }
 0x968   : > { %2082 = vrot.lane.b32.xlu0 %v2078_v10, %s13131_s20 }
 0x96c   : > { %2121 = vrot.lane.b32.xlu0 %v2117_v26, %s13133_s29  ;;  %v2291_v26 = vpop.permute.xlu0 %2290 }
 0x96d   : > { %v2292_v57 = vrot.slane %v2291_v26, 4 }
 0x96f   : > { %v2297_v38 = vmul.f32 %v2292_v57, %v2288_v30 }
 0x970   : > { %2160 = vrot.lane.b32.xlu0 %v2156_v51, %s13135_s25  ;;  %v9269_v30 = vpop.permute.xlu0 %2339 }
 0x974   : > { %2199 = vrot.lane.b32.xlu0 %v2195_v16, %s13136_s19  ;;  %v2293_v16 = vsel %vm1998_vm5, %v2292_v57, %v2291_v26  ;;  %v13143_v26 = vld [vmem:[#allocation43_spill] sm:$0xff]  ;;  %v12759_v57 = vmov 38  }
 0x975   : > { %v2296_v21 = vmul.f32 %v2293_v16, %v9047_v61  ;;  %v12767_v16 = vrot.slane %v9269_v30, 4 }
 0x978   : > { %2238 = vrot.lane.b32.xlu0 %v9052_v55, %s13096_s15  ;;  %v2289_v55 = vld [vmem:[%s13026_s4] sm:$0xf] }
 0x99e   : > { %v9237_v20 = vpop.permute.xlu1 %2240 }
 0x9af   : > { %v2263_v48 = vpop.permute.xlu1 %2262 }
 0x9b0   : > { %v2270_v47 = vrot.slane %v2263_v48, %v8355_v62 }
 0x9b2   : > { %v2272_v10 = vmul.f32 %v2270_v47, %v2258_v4  ;;  %v2273_v17 = vmul.f32 %v2270_v47, %v2259_v9  ;;  %v2328_v4 = vld [vmem:[%s13026_s4] sm:$0xf] }
 0x9b3   : > { %v2377_v47 = vld [vmem:[%s13026_s4] sm:$0xf] }
 0x9b4   : > { %2278 = vrot.lane.b32.xlu1 %v2273_v17, %s13138_s3  ;;  %2276 = vrot.lane.b32.xlu0 %v2272_v10, %s13138_s3  ;;  %v13140_v10 = vmov 10   ;;  %v2416_v17 = vld [vmem:[%s13026_s4] sm:$0xf]  ;;  %s13146_s3 = smov 125  }
 0x9b8   : > { %2300 = vperm.xlu1 %7831, %v2289_v55   ;;  %v13141_v55 = vmov 17  }
 0x9bc   : > { %7832 = vset.pattern.permute.xlu1 %v13139_v53 }
 0xa26   : > { %v9248_v51 = vpop.permute.xlu1 %2278 }
 0xa37   : > { %v2301_v18 = vpop.permute.xlu1 %2300 }
 0xa38   : > { %v2308_v14 = vrot.slane %v2301_v18, %v8355_v62 }
 0xa3a   : > { %v2310_v9 = vmul.f32 %v2308_v14, %v2296_v21  ;;  %v2311_v48 = vmul.f32 %v2308_v14, %v2297_v38  ;;  %v9272_v38 = vpop.permute.xlu0 %2378  ;;  %v2342_v21 = vsel %vm13144_vm10, %v12767_v16, %v9269_v30  ;;  %vm13147_vm10 = vcmask 916480  }
 0xa3b   : > { %v12768_v14 = vrot.slane %v9272_v38, 4 }
 0xa3c   : > { %2316 = vrot.lane.b32.xlu1 %v2311_v48, %s13049_s24  ;;  %2314 = vrot.lane.b32.xlu0 %v2310_v9, %s13049_s24  ;;  %v2345_v48 = vmul.f32 %v2342_v21, %v9059_v5 }
 0xa40   : > { %2349 = vperm.xlu1 %7832, %v2328_v4  }
 0xa44   : > { %7833 = vset.pattern.permute.xlu1 %v13140_v10 }
 0xa45   : > { %2388 = vperm.xlu1 %7833, %v2377_v47   ;;  %v9285_v47 = vpop.permute.xlu0 %2417 }
 0xa46   : > { %v12773_v31 = vrot.slane %v9285_v47, 4 }
 0xa49   : > { %7834 = vset.pattern.permute.xlu1 %v13141_v55  ;;  %v9302_v16 = vpop.permute.xlu0 %2459 }
 0xa4a   : > { %2427 = vperm.xlu1 %7834, %v2416_v17   ;;  %v2381_v17 = vsel %vm13145_vm8, %v12768_v14, %v9272_v38  ;;  %vm13150_vm8 = vcmask 130048  }
 0xa4b   : > { %v2384_v0 = vmul.f32 %v2381_v17, %v9059_v5 }
 0xa4d   : > { %v2493_v17 = vpop.permute.xlu0 %2492 }
 0xa4e   : > { %2482 = vrot.lane.b32.xlu1 %v13143_v26, %s13142_s9  ;;  %v2500_v49 = vrot.slane %v2493_v17, %v8355_v62 }
 0xa4f   : > { %7837 = vset.pattern.permute.xlu1 %v12759_v57 }
 0xa51   : > { %v2521_v17 = vpop.permute.xlu0 %2520 }
 0xaae   : > { %v9274_v18 = vpop.permute.xlu1 %2316 }
 0xabf   : > { %v2350_v9 = vpop.permute.xlu1 %2349 }
 0xac0   : > { %v9283_v4 = vrot.slane %v2350_v9, %v8355_v62  ;;  %v2420_v9 = vsel %vm13147_vm10, %v12773_v31, %v9285_v47  ;;  %vm13153_vm10 = vcmask 261120  }
 0xac1   : > { %v2423_v11 = vmul.f32 %v2420_v9, %v9059_v5 }
 0xac2   : > { %v2359_v57 = vmul.f32 %v9283_v4, %v2345_v48 }
 0xac4   : > { %v2389_v52 = vpop.permute.xlu1 %2388  ;;  %2363 = vrot.lane.b32.xlu0 %v2359_v57, %s13146_s3 }
 0xac5   : > { %v9296_v21 = vrot.slane %v2389_v52, %v8355_v62 }
 0xac7   : > { %v2398_v14 = vmul.f32 %v9296_v21, %v2384_v0 }
 0xac9   : > { %v2428_v48 = vpop.permute.xlu1 %2427  ;;  %2402 = vrot.lane.b32.xlu0 %v2398_v14, %s13148_s10 }
 0xaca   : > { %v9308_v57 = vrot.slane %v2428_v48, %v8355_v62  ;;  %v12777_v48 = vmov 45  }
 0xacc   : > { %v2437_v52 = vmul.f32 %v9308_v57, %v2423_v11  ;;  %v2519_v11 = vld [vmem:[%s13026_s4] sm:$0xf] }
 0xacd   : > { %v2483_v45 = vpop.permute.xlu1 %2482 }
 0xace   : > { %v2484_v31 = vrot.slane %v2483_v45, 4  ;;  %2441 = vrot.lane.b32.xlu0 %v2437_v52, %s13149_s11  ;;  %v2522_v52 = vrot.slane %v2521_v17, 4 }
 0xad0   : > { %v2485_v0 = vsel %vm13150_vm8, %v2484_v31, %v2483_v45  ;;  %v2489_v60 = vmul.f32 %v2484_v31, %v2480_v24  ;;  %v2523_v31 = vsel %vm13153_vm10, %v2522_v52, %v2521_v17  ;;  %v2559_v17 = vpop.permute.xlu0 %2558  ;;  %vm12892_vm8 = vcmask 392192  }
 0xad1   : > { %v2488_v14 = vmul.f32 %v2485_v0, %v9047_v61  ;;  %v2526_v24 = vmul.f32 %v2523_v31, %v9047_v61  ;;  %vm12784_vm10 = vcmask 662528  }
 0xad2   : > { %v2503_v12 = vmul.f32 %v2500_v49, %v2489_v60  ;;  %v2527_v60 = vmul.f32 %v2522_v52, %v2518_v46  ;;  %v2560_v46 = vrot.slane %v2559_v17, 4  ;;  %v2556_v52 = vld [vmem:[#allocation2 + $0x10] sm:$0xf] }
 0xad3   : > { %v9315_v9 = vmul.f32 %v2500_v49, %v2488_v14 }
 0xad4   : > { %2508 = vrot.lane.b32.xlu1 %v2503_v12, %s13151_s22 }
 0xad8   : > { %2530 = vperm.xlu1 %7837, %v2519_v11   ;;  %v2557_v11 = vld [vmem:[%s13026_s4] sm:$0xf] }
 0xadc   : > { %7838 = vset.pattern.permute.xlu1 %v12777_v48  ;;  %v13155_v48 = vmov 4  }
 0xb46   : > { %v9322_v45 = vpop.permute.xlu1 %2508 }
 0xb47   : > { %13152 = vst [vmem:[#allocation10_spill] sm:$0xff] %v9322_v45  ;;  %v13279_v45 = vld [vmem:[#allocation13_spill] sm:$0xff] }
 0xb57   : > { %v2531_v49 = vpop.permute.xlu1 %2530 }
 0xb58   : > { %v2538_v12 = vrot.slane %v2531_v49, %v8355_v62  ;;  %v2561_v49 = vsel %vm12892_vm8, %v2560_v46, %v2559_v17  ;;  %v1536_v17 = vmul.f32 %v1531_v44, %v1527_v36 }
 0xb5a   : > { %v2540_v0 = vmul.f32 %v2538_v12, %v2526_v24  ;;  %v2541_v14 = vmul.f32 %v2538_v12, %v2527_v60  ;;  %v2565_v60 = vmul.f32 %v2560_v46, %v2556_v52  ;;  %v2564_v12 = vmul.f32 %v2561_v49, %v9047_v61  ;;  %v1566_v46 = vld [vmem:[#allocation2 + $0xc] sm:$0xf] }
 0xb5b   : > { %v1575_v52 = vmul.f32 %v1570_v59, %v1566_v46  ;;  %v1550_v49 = vmul.f32 %v9069_v23, %v1536_v17  ;;  %v1812_v59 = vld [vmem:[#allocation2 + $0xc] sm:$0xf]  ;;  %v13161_v23 = vrot.slane %v13113_v54, 4 }
 0xb5c   : > { %2546 = vrot.lane.b32.xlu1 %v2541_v14, %s13154_s12  ;;  %2544 = vrot.lane.b32.xlu0 %v2540_v0, %s13154_s12  ;;  %v2046_v54 = vld [vmem:[#allocation2 + $0xc] sm:$0xf]  ;;  %s13216_s12 = smov 114  }
 0xb5d   : > { %v1821_v36 = vmul.f32 %v13161_v23, %v1812_v59  ;;  %v13168_v59 = vrot.slane %v9269_v30, 4  ;;  %v2456_v30 = vmul.f32 %v13143_v26, %v9047_v61  ;;  %v2595_v26 = vld [vmem:[#allocation2 + $0xc] sm:$0xf] }
 0xb5f   : > { %v1835_v46 = vmul.f32 %v9138_v33, %v1821_v36  ;;  %v13165_v33 = vrot.slane %v9032_v63, 4  ;;  %v2327_v63 = vld [vmem:[#allocation2 + $0xc] sm:$0xf]  ;;  %v13169_v36 = vrot.slane %v9272_v38, 4 }
 0xb60   : > { %2568 = vperm.xlu1 %7838, %v2557_v11   ;;  %v2596_v11 = vld [vmem:[%s13026_s4] sm:$0xf]  ;;  %v2346_v23 = vmul.f32 %v13168_v59, %v2327_v63 }
 0xb64   : > { %7839 = vset.pattern.permute.xlu1 %v13155_v48  ;;  %v2645_v48 = vld [vmem:[#allocation2 + $0xc] sm:$0xf] }
 0xbce   : > { %v9333_v31 = vpop.permute.xlu1 %2546 }
 0xbcf   : > { %13156 = vst [vmem:[#allocation12_spill] sm:$0xff] %v9333_v31 }
 0xbdf   : > { %v2569_v24 = vpop.permute.xlu1 %2568 }
 0xbe0   : > { %v2576_v0 = vrot.slane %v2569_v24, %v8355_v62  ;;  %v13159_v24 = vrot.slane %v13100_v34, 4  ;;  %v1851_v34 = vld [vmem:[#allocation2 + $0xc] sm:$0xf] }
 0xbe2   : > { %v2578_v14 = vmul.f32 %v2576_v0, %v2564_v12  ;;  %v2579_v27 = vmul.f32 %v2576_v0, %v2565_v60  ;;  %v1605_v60 = vld [vmem:[#allocation2 + $0xc] sm:$0xf]  ;;  %v1589_v0 = vmul.f32 %v9080_v58, %v1575_v52  ;;  %v13162_v58 = vrot.slane %v13116_v7, 4 }
 0xbe3   : > { %v1614_v12 = vmul.f32 %v13159_v24, %v1605_v60  ;;  %v2095_v7 = vld [vmem:[#allocation2 + $0xc] sm:$0xf] }
 0xbe4   : > { %2584 = vrot.lane.b32.xlu1 %v2579_v27, %s13157_s16  ;;  %2582 = vrot.lane.b32.xlu0 %v2578_v14, %s13157_s16  ;;  %v13158_v27 = vmov 11   ;;  %v1763_v14 = vld [vmem:[#allocation2 + $0xc] sm:$0xf]  ;;  %v1860_v17 = vmul.f32 %v13162_v58, %v1851_v34  ;;  %v13170_v34 = vrot.slane %v9285_v47, 4  ;;  %v2608_v47 = vpop.permute.xlu0 %2607  ;;  %s13224_s16 = smov 18  }
 0xbe5   : > { %v1782_v44 = vmul.f32 %v13160_v19, %v1763_v14  ;;  %v1628_v1 = vmul.f32 %v9091_v50, %v1614_v12  ;;  %v13163_v50 = vrot.slane %v13118_v6, 4  ;;  %v2104_v12 = vmul.f32 %v13165_v33, %v2095_v7  ;;  %v2134_v6 = vld [vmem:[#allocation2 + $0xc] sm:$0xf]  ;;  %v13175_v7 = vld [vmem:[#allocation44_spill] sm:$0xff] }
 0xbe7   : > { %v1899_v52 = vmul.f32 %v13163_v50, %v1890_v43  ;;  %v2118_v19 = vmul.f32 %v9207_v28, %v2104_v12  ;;  %v2360_v28 = vmul.f32 %v9283_v4, %v2346_v23  ;;  %v13176_v12 = vmov 18  }
 0xbe8   : > { %2618 = vperm.xlu1 %7839, %v2596_v11   ;;  %v1796_v11 = vmul.f32 %v9126_v25, %v1782_v44  ;;  %v13164_v25 = vrot.slane %v9026_v22, 4  ;;  %v2173_v22 = vld [vmem:[#allocation2 + $0xc] sm:$0xf] }
 0xbe9   : > { %v1913_v24 = vmul.f32 %v9161_v40, %v1899_v52  ;;  %v13167_v40 = vrot.slane %v9040_v37, 4  ;;  %v2415_v37 = vld [vmem:[#allocation2 + $0xc] sm:$0xf] }
 0xbea   : > { %v2065_v60 = vmul.f32 %v13164_v25, %v2046_v54  ;;  %v2424_v58 = vmul.f32 %v13170_v34, %v2415_v37 }
 0xbeb   : > { %v2182_v44 = vmul.f32 %v13167_v40, %v2173_v22 }
 0xbec   : > { %1555 = vrot.lane.b32.xlu1 %v1550_v49, %s13082_s18  ;;  %v1874_v49 = vmul.f32 %v9150_v56, %v1860_v17  ;;  %v13166_v56 = vrot.slane %v9036_v35, 4  ;;  %v2376_v35 = vld [vmem:[#allocation2 + $0xc] sm:$0xf]  ;;  %v2438_v4 = vmul.f32 %v9308_v57, %v2424_v58  ;;  %s13255_s18 = smov 90  }
 0xbed   : > { %7840 = vset.pattern.permute.xlu1 %v13158_v27 }
 0xbee   : > { %v2143_v14 = vmul.f32 %v13166_v56, %v2134_v6 }
 0xbf0   : > { %1594 = vrot.lane.b32.xlu1 %v1589_v0, %s13081_s30  ;;  %v2079_v0 = vmul.f32 %v9195_v32, %v2065_v60  ;;  %v2196_v32 = vmul.f32 %v9230_v41, %v2182_v44  ;;  %v2467_v41 = vrot.slane %v9302_v16, %v8355_v62  ;;  %v2646_v60 = vld [vmem:[%s13026_s4] sm:$0xf] }
 0xbf2   : > { %v2469_v38 = vmul.f32 %v2467_v41, %v2456_v30 }
 0xbf4   : > { %1633 = vrot.lane.b32.xlu1 %v1628_v1, %s13080_s14  ;;  %v2157_v1 = vmul.f32 %v9219_v13, %v2143_v14  ;;  %s12990_s14 = smov 102  }
 0xbf8   : > { %1801 = vrot.lane.b32.xlu1 %v1796_v11, %s13075_s23  ;;  %v2385_v11 = vmul.f32 %v13169_v36, %v2376_v35  ;;  %s13174_s23 = smov 97  }
 0xbfa   : > { %v2399_v13 = vmul.f32 %v9296_v21, %v2385_v11  ;;  %v9407_v21 = vpop.permute.xlu0 %1553 }
 0xbfc   : > { %1840 = vrot.lane.b32.xlu1 %v1835_v46, %s13073_s13  ;;  %v2609_v46 = vrot.slane %v2608_v47, 4  ;;  %s12809_s13 = smov 28  }
 0xbfe   : > { %v9409_v17 = vpop.permute.xlu0 %1592  ;;  %v2611_v57 = vsel %vm12784_vm10, %v2609_v46, %v2608_v47  ;;  %v2615_v52 = vmul.f32 %v2609_v46, %v2595_v26  ;;  %vm13182_vm10 = vcmask 793600  }
 0xbff   : > { %v2614_v50 = vmul.f32 %v2611_v57, %v9059_v5 }
 0xc00   : > { %1879 = vrot.lane.b32.xlu1 %v1874_v49, %s13070_s17  ;;  %s13193_s17 = smov 76  }
 0xc02   : > { %v9411_v16 = vpop.permute.xlu0 %1631 }
 0xc04   : > { %1918 = vrot.lane.b32.xlu1 %v1913_v24, %s13069_s26  ;;  %s13173_s26 = smov 124  }
 0xc06   : > { %v9417_v49 = vpop.permute.xlu0 %1671 }
 0xc08   : > { %2084 = vrot.lane.b32.xlu1 %v2079_v0, %s13131_s20 }
 0xc0a   : > { %v9425_v24 = vpop.permute.xlu0 %1710 }
 0xc0c   : > { %2123 = vrot.lane.b32.xlu1 %v2118_v19, %s13133_s29  ;;  %s13189_s29 = smov 1  }
 0xc0e   : > { %v9429_v33 = vpop.permute.xlu0 %1750 }
 0xc10   : > { %2162 = vrot.lane.b32.xlu1 %v2157_v1, %s13135_s25 }
 0xc12   : > { %v9432_v0 = vpop.permute.xlu0 %1799 }
 0xc14   : > { %2201 = vrot.lane.b32.xlu1 %v2196_v32, %s13136_s19  ;;  %s13184_s19 = smov 113  }
 0xc16   : > { %v9434_v6 = vpop.permute.xlu0 %1838 }
 0xc18   : > { %2365 = vrot.lane.b32.xlu1 %v2360_v28, %s13146_s3 }
 0xc1a   : > { %v9436_v56 = vpop.permute.xlu0 %1877 }
 0xc1c   : > { %2404 = vrot.lane.b32.xlu1 %v2399_v13, %s13148_s10 }
 0xc1e   : > { %v9438_v14 = vpop.permute.xlu0 %1916 }
 0xc20   : > { %2443 = vrot.lane.b32.xlu1 %v2438_v4, %s13149_s11  ;;  %s13276_s11 = smov 28  }
 0xc22   : > { %v9442_v22 = vpop.permute.xlu0 %1955 }
 0xc24   : > { %2471 = vrot.lane.b32.xlu1 %v2469_v38, %s13171_s0  ;;  %s12833_s0 = smov 99  }
 0xc26   : > { %v9446_v44 = vpop.permute.xlu0 %1993 }
 0xc28   : > { %2506 = vrot.lane.b32.xlu1 %v9315_v9, %s13151_s22 }
 0xc2a   : > { %v9450_v63 = vpop.permute.xlu0 %2033 }
 0xc2e   : > { %v9454_v59 = vpop.permute.xlu0 %2082 }
 0xc32   : > { %v9458_v35 = vpop.permute.xlu0 %2121 }
 0xc36   : > { %v9462_v36 = vpop.permute.xlu0 %2160 }
 0xc3a   : > { %v9466_v37 = vpop.permute.xlu0 %2199 }
 0xc3e   : > { %v9470_v34 = vpop.permute.xlu0 %2238 }
 0xc42   : > { %v9474_v41 = vpop.permute.xlu0 %2276 }
 0xc46   : > { %v9478_v4 = vpop.permute.xlu0 %2314 }
 0xc4a   : > { %v9480_v38 = vpop.permute.xlu0 %2363 }
 0xc4e   : > { %v9484_v46 = vpop.permute.xlu0 %2402 }
 0xc52   : > { %v9488_v57 = vpop.permute.xlu0 %2441 }
 0xc56   : > { %v9413_v61 = vpop.permute.xlu1 %2584 }
 0xc57   : > { %13172 = vst [vmem:[#allocation16_spill] sm:$0xff] %v9413_v61  ;;  %v2685_v61 = vld [vmem:[%s13026_s4] sm:$0xf] }
 0xc67   : > { %v2619_v43 = vpop.permute.xlu1 %2618 }
 0xc68   : > { %v2626_v9 = vrot.slane %v2619_v43, %v8355_v62 }
 0xc6a   : > { %v2628_v54 = vmul.f32 %v2626_v9, %v2614_v50  ;;  %v2629_v25 = vmul.f32 %v2626_v9, %v2615_v52  ;;  %v9492_v50 = vpop.permute.xlu0 %2544 }
 0xc6b   : > { %v9440_v19 = vpop.permute.xlu1 %1555  ;;  %13177 = vst [vmem:[#allocation18_spill] sm:$0xff] %v9492_v50 }
 0xc6c   : > { %2634 = vrot.lane.b32.xlu1 %v2629_v25, %s13173_s26  ;;  %2632 = vrot.lane.b32.xlu0 %v2628_v54, %s13173_s26 }
 0xc6e   : > { %v9496_v9 = vpop.permute.xlu0 %2582 }
 0xc6f   : > { %v9444_v40 = vpop.permute.xlu1 %1594  ;;  %13178 = vst [vmem:[#allocation15_spill] sm:$0xff] %v9496_v9 }
 0xc70   : > { %2657 = vperm.xlu1 %7840, %v2646_v60   ;;  %2647 = vrot.lane.b32.xlu0 %v13175_v7, %s13174_s23  ;;  %s13194_s23 = smov 17  }
 0xc73   : > { %v9448_v1 = vpop.permute.xlu1 %1633 }
 0xc74   : > { %7841 = vset.pattern.permute.xlu1 %v13176_v12 }
 0xc77   : > { %v9452_v32 = vpop.permute.xlu1 %1801 }
 0xc7b   : > { %v9456_v23 = vpop.permute.xlu1 %1840 }
 0xc7f   : > { %v9460_v28 = vpop.permute.xlu1 %1879 }
 0xc83   : > { %v9464_v11 = vpop.permute.xlu1 %1918 }
 0xc87   : > { %v9468_v13 = vpop.permute.xlu1 %2084 }
 0xc8b   : > { %v9472_v58 = vpop.permute.xlu1 %2123 }
 0xc8f   : > { %v9476_v30 = vpop.permute.xlu1 %2162 }
 0xc93   : > { %v9482_v47 = vpop.permute.xlu1 %2201 }
 0xc97   : > { %v9486_v26 = vpop.permute.xlu1 %2365 }
 0xc9b   : > { %v9490_v43 = vpop.permute.xlu1 %2404 }
 0xc9f   : > { %v9494_v52 = vpop.permute.xlu1 %2443 }
 0xca3   : > { %v9500_v25 = vpop.permute.xlu1 %2471 }
 0xca4   : > { %13180 = vst [vmem:[#allocation17_spill] sm:$0xff] %v9500_v25  ;;  %v1520_v25 = vrot.slane %v13279_v45, %v8355_v62 }
 0xca7   : > { %v9502_v15 = vpop.permute.xlu1 %2506 }
 0xcde   : > { %v9498_v54 = vpop.permute.xlu0 %2632  ;;  %v9504_v12 = vpop.permute.xlu1 %2634 }
 0xcdf   : > { %13179 = vst [vmem:[#allocation20_spill] sm:$0xff] %v9498_v54  ;;  %13181 = vst [vmem:[#allocation19_spill] sm:$0xff] %v9504_v12 }
 0xce2   : > { %v2648_v60 = vpop.permute.xlu0 %2647 }
 0xce3   : > { %v2649_v3 = vrot.slane %v2648_v60, 4 }
 0xce5   : > { %v2650_v27 = vsel %vm13182_vm10, %v2649_v3, %v2648_v60  ;;  %v2654_v53 = vmul.f32 %v2649_v3, %v2645_v48  ;;  %v12788_v60 = vmov 25   ;;  %vm13187_vm10 = vcmask 924672  }
 0xce6   : > { %v2653_v10 = vmul.f32 %v2650_v27, %v9059_v5 }
 0xcef   : > { %v2658_v55 = vpop.permute.xlu1 %2657 }
 0xcf0   : > { %v2665_v8 = vrot.slane %v2658_v55, %v8355_v62 }
 0xcf2   : > { %v2667_v39 = vmul.f32 %v2665_v8, %v2653_v10  ;;  %v2668_v42 = vmul.f32 %v2665_v8, %v2654_v53 }
 0xcf4   : > { %2673 = vrot.lane.b32.xlu1 %v2668_v42, %s13183_s21  ;;  %2671 = vrot.lane.b32.xlu0 %v2667_v39, %s13183_s21  ;;  %v2684_v39 = vld [vmem:[#allocation2 + $0xc] sm:$0xf]  ;;  %s13188_s21 = smov 92  }
 0xcf8   : > { %2696 = vperm.xlu1 %7841, %v2685_v61   ;;  %2686 = vrot.lane.b32.xlu0 %v13175_v7, %s13184_s19  ;;  %s12805_s19 = smov 49  }
 0xcfc   : > { %7842 = vset.pattern.permute.xlu1 %v12788_v60  ;;  %v2724_v60 = vld [vmem:[%s13026_s4] sm:$0xf] }
 0xd66   : > { %v9517_v3 = vpop.permute.xlu0 %2671  ;;  %v9519_v8 = vpop.permute.xlu1 %2673 }
 0xd67   : > { %13185 = vst [vmem:[#allocation21_spill] sm:$0xff] %v9517_v3  ;;  %13186 = vst [vmem:[#allocation23_spill] sm:$0xff] %v9519_v8 }
 0xd6a   : > { %v2687_v55 = vpop.permute.xlu0 %2686 }
 0xd6b   : > { %v2688_v10 = vrot.slane %v2687_v55, 4 }
 0xd6d   : > { %v2689_v42 = vsel %vm13187_vm10, %v2688_v10, %v2687_v55  ;;  %v2693_v27 = vmul.f32 %v2688_v10, %v2684_v39  ;;  %v12793_v55 = vmov 32   ;;  %vm13192_vm10 = vcmask 7168  }
 0xd6e   : > { %v2692_v48 = vmul.f32 %v2689_v42, %v9059_v5 }
 0xd77   : > { %v2697_v53 = vpop.permute.xlu1 %2696 }
 0xd78   : > { %v2704_v61 = vrot.slane %v2697_v53, %v8355_v62 }
 0xd7a   : > { %v2706_v54 = vmul.f32 %v2704_v61, %v2692_v48  ;;  %v2707_v12 = vmul.f32 %v2704_v61, %v2693_v27  ;;  %v9537_v48 = vld [vmem:[#allocation2 + $0x8] sm:$0xff] }
 0xd7c   : > { %2712 = vrot.lane.b32.xlu1 %v2707_v12, %s13188_s21  ;;  %2710 = vrot.lane.b32.xlu0 %v2706_v54, %s13188_s21  ;;  %v2723_v12 = vld [vmem:[#allocation2 + $0x10] sm:$0xf] }
 0xd80   : > { %2735 = vperm.xlu1 %7842, %v2724_v60   ;;  %2725 = vrot.lane.b32.xlu0 %v13175_v7, %s13189_s29  ;;  %s13198_s29 = smov 60  }
 0xd84   : > { %7843 = vset.pattern.permute.xlu1 %v12793_v55  ;;  %v2762_v55 = vld [vmem:[%s13026_s4] sm:$0xf] }
 0xdee   : > { %v9532_v5 = vpop.permute.xlu0 %2710  ;;  %v9534_v39 = vpop.permute.xlu1 %2712 }
 0xdef   : > { %13190 = vst [vmem:[#allocation22_spill] sm:$0xff] %v9532_v5  ;;  %13191 = vst [vmem:[#allocation26_spill] sm:$0xff] %v9534_v39 }
 0xdf2   : > { %v2726_v10 = vpop.permute.xlu0 %2725 }
 0xdf3   : > { %v2727_v42 = vrot.slane %v2726_v10, 4 }
 0xdf5   : > { %v2728_v54 = vsel %vm13192_vm10, %v2727_v42, %v2726_v10  ;;  %v2732_v53 = vmul.f32 %v2727_v42, %v2723_v12  ;;  %v12797_v10 = vmov 39   ;;  %vm13197_vm10 = vcmask 138240  }
 0xdf6   : > { %v2731_v60 = vmul.f32 %v2728_v54, %v9537_v48 }
 0xdff   : > { %v2736_v27 = vpop.permute.xlu1 %2735 }
 0xe00   : > { %v2743_v61 = vrot.slane %v2736_v27, %v8355_v62 }
 0xe02   : > { %v2745_v3 = vmul.f32 %v2743_v61, %v2731_v60  ;;  %v2746_v8 = vmul.f32 %v2743_v61, %v2732_v53 }
 0xe04   : > { %2751 = vrot.lane.b32.xlu1 %v2746_v8, %s13193_s17  ;;  %2749 = vrot.lane.b32.xlu0 %v2745_v3, %s13193_s17  ;;  %v2761_v8 = vld [vmem:[#allocation2 + $0x10] sm:$0xf]  ;;  %s13220_s17 = smov 2  }
 0xe08   : > { %2773 = vperm.xlu1 %7843, %v2762_v55   ;;  %2763 = vrot.lane.b32.xlu0 %v13175_v7, %s13194_s23  ;;  %s13199_s23 = smov 33  }
 0xe0c   : > { %7844 = vset.pattern.permute.xlu1 %v12797_v10  ;;  %v2800_v10 = vld [vmem:[%s13026_s4] sm:$0xf] }
 0xe76   : > { %v9549_v42 = vpop.permute.xlu0 %2749  ;;  %v9551_v53 = vpop.permute.xlu1 %2751 }
 0xe77   : > { %13195 = vst [vmem:[#allocation29_spill] sm:$0xff] %v9549_v42  ;;  %13196 = vst [vmem:[#allocation25_spill] sm:$0xff] %v9551_v53 }
 0xe7a   : > { %v2764_v12 = vpop.permute.xlu0 %2763 }
 0xe7b   : > { %v2765_v54 = vrot.slane %v2764_v12, 4 }
 0xe7d   : > { %v2766_v3 = vsel %vm13197_vm10, %v2765_v54, %v2764_v12  ;;  %v2770_v27 = vmul.f32 %v2765_v54, %v2761_v8  ;;  %v12800_v12 = vmov 46   ;;  %vm13202_vm10 = vcmask 269312  }
 0xe7e   : > { %v2769_v61 = vmul.f32 %v2766_v3, %v9537_v48 }
 0xe87   : > { %v2774_v60 = vpop.permute.xlu1 %2773 }
 0xe88   : > { %v2781_v55 = vrot.slane %v2774_v60, %v8355_v62 }
 0xe8a   : > { %v2783_v5 = vmul.f32 %v2781_v55, %v2769_v61  ;;  %v2784_v39 = vmul.f32 %v2781_v55, %v2770_v27 }
 0xe8c   : > { %2789 = vrot.lane.b32.xlu1 %v2784_v39, %s13198_s29  ;;  %2787 = vrot.lane.b32.xlu0 %v2783_v5, %s13198_s29  ;;  %v2799_v39 = vld [vmem:[#allocation2 + $0x10] sm:$0xf] }
 0xe90   : > { %2811 = vperm.xlu1 %7844, %v2800_v10   ;;  %2801 = vrot.lane.b32.xlu0 %v13175_v7, %s13199_s23  ;;  %s8070_s23 = smov 44  }
 0xe94   : > { %7845 = vset.pattern.permute.xlu1 %v12800_v12  ;;  %v2839_v12 = vld [vmem:[%s13026_s4] sm:$0xf] }
 0xefe   : > { %v9564_v54 = vpop.permute.xlu0 %2787  ;;  %v9566_v27 = vpop.permute.xlu1 %2789 }
 0xeff   : > { %13200 = vst [vmem:[#allocation31_spill] sm:$0xff] %v9564_v54  ;;  %13201 = vst [vmem:[#allocation28_spill] sm:$0xff] %v9566_v27 }
 0xf02   : > { %v2802_v8 = vpop.permute.xlu0 %2801 }
 0xf03   : > { %v2803_v3 = vrot.slane %v2802_v8, 4 }
 0xf05   : > { %v2804_v5 = vsel %vm13202_vm10, %v2803_v3, %v2802_v8  ;;  %v2808_v60 = vmul.f32 %v2803_v3, %v2799_v39  ;;  %v13203_v8 = vmov 5   ;;  %vm12807_vm10 = vcmask 400384  }
 0xf06   : > { %v2807_v55 = vmul.f32 %v2804_v5, %v9537_v48 }
 0xf0f   : > { %v2812_v61 = vpop.permute.xlu1 %2811 }
 0xf10   : > { %v2819_v10 = vrot.slane %v2812_v61, %v8355_v62 }
 0xf12   : > { %v2821_v53 = vmul.f32 %v2819_v10, %v2807_v55  ;;  %v2822_v42 = vmul.f32 %v2819_v10, %v2808_v60 }
 0xf14   : > { %2827 = vrot.lane.b32.xlu1 %v2822_v42, %s8070_s23  ;;  %2825 = vrot.lane.b32.xlu0 %v2821_v53, %s8070_s23  ;;  %v2838_v42 = vld [vmem:[#allocation2 + $0x10] sm:$0xf]  ;;  %s8083_s23 = smov 43  }
 0xf18   : > { %2851 = vperm.xlu1 %7845, %v2839_v12   ;;  %2840 = vrot.lane.b32.xlu0 %v13175_v7, %s12805_s19  ;;  %v7597_v12 = vld [vmem:[%s12518_s1 + $0x10] ss:$8 sm:$0x3]  ;;  %s8073_s19 = smov 82  }
 0xf1c   : > { %7846 = vset.pattern.permute.xlu1 %v13203_v8  ;;  %v13206_v8 = vld [vmem:[#allocation5_spill] sm:$0xff] }
 0xf1d   : > { %v2885_v27 = vrot.slane %v7597_v12, %v13206_v8 }
 0xf86   : > { %v9577_v3 = vpop.permute.xlu0 %2825  ;;  %v9579_v60 = vpop.permute.xlu1 %2827 }
 0xf87   : > { %13204 = vst [vmem:[#allocation32_spill] sm:$0xff] %v9577_v3  ;;  %13205 = vst [vmem:[#allocation33_spill] sm:$0xff] %v9579_v60  ;;  %v13207_v3 = vld [vmem:[#allocation6_spill] sm:$0xff] }
 0xf88   : > { %v2889_v54 = vrot.slane %v7597_v12, %v13207_v3 }
 0xf8a   : > { %v2841_v39 = vpop.permute.xlu0 %2840 }
 0xf8b   : > { %v2842_v5 = vrot.slane %v2841_v39, 4 }
 0xf8d   : > { %v2844_v53 = vsel %vm12807_vm10, %v2842_v5, %v2841_v39  ;;  %v2848_v61 = vmul.f32 %v2842_v5, %v2838_v42  ;;  %v9591_v39 = vcombine.low %v2885_v27, %v2889_v54  ;;  %v2880_v5 = vld [vmem:[%s13026_s4] sm:$0xf]  ;;  %v13208_v42 = vmov 12   ;;  %v9602_v54 = vld [vmem:[#allocation2 + $0x4] sm:$0xff]  ;;  %v2879_v27 = vld [vmem:[#allocation2 + $0xc] sm:$0xf] }
 0xf8e   : > { %v2847_v7 = vmul.f32 %v2844_v53, %v9537_v48  ;;  %vm2894_vm10 = vcmask 670720  }
 0xf97   : > { %v2852_v55 = vpop.permute.xlu1 %2851 }
 0xf98   : > { %v2859_v10 = vrot.slane %v2852_v55, %v8355_v62 }
 0xf9a   : > { %v2861_v9 = vmul.f32 %v2859_v10, %v2847_v7  ;;  %v2862_v31 = vmul.f32 %v2859_v10, %v2848_v61 }
 0xf9c   : > { %2867 = vrot.lane.b32.xlu1 %v2862_v31, %s12809_s13  ;;  %2865 = vrot.lane.b32.xlu0 %v2861_v9, %s12809_s13  ;;  %s13211_s13 = smov 98  }
 0xfa0   : > { %2902 = vperm.xlu1 %7846, %v2880_v5   ;;  %2891 = vrot.lane.b32.xlu0 %v9591_v39, %s8073_s19  ;;  %s8074_s19 = smov 123  }
 0xfa4   : > { %7847 = vset.pattern.permute.xlu1 %v13208_v42  ;;  %v2931_v42 = vld [vmem:[%s13026_s4] sm:$0xf] }
0x100e   : > { %v9598_v53 = vpop.permute.xlu0 %2865  ;;  %v9600_v31 = vpop.permute.xlu1 %2867 }
0x100f   : > { %13209 = vst [vmem:[#allocation34_spill] sm:$0xff] %v9598_v53  ;;  %13210 = vst [vmem:[#allocation35_spill] sm:$0xff] %v9600_v31 }
0x1012   : > { %v2892_v12 = vpop.permute.xlu0 %2891 }
0x1013   : > { %v2893_v61 = vrot.slane %v2892_v12, 4 }
0x1015   : > { %v2895_v9 = vsel %vm2894_vm10, %v2893_v61, %v2892_v12  ;;  %v2899_v10 = vmul.f32 %v2893_v61, %v2879_v27  ;;  %v13212_v12 = vmov 19   ;;  %vm13215_vm10 = vcmask 801792  }
0x1016   : > { %v2898_v7 = vmul.f32 %v2895_v9, %v9602_v54 }
0x101f   : > { %v2903_v55 = vpop.permute.xlu1 %2902 }
0x1020   : > { %v2910_v5 = vrot.slane %v2903_v55, %v8355_v62 }
0x1022   : > { %v2912_v60 = vmul.f32 %v2910_v5, %v2898_v7  ;;  %v2913_v50 = vmul.f32 %v2910_v5, %v2899_v10 }
0x1024   : > { %2918 = vrot.lane.b32.xlu1 %v2913_v50, %s8074_s19  ;;  %2916 = vrot.lane.b32.xlu0 %v2912_v60, %s8074_s19  ;;  %v2930_v50 = vld [vmem:[#allocation2 + $0xc] sm:$0xf]  ;;  %s8075_s19 = smov 107  }
0x1028   : > { %2942 = vperm.xlu1 %7847, %v2931_v42   ;;  %2932 = vrot.lane.b32.xlu0 %v9591_v39, %s13211_s13 }
0x102c   : > { %7848 = vset.pattern.permute.xlu1 %v13212_v12  ;;  %v2971_v12 = vld [vmem:[%s13026_s4] sm:$0xf] }
0x1096   : > { %v9612_v31 = vpop.permute.xlu0 %2916  ;;  %v9614_v27 = vpop.permute.xlu1 %2918 }
0x1097   : > { %13213 = vst [vmem:[#allocation36_spill] sm:$0xff] %v9612_v31  ;;  %13214 = vst [vmem:[#allocation38_spill] sm:$0xff] %v9614_v27 }
0x109a   : > { %v2933_v61 = vpop.permute.xlu0 %2932 }
0x109b   : > { %v2934_v9 = vrot.slane %v2933_v61, 4 }
0x109d   : > { %v2935_v55 = vsel %vm13215_vm10, %v2934_v9, %v2933_v61  ;;  %v2939_v10 = vmul.f32 %v2934_v9, %v2930_v50  ;;  %v12815_v61 = vmov 26   ;;  %vm13219_vm10 = vcmask 932864  }
0x109e   : > { %v2938_v7 = vmul.f32 %v2935_v55, %v9602_v54 }
0x10a7   : > { %v2943_v60 = vpop.permute.xlu1 %2942 }
0x10a8   : > { %v2950_v42 = vrot.slane %v2943_v60, %v8355_v62 }
0x10aa   : > { %v2952_v5 = vmul.f32 %v2950_v42, %v2938_v7  ;;  %v2953_v53 = vmul.f32 %v2950_v42, %v2939_v10  ;;  %v2970_v7 = vld [vmem:[#allocation2 + $0xc] sm:$0xf] }
0x10ac   : > { %2958 = vrot.lane.b32.xlu1 %v2953_v53, %s8075_s19  ;;  %2956 = vrot.lane.b32.xlu0 %v2952_v5, %s8075_s19  ;;  %s8084_s19 = smov 50  }
0x10b0   : > { %2982 = vperm.xlu1 %7848, %v2971_v12   ;;  %2972 = vrot.lane.b32.xlu0 %v9591_v39, %s13216_s12  ;;  %s8077_s12 = smov 91  }
0x10b4   : > { %7849 = vset.pattern.permute.xlu1 %v12815_v61  ;;  %v3011_v61 = vld [vmem:[%s13026_s4] sm:$0xf] }
0x111e   : > { %v9625_v55 = vpop.permute.xlu0 %2956  ;;  %v9627_v60 = vpop.permute.xlu1 %2958 }
0x111f   : > { %13217 = vst [vmem:[#allocation37_spill] sm:$0xff] %v9625_v55  ;;  %13218 = vst [vmem:[#allocation40_spill] sm:$0xff] %v9627_v60 }
0x1122   : > { %v2973_v9 = vpop.permute.xlu0 %2972 }
0x1123   : > { %v2974_v50 = vrot.slane %v2973_v9, 4 }
0x1125   : > { %v2975_v53 = vsel %vm13219_vm10, %v2974_v50, %v2973_v9  ;;  %v2979_v5 = vmul.f32 %v2974_v50, %v2970_v7  ;;  %v12819_v9 = vmov 33   ;;  %vm13223_vm10 = vcmask 15360  }
0x1126   : > { %v2978_v42 = vmul.f32 %v2975_v53, %v9602_v54 }
0x112f   : > { %v2983_v10 = vpop.permute.xlu1 %2982 }
0x1130   : > { %v2990_v12 = vrot.slane %v2983_v10, %v8355_v62 }
0x1132   : > { %v2992_v31 = vmul.f32 %v2990_v12, %v2978_v42  ;;  %v2993_v27 = vmul.f32 %v2990_v12, %v2979_v5  ;;  %v3010_v42 = vld [vmem:[#allocation2 + $0x10] sm:$0xf] }
0x1134   : > { %2998 = vrot.lane.b32.xlu1 %v2993_v27, %s8077_s12  ;;  %2996 = vrot.lane.b32.xlu0 %v2992_v31, %s8077_s12  ;;  %s8079_s12 = smov 75  }
0x1138   : > { %3022 = vperm.xlu1 %7849, %v3011_v61   ;;  %3012 = vrot.lane.b32.xlu0 %v9591_v39, %s13220_s17 }
0x113c   : > { %7850 = vset.pattern.permute.xlu1 %v12819_v9  ;;  %v3050_v9 = vld [vmem:[%s13026_s4] sm:$0xf] }
0x11a6   : > { %v9638_v53 = vpop.permute.xlu0 %2996  ;;  %v9640_v10 = vpop.permute.xlu1 %2998 }
0x11a7   : > { %13221 = vst [vmem:[#allocation39_spill] sm:$0xff] %v9638_v53  ;;  %13222 = vst [vmem:[#allocation42_spill] sm:$0xff] %v9640_v10 }
0x11aa   : > { %v3013_v50 = vpop.permute.xlu0 %3012 }
0x11ab   : > { %v3014_v7 = vrot.slane %v3013_v50, 4 }
0x11ad   : > { %v3015_v31 = vsel %vm13223_vm10, %v3014_v7, %v3013_v50  ;;  %v3019_v27 = vmul.f32 %v3014_v7, %v3010_v42  ;;  %v12824_v50 = vmov 40   ;;  %vm13227_vm10 = vcmask 146432  }
0x11ae   : > { %v3018_v12 = vmul.f32 %v3015_v31, %v9537_v48 }
0x11b7   : > { %v3023_v5 = vpop.permute.xlu1 %3022 }
0x11b8   : > { %v3030_v61 = vrot.slane %v3023_v5, %v8355_v62 }
0x11ba   : > { %v3032_v55 = vmul.f32 %v3030_v61, %v3018_v12  ;;  %v3033_v60 = vmul.f32 %v3030_v61, %v3019_v27  ;;  %v3049_v27 = vld [vmem:[#allocation2 + $0x10] sm:$0xf] }
0x11bc   : > { %3038 = vrot.lane.b32.xlu1 %v3033_v60, %s8079_s12  ;;  %3036 = vrot.lane.b32.xlu0 %v3032_v55, %s8079_s12  ;;  %s13370_s12 = smov 51  }
0x11c0   : > { %3061 = vperm.xlu1 %7850, %v3050_v9   ;;  %3051 = vrot.lane.b32.xlu0 %v9591_v39, %s13224_s16  ;;  %s8081_s16 = smov 59  }
0x11c4   : > { %7851 = vset.pattern.permute.xlu1 %v12824_v50  ;;  %v3089_v50 = vld [vmem:[%s13026_s4] sm:$0xf] }
0x122e   : > { %v9651_v7 = vpop.permute.xlu0 %3036  ;;  %v9653_v5 = vpop.permute.xlu1 %3038 }
0x122f   : > { %13225 = vst [vmem:[#allocation43_spill] sm:$0xff] %v9651_v7  ;;  %13226 = vst [vmem:[#allocation44_spill] sm:$0xff] %v9653_v5 }
0x1232   : > { %v3052_v42 = vpop.permute.xlu0 %3051 }
0x1233   : > { %v3053_v31 = vrot.slane %v3052_v42, 4 }
0x1235   : > { %v3054_v55 = vsel %vm13227_vm10, %v3053_v31, %v3052_v42  ;;  %v3058_v60 = vmul.f32 %v3053_v31, %v3049_v27  ;;  %v12827_v42 = vmov 47   ;;  %vm3132_vm10 = vcmask 408576  }
0x1236   : > { %v3057_v61 = vmul.f32 %v3054_v55, %v9537_v48 }
0x123f   : > { %v3062_v12 = vpop.permute.xlu1 %3061 }
0x1240   : > { %v3069_v9 = vrot.slane %v3062_v12, %v8355_v62 }
0x1242   : > { %v3071_v53 = vmul.f32 %v3069_v9, %v3057_v61  ;;  %v3072_v10 = vmul.f32 %v3069_v9, %v3058_v60  ;;  %v3088_v60 = vld [vmem:[#allocation2 + $0x10] sm:$0xf] }
0x1244   : > { %3077 = vrot.lane.b32.xlu1 %v3072_v10, %s8081_s16  ;;  %3075 = vrot.lane.b32.xlu0 %v3071_v53, %s8081_s16  ;;  %s8085_s16 = smov 27  }
0x1248   : > { %3100 = vperm.xlu1 %7851, %v3089_v50   ;;  %3090 = vrot.lane.b32.xlu0 %v9591_v39, %s13094_s2 }
0x124c   : > { %7852 = vset.pattern.permute.xlu1 %v12827_v42  ;;  %v3128_v42 = vld [vmem:[%s13026_s4] sm:$0xf] }
0x12b6   : > { %v9664_v31 = vpop.permute.xlu0 %3075  ;;  %v9666_v12 = vpop.permute.xlu1 %3077 }
0x12b7   : > { %13228 = vst [vmem:[#allocation45_spill] sm:$0xff] %v9664_v31  ;;  %13229 = vst [vmem:[#allocation46_spill] sm:$0xff] %v9666_v12 }
0x12ba   : > { %v3091_v27 = vpop.permute.xlu0 %3090 }
0x12bb   : > { %v3092_v55 = vrot.slane %v3091_v27, 4 }
0x12bd   : > { %v3093_v53 = vsel %vm12883_vm2, %v3092_v55, %v3091_v27  ;;  %v3097_v10 = vmul.f32 %v3092_v55, %v3088_v60  ;;  %v13230_v27 = vmov 6   ;;  %vm13278_vm2 = vcmask 629760  }
0x12be   : > { %v3096_v9 = vmul.f32 %v3093_v53, %v9537_v48 }
0x12c7   : > { %v3101_v61 = vpop.permute.xlu1 %3100 }
0x12c8   : > { %v3108_v50 = vrot.slane %v3101_v61, %v8355_v62 }
0x12ca   : > { %v3110_v5 = vmul.f32 %v3108_v50, %v3096_v9  ;;  %v3111_v7 = vmul.f32 %v3108_v50, %v3097_v10  ;;  %v3127_v10 = vld [vmem:[#allocation2 + $0x10] sm:$0xf] }
0x12cc   : > { %3116 = vrot.lane.b32.xlu1 %v3111_v7, %s8083_s23  ;;  %3114 = vrot.lane.b32.xlu0 %v3110_v5, %s8083_s23  ;;  %v7598_v5 = vld [vmem:[%s12518_s1 + $0x11] ss:$8 sm:$0x3]  ;;  %s12848_s23 = smov 122  }
0x12cd   : > { %v3179_v12 = vrot.slane %v7598_v5, %v13207_v3 }
0x12d0   : > { %3140 = vperm.xlu1 %7852, %v3128_v42   ;;  %3129 = vrot.lane.b32.xlu0 %v9591_v39, %s8084_s19  ;;  %s12834_s19 = smov 83  }
0x12d4   : > { %7853 = vset.pattern.permute.xlu1 %v13230_v27  ;;  %v3175_v27 = vrot.slane %v7598_v5, %v13206_v8 }
0x133e   : > { %v9676_v55 = vpop.permute.xlu0 %3114  ;;  %v9678_v61 = vpop.permute.xlu1 %3116 }
0x133f   : > { %13231 = vst [vmem:[#allocation47_spill] sm:$0xff] %v9676_v55  ;;  %13232 = vst [vmem:[#allocation48_spill] sm:$0xff] %v9678_v61 }
0x1342   : > { %v3130_v60 = vpop.permute.xlu0 %3129 }
0x1343   : > { %v3131_v53 = vrot.slane %v3130_v60, 4 }
0x1345   : > { %v3133_v7 = vsel %vm3132_vm10, %v3131_v53, %v3130_v60  ;;  %v3137_v9 = vmul.f32 %v3131_v53, %v3127_v10  ;;  %v9687_v60 = vcombine.low %v3175_v27, %v3179_v12  ;;  %v3170_v53 = vld [vmem:[%s13026_s4] sm:$0xf]  ;;  %v13233_v10 = vmov 13   ;;  %v3169_v27 = vld [vmem:[#allocation2 + $0xc] sm:$0xf] }
0x1346   : > { %v3136_v50 = vmul.f32 %v3133_v7, %v9537_v48  ;;  %vm12831_vm10 = vcmask 678912  }
0x134f   : > { %v3141_v42 = vpop.permute.xlu1 %3140 }
0x1350   : > { %v3148_v39 = vrot.slane %v3141_v42, %v8355_v62 }
0x1352   : > { %v3150_v55 = vmul.f32 %v3148_v39, %v3136_v50  ;;  %v3151_v31 = vmul.f32 %v3148_v39, %v3137_v9 }
0x1354   : > { %3156 = vrot.lane.b32.xlu1 %v3151_v31, %s8085_s16  ;;  %3154 = vrot.lane.b32.xlu0 %v3150_v55, %s8085_s16  ;;  %s12841_s16 = smov 106  }
0x1358   : > { %3192 = vperm.xlu1 %7853, %v3170_v53   ;;  %3181 = vrot.lane.b32.xlu0 %v9687_v60, %s12834_s19  ;;  %s12838_s19 = smov 115  }
0x135c   : > { %7854 = vset.pattern.permute.xlu1 %v13233_v10  ;;  %v3221_v10 = vld [vmem:[%s13026_s4] sm:$0xf] }
0x13c6   : > { %v9695_v7 = vpop.permute.xlu0 %3154  ;;  %v9697_v31 = vpop.permute.xlu1 %3156 }
0x13c7   : > { %13234 = vst [vmem:[#allocation49_spill] sm:$0xff] %v9695_v7  ;;  %13235 = vst [vmem:[#allocation50_spill] sm:$0xff] %v9697_v31 }
0x13ca   : > { %v3182_v5 = vpop.permute.xlu0 %3181 }
0x13cb   : > { %v3183_v9 = vrot.slane %v3182_v5, 4 }
0x13cd   : > { %v3185_v12 = vsel %vm12831_vm10, %v3183_v9, %v3182_v5  ;;  %v3189_v50 = vmul.f32 %v3183_v9, %v3169_v27  ;;  %v13236_v5 = vmov 20   ;;  %vm12835_vm10 = vcmask 809984  }
0x13ce   : > { %v3188_v42 = vmul.f32 %v3185_v12, %v9602_v54 }
0x13d7   : > { %v3193_v55 = vpop.permute.xlu1 %3192 }
0x13d8   : > { %v3200_v39 = vrot.slane %v3193_v55, %v8355_v62 }
0x13da   : > { %v3202_v53 = vmul.f32 %v3200_v39, %v3188_v42  ;;  %v3203_v61 = vmul.f32 %v3200_v39, %v3189_v50  ;;  %v3220_v42 = vld [vmem:[#allocation2 + $0xc] sm:$0xf] }
0x13dc   : > { %3208 = vrot.lane.b32.xlu1 %v3203_v61, %s12848_s23  ;;  %3206 = vrot.lane.b32.xlu0 %v3202_v53, %s12848_s23  ;;  %s12853_s23 = smov 19  }
0x13e0   : > { %3233 = vperm.xlu1 %7854, %v3221_v10   ;;  %3222 = vrot.lane.b32.xlu0 %v9687_v60, %s12833_s0  ;;  %s12863_s0 = smov 90  }
0x13e4   : > { %7855 = vset.pattern.permute.xlu1 %v13236_v5  ;;  %v3262_v5 = vld [vmem:[%s13026_s4] sm:$0xf] }
0x144e   : > { %v9710_v9 = vpop.permute.xlu0 %3206  ;;  %v9712_v55 = vpop.permute.xlu1 %3208 }
0x144f   : > { %13237 = vst [vmem:[#allocation51_spill] sm:$0xff] %v9710_v9  ;;  %13238 = vst [vmem:[#allocation52_spill] sm:$0xff] %v9712_v55 }
0x1452   : > { %v3223_v12 = vpop.permute.xlu0 %3222 }
0x1453   : > { %v3224_v27 = vrot.slane %v3223_v12, 4 }
0x1455   : > { %v3226_v61 = vsel %vm12835_vm10, %v3224_v27, %v3223_v12  ;;  %v3230_v10 = vmul.f32 %v3224_v27, %v3220_v42  ;;  %v12839_v12 = vmov 27   ;;  %vm12843_vm10 = vcmask 941056  }
0x1456   : > { %v3229_v39 = vmul.f32 %v3226_v61, %v9602_v54 }
0x145f   : > { %v3234_v50 = vpop.permute.xlu1 %3233 }
0x1460   : > { %v3241_v53 = vrot.slane %v3234_v50, %v8355_v62  ;;  %v3261_v50 = vld [vmem:[#allocation2 + $0xc] sm:$0xf] }
0x1462   : > { %v3243_v31 = vmul.f32 %v3241_v53, %v3229_v39  ;;  %v3244_v7 = vmul.f32 %v3241_v53, %v3230_v10 }
0x1464   : > { %3249 = vrot.lane.b32.xlu1 %v3244_v7, %s12841_s16  ;;  %3247 = vrot.lane.b32.xlu0 %v3243_v31, %s12841_s16  ;;  %s12845_s16 = smov 3  }
0x1468   : > { %3274 = vperm.xlu1 %7855, %v3262_v5   ;;  %3263 = vrot.lane.b32.xlu0 %v9687_v60, %s12838_s19  ;;  %s12856_s19 = smov 74  }
0x146c   : > { %7856 = vset.pattern.permute.xlu1 %v12839_v12  ;;  %v3303_v12 = vld [vmem:[%s13026_s4] sm:$0xf] }
0x14d6   : > { %v9725_v27 = vpop.permute.xlu0 %3247  ;;  %v9727_v7 = vpop.permute.xlu1 %3249 }
0x14d7   : > { %13239 = vst [vmem:[#allocation53_spill] sm:$0xff] %v9725_v27  ;;  %13240 = vst [vmem:[#allocation54_spill] sm:$0xff] %v9727_v7  ;;  %v3784_v7 = vld [vmem:[%s12523_s6] sm:$0xf] }
0x14da   : > { %v3264_v61 = vpop.permute.xlu0 %3263 }
0x14db   : > { %v3265_v42 = vrot.slane %v3264_v61, 4 }
0x14dd   : > { %v3267_v31 = vsel %vm12843_vm10, %v3265_v42, %v3264_v61  ;;  %v3271_v10 = vmul.f32 %v3265_v42, %v3261_v50  ;;  %vm12850_vm10 = vcmask 23552  }
0x14de   : > { %v3270_v5 = vmul.f32 %v3267_v31, %v9602_v54  ;;  %v12846_v54 = vmov 34  }
0x14e7   : > { %v3275_v39 = vpop.permute.xlu1 %3274 }
0x14e8   : > { %v3282_v53 = vrot.slane %v3275_v39, %v8355_v62 }
0x14ea   : > { %v3284_v9 = vmul.f32 %v3282_v53, %v3270_v5  ;;  %v3285_v55 = vmul.f32 %v3282_v53, %v3271_v10 }
0x14ec   : > { %3290 = vrot.lane.b32.xlu1 %v3285_v55, %s12863_s0  ;;  %3288 = vrot.lane.b32.xlu0 %v3284_v9, %s12863_s0  ;;  %v3302_v9 = vld [vmem:[#allocation2 + $0x10] sm:$0xf]  ;;  %s12867_s0 = smov 51  }
0x14f0   : > { %3315 = vperm.xlu1 %7856, %v3303_v12   ;;  %3304 = vrot.lane.b32.xlu0 %v9687_v60, %s12845_s16  ;;  %s12869_s16 = smov 58  }
0x14f4   : > { %7857 = vset.pattern.permute.xlu1 %v12846_v54  ;;  %v3343_v54 = vld [vmem:[%s13026_s4] sm:$0xf] }
0x155e   : > { %v9740_v61 = vpop.permute.xlu0 %3288  ;;  %v9742_v55 = vpop.permute.xlu1 %3290 }
0x155f   : > { %13241 = vst [vmem:[#allocation55_spill] sm:$0xff] %v9740_v61  ;;  %13242 = vst [vmem:[#allocation56_spill] sm:$0xff] %v9742_v55 }
0x1562   : > { %v3305_v42 = vpop.permute.xlu0 %3304 }
0x1563   : > { %v3306_v31 = vrot.slane %v3305_v42, 4 }
0x1565   : > { %v3308_v50 = vsel %vm12850_vm10, %v3306_v31, %v3305_v42  ;;  %v3312_v39 = vmul.f32 %v3306_v31, %v3302_v9  ;;  %v12854_v42 = vmov 41   ;;  %vm12858_vm10 = vcmask 154624  }
0x1566   : > { %v3311_v12 = vmul.f32 %v3308_v50, %v9537_v48 }
0x156f   : > { %v3316_v5 = vpop.permute.xlu1 %3315 }
0x1570   : > { %v3323_v10 = vrot.slane %v3316_v5, %v8355_v62 }
0x1572   : > { %v3325_v53 = vmul.f32 %v3323_v10, %v3311_v12  ;;  %v3326_v27 = vmul.f32 %v3323_v10, %v3312_v39  ;;  %v3342_v39 = vld [vmem:[#allocation2 + $0x10] sm:$0xf] }
0x1574   : > { %3331 = vrot.lane.b32.xlu1 %v3326_v27, %s12856_s19  ;;  %3329 = vrot.lane.b32.xlu0 %v3325_v53, %s12856_s19  ;;  %s12860_s19 = smov 35  }
0x1578   : > { %3355 = vperm.xlu1 %7857, %v3343_v54   ;;  %3344 = vrot.lane.b32.xlu0 %v9687_v60, %s12853_s23  ;;  %s12866_s23 = smov 42  }
0x157c   : > { %7858 = vset.pattern.permute.xlu1 %v12854_v42  ;;  %v3383_v42 = vld [vmem:[%s13026_s4] sm:$0xf] }
0x15e6   : > { %v9755_v31 = vpop.permute.xlu0 %3329  ;;  %v9757_v27 = vpop.permute.xlu1 %3331 }
0x15e7   : > { %13243 = vst [vmem:[#allocation57_spill] sm:$0xff] %v9755_v31  ;;  %13244 = vst [vmem:[#allocation58_spill] sm:$0xff] %v9757_v27 }
0x15ea   : > { %v3345_v9 = vpop.permute.xlu0 %3344 }
0x15eb   : > { %v3346_v50 = vrot.slane %v3345_v9, 4 }
0x15ed   : > { %v3348_v5 = vsel %vm12858_vm10, %v3346_v50, %v3345_v9  ;;  %v3352_v12 = vmul.f32 %v3346_v50, %v3342_v39  ;;  %v12861_v9 = vmov 48   ;;  %vm12865_vm10 = vcmask 285696  }
0x15ee   : > { %v3351_v54 = vmul.f32 %v3348_v5, %v9537_v48 }
0x15f7   : > { %v3356_v10 = vpop.permute.xlu1 %3355 }
0x15f8   : > { %v3363_v53 = vrot.slane %v3356_v10, %v8355_v62 }
0x15fa   : > { %v3365_v61 = vmul.f32 %v3363_v53, %v3351_v54  ;;  %v3366_v55 = vmul.f32 %v3363_v53, %v3352_v12 }
0x15fc   : > { %3371 = vrot.lane.b32.xlu1 %v3366_v55, %s12869_s16  ;;  %3369 = vrot.lane.b32.xlu0 %v3365_v61, %s12869_s16  ;;  %v3382_v61 = vld [vmem:[#allocation2 + $0x10] sm:$0xf]  ;;  %s12933_s16 = smov 100  }
0x1600   : > { %3395 = vperm.xlu1 %7858, %v3383_v42   ;;  %3384 = vrot.lane.b32.xlu0 %v9687_v60, %s12860_s19  ;;  %s8105_s19 = smov 66  }
0x1604   : > { %7859 = vset.pattern.permute.xlu1 %v12861_v9  ;;  %v3423_v9 = vld [vmem:[%s13026_s4] sm:$0xf]  ;;  %s13253_s4 = smov 58  }
0x166e   : > { %v9770_v50 = vpop.permute.xlu0 %3369  ;;  %v9772_v55 = vpop.permute.xlu1 %3371 }
0x166f   : > { %13245 = vst [vmem:[#allocation59_spill] sm:$0xff] %v9770_v50  ;;  %13246 = vst [vmem:[#allocation60_spill] sm:$0xff] %v9772_v55  ;;  %v1636_v50 = vrot.slane %v9448_v1, 4 }
0x1672   : > { %v3385_v39 = vpop.permute.xlu0 %3384 }
0x1673   : > { %v3386_v5 = vrot.slane %v3385_v39, 4 }
0x1675   : > { %v3388_v12 = vsel %vm12865_vm10, %v3386_v5, %v3385_v39  ;;  %v3392_v10 = vmul.f32 %v3386_v5, %v3382_v61  ;;  %v13247_v39 = vmov 0   ;;  %vm12891_vm10 = vcmask 416768  }
0x1676   : > { %v3391_v42 = vmul.f32 %v3388_v12, %v9537_v48 }
0x167f   : > { %v3396_v54 = vpop.permute.xlu1 %3395 }
0x1680   : > { %v3403_v53 = vrot.slane %v3396_v54, %v8355_v62 }
0x1682   : > { %v3405_v27 = vmul.f32 %v3403_v53, %v3391_v42  ;;  %v3406_v31 = vmul.f32 %v3403_v53, %v3392_v10 }
0x1684   : > { %3411 = vrot.lane.b32.xlu1 %v3406_v31, %s12866_s23  ;;  %3409 = vrot.lane.b32.xlu0 %v3405_v27, %s12866_s23  ;;  %v3422_v31 = vld [vmem:[#allocation2 + $0x10] sm:$0xf]  ;;  %s12872_s23 = smov 26  }
0x1688   : > { %3435 = vperm.xlu1 %7859, %v3423_v9   ;;  %3424 = vrot.lane.b32.xlu0 %v9687_v60, %s12867_s0  ;;  %v7599_v60 = vld [vmem:[%s12518_s1 + $0x1] ss:$8 sm:$0x3]  ;;  %s12965_s0 = smov 52  }
0x168c   : > { %7861 = vset.pattern.permute.xlu1 %v13247_v39 }
0x16f6   : > { %v9785_v5 = vpop.permute.xlu0 %3409  ;;  %v9787_v10 = vpop.permute.xlu1 %3411 }
0x16f7   : > { %13248 = vst [vmem:[#allocation61_spill] sm:$0xff] %v9785_v5  ;;  %13249 = vst [vmem:[#allocation62_spill] sm:$0xff] %v9787_v10  ;;  %v3497_v10 = vrot.slane %v7599_v60, %v13206_v8 }
0x16fa   : > { %v3425_v61 = vpop.permute.xlu0 %3424 }
0x16fb   : > { %v3426_v12 = vrot.slane %v3425_v61, 4 }
0x16fd   : > { %v3428_v27 = vsel %vm12891_vm10, %v3426_v12, %v3425_v61  ;;  %v3432_v54 = vmul.f32 %v3426_v12, %v3422_v31  ;;  %v3501_v61 = vrot.slane %v7599_v60, %v13207_v3  ;;  %v3461_v12 = vld [vmem:[%s13250_s5] sm:$0xf]  ;;  %vm13282_vm10 = vcmask 785408   ;;  %s8106_s5 = smov 88  }
0x16fe   : > { %v3431_v9 = vmul.f32 %v3428_v27, %v9537_v48  ;;  %v3492_v48 = vld [vmem:[%s12523_s6] sm:$0xf]  ;;  %v13252_v27 = vmov 28  }
0x16ff   : > { %v3502_v31 = vcombine.low %v3497_v10, %v3501_v61  ;;  %v3607_v10 = vld [vmem:[%s12523_s6] sm:$0xf]  ;;  %v13258_v61 = vmov 35  }
0x1700   : > { %v3646_v60 = vld [vmem:[%s12523_s6] sm:$0xf] }
0x1707   : > { %v3436_v42 = vpop.permute.xlu1 %3435 }
0x1708   : > { %v3443_v53 = vrot.slane %v3436_v42, %v8355_v62  ;;  %v13254_v42 = vmov 14  }
0x170a   : > { %v3445_v39 = vmul.f32 %v3443_v53, %v3431_v9  ;;  %v3446_v55 = vmul.f32 %v3443_v53, %v3432_v54  ;;  %v3568_v54 = vld [vmem:[%s12523_s6] sm:$0xf]  ;;  %v13256_v9 = vmov 21  }
0x170b   : > { %v3667_v53 = vld [vmem:[%s12523_s6] sm:$0xf] }
0x170c   : > { %3451 = vrot.lane.b32.xlu1 %v3446_v55, %s12872_s23  ;;  %3449 = vrot.lane.b32.xlu0 %v3445_v39, %s12872_s23  ;;  %v3529_v55 = vld [vmem:[%s12523_s6] sm:$0xf]  ;;  %v13251_v39 = vmov 7  }
0x1710   : > { %3513 = vperm.xlu1 %7861, %v3492_v48   ;;  %3464 = vperm.xlu0 %7860, %v3461_v12   ;;  %v3700_v48 = vld [vmem:[%s12523_s6] sm:$0xf]  ;;  %v13259_v12 = vmov 42  }
0x1714   : > { %7862 = vset.pattern.permute.xlu1 %v13251_v39  ;;  %3503 = vrot.lane.b32.xlu0 %v3502_v31, %s12872_s23  ;;  %s13257_s23 = smov 122  }
0x1715   : > { %3540 = vperm.xlu1 %7862, %v3529_v55   ;;  %7865 = vset.pattern.permute.xlu0 %v13252_v27  ;;  %v13260_v55 = vmov 29  }
0x1718   : > { %3530 = vrot.lane.b32.xlu0 %v3502_v31, %s13253_s4 }
0x1719   : > { %7863 = vset.pattern.permute.xlu1 %v13254_v42  ;;  %v7600_v42 = vld [vmem:[%s12518_s1 + $0x2] ss:$8 sm:$0x3] }
0x171a   : > { %3579 = vperm.xlu1 %7863, %v3568_v54  }
0x171c   : > { %3569 = vrot.lane.b32.xlu0 %v3502_v31, %s13255_s18 }
0x171e   : > { %7864 = vset.pattern.permute.xlu1 %v13256_v9 }
0x171f   : > { %3618 = vperm.xlu1 %7864, %v3607_v10  }
0x1720   : > { %3608 = vrot.lane.b32.xlu0 %v3502_v31, %s13257_s23  ;;  %v13261_v31 = vmov 1  }
0x1723   : > { %7866 = vset.pattern.permute.xlu1 %v13258_v61 }
0x1724   : > { %3672 = vperm.xlu1 %7866, %v3667_v53   ;;  %3651 = vperm.xlu0 %7865, %v3646_v60  }
0x1728   : > { %7867 = vset.pattern.permute.xlu1 %v13259_v12  ;;  %7872 = vset.pattern.permute.xlu0 %v13260_v55 }
0x1729   : > { %3705 = vperm.xlu1 %7867, %v3700_v48   ;;  %v3666_v48 = vld [vmem:[#allocation2 + $0x10] sm:$0xf] }
0x172d   : > { %7868 = vset.pattern.permute.xlu1 %v13261_v31 }
0x177e   : > { %v9835_v54 = vpop.permute.xlu1 %3451  ;;  %v9837_v10 = vpop.permute.xlu0 %3449 }
0x177f   : > { %13262 = vst [vmem:[#allocation63_spill] sm:$0xff] %v9835_v54  ;;  %13263 = vst [vmem:[#allocation64_spill] sm:$0xff] %v9837_v10 }
0x178f   : > { %v9839_v27 = vpop.permute.xlu1 %3513  ;;  %v9841_v61 = vpop.permute.xlu0 %3464 }
0x1790   : > { %13264 = vst [vmem:[#allocation65_spill] sm:$0xff] %v9839_v27  ;;  %13265 = vst [vmem:[#allocation66_spill] sm:$0xff] %v9841_v61  ;;  %v3699_v61 = vld [vmem:[#allocation2 + $0x10] sm:$0xf] }
0x1793   : > { %v9845_v60 = vpop.permute.xlu0 %3503 }
0x1794   : > { %v9843_v53 = vpop.permute.xlu1 %3540  ;;  %13267 = vst [vmem:[#allocation68_spill] sm:$0xff] %v9845_v60 }
0x1795   : > { %13266 = vst [vmem:[#allocation67_spill] sm:$0xff] %v9843_v53 }
0x1797   : > { %v9849_v12 = vpop.permute.xlu0 %3530 }
0x1798   : > { %13269 = vst [vmem:[#allocation70_spill] sm:$0xff] %v9849_v12  ;;  %v9854_v31 = vrot.slane %v9849_v12, 4 }
0x1799   : > { %v9847_v9 = vpop.permute.xlu1 %3579 }
0x179a   : > { %13268 = vst [vmem:[#allocation69_spill] sm:$0xff] %v9847_v9  ;;  %13271 = vst [vmem:[#allocation72_spill] sm:$0xff] %v9854_v31  ;;  %v3669_v39 = vmul.f32 %v3666_v48, %v9854_v31  ;;  %v3740_v9 = vrot.slane %v7600_v42, %v13206_v8 }
0x179b   : > { %v9860_v53 = vpop.permute.xlu0 %3569 }
0x179c   : > { %13272 = vst [vmem:[#allocation73_spill] sm:$0xff] %v9860_v53  ;;  %v9868_v12 = vrot.slane %v9860_v53, 4 }
0x179e   : > { %v9851_v55 = vpop.permute.xlu1 %3618  ;;  %13274 = vst [vmem:[#allocation75_spill] sm:$0xff] %v9868_v12  ;;  %v3702_v10 = vmul.f32 %v3699_v61, %v9868_v12  ;;  %v1490_v61 = vld [vmem:[#allocation2 + $0xc] sm:$0xf] }
0x179f   : > { %13270 = vst [vmem:[#allocation71_spill] sm:$0xff] %v9851_v55  ;;  %v3744_v55 = vrot.slane %v7600_v42, %v13207_v3  ;;  %v13277_v42 = vld [vmem:[#allocation14_spill] sm:$0xff] }
0x17a0   : > { %v1504_v53 = vrot.slane %v13277_v42, 4 }
0x17a1   : > { %v3745_v48 = vcombine.low %v3740_v9, %v3744_v55  ;;  %v1557_v9 = vrot.slane %v9407_v21, 4  ;;  %v1597_v55 = vrot.slane %v9444_v40, 4 }
0x17a3   : > { %v3673_v27 = vpop.permute.xlu1 %3672 }
0x17a4   : > { %v9863_v60 = vrot.slane %v3673_v27, %v8355_v62 }
0x17a6   : > { %13273 = vst [vmem:[#allocation74_spill] sm:$0xff] %v9863_v60  ;;  %v3683_v54 = vmul.f32 %v9863_v60, %v3669_v39  ;;  %v3735_v39 = vld [vmem:[%s12523_s6] sm:$0xf] }
0x17a8   : > { %3688 = vrot.lane.b32.xlu0 %v3683_v54, %s13081_s30  ;;  %v3706_v31 = vpop.permute.xlu1 %3705  ;;  %v1558_v54 = vrot.slane %v9440_v19, 4 }
0x17a9   : > { %v9874_v5 = vrot.slane %v3706_v31, %v8355_v62  ;;  %v1505_v31 = vsel %vm13278_vm2, %v1504_v53, %v13277_v42  ;;  %v1635_v42 = vrot.slane %v9411_v16, 4  ;;  %vm13281_vm2 = vcmask 916480  }
0x17aa   : > { %v1559_v12 = vsel %vm416_vm0, %v1557_v9, %v1558_v54 }
0x17ab   : > { %13275 = vst [vmem:[#allocation76_spill] sm:$0xff] %v9874_v5  ;;  %v3716_v27 = vmul.f32 %v9874_v5, %v3702_v10  ;;  %v1509_v10 = vmul.f32 %v1504_v53, %v1490_v61  ;;  %v1596_v5 = vrot.slane %v9409_v17, 4  ;;  %v1560_v54 = vsel %vm13281_vm2, %v9407_v21, %v1559_v12  ;;  %v3901_v21 = vld [vmem:[%s12523_s6] sm:$0xf] }
0x17ac   : > { %3746 = vrot.lane.b32.xlu0 %v3745_v48, %s13276_s11  ;;  %vm13283_vm2 = vcmask 654336  }
0x17ad   : > { %3721 = vrot.lane.b32.xlu1 %v3716_v27, %s13108_s28  ;;  %v7967_v27 = vld [vmem:[#allocation2 + $0x4] sm:$0xff]  ;;  %v1598_v53 = vsel %vm416_vm0, %v1596_v5, %v1597_v55  ;;  %v1523_v61 = vmul.f32 %v1520_v25, %v1509_v10  ;;  %v3823_v5 = vld [vmem:[%s12523_s6] sm:$0xf]  ;;  %v13285_v10 = vld [vmem:[#allocation24_spill] sm:$0xff] }
0x17ae   : > { %v1508_v60 = vmul.f32 %v7967_v27, %v1505_v31  ;;  %v1637_v31 = vsel %vm416_vm0, %v1635_v42, %v1636_v50  ;;  %v1599_v45 = vsel %vm13282_vm10, %v9409_v17, %v1598_v53  ;;  %v1675_v17 = vrot.slane %v9417_v49, 4  ;;  %v7601_v53 = vld [vmem:[%s12518_s1 + $0x4] ss:$8 sm:$0x3] }
0x17af   : > { %v1564_v27 = vadd.f32 %v9440_v19, %v1523_v61  ;;  %v13284_v19 = vmov 15   ;;  %vm13286_vm10 = vcmask 523264  }
0x17b0   : > { %3785 = vrot.lane.b32.xlu0 %v3745_v48, %s13198_s29  ;;  %v1522_v9 = vmul.f32 %v1520_v25, %v1508_v60  ;;  %v1677_v42 = vsel %vm13286_vm10, %v1675_v17, %v13285_v10  ;;  %v13293_v10 = vld [vmem:[#allocation30_spill] sm:$0xff] }
0x17b1   : > { %3756 = vperm.xlu1 %7868, %v3735_v39   ;;  %v13280_v39 = vmov 8   ;;  %v1603_v25 = vadd.f32 %v9444_v40, %v1564_v27  ;;  %v3934_v40 = vld [vmem:[%s12523_s6] sm:$0xf]  ;;  %v4006_v27 = vrot.slane %v7601_v53, %v13206_v8 }
0x17b2   : > { %v1563_v55 = vadd.f32 %v1560_v54, %v1522_v9  ;;  %v13289_v9 = vmov 36  }
0x17b3   : > { %v1642_v12 = vadd.f32 %v9448_v1, %v1603_v25  ;;  %v13287_v1 = vmov 22   ;;  %v3967_v25 = vld [vmem:[%s12523_s6] sm:$0xf] }
0x17b4   : > { %3824 = vrot.lane.b32.xlu0 %v3745_v48, %s13188_s21  ;;  %v1602_v50 = vadd.f32 %v1599_v45, %v1563_v55  ;;  %v4010_v45 = vrot.slane %v7601_v53, %v13207_v3 }
0x17b5   : > { %7869 = vset.pattern.permute.xlu1 %v13280_v39  ;;  %v1681_v54 = vadd.f32 %v1677_v42, %v1642_v12  ;;  %v1804_v12 = vrot.slane %v9452_v32, 4 }
0x17b6   : > { %3795 = vperm.xlu1 %7869, %v3784_v7   ;;  %v1638_v7 = vsel %vm13283_vm2, %v9411_v16, %v1637_v31  ;;  %v1714_v16 = vrot.slane %v9425_v24, 4  ;;  %vm13288_vm2 = vmmov %vm13286_vm10  ;;  %vm13294_vm10 = vcmask 261120  }
0x17b7   : > { %v1641_v60 = vadd.f32 %v1638_v7, %v1602_v50  ;;  %v1676_v61 = vsel %vm13288_vm2, %v1675_v17, %v9417_v49  ;;  %v13291_v17 = vmov 2   ;;  %vm13295_vm2 = vmmov %vm13294_vm10 }
0x17b8   : > { %3863 = vrot.lane.b32.xlu0 %v3745_v48, %s13173_s26  ;;  %v3862_v48 = vld [vmem:[%s12523_s6] sm:$0xf]  ;;  %v1716_v49 = vsel %vm12892_vm8, %v1714_v16, %v9425_v24 }
0x17b9   : > { %v1680_v31 = vadd.f32 %v1676_v61, %v1641_v60  ;;  %v13292_v60 = vmov 43  }
0x17ba   : > { %7870 = vset.pattern.permute.xlu1 %v13284_v19 }
0x17bb   : > { %3834 = vperm.xlu1 %7870, %v3823_v5   ;;  %v13290_v5 = vld [vmem:[#allocation27_spill] sm:$0xff]  ;;  %v1720_v50 = vadd.f32 %v1716_v49, %v1680_v31  ;;  %v1842_v31 = vrot.slane %v9434_v6, 4  ;;  %v1921_v49 = vrot.slane %v9464_v11, 4 }
0x17bc   : > { %3906 = vperm.xlu0 %7872, %v3901_v21   ;;  %v1717_v55 = vsel %vm12892_vm8, %v1714_v16, %v13290_v5  ;;  %v1754_v21 = vrot.slane %v9429_v33, 4  ;;  %vm13297_vm8 = vcmask 1039360  }
0x17bd   : > { %v1721_v7 = vadd.f32 %v1717_v55, %v1681_v54  ;;  %v1843_v54 = vrot.slane %v9456_v23, 4 }
0x17be   : > { %v1756_v42 = vsel %vm13294_vm10, %v1754_v21, %v13293_v10  ;;  %v1755_v53 = vsel %vm13295_vm2, %v1754_v21, %v9429_v33  ;;  %v1881_v33 = vrot.slane %v9436_v56, 4  ;;  %vm13298_vm10 = vcmask 908288  }
0x17bf   : > { %7871 = vset.pattern.permute.xlu1 %v13287_v1  ;;  %v1760_v61 = vadd.f32 %v1756_v42, %v1721_v7  ;;  %v1759_v24 = vadd.f32 %v1755_v53, %v1720_v50  ;;  %v1920_v7 = vrot.slane %v9438_v14, 4  ;;  %vm13300_vm2 = vcmask 646144  }
0x17c0   : > { %7873 = vset.pattern.permute.xlu0 %v13289_v9  ;;  %3873 = vperm.xlu1 %7871, %v3862_v48   ;;  %v4011_v48 = vcombine.low %v4006_v27, %v4010_v45  ;;  %v1882_v27 = vrot.slane %v9460_v28, 4  ;;  %v13296_v45 = vmov 30  }
0x17c1   : > { %3939 = vperm.xlu0 %7873, %v3934_v40   ;;  %v1803_v40 = vrot.slane %v9432_v0, 4  ;;  %v1810_v55 = vadd.f32 %v9452_v32, %v1760_v61  ;;  %v1922_v32 = vsel %vm416_vm0, %v1920_v7, %v1921_v49  ;;  %v1959_v61 = vrot.slane %v9442_v22, 4 }
0x17c2   : > { %v1883_v50 = vsel %vm416_vm0, %v1881_v33, %v1882_v27  ;;  %v1923_v53 = vsel %vm13300_vm2, %v9438_v14, %v1922_v32  ;;  %v2087_v49 = vrot.slane %v9468_v13, 4  ;;  %vm13305_vm2 = vcmask 252928  }
0x17c3   : > { %v1805_v16 = vsel %vm416_vm0, %v1803_v40, %v1804_v12 }
0x17c4   : > { %7875 = vset.pattern.permute.xlu1 %v13291_v17  ;;  %v1806_v5 = vsel %vm13297_vm8, %v9432_v0, %v1805_v16  ;;  %v1849_v0 = vadd.f32 %v9456_v23, %v1810_v55  ;;  %vm13299_vm8 = vcmask 777216   ;;  %v4167_v16 = vld [vmem:[%s12523_s6] sm:$0xf]  ;;  %v7602_v55 = vld [vmem:[%s12518_s1 + $0x6] ss:$8 sm:$0x3] }
0x17c5   : > { %7874 = vset.pattern.permute.xlu0 %v13292_v60  ;;  %v1809_v21 = vadd.f32 %v1806_v5, %v1759_v24  ;;  %v1884_v10 = vsel %vm13299_vm8, %v9436_v56, %v1883_v50  ;;  %v1997_v56 = vrot.slane %v9446_v44, 4  ;;  %v2037_v5 = vrot.slane %v9450_v63, 4 }
0x17c6   : > { %3972 = vperm.xlu0 %7874, %v3967_v25   ;;  %v1844_v25 = vsel %vm416_vm0, %v1842_v31, %v1843_v54  ;;  %v1888_v42 = vadd.f32 %v9460_v28, %v1849_v0  ;;  %v13301_v54 = vld [vmem:[#allocation41_spill] sm:$0xff]  ;;  %v4272_v7 = vrot.slane %v7602_v55, %v13206_v8  ;;  %v2086_v50 = vrot.slane %v9454_v59, 4 }
0x17c7   : > { %v1845_v12 = vsel %vm13298_vm10, %v9434_v6, %v1844_v25  ;;  %vm13302_vm10 = vcmask 515072   ;;  %v1999_v33 = vsel %vm1998_vm5, %v1997_v56, %v9446_v44  ;;  %v4233_v44 = vld [vmem:[%s12523_s6] sm:$0xf] }
0x17c8   : > { %v1848_v40 = vadd.f32 %v1845_v12, %v1809_v21  ;;  %v1927_v6 = vadd.f32 %v9464_v11, %v1888_v42  ;;  %v1961_v28 = vsel %vm13302_vm10, %v1959_v61, %v13301_v54  ;;  %vm13303_vm8 = vmmov %vm13302_vm10  ;;  %v4200_v11 = vld [vmem:[%s12523_s6] sm:$0xf]  ;;  %v13304_v21 = vmov 37  }
0x17c9   : > { %v1960_v14 = vsel %vm13303_vm8, %v1959_v61, %v9442_v22  ;;  %v2039_v12 = vsel %vm13305_vm2, %v2037_v5, %v9028_v29  ;;  %v2126_v42 = vrot.slane %v9472_v58, 4  ;;  %v2125_v29 = vrot.slane %v9458_v35, 4 }
0x17ca   : > { %4012 = vrot.lane.b32.xlu0 %v4011_v48, %s13049_s24  ;;  %v1887_v24 = vadd.f32 %v1884_v10, %v1848_v40  ;;  %v1965_v31 = vadd.f32 %v1961_v28, %v1927_v6  ;;  %v2088_v10 = vsel %vm416_vm0, %v2086_v50, %v2087_v49  ;;  %v2204_v54 = vrot.slane %v9482_v47, 4 }
0x17cb   : > { %7879 = vset.pattern.permute.xlu0 %v13296_v45  ;;  %v2089_v6 = vsel %vm12969_vm4, %v9454_v59, %v2088_v10  ;;  %v2203_v28 = vrot.slane %v9466_v37, 4  ;;  %vm13309_vm10 = vcmask 506880  }
0x17cc   : > { %v1926_v23 = vadd.f32 %v1923_v53, %v1887_v24  ;;  %v13307_v53 = vmov 44   ;;  %v2165_v24 = vrot.slane %v9476_v30, 4  ;;  %vm13310_vm8 = vmmov %vm13309_vm10 }
0x17ce   : > { %4051 = vrot.lane.b32.xlu0 %v4011_v48, %s13096_s15  ;;  %v1964_v27 = vadd.f32 %v1960_v14, %v1926_v23  ;;  %v2164_v23 = vrot.slane %v9462_v36, 4 }
0x17d0   : > { %v2003_v25 = vadd.f32 %v1999_v33, %v1964_v27  ;;  %v2166_v14 = vsel %vm416_vm0, %v2164_v23, %v2165_v24  ;;  %v2242_v33 = vrot.slane %v9470_v34, 4 }
0x17d2   : > { %4090 = vrot.lane.b32.xlu0 %v4011_v48, %s13135_s25 }
0x17d6   : > { %4129 = vrot.lane.b32.xlu0 %v4011_v48, %s13131_s20  ;;  %v2000_v48 = vsel %vm1998_vm5, %v1997_v56, %v8921_v2  ;;  %v4276_v2 = vrot.slane %v7602_v55, %v13207_v3  ;;  %vm13306_vm5 = vmmov %vm13305_vm2  ;;  %v2127_v56 = vsel %vm416_vm0, %v2125_v29, %v2126_v42  ;;  %vm13311_vm2 = vcmask 244736  }
0x17d7   : > { %v2004_v22 = vadd.f32 %v2000_v48, %v1965_v31  ;;  %v2038_v0 = vsel %vm13306_vm5, %v2037_v5, %v9450_v63  ;;  %v13308_v31 = vmov 24   ;;  %v2128_v59 = vsel %vm12895_vm3, %v9458_v35, %v2127_v56  ;;  %vm13312_vm5 = vmmov %vm13311_vm2 }
0x17d8   : > { %v2042_v32 = vadd.f32 %v2038_v0, %v2003_v25  ;;  %v10016_v61 = vcombine.low %v4272_v7, %v4276_v2  ;;  %v2167_v48 = vsel %vm12970_vm1, %v9462_v36, %v2166_v14  ;;  %v2280_v25 = vrot.slane %v9474_v41, 4 }
0x17d9   : > { %v2043_v40 = vadd.f32 %v2039_v12, %v2004_v22  ;;  %v2244_v36 = vsel %vm13309_vm10, %v2242_v33, %v9237_v20  ;;  %v2318_v2 = vrot.slane %v9478_v4, 4  ;;  %v2368_v12 = vrot.slane %v9486_v26, 4 }
0x17da   : > { %4172 = vperm.xlu0 %7879, %v4167_v16   ;;  %v2092_v16 = vadd.f32 %v2089_v6, %v2042_v32  ;;  %v2367_v0 = vrot.slane %v9480_v38, 4  ;;  %v2407_v32 = vrot.slane %v9490_v43, 4  ;;  %v2446_v42 = vrot.slane %v9494_v52, 4 }
0x17db   : > { %v2093_v63 = vadd.f32 %v9468_v13, %v2043_v40  ;;  %v2320_v20 = vsel %vm13311_vm2, %v2318_v2, %v9274_v18  ;;  %v2445_v18 = vrot.slane %v9488_v57, 4  ;;  %vm13315_vm10 = vcmask 498688  }
0x17dc   : > { %v2131_v27 = vadd.f32 %v2128_v59, %v2092_v16  ;;  %vm13318_vm2 = vmmov %vm13315_vm10  ;;  %vm3119_vm3 = vcmask 351232  }
0x17dd   : > { %v2132_v13 = vadd.f32 %v9472_v58, %v2093_v63  ;;  %v2447_v63 = vsel %vm416_vm0, %v2445_v18, %v2446_v42 }
0x17de   : > { %7880 = vset.pattern.permute.xlu0 %v13304_v21  ;;  %v2170_v22 = vadd.f32 %v2167_v48, %v2131_v27  ;;  %v13317_v48 = vld [vmem:[#allocation18_spill] sm:$0xff] }
0x17df   : > { %4205 = vperm.xlu0 %7880, %v4200_v11   ;;  %v2205_v11 = vsel %vm416_vm0, %v2203_v28, %v2204_v54  ;;  %v2171_v5 = vadd.f32 %v9476_v30, %v2132_v13  ;;  %v2243_v30 = vsel %vm13310_vm8, %v2242_v33, %v9470_v34  ;;  %v2319_v34 = vsel %vm13312_vm5, %v2318_v2, %v9478_v4  ;;  %v13313_v28 = vld [vmem:[#allocation17_spill] sm:$0xff]  ;;  %v13314_v13 = vld [vmem:[#allocation10_spill] sm:$0xff]  ;;  %v13323_v2 = vld [vmem:[#allocation23_spill] sm:$0xff] }
0x17e0   : > { %v2206_v55 = vsel %vm12893_vm14, %v9466_v37, %v2205_v11  ;;  %v2282_v37 = vsel %vm12894_vm6, %v2280_v25, %v9248_v51  ;;  %v2369_v51 = vsel %vm416_vm0, %v2367_v0, %v2368_v12  ;;  %v2510_v54 = vrot.slane %v9502_v15, 4 }
0x17e1   : > { %v2210_v35 = vadd.f32 %v9482_v47, %v2171_v5  ;;  %v2209_v58 = vadd.f32 %v2206_v55, %v2170_v22  ;;  %v2281_v47 = vsel %vm12894_vm6, %v2280_v25, %v9474_v41  ;;  %v2406_v41 = vrot.slane %v9484_v46, 4 }
0x17e2   : > { %v2370_v29 = vsel %vm12899_vm15, %v9480_v38, %v2369_v51  ;;  %v2448_v38 = vsel %vm12896_vm11, %v9488_v57, %v2447_v63  ;;  %v2512_v27 = vsel %vm13315_vm10, %v2510_v54, %v13314_v13  ;;  %vm13316_vm8 = vcmask 629760   ;;  %v13319_v57 = vld [vmem:[#allocation12_spill] sm:$0xff]  ;;  %v13329_v63 = vld [vmem:[#allocation31_spill] sm:$0xff] }
0x17e3   : > { %7881 = vset.pattern.permute.xlu0 %v13307_v53  ;;  %v2248_v49 = vadd.f32 %v2244_v36, %v2210_v35  ;;  %v2247_v7 = vadd.f32 %v2243_v30, %v2209_v58  ;;  %v2408_v6 = vsel %vm416_vm0, %v2406_v41, %v2407_v32  ;;  %v2511_v5 = vsel %vm13318_vm2, %v2510_v54, %v9502_v15  ;;  %v13320_v35 = vld [vmem:[#allocation15_spill] sm:$0xff]  ;;  %v13327_v32 = vld [vmem:[#allocation22_spill] sm:$0xff]  ;;  %v13328_v41 = vld [vmem:[#allocation29_spill] sm:$0xff] }
0x17e4   : > { %4238 = vperm.xlu0 %7881, %v4233_v44   ;;  %v2409_v16 = vsel %vm1120_vm9, %v9484_v46, %v2408_v6  ;;  %v2548_v46 = vrot.slane %v13317_v48, 4  ;;  %v13321_v36 = vld [vmem:[#allocation19_spill] sm:$0xff]  ;;  %v2753_v42 = vrot.slane %v13328_v41, 4  ;;  %vm13330_vm5 = vcmask 883712  }
0x17e5   : > { %v2286_v50 = vadd.f32 %v2282_v37, %v2248_v49  ;;  %v2285_v44 = vadd.f32 %v2281_v47, %v2247_v7  ;;  %v2637_v30 = vrot.slane %v13321_v36, 4  ;;  %v13322_v49 = vld [vmem:[#allocation20_spill] sm:$0xff]  ;;  %v2676_v47 = vrot.slane %v13323_v2, 4 }
0x17e6   : > { %v2550_v22 = vsel %vm12898_vm13, %v2548_v46, %v13319_v57  ;;  %v2636_v7 = vrot.slane %v13322_v49, 4  ;;  %v2549_v37 = vsel %vm12898_vm13, %v2548_v46, %v13317_v48  ;;  %vm13332_vm10 = vcmask 621568   ;;  %v13337_v46 = vld [vmem:[#allocation34_spill] sm:$0xff] }
0x17e7   : > { %v2324_v40 = vadd.f32 %v2320_v20, %v2286_v50  ;;  %v2323_v10 = vadd.f32 %v2319_v34, %v2285_v44  ;;  %v13324_v50 = vld [vmem:[#allocation21_spill] sm:$0xff]  ;;  %v13325_v44 = vld [vmem:[#allocation16_spill] sm:$0xff]  ;;  %vm13334_vm2 = vcmask 752640   ;;  %vm13336_vm14 = vcmask 490496  }
0x17e8   : > { %4278 = vrot.lane.b32.xlu0 %v10016_v61, %s13053_s27  ;;  %v2675_v15 = vrot.slane %v13324_v50, 4  ;;  %v2638_v34 = vsel %vm416_vm0, %v2636_v7, %v2637_v30  ;;  %v13340_v30 = vld [vmem:[#allocation35_spill] sm:$0xff]  ;;  %v13341_v7 = vld [vmem:[#allocation38_spill] sm:$0xff]  ;;  %vm3080_vm6 = vcmask 482304   ;;  %vm3454_vm11 = vcmask 211968  }
0x17e9   : > { %7885 = vset.pattern.permute.xlu0 %v13308_v31  ;;  %v2374_v24 = vadd.f32 %v9486_v26, %v2324_v40  ;;  %v2373_v4 = vadd.f32 %v2370_v29, %v2323_v10  ;;  %v2473_v26 = vrot.slane %v13313_v28, 4  ;;  %v13326_v40 = vld [vmem:[#allocation26_spill] sm:$0xff]  ;;  %v2714_v10 = vrot.slane %v13327_v32, 4  ;;  %v10102_v29 = vpop.permute.xlu0 %3608 }
0x17ea   : > { %v2715_v51 = vrot.slane %v13326_v40, 4  ;;  %v2677_v18 = vsel %vm416_vm0, %v2675_v15, %v2676_v47  ;;  %vm13378_vm13 = vcmask 416768   ;;  %vm13389_vm15 = vcmask 752640  }
0x17eb   : > { %v2413_v23 = vadd.f32 %v9490_v43, %v2374_v24  ;;  %v2412_v56 = vadd.f32 %v2409_v16, %v2373_v4  ;;  %v2474_v43 = vsel %vm13316_vm8, %v2473_v26, %v13313_v28  ;;  %v2639_v4 = vsel %vm1293_vm7, %v13322_v49, %v2638_v34  ;;  %v13331_v28 = vld [vmem:[#allocation25_spill] sm:$0xff] }
0x17ec   : > { %4317 = vrot.lane.b32.xlu0 %v10016_v61, %s13108_s28  ;;  %v2716_v54 = vsel %vm416_vm0, %v2714_v10, %v2715_v51  ;;  %vm2830_vm8 = vcmask 359424   ;;  %v13344_v34 = vld [vmem:[#allocation37_spill] sm:$0xff] }
0x17ed   : > { %v2452_v14 = vadd.f32 %v9494_v52, %v2413_v23  ;;  %v2451_v59 = vadd.f32 %v2448_v38, %v2412_v56  ;;  %v2586_v52 = vrot.slane %v13320_v35, 4  ;;  %v2791_v23 = vrot.slane %v13329_v63, 4 }
0x17ee   : > { %v2678_v38 = vsel %vm13330_vm5, %v13324_v50, %v2677_v18  ;;  %vm2870_vm5 = vcmask 228352   ;;  %v13346_v18 = vld [vmem:[#allocation39_spill] sm:$0xff] }
0x17ef   : > { %v2478_v11 = vadd.f32 %v2473_v26, %v2452_v14  ;;  %v2477_v33 = vadd.f32 %v2474_v43, %v2451_v59  ;;  %v2588_v0 = vsel %vm12968_vm12, %v2586_v52, %v13325_v44  ;;  %v2587_v6 = vsel %vm12968_vm12, %v2586_v52, %v13320_v35  ;;  %v13333_v14 = vld [vmem:[#allocation32_spill] sm:$0xff]  ;;  %v13338_v35 = vld [vmem:[#allocation33_spill] sm:$0xff] }
0x17f0   : > { %4356 = vrot.lane.b32.xlu0 %v10016_v61, %s13081_s30  ;;  %v2755_v26 = vsel %vm13332_vm10, %v2753_v42, %v13331_v28  ;;  %v2829_v59 = vrot.slane %v13333_v14, 4  ;;  %v2717_v43 = vsel %vm13334_vm2, %v13327_v32, %v2716_v54  ;;  %vm13339_vm2 = vmmov %vm13336_vm14  ;;  %vm13474_vm12 = vcmask 523264  }
0x17f1   : > { %v2516_v55 = vadd.f32 %v2512_v27, %v2478_v11  ;;  %v2515_v58 = vadd.f32 %v2511_v5, %v2477_v33  ;;  %v13335_v11 = vld [vmem:[#allocation28_spill] sm:$0xff]  ;;  %v2869_v5 = vrot.slane %v13337_v46, 4 }
0x17f2   : > { %v2793_v48 = vsel %vm13336_vm14, %v2791_v23, %v13335_v11  ;;  %v2832_v52 = vsel %vm2830_vm8, %v2829_v59, %v13338_v35  ;;  %v2831_v44 = vsel %vm2830_vm8, %v2829_v59, %v13333_v14  ;;  %vm2923_vm14 = vcmask 1006592  }
0x17f3   : > { %v2554_v25 = vadd.f32 %v2550_v22, %v2516_v55  ;;  %v2553_v12 = vadd.f32 %v2549_v37, %v2515_v58  ;;  %v10124_v55 = vpop.permute.xlu0 %3651  ;;  %v2754_v22 = vsel %vm13332_vm10, %v2753_v42, %v13328_v41  ;;  %v2872_v49 = vsel %vm2870_vm5, %v2869_v5, %v13340_v30  ;;  %v13345_v42 = vld [vmem:[#allocation42_spill] sm:$0xff] }
0x17f4   : > { %v2921_v37 = vrot.slane %v13341_v7, 4  ;;  %v2871_v32 = vsel %vm2870_vm5, %v2869_v5, %v13337_v46  ;;  %vm2963_vm8 = vcmask 875520   ;;  %vm3041_vm10 = vcmask 613376  }
0x17f5   : > { %v2592_v20 = vadd.f32 %v2588_v0, %v2554_v25  ;;  %v2591_v16 = vadd.f32 %v2587_v6, %v2553_v12  ;;  %v13343_v0 = vld [vmem:[#allocation40_spill] sm:$0xff]  ;;  %v3000_v6 = vrot.slane %v13346_v18, 4 }
0x17f7   : > { %v2643_v24 = vadd.f32 %v13321_v36, %v2592_v20  ;;  %v2642_v13 = vadd.f32 %v2639_v4, %v2591_v16  ;;  %v2792_v36 = vsel %vm13339_vm2, %v2791_v23, %v13329_v63  ;;  %v2961_v20 = vrot.slane %v13343_v0, 4  ;;  %v13347_v63 = vld [vmem:[#allocation43_spill] sm:$0xff] }
0x17f8   : > { %v3040_v23 = vrot.slane %v13347_v63, 4  ;;  %vm3003_vm2 = vcmask 744448  }
0x17f9   : > { %v2682_v56 = vadd.f32 %v13323_v2, %v2643_v24  ;;  %v2681_v33 = vadd.f32 %v2678_v38, %v2642_v13  ;;  %v13342_v2 = vld [vmem:[#allocation36_spill] sm:$0xff]  ;;  %v3001_v24 = vrot.slane %v13345_v42, 4 }
0x17fa   : > { %v2920_v47 = vrot.slane %v13342_v2, 4 }
0x17fb   : > { %v2721_v27 = vadd.f32 %v13326_v40, %v2682_v56  ;;  %v2720_v58 = vadd.f32 %v2717_v43, %v2681_v33  ;;  %v2960_v40 = vrot.slane %v13344_v34, 4  ;;  %v3002_v13 = vsel %vm416_vm0, %v3000_v6, %v3001_v24  ;;  %v13349_v43 = vld [vmem:[#allocation44_spill] sm:$0xff]  ;;  %v13358_v24 = vld [vmem:[#allocation53_spill] sm:$0xff] }
0x17fc   : > { %v2922_v41 = vsel %vm416_vm0, %v2920_v47, %v2921_v37  ;;  %v3043_v11 = vsel %vm3041_vm10, %v3040_v23, %v13349_v43 }
0x17fd   : > { %v2759_v57 = vadd.f32 %v2755_v26, %v2721_v27  ;;  %v2758_v15 = vadd.f32 %v2754_v22, %v2720_v58  ;;  %v2962_v56 = vsel %vm416_vm0, %v2960_v40, %v2961_v20  ;;  %v2924_v28 = vsel %vm2923_vm14, %v13342_v2, %v2922_v41  ;;  %v13348_v26 = vld [vmem:[#allocation45_spill] sm:$0xff]  ;;  %v13351_v22 = vld [vmem:[#allocation46_spill] sm:$0xff] }
0x17fe   : > { %v3079_v14 = vrot.slane %v13348_v26, 4  ;;  %v2964_v27 = vsel %vm2963_vm8, %v13344_v34, %v2962_v56  ;;  %vm3159_vm14 = vcmask 220160   ;;  %v13356_v34 = vld [vmem:[#allocation51_spill] sm:$0xff]  ;;  %v13357_v41 = vld [vmem:[#allocation54_spill] sm:$0xff]  ;;  %v13359_v56 = vld [vmem:[#allocation56_spill] sm:$0xff]  ;;  %vm3334_vm8 = vcmask 605184  }
0x17ff   : > { %v2797_v25 = vadd.f32 %v2793_v48, %v2759_v57  ;;  %v2796_v51 = vadd.f32 %v2792_v36, %v2758_v15  ;;  %v13350_v48 = vld [vmem:[#allocation47_spill] sm:$0xff]  ;;  %v3004_v57 = vsel %vm3003_vm2, %v13346_v18, %v3002_v13  ;;  %v3210_v40 = vrot.slane %v13356_v34, 4 }
0x1800   : > { %v3118_v46 = vrot.slane %v13350_v48, 4  ;;  %v3082_v35 = vsel %vm3080_vm6, %v3079_v14, %v13351_v22  ;;  %v3081_v15 = vsel %vm3080_vm6, %v3079_v14, %v13348_v26  ;;  %v3251_v18 = vrot.slane %v13358_v24, 4 }
0x1801   : > { %v2836_v12 = vadd.f32 %v2832_v52, %v2797_v25  ;;  %v2835_v4 = vadd.f32 %v2831_v44, %v2796_v51  ;;  %v13352_v52 = vld [vmem:[#allocation49_spill] sm:$0xff]  ;;  %vm3213_vm6 = vcmask 998400   ;;  %vm12971_vm2 = vcmask 474112  }
0x1802   : > { %v3158_v58 = vrot.slane %v13352_v52, 4 }
0x1803   : > { %v2876_v10 = vadd.f32 %v2872_v49, %v2836_v12  ;;  %v2875_v38 = vadd.f32 %v2871_v32, %v2835_v4  ;;  %v3042_v49 = vsel %vm3041_vm10, %v3040_v23, %v13347_v63  ;;  %v13354_v12 = vld [vmem:[#allocation50_spill] sm:$0xff]  ;;  %vm3295_vm10 = vcmask 736256  }
0x1804   : > { %v3161_v44 = vsel %vm3159_vm14, %v3158_v58, %v13354_v12  ;;  %v3160_v4 = vsel %vm3159_vm14, %v3158_v58, %v13352_v52  ;;  %v13364_v58 = vld [vmem:[#allocation61_spill] sm:$0xff]  ;;  %vm3414_vm14 = vcmask 343040   ;;  %v13366_v12 = vld [vmem:[#allocation64_spill] sm:$0xff] }
0x1805   : > { %v2928_v16 = vadd.f32 %v13341_v7, %v2876_v10  ;;  %v2927_v5 = vadd.f32 %v2924_v28, %v2875_v38  ;;  %v13353_v7 = vld [vmem:[#allocation48_spill] sm:$0xff]  ;;  %v3120_v10 = vsel %vm3119_vm3, %v3118_v46, %v13350_v48  ;;  %v3293_v38 = vrot.slane %v13359_v56, 4  ;;  %v13360_v28 = vld [vmem:[#allocation55_spill] sm:$0xff] }
0x1806   : > { %v3121_v37 = vsel %vm3119_vm3, %v3118_v46, %v13353_v7  ;;  %v3292_v26 = vrot.slane %v13360_v28, 4  ;;  %vm3254_vm3 = vcmask 867328   ;;  %v13362_v46 = vld [vmem:[#allocation59_spill] sm:$0xff] }
0x1807   : > { %v2968_v59 = vadd.f32 %v13343_v0, %v2928_v16  ;;  %v2967_v25 = vadd.f32 %v2964_v27, %v2927_v5  ;;  %v13355_v0 = vld [vmem:[#allocation52_spill] sm:$0xff]  ;;  %v3373_v5 = vrot.slane %v13362_v46, 4 }
0x1808   : > { %v3211_v20 = vrot.slane %v13355_v0, 4 }
0x1809   : > { %v3008_v33 = vadd.f32 %v13345_v42, %v2968_v59  ;;  %v3007_v2 = vadd.f32 %v3004_v57, %v2967_v25  ;;  %v3252_v42 = vrot.slane %v13357_v41, 4  ;;  %v13361_v59 = vld [vmem:[#allocation57_spill] sm:$0xff]  ;;  %v3294_v57 = vsel %vm416_vm0, %v3292_v26, %v3293_v38  ;;  %v13369_v38 = vld [vmem:[#allocation66_spill] sm:$0xff] }
0x180a   : > { %v3212_v16 = vsel %vm416_vm0, %v3210_v40, %v3211_v20  ;;  %v3333_v13 = vrot.slane %v13361_v59, 4  ;;  %v3413_v25 = vrot.slane %v13364_v58, 4 }
0x180b   : > { %v3047_v36 = vadd.f32 %v3043_v11, %v3008_v33  ;;  %v3046_v51 = vadd.f32 %v3042_v49, %v3007_v2  ;;  %v3253_v43 = vsel %vm416_vm0, %v3251_v18, %v3252_v42  ;;  %v3214_v48 = vsel %vm3213_vm6, %v13356_v34, %v3212_v16 }
0x180c   : > { %v3255_v22 = vsel %vm3254_vm3, %v13358_v24, %v3253_v43  ;;  %v3296_v2 = vsel %vm3295_vm10, %v13360_v28, %v3294_v57  ;;  %v3335_v40 = vsel %vm3334_vm8, %v3333_v13, %v13361_v59  ;;  %v3472_v28 = vrot.slane %v13369_v38, %v8355_v62  ;;  %v4199_v38 = vld [vmem:[#allocation2 + $0x10] sm:$0xf] }
0x180d   : > { %v3086_v47 = vadd.f32 %v3082_v35, %v3047_v36  ;;  %v3085_v6 = vadd.f32 %v3081_v15, %v3046_v51  ;;  %v13363_v35 = vld [vmem:[#allocation58_spill] sm:$0xff] }
0x180e   : > { %v3336_v52 = vsel %vm3334_vm8, %v3333_v13, %v13363_v35  ;;  %v13367_v51 = vld [vmem:[#allocation62_spill] sm:$0xff] }
0x180f   : > { %v3125_v32 = vadd.f32 %v3121_v37, %v3086_v47  ;;  %v3124_v14 = vadd.f32 %v3120_v10, %v3085_v6  ;;  %v13365_v47 = vld [vmem:[#allocation60_spill] sm:$0xff]  ;;  %v3375_v6 = vsel %vm12971_vm2, %v3373_v5, %v13362_v46 }
0x1810   : > { %v3376_v15 = vsel %vm12971_vm2, %v3373_v5, %v13365_v47 }
0x1811   : > { %v3165_v63 = vadd.f32 %v3161_v44, %v3125_v32  ;;  %v3164_v11 = vadd.f32 %v3160_v4, %v3124_v14  ;;  %v3453_v44 = vrot.slane %v13366_v12, 4  ;;  %v3416_v32 = vsel %vm3414_vm14, %v3413_v25, %v13367_v51  ;;  %v13368_v4 = vld [vmem:[#allocation63_spill] sm:$0xff] }
0x1812   : > { %v3415_v14 = vsel %vm3414_vm14, %v3413_v25, %v13364_v58  ;;  %v3966_v25 = vld [vmem:[#allocation2 + $0x10] sm:$0xf] }
0x1813   : > { %v3218_v27 = vadd.f32 %v13355_v0, %v3165_v63  ;;  %v3217_v49 = vadd.f32 %v3214_v48, %v3164_v11  ;;  %v3900_v0 = vld [vmem:[#allocation2 + $0x10] sm:$0xf]  ;;  %v3456_v63 = vsel %vm3454_vm11, %v3453_v44, %v13368_v4  ;;  %v3455_v43 = vsel %vm3454_vm11, %v3453_v44, %v13366_v12 }
0x1815   : > { %v3259_v33 = vadd.f32 %v13357_v41, %v3218_v27  ;;  %v3258_v20 = vadd.f32 %v3255_v22, %v3217_v49 }
0x1817   : > { %v3300_v7 = vadd.f32 %v13359_v56, %v3259_v33  ;;  %v3299_v41 = vadd.f32 %v3296_v2, %v3258_v20  ;;  %v3933_v33 = vld [vmem:[#allocation2 + $0x10] sm:$0xf] }
0x1819   : > { %v3340_v34 = vadd.f32 %v3336_v52, %v3300_v7  ;;  %v3339_v16 = vadd.f32 %v3335_v40, %v3299_v41  ;;  %v13371_v40 = vmov 9  }
0x181a   : > { %v10136_v50 = vpop.permute.xlu0 %3688 }
0x181b   : > { %v3380_v42 = vadd.f32 %v3376_v15, %v3340_v34  ;;  %v3379_v59 = vadd.f32 %v3375_v6, %v3339_v16  ;;  %v4050_v34 = vld [vmem:[%s12523_s6] sm:$0xf] }
0x181c   : > { %v4128_v6 = vld [vmem:[%s12523_s6] sm:$0xf] }
0x181d   : > { %v3420_v56 = vadd.f32 %v3416_v32, %v3380_v42  ;;  %v3419_v11 = vadd.f32 %v3415_v14, %v3379_v59  ;;  %v4089_v32 = vld [vmem:[%s12523_s6] sm:$0xf]  ;;  %v4166_v42 = vld [vmem:[#allocation2 + $0x10] sm:$0xf] }
0x181e   : > { %v10150_v54 = vpop.permute.xlu0 %3746 }
0x181f   : > { %v10205_v37 = vrot.slane %v10150_v54, 4  ;;  %v3460_v13 = vadd.f32 %v3456_v63, %v3420_v56  ;;  %v3459_v46 = vadd.f32 %v3455_v43, %v3419_v11  ;;  %v13373_v63 = vmov 23  }
0x1820   : > { %v13374_v43 = vmov 3  }
0x1821   : > { %v3903_v24 = vmul.f32 %v3900_v0, %v10205_v37  ;;  %v3475_v48 = vadd.f32 %v3472_v28, %v3460_v13  ;;  %v3474_v22 = vadd.f32 %v3472_v28, %v3459_v46  ;;  %v4001_v0 = vld [vmem:[%s12523_s6] sm:$0xf] }
0x1822   : > { %v10165_v30 = vpop.permute.xlu0 %3785 }
0x1823   : > { %v10233_v5 = vrot.slane %v10165_v30, 4 }
0x1825   : > { %v3936_v58 = vmul.f32 %v3933_v33, %v10233_v5 }
0x1826   : > { %v10183_v23 = vpop.permute.xlu0 %3824 }
0x1827   : > { %v10240_v52 = vrot.slane %v10183_v23, 4 }
0x1829   : > { %v3969_v47 = vmul.f32 %v3966_v25, %v10240_v52  ;;  %v4355_v25 = vld [vmem:[%s12523_s6] sm:$0xf] }
0x182a   : > { %v10201_v36 = vpop.permute.xlu0 %3863 }
0x183b   : > { %v3907_v10 = vpop.permute.xlu0 %3906 }
0x183c   : > { %v10218_v18 = vrot.slane %v3907_v10, %v8355_v62  ;;  %v13372_v10 = vmov 16  }
0x183e   : > { %v3917_v26 = vmul.f32 %v10218_v18, %v3903_v24 }
0x1840   : > { %3922 = vrot.lane.b32.xlu1 %v3917_v26, %s13131_s20  ;;  %v3940_v27 = vpop.permute.xlu0 %3939 }
0x1841   : > { %v10237_v35 = vrot.slane %v3940_v27, %v8355_v62  ;;  %v4232_v27 = vld [vmem:[#allocation2 + $0x10] sm:$0xf] }
0x1843   : > { %v3950_v7 = vmul.f32 %v10237_v35, %v3936_v58  ;;  %v13375_v58 = vmov 10  }
0x1844   : > { %3480 = vrot.lane.b32.xlu1 %v3475_v48, %s13370_s12 }
0x1845   : > { %v3973_v57 = vpop.permute.xlu0 %3972 }
0x1846   : > { %v10248_v2 = vrot.slane %v3973_v57, %v8355_v62  ;;  %v4267_v57 = vld [vmem:[%s12523_s6] sm:$0xf] }
0x1848   : > { %3478 = vrot.lane.b32.xlu1 %v3474_v22, %s13370_s12  ;;  %v3983_v12 = vmul.f32 %v10248_v2, %v3969_v47  ;;  %v4316_v22 = vld [vmem:[%s12523_s6] sm:$0xf]  ;;  %v13377_v47 = vmov 31   ;;  %s12931_s12 = smov 4  }
0x1849   : > { %v10244_v49 = vpop.permute.xlu0 %4012 }
0x184a   : > { %v10272_v41 = vrot.slane %v10244_v49, 4 }
0x184c   : > { %3955 = vrot.lane.b32.xlu1 %v3950_v7, %s13135_s25  ;;  %v4169_v56 = vmul.f32 %v4166_v42, %v10272_v41  ;;  %v13376_v7 = vmov 17  }
0x184d   : > { %v10252_v15 = vpop.permute.xlu0 %4051 }
0x184e   : > { %v10282_v16 = vrot.slane %v10252_v15, 4 }
0x1850   : > { %3988 = vrot.lane.b32.xlu1 %v3983_v12, %s13096_s15  ;;  %v4202_v13 = vmul.f32 %v4199_v38, %v10282_v16  ;;  %v10315_v12 = vpop.permute.xlu1 %3721 }
0x1851   : > { %v10256_v44 = vpop.permute.xlu0 %4090 }
0x1852   : > { %v10290_v59 = vrot.slane %v10256_v44, 4 }
0x1854   : > { %4022 = vperm.xlu1 %7875, %v4001_v0   ;;  %v4235_v46 = vmul.f32 %v4232_v27, %v10290_v59  ;;  %v3757_v0 = vpop.permute.xlu1 %3756  ;;  %v13379_v27 = vld [vmem:[#allocation70_spill] sm:$0xff] }
0x1855   : > { %v10261_v20 = vpop.permute.xlu0 %4129 }
0x1858   : > { %7876 = vset.pattern.permute.xlu1 %v13371_v40 }
0x1859   : > { %4061 = vperm.xlu1 %7876, %v4050_v34   ;;  %v4173_v51 = vpop.permute.xlu0 %4172  ;;  %v3796_v34 = vpop.permute.xlu1 %3795 }
0x185a   : > { %v10278_v4 = vrot.slane %v4173_v51, %v8355_v62 }
0x185c   : > { %v4183_v28 = vmul.f32 %v10278_v4, %v4169_v56 }
0x185d   : > { %7877 = vset.pattern.permute.xlu1 %v13372_v10  ;;  %v10317_v51 = vpop.permute.xlu1 %3834 }
0x185e   : > { %4100 = vperm.xlu1 %7877, %v4089_v32   ;;  %v4206_v24 = vpop.permute.xlu0 %4205 }
0x185f   : > { %v10287_v26 = vrot.slane %v4206_v24, %v8355_v62 }
0x1861   : > { %v4216_v11 = vmul.f32 %v10287_v26, %v4202_v13  ;;  %v10319_v32 = vpop.permute.xlu1 %3873 }
0x1862   : > { %7878 = vset.pattern.permute.xlu1 %v13373_v63 }
0x1863   : > { %4139 = vperm.xlu1 %7878, %v4128_v6   ;;  %v4239_v14 = vpop.permute.xlu0 %4238 }
0x1864   : > { %v10297_v48 = vrot.slane %v4239_v14, %v8355_v62 }
0x1866   : > { %v4249_v33 = vmul.f32 %v10297_v48, %v4235_v46 }
0x1867   : > { %4188 = vrot.lane.b32.xlu1 %v4183_v28, %s13173_s26 }
0x1868   : > { %7882 = vset.pattern.permute.xlu1 %v13374_v43 }
0x186b   : > { %4221 = vrot.lane.b32.xlu1 %v4216_v11, %s13188_s21  ;;  %v13380_v11 = vld [vmem:[#allocation72_spill] sm:$0xff] }
0x186c   : > { %v3533_v46 = vsel %vm12971_vm2, %v13380_v11, %v13379_v27 }
0x186f   : > { %4254 = vrot.lane.b32.xlu1 %v4249_v33, %s13198_s29 }
0x1873   : > { %4288 = vperm.xlu1 %7882, %v4267_v57  }
0x1877   : > { %7883 = vset.pattern.permute.xlu1 %v13375_v58  ;;  %v13384_v58 = vld [vmem:[#allocation69_spill] sm:$0xff] }
0x1878   : > { %4327 = vperm.xlu1 %7883, %v4316_v22   ;;  %v3587_v43 = vrot.slane %v13384_v58, %v8355_v62 }
0x187c   : > { %7884 = vset.pattern.permute.xlu1 %v13376_v7 }
0x187d   : > { %4366 = vperm.xlu1 %7884, %v4355_v25   ;;  %v13381_v25 = vld [vmem:[#allocation67_spill] sm:$0xff] }
0x1881   : > { %7886 = vset.pattern.permute.xlu1 %v13377_v47 }
0x18b2   : > { %v10321_v42 = vpop.permute.xlu1 %3922 }
0x18b6   : > { %v3481_v24 = vpop.permute.xlu1 %3480 }
0x18b7   : > { %v3483_v56 = vrot.slane %v3481_v24, 4  ;;  %v3548_v24 = vrot.slane %v13381_v25, %v8355_v62 }
0x18ba   : > { %v3479_v6 = vpop.permute.xlu1 %3478 }
0x18bb   : > { %v3482_v38 = vrot.slane %v3479_v6, 4 }
0x18bd   : > { %v3484_v28 = vsel %vm416_vm0, %v3482_v38, %v3483_v56  ;;  %v13382_v56 = vld [vmem:[#allocation73_spill] sm:$0xff]  ;;  %v13383_v38 = vld [vmem:[#allocation75_spill] sm:$0xff] }
0x18be   : > { %v10325_v14 = vsel %vm13378_vm13, %v3479_v6, %v3484_v28  ;;  %v10333_v57 = vpop.permute.xlu1 %3955  ;;  %v3572_v6 = vsel %vm3295_vm10, %v13383_v38, %v13382_v56  ;;  %v3610_v28 = vrot.slane %v10102_v29, 4  ;;  %vm13387_vm13 = vcmask 490496  }
0x18bf   : > { %3487 = vst [vmem:[#allocation2 + $0x8] sm:$0xff] %v10325_v14  ;;  %v3701_v17 = vmul.f32 %v3572_v6, %v10325_v14 }
0x18c0   : > { %v3611_v25 = vsel %vm3213_vm6, %v3610_v28, %v10102_v29 }
0x18c2   : > { %v10346_v53 = vpop.permute.xlu1 %3988 }
0x18c6   : > { %v10328_v13 = vld [vmem:[#allocation2 + $0x4] sm:$0xff]  ;;  %v3528_v33 = vld [vmem:[#allocation2 + $0xc] sm:$0xf] }
0x18c7   : > { %v3536_v22 = vmul.f32 %v10328_v13, %v3533_v46  ;;  %v3537_v47 = vmul.f32 %v13380_v11, %v3528_v33  ;;  %v3567_v31 = vld [vmem:[#allocation2 + $0xc] sm:$0xf]  ;;  %v3575_v7 = vmul.f32 %v10328_v13, %v3572_v6  ;;  %v3614_v11 = vmul.f32 %v10328_v13, %v3611_v25 }
0x18c8   : > { %v3576_v56 = vmul.f32 %v13383_v38, %v3567_v31  ;;  %v3606_v63 = vld [vmem:[#allocation2 + $0xc] sm:$0xf]  ;;  %v3749_v31 = vsel %vm2870_vm5, %v10205_v37, %v10150_v54  ;;  %v3764_v6 = vrot.slane %v3757_v0, %v8355_v62  ;;  %v3827_v0 = vsel %vm13389_vm15, %v10240_v52, %v10183_v23 }
0x18c9   : > { %v3550_v27 = vmul.f32 %v3548_v24, %v3536_v22  ;;  %v3551_v45 = vmul.f32 %v3548_v24, %v3537_v47  ;;  %v3589_v33 = vmul.f32 %v3587_v43, %v3575_v7  ;;  %v13385_v22 = vld [vmem:[#allocation71_spill] sm:$0xff]  ;;  %v3615_v40 = vmul.f32 %v3610_v28, %v3606_v63  ;;  %v13386_v63 = vld [vmem:[#allocation76_spill] sm:$0xff] }
0x18ca   : > { %v3626_v10 = vrot.slane %v13385_v22, %v8355_v62  ;;  %v3734_v24 = vld [vmem:[#allocation2 + $0xc] sm:$0xf]  ;;  %v3752_v38 = vmul.f32 %v10328_v13, %v3749_v31  ;;  %v3788_v28 = vsel %vm13387_vm13, %v10233_v5, %v10165_v30  ;;  %v3865_v30 = vrot.slane %v10201_v36, 4 }
0x18cb   : > { %3554 = vrot.lane.b32.xlu0 %v3550_v27, %s13081_s30  ;;  %3556 = vrot.lane.b32.xlu1 %v3551_v45, %s13081_s30  ;;  %v3590_v27 = vmul.f32 %v3587_v43, %v3576_v56  ;;  %v3668_v45 = vmul.f32 %v3533_v46, %v10325_v14  ;;  %v3715_v43 = vmul.f32 %v13386_v63, %v3701_v17  ;;  %v13388_v46 = vld [vmem:[#allocation74_spill] sm:$0xff]  ;;  %v3822_v22 = vld [vmem:[#allocation2 + $0xc] sm:$0xf]  ;;  %vm13390_vm15 = vcmask 244736  }
0x18cc   : > { %v3628_v29 = vmul.f32 %v3626_v10, %v3614_v11  ;;  %v3629_v7 = vmul.f32 %v3626_v10, %v3615_v40  ;;  %v3753_v54 = vmul.f32 %v10205_v37, %v3734_v24  ;;  %v3783_v10 = vld [vmem:[#allocation2 + $0xc] sm:$0xf]  ;;  %v3791_v25 = vmul.f32 %v10328_v13, %v3788_v28 }
0x18cd   : > { %v3682_v40 = vmul.f32 %v13388_v46, %v3668_v45  ;;  %v3766_v56 = vmul.f32 %v3764_v6, %v3752_v38  ;;  %v3803_v17 = vrot.slane %v3796_v34, %v8355_v62  ;;  %v3792_v37 = vmul.f32 %v10233_v5, %v3783_v10  ;;  %v3861_v5 = vld [vmem:[#allocation2 + $0xc] sm:$0xf] }
0x18ce   : > { %v3842_v34 = vrot.slane %v10317_v51, %v8355_v62  ;;  %v3866_v23 = vsel %vm1293_vm7, %v3865_v30, %v10201_v36  ;;  %v3870_v51 = vmul.f32 %v3865_v30, %v3861_v5  ;;  %vm13391_vm13 = vcmask 506880   ;;  %v4279_v30 = vpop.permute.xlu0 %4278 }
0x18cf   : > { %3593 = vrot.lane.b32.xlu0 %v3589_v33, %s13108_s28  ;;  %3595 = vrot.lane.b32.xlu1 %v3590_v27, %s13108_s28  ;;  %v3767_v33 = vmul.f32 %v3764_v6, %v3753_v54  ;;  %v3830_v27 = vmul.f32 %v10328_v13, %v3827_v0  ;;  %v3806_v24 = vmul.f32 %v3803_v17, %v3792_v37 }
0x18d0   : > { %v3869_v38 = vmul.f32 %v10328_v13, %v3866_v23  ;;  %v3881_v6 = vrot.slane %v10319_v32, %v8355_v62  ;;  %v3902_v32 = vmul.f32 %v3749_v31, %v10325_v14  ;;  %v3935_v31 = vmul.f32 %v3788_v28, %v10325_v14 }
0x18d1   : > { %v3844_v63 = vmul.f32 %v3842_v34, %v3830_v27  ;;  %v4131_v27 = vrot.slane %v10261_v20, 4 }
0x18d2   : > { %v3883_v46 = vmul.f32 %v3881_v6, %v3869_v38  ;;  %v3949_v28 = vmul.f32 %v10237_v35, %v3935_v31  ;;  %v4000_v38 = vld [vmem:[#allocation2 + $0xc] sm:$0xf] }
0x18d3   : > { %v4023_v58 = vpop.permute.xlu1 %4022  ;;  %3632 = vrot.lane.b32.xlu0 %v3628_v29, %s13053_s27  ;;  %3634 = vrot.lane.b32.xlu1 %v3629_v7, %s13053_s27  ;;  %v3805_v29 = vmul.f32 %v3803_v17, %v3791_v25  ;;  %v3831_v7 = vmul.f32 %v10240_v52, %v3822_v22  ;;  %v10402_v52 = vsel %vm13390_vm15, %v10272_v41, %v10244_v49  ;;  %vm13392_vm15 = vcmask 261120  }
0x18d4   : > { %v4030_v36 = vrot.slane %v4023_v58, %v8355_v62  ;;  %v4018_v10 = vmul.f32 %v10328_v13, %v10402_v52  ;;  %v3884_v25 = vmul.f32 %v3881_v6, %v3870_v51  ;;  %v10415_v49 = vsel %vm13391_vm13, %v10282_v16, %v10252_v15 }
0x18d5   : > { %v3845_v54 = vmul.f32 %v3842_v34, %v3831_v7  ;;  %v4057_v37 = vmul.f32 %v10328_v13, %v10415_v49  ;;  %v10429_v15 = vsel %vm12970_vm1, %v10290_v59, %v10256_v44  ;;  %v4132_v44 = vsel %vm12969_vm4, %v4131_v27, %v10261_v20 }
0x18d6   : > { %v4096_v34 = vmul.f32 %v10328_v13, %v10429_v15  ;;  %v4135_v5 = vmul.f32 %v10328_v13, %v4132_v44  ;;  %v4019_v51 = vmul.f32 %v10272_v41, %v4000_v38  ;;  %vm13393_vm13 = vcmask 523264  }
0x18d7   : > { %3719 = vrot.lane.b32.xlu0 %v3715_v43, %s13108_s28  ;;  %3686 = vrot.lane.b32.xlu1 %v3682_v40, %s13081_s30  ;;  %v4168_v44 = vmul.f32 %v10402_v52, %v10325_v14  ;;  %v13395_v38 = vmov 38   ;;  %v4234_v52 = vmul.f32 %v10429_v15, %v10325_v14 }
0x18d8   : > { %v4062_v47 = vpop.permute.xlu1 %4061 }
0x18d9   : > { %v4069_v58 = vrot.slane %v4062_v47, %v8355_v62 }
0x18db   : > { %3770 = vrot.lane.b32.xlu0 %v3766_v56, %s13131_s20  ;;  %3772 = vrot.lane.b32.xlu1 %v3767_v33, %s13131_s20  ;;  %v4032_v56 = vmul.f32 %v4030_v36, %v4018_v10  ;;  %v3916_v33 = vmul.f32 %v10218_v18, %v3902_v32  ;;  %v4071_v47 = vmul.f32 %v4069_v58, %v4057_v37  ;;  %v4049_v10 = vld [vmem:[#allocation2 + $0xc] sm:$0xf] }
0x18dc   : > { %v3968_v18 = vmul.f32 %v3827_v0, %v10325_v14  ;;  %v4058_v41 = vmul.f32 %v10282_v16, %v4049_v10  ;;  %v4127_v16 = vld [vmem:[#allocation2 + $0xc] sm:$0xf] }
0x18dd   : > { %v4101_v11 = vpop.permute.xlu1 %4100 }
0x18de   : > { %v4108_v22 = vrot.slane %v4101_v11, %v8355_v62  ;;  %v4318_v11 = vpop.permute.xlu0 %4317  ;;  %v3982_v0 = vmul.f32 %v10248_v2, %v3968_v18  ;;  %v4033_v2 = vmul.f32 %v4030_v36, %v4019_v51  ;;  %v4072_v36 = vmul.f32 %v4069_v58, %v4058_v41 }
0x18df   : > { %3809 = vrot.lane.b32.xlu0 %v3805_v29, %s13135_s25  ;;  %3811 = vrot.lane.b32.xlu1 %v3806_v24, %s13135_s25  ;;  %v10441_v24 = vrot.slane %v4279_v30, 4  ;;  %v10452_v20 = vrot.slane %v4318_v11, 4  ;;  %v4136_v58 = vmul.f32 %v4131_v27, %v4127_v16  ;;  %v4182_v27 = vmul.f32 %v10278_v4, %v4168_v44  ;;  %v4420_v44 = vld [vmem:[%s12523_s6] sm:$0xf] }
0x18e0   : > { %v4110_v23 = vmul.f32 %v4108_v22, %v4096_v34 }
0x18e2   : > { %v4140_v45 = vpop.permute.xlu1 %4139 }
0x18e3   : > { %3848 = vrot.lane.b32.xlu0 %v3844_v63, %s13096_s15  ;;  %3850 = vrot.lane.b32.xlu1 %v3845_v54, %s13096_s15  ;;  %v4147_v7 = vrot.slane %v4140_v45, %v8355_v62  ;;  %v10450_v45 = vsel %vm13392_vm15, %v10441_v24, %v4279_v30  ;;  %vm13394_vm15 = vcmask 785408  }
0x18e4   : > { %v4284_v54 = vmul.f32 %v10450_v45, %v10328_v13  ;;  %v4421_v9 = vmul.f32 %v10450_v45, %v10325_v14 }
0x18e5   : > { %v4149_v35 = vmul.f32 %v4147_v7, %v4135_v5  ;;  %v4150_v5 = vmul.f32 %v4147_v7, %v4136_v58 }
0x18e6   : > { %v10393_v43 = vpop.permute.xlu1 %4188 }
0x18e7   : > { %3887 = vrot.lane.b32.xlu0 %v3883_v46, %s13049_s24  ;;  %3889 = vrot.lane.b32.xlu1 %v3884_v25, %s13049_s24  ;;  %v4357_v46 = vpop.permute.xlu0 %4356  ;;  %s12955_s24 = smov 54  }
0x18e8   : > { %v10464_v30 = vrot.slane %v4357_v46, 4 }
0x18ea   : > { %v10405_v40 = vpop.permute.xlu1 %4221  ;;  %v10474_v34 = vsel %vm13394_vm15, %v10464_v30, %v4357_v46  ;;  %vm4574_vm15 = vcmask 539648  }
0x18eb   : > { %4036 = vrot.lane.b32.xlu0 %v4032_v56, %s13173_s26  ;;  %3920 = vrot.lane.b32.xlu1 %v3916_v33, %s13131_s20  ;;  %v10462_v56 = vsel %vm13393_vm13, %v10452_v20, %v4318_v11  ;;  %v4088_v33 = vld [vmem:[#allocation2 + $0xc] sm:$0xf]  ;;  %vm13414_vm13 = vcmask 277504  }
0x18ec   : > { %v4323_v31 = vmul.f32 %v10462_v56, %v10328_v13  ;;  %v4097_v18 = vmul.f32 %v10290_v59, %v4088_v33  ;;  %v4393_v59 = vld [vmem:[%s12523_s6] sm:$0xf] }
0x18ee   : > { %v10418_v17 = vpop.permute.xlu1 %4254  ;;  %v4111_v11 = vmul.f32 %v4108_v22, %v4097_v18  ;;  %v4201_v22 = vmul.f32 %v10415_v49, %v10325_v14  ;;  %v4315_v49 = vld [vmem:[#allocation2 + $0xc] sm:$0xf] }
0x18ef   : > { %4075 = vrot.lane.b32.xlu0 %v4071_v47, %s13188_s21  ;;  %3953 = vrot.lane.b32.xlu1 %v3949_v28, %s13135_s25  ;;  %v4362_v28 = vmul.f32 %v10474_v34, %v10328_v13  ;;  %v4324_v51 = vmul.f32 %v10452_v20, %v4315_v49 }
0x18f0   : > { %v4215_v7 = vmul.f32 %v10287_v26, %v4201_v22 }
0x18f2   : > { %v4289_v29 = vpop.permute.xlu1 %4288 }
0x18f3   : > { %4114 = vrot.lane.b32.xlu0 %v4110_v23, %s13198_s29  ;;  %v4296_v6 = vrot.slane %v4289_v29, %v8355_v62  ;;  %3986 = vrot.lane.b32.xlu1 %v3982_v0, %s13096_s15  ;;  %v4266_v0 = vld [vmem:[#allocation2 + $0xc] sm:$0xf] }
0x18f5   : > { %v4298_v32 = vmul.f32 %v4296_v6, %v4284_v54  ;;  %v4354_v54 = vld [vmem:[#allocation2 + $0xc] sm:$0xf] }
0x18f6   : > { %v4363_v15 = vmul.f32 %v10464_v30, %v4354_v54 }
0x18f7   : > { %v4328_v63 = vpop.permute.xlu1 %4327  ;;  %4153 = vrot.lane.b32.xlu0 %v4149_v35, %s13276_s11  ;;  %4038 = vrot.lane.b32.xlu1 %v4033_v2, %s13173_s26  ;;  %v4285_v35 = vmul.f32 %v10441_v24, %v4266_v0 }
0x18f8   : > { %v4335_v25 = vrot.slane %v4328_v63, %v8355_v62  ;;  %v4248_v63 = vmul.f32 %v10297_v48, %v4234_v52 }
0x18f9   : > { %v4299_v4 = vmul.f32 %v4296_v6, %v4285_v35 }
0x18fa   : > { %v4337_v47 = vmul.f32 %v4335_v25, %v4323_v31  ;;  %v4338_v46 = vmul.f32 %v4335_v25, %v4324_v51 }
0x18fb   : > { %4302 = vrot.lane.b32.xlu0 %v4298_v32, %s13257_s23  ;;  %4077 = vrot.lane.b32.xlu1 %v4072_v36, %s13188_s21 }
0x18fc   : > { %v4367_v37 = vpop.permute.xlu1 %4366 }
0x18fd   : > { %v4374_v29 = vrot.slane %v4367_v37, %v8355_v62 }
0x18ff   : > { %4341 = vrot.lane.b32.xlu0 %v4337_v47, %s13255_s18  ;;  %v4376_v23 = vmul.f32 %v4374_v29, %v4362_v28  ;;  %4116 = vrot.lane.b32.xlu1 %v4111_v11, %s13198_s29  ;;  %v4377_v26 = vmul.f32 %v4374_v29, %v4363_v15  ;;  %v4395_v11 = vmul.f32 %v10016_v61, %v10325_v14 }
0x1903   : > { %4380 = vrot.lane.b32.xlu0 %v4376_v23, %s13253_s4  ;;  %4155 = vrot.lane.b32.xlu1 %v4150_v5, %s13276_s11  ;;  %s12935_s11 = smov 68  }
0x1907   : > { %4398 = vperm.xlu0 %7885, %v4393_v59   ;;  %4186 = vrot.lane.b32.xlu1 %v4182_v27, %s13173_s26  ;;  %s13399_s26 = smov 26   ;;  %v13400_v59 = vmov 4  }
0x190b   : > { %7887 = vset.pattern.permute.xlu0 %v13395_v38  ;;  %4219 = vrot.lane.b32.xlu1 %v4215_v7, %s13188_s21  ;;  %v4419_v38 = vld [vmem:[#allocation2 + $0x10] sm:$0xf]  ;;  %s8104_s21 = smov 120  }
0x190c   : > { %v4422_v1 = vmul.f32 %v4419_v38, %v10441_v24 }
0x190f   : > { %4252 = vrot.lane.b32.xlu1 %v4248_v63, %s13198_s29  ;;  %s12960_s29 = smov 38  }
0x1913   : > { %4304 = vrot.lane.b32.xlu1 %v4299_v4, %s13257_s23 }
0x1917   : > { %4343 = vrot.lane.b32.xlu1 %v4338_v46, %s13255_s18 }
0x191b   : > { %4382 = vrot.lane.b32.xlu1 %v4377_v26, %s13253_s4 }
0x193d   : > { %v10506_v48 = vpop.permute.xlu0 %3554  ;;  %v10543_v5 = vpop.permute.xlu1 %3556 }
0x1941   : > { %v10508_v10 = vpop.permute.xlu0 %3593  ;;  %v10546_v22 = vpop.permute.xlu1 %3595 }
0x1945   : > { %v10510_v2 = vpop.permute.xlu0 %3632  ;;  %v10548_v27 = vpop.permute.xlu1 %3634 }
0x1949   : > { %v10512_v6 = vpop.permute.xlu0 %3719  ;;  %v10550_v52 = vpop.permute.xlu1 %3686 }
0x194d   : > { %v10514_v32 = vpop.permute.xlu0 %3770  ;;  %v10552_v61 = vpop.permute.xlu1 %3772 }
0x1951   : > { %v10516_v41 = vpop.permute.xlu0 %3809  ;;  %v10554_v7 = vpop.permute.xlu1 %3811 }
0x1955   : > { %v10518_v25 = vpop.permute.xlu0 %3848  ;;  %v10556_v0 = vpop.permute.xlu1 %3850 }
0x1959   : > { %v10520_v37 = vpop.permute.xlu0 %3887  ;;  %v10558_v63 = vpop.permute.xlu1 %3889 }
0x195d   : > { %v10522_v31 = vpop.permute.xlu0 %4036  ;;  %v10560_v35 = vpop.permute.xlu1 %3920 }
0x1961   : > { %v10524_v33 = vpop.permute.xlu0 %4075  ;;  %v10562_v49 = vpop.permute.xlu1 %3953 }
0x1965   : > { %v10526_v36 = vpop.permute.xlu0 %4114  ;;  %v10564_v4 = vpop.permute.xlu1 %3986 }
0x1969   : > { %v10528_v47 = vpop.permute.xlu0 %4153  ;;  %v10566_v51 = vpop.permute.xlu1 %4038 }
0x196d   : > { %v10530_v29 = vpop.permute.xlu0 %4302  ;;  %v10568_v54 = vpop.permute.xlu1 %4077 }
0x196e   : > { %13396 = vst [vmem:[#allocation14_spill] sm:$0xff] %v10530_v29 }
0x1971   : > { %v10532_v18 = vpop.permute.xlu0 %4341  ;;  %v10570_v46 = vpop.permute.xlu1 %4116 }
0x1972   : > { %13397 = vst [vmem:[#allocation13_spill] sm:$0xff] %v10532_v18 }
0x1975   : > { %v10534_v16 = vpop.permute.xlu0 %4380  ;;  %v10572_v15 = vpop.permute.xlu1 %4155 }
0x1976   : > { %13398 = vst [vmem:[#allocation24_spill] sm:$0xff] %v10534_v16 }
0x1979   : > { %v10574_v26 = vpop.permute.xlu1 %4186 }
0x1986   : > { %v4399_v28 = vpop.permute.xlu0 %4398 }
0x1987   : > { %v4406_v23 = vrot.slane %v4399_v28, %v8355_v62  ;;  %v10576_v28 = vpop.permute.xlu1 %4219 }
0x1989   : > { %v4408_v58 = vmul.f32 %v4406_v23, %v4395_v11 }
0x198b   : > { %4410 = vrot.lane.b32.xlu1 %v4408_v58, %s13399_s26  ;;  %v10578_v11 = vpop.permute.xlu1 %4252 }
0x198f   : > { %4425 = vperm.xlu1 %7886, %v4420_v44   ;;  %v10580_v23 = vpop.permute.xlu1 %4304 }
0x1990   : > { %13401 = vst [vmem:[#allocation27_spill] sm:$0xff] %v10580_v23 }
0x1993   : > { %7889 = vset.pattern.permute.xlu1 %v13400_v59  ;;  %v10582_v58 = vpop.permute.xlu1 %4343 }
0x1994   : > { %13402 = vst [vmem:[#allocation30_spill] sm:$0xff] %v10582_v58 }
0x1997   : > { %v10584_v44 = vpop.permute.xlu1 %4382 }
0x1998   : > { %13403 = vst [vmem:[#allocation41_spill] sm:$0xff] %v10584_v44  ;;  %v4453_v44 = vld [vmem:[%s12523_s6] sm:$0xf] }
0x19fd   : > { %v10586_v59 = vpop.permute.xlu1 %4410 }
0x19fe   : > { %13404 = vst [vmem:[#allocation17_spill] sm:$0xff] %v10586_v59  ;;  %v7603_v59 = vld [vmem:[%s12518_s1 + $0x10] ss:$8 sm:$0x3] }
0x19ff   : > { %v4525_v45 = vrot.slane %v7603_v59, %v13206_v8  ;;  %v4529_v24 = vrot.slane %v7603_v59, %v13207_v3 }
0x1a0e   : > { %v4426_v60 = vpop.permute.xlu1 %4425 }
0x1a0f   : > { %v4433_v19 = vrot.slane %v4426_v60, %v8355_v62 }
0x1a11   : > { %v4435_v39 = vmul.f32 %v4433_v19, %v4421_v9  ;;  %v4436_v16 = vmul.f32 %v4433_v19, %v4422_v1  ;;  %v4486_v19 = vld [vmem:[%s12523_s6] sm:$0xf]  ;;  %v13405_v1 = vmov 45   ;;  %v13406_v9 = vmov 32  }
0x1a13   : > { %4441 = vrot.lane.b32.xlu1 %v4436_v16, %s13257_s23  ;;  %4439 = vrot.lane.b32.xlu0 %v4435_v39, %s13257_s23  ;;  %v10606_v39 = vcombine.low %v4525_v45, %v4529_v24  ;;  %v4454_v16 = vmul.f32 %v10462_v56, %v10325_v14 }
0x1a17   : > { %4458 = vperm.xlu0 %7887, %v4453_v44   ;;  %v4452_v44 = vld [vmem:[#allocation2 + $0x10] sm:$0xf] }
0x1a1b   : > { %7888 = vset.pattern.permute.xlu0 %v13405_v1  ;;  %v4455_v1 = vmul.f32 %v4452_v44, %v10452_v20  ;;  %v4520_v20 = vld [vmem:[%s12523_s6] sm:$0xf]  ;;  %v4519_v44 = vld [vmem:[#allocation2 + $0xc] sm:$0xf] }
0x1a1c   : > { %4491 = vperm.xlu0 %7888, %v4486_v19  }
0x1a20   : > { %4531 = vrot.lane.b32.xlu0 %v10606_v39, %s13094_s2 }
0x1a21   : > { %7893 = vset.pattern.permute.xlu0 %v13406_v9  ;;  %v4487_v9 = vmul.f32 %v10474_v34, %v10325_v14 }
0x1a85   : > { %v10611_v60 = vpop.permute.xlu0 %4439 }
0x1a86   : > { %13407 = vst [vmem:[#allocation10_spill] sm:$0xff] %v10611_v60  ;;  %v4485_v60 = vld [vmem:[#allocation2 + $0x10] sm:$0xf] }
0x1a87   : > { %v4488_v56 = vmul.f32 %v4485_v60, %v10464_v30 }
0x1a96   : > { %v4459_v38 = vpop.permute.xlu0 %4458 }
0x1a97   : > { %v4466_v59 = vrot.slane %v4459_v38, %v8355_v62 }
0x1a99   : > { %v4468_v18 = vmul.f32 %v4466_v59, %v4454_v16  ;;  %v4469_v24 = vmul.f32 %v4466_v59, %v4455_v1  ;;  %v10629_v1 = vpop.permute.xlu1 %4441 }
0x1a9a   : > { %13409 = vst [vmem:[#allocation18_spill] sm:$0xff] %v10629_v1 }
0x1a9b   : > { %4472 = vrot.lane.b32.xlu1 %v4468_v18, %s13255_s18  ;;  %v4492_v45 = vpop.permute.xlu0 %4491  ;;  %v13408_v18 = vmov 11  }
0x1a9c   : > { %v4499_v19 = vrot.slane %v4492_v45, %v8355_v62 }
0x1a9e   : > { %v4501_v58 = vmul.f32 %v4499_v19, %v4487_v9  ;;  %v4502_v38 = vmul.f32 %v4499_v19, %v4488_v56 }
0x1a9f   : > { %4474 = vrot.lane.b32.xlu1 %v4469_v24, %s13255_s18  ;;  %v4532_v30 = vpop.permute.xlu0 %4531 }
0x1aa3   : > { %4505 = vrot.lane.b32.xlu1 %v4501_v58, %s13253_s4  ;;  %v10637_v58 = vrot.slane %v4532_v30, 4 }
0x1aa5   : > { %v10643_v59 = vsel %vm13414_vm13, %v10637_v58, %v4532_v30  ;;  %v4538_v19 = vmul.f32 %v10637_v58, %v4519_v44  ;;  %v4570_v30 = vld [vmem:[%s12523_s6] sm:$0xf]  ;;  %vm13421_vm13 = vcmask 801792  }
0x1aa6   : > { %v4537_v24 = vmul.f32 %v10643_v59, %v10328_v13 }
0x1aa7   : > { %4507 = vrot.lane.b32.xlu1 %v4502_v38, %s13253_s4 }
0x1aab   : > { %4541 = vperm.xlu1 %7889, %v4520_v20  }
0x1aaf   : > { %7890 = vset.pattern.permute.xlu1 %v13408_v18  ;;  %v13415_v18 = vmov 18  }
0x1b0d   : > { %v10631_v34 = vpop.permute.xlu1 %4472 }
0x1b0e   : > { %13410 = vst [vmem:[#allocation12_spill] sm:$0xff] %v10631_v34 }
0x1b11   : > { %v10633_v16 = vpop.permute.xlu1 %4474 }
0x1b12   : > { %13411 = vst [vmem:[#allocation15_spill] sm:$0xff] %v10633_v16 }
0x1b15   : > { %v10635_v9 = vpop.permute.xlu1 %4505 }
0x1b16   : > { %13412 = vst [vmem:[#allocation19_spill] sm:$0xff] %v10635_v9 }
0x1b19   : > { %v10639_v60 = vpop.permute.xlu1 %4507 }
0x1b1a   : > { %13413 = vst [vmem:[#allocation20_spill] sm:$0xff] %v10639_v60 }
0x1b2a   : > { %v4542_v45 = vpop.permute.xlu1 %4541 }
0x1b2b   : > { %v4549_v56 = vrot.slane %v4542_v45, %v8355_v62 }
0x1b2d   : > { %v4551_v38 = vmul.f32 %v4549_v56, %v4537_v24  ;;  %v4552_v20 = vmul.f32 %v4549_v56, %v4538_v19 }
0x1b2f   : > { %4557 = vrot.lane.b32.xlu1 %v4552_v20, %s8104_s21  ;;  %4555 = vrot.lane.b32.xlu0 %v4551_v38, %s8104_s21  ;;  %v4569_v38 = vld [vmem:[#allocation2 + $0xc] sm:$0xf] }
0x1b33   : > { %4582 = vperm.xlu1 %7890, %v4570_v30   ;;  %4571 = vrot.lane.b32.xlu0 %v10606_v39, %s8105_s19  ;;  %s12957_s19 = smov 86  }
0x1b37   : > { %7891 = vset.pattern.permute.xlu1 %v13415_v18 }
0x1ba1   : > { %v10656_v44 = vpop.permute.xlu0 %4555  ;;  %v10660_v19 = vpop.permute.xlu1 %4557 }
0x1ba2   : > { %13416 = vst [vmem:[#allocation23_spill] sm:$0xff] %v10656_v44  ;;  %13417 = vst [vmem:[#allocation21_spill] sm:$0xff] %v10660_v19  ;;  %v13418_v19 = vmov 25  }
0x1ba5   : > { %v4572_v45 = vpop.permute.xlu0 %4571 }
0x1ba6   : > { %v10658_v24 = vrot.slane %v4572_v45, 4 }
0x1ba8   : > { %v10663_v56 = vsel %vm4574_vm15, %v10658_v24, %v4572_v45  ;;  %v4579_v9 = vmul.f32 %v10658_v24, %v4569_v38  ;;  %v4611_v45 = vld [vmem:[%s12523_s6] sm:$0xf]  ;;  %vm13425_vm15 = vcmask 15360  }
0x1ba9   : > { %v4578_v30 = vmul.f32 %v10663_v56, %v10328_v13 }
0x1bb2   : > { %v4583_v20 = vpop.permute.xlu1 %4582 }
0x1bb3   : > { %v4590_v18 = vrot.slane %v4583_v20, %v8355_v62 }
0x1bb5   : > { %v4592_v34 = vmul.f32 %v4590_v18, %v4578_v30  ;;  %v4593_v44 = vmul.f32 %v4590_v18, %v4579_v9  ;;  %v4610_v9 = vld [vmem:[#allocation2 + $0xc] sm:$0xf] }
0x1bb7   : > { %4598 = vrot.lane.b32.xlu1 %v4593_v44, %s8106_s5  ;;  %4596 = vrot.lane.b32.xlu0 %v4592_v34, %s8106_s5 }
0x1bbb   : > { %4622 = vperm.xlu1 %7891, %v4611_v45   ;;  %4612 = vrot.lane.b32.xlu0 %v10606_v39, %s13211_s13  ;;  %s8107_s13 = smov 56  }
0x1bbf   : > { %7892 = vset.pattern.permute.xlu1 %v13418_v19 }
0x1c29   : > { %v10677_v38 = vpop.permute.xlu0 %4596  ;;  %v10681_v18 = vpop.permute.xlu1 %4598 }
0x1c2a   : > { %13419 = vst [vmem:[#allocation16_spill] sm:$0xff] %v10677_v38  ;;  %13420 = vst [vmem:[#allocation26_spill] sm:$0xff] %v10681_v18  ;;  %v10704_v18 = vld [vmem:[#allocation2 + $0x8] sm:$0xff] }
0x1c2d   : > { %v4613_v20 = vpop.permute.xlu0 %4612 }
0x1c2e   : > { %v10679_v30 = vrot.slane %v4613_v20, 4 }
0x1c30   : > { %v10685_v34 = vsel %vm13421_vm13, %v10679_v30, %v4613_v20  ;;  %v4619_v60 = vmul.f32 %v10679_v30, %v4610_v9  ;;  %v4651_v20 = vld [vmem:[%s12523_s6] sm:$0xf]  ;;  %vm4805_vm13 = vcmask 293888  }
0x1c31   : > { %v4618_v45 = vmul.f32 %v10685_v34, %v10328_v13  ;;  %v13422_v13 = vmov 5  }
0x1c3a   : > { %v4623_v44 = vpop.permute.xlu1 %4622 }
0x1c3b   : > { %v4630_v19 = vrot.slane %v4623_v44, %v8355_v62 }
0x1c3d   : > { %v4632_v16 = vmul.f32 %v4630_v19, %v4618_v45  ;;  %v4633_v38 = vmul.f32 %v4630_v19, %v4619_v60  ;;  %v4650_v19 = vld [vmem:[#allocation2 + $0x10] sm:$0xf] }
0x1c3f   : > { %4638 = vrot.lane.b32.xlu1 %v4633_v38, %s8107_s13  ;;  %4636 = vrot.lane.b32.xlu0 %v4632_v16, %s8107_s13 }
0x1c43   : > { %4662 = vperm.xlu1 %7892, %v4651_v20   ;;  %4652 = vrot.lane.b32.xlu0 %v10606_v39, %s13220_s17  ;;  %s8108_s17 = smov 24  }
0x1c47   : > { %7896 = vset.pattern.permute.xlu1 %v13422_v13  ;;  %v4690_v13 = vld [vmem:[%s12523_s6] sm:$0xf] }
0x1cb1   : > { %v10699_v9 = vpop.permute.xlu0 %4636  ;;  %v10701_v60 = vpop.permute.xlu1 %4638 }
0x1cb2   : > { %13423 = vst [vmem:[#allocation22_spill] sm:$0xff] %v10699_v9  ;;  %13424 = vst [vmem:[#allocation29_spill] sm:$0xff] %v10701_v60 }
0x1cb5   : > { %v4653_v44 = vpop.permute.xlu0 %4652 }
0x1cb6   : > { %v4654_v45 = vrot.slane %v4653_v44, 4 }
0x1cb8   : > { %v4655_v38 = vsel %vm13425_vm15, %v4654_v45, %v4653_v44  ;;  %v4659_v16 = vmul.f32 %v4654_v45, %v4650_v19  ;;  %v4723_v44 = vld [vmem:[%s12523_s6] sm:$0xf]  ;;  %v7604_v45 = vld [vmem:[%s12518_s1 + $0x12] ss:$8 sm:$0x3]  ;;  %v13426_v19 = vmov 39  }
0x1cb9   : > { %v4658_v20 = vmul.f32 %v4655_v38, %v10704_v18  ;;  %vm12941_vm15 = vcmask 556032  }
0x1cc2   : > { %v4663_v1 = vpop.permute.xlu1 %4662 }
0x1cc3   : > { %v4670_v29 = vrot.slane %v4663_v1, %v8355_v62  ;;  %v4756_v1 = vld [vmem:[%s12523_s6] sm:$0xf] }
0x1cc5   : > { %v4672_v39 = vmul.f32 %v4670_v29, %v4658_v20  ;;  %v4673_v23 = vmul.f32 %v4670_v29, %v4659_v16  ;;  %v4796_v29 = vrot.slane %v7604_v45, %v13206_v8  ;;  %v13428_v16 = vmov 33  }
0x1cc7   : > { %4678 = vrot.lane.b32.xlu1 %v4673_v23, %s8108_s17  ;;  %4676 = vrot.lane.b32.xlu0 %v4672_v39, %s8108_s17  ;;  %v4800_v23 = vrot.slane %v7604_v45, %v13207_v3  ;;  %s8109_s17 = smov 36  }
0x1cc9   : > { %v10724_v38 = vcombine.low %v4796_v29, %v4800_v23 }
0x1ccb   : > { %4695 = vperm.xlu0 %7893, %v4690_v13   ;;  %v13427_v13 = vmov 46  }
0x1ccf   : > { %7894 = vset.pattern.permute.xlu0 %v13426_v19  ;;  %v4689_v19 = vld [vmem:[#allocation2 + $0x10] sm:$0xf] }
0x1cd0   : > { %4728 = vperm.xlu0 %7894, %v4723_v44   ;;  %v4691_v44 = vmul.f32 %v10643_v59, %v10325_v14 }
0x1cd4   : > { %7895 = vset.pattern.permute.xlu0 %v13427_v13  ;;  %v4692_v13 = vmul.f32 %v4689_v19, %v10637_v58  ;;  %v4755_v19 = vld [vmem:[#allocation2 + $0x10] sm:$0xf] }
0x1cd5   : > { %4761 = vperm.xlu0 %7895, %v4756_v1  }
0x1cd9   : > { %4802 = vrot.lane.b32.xlu0 %v10724_v38, %s8109_s17  ;;  %s8119_s17 = smov 70  }
0x1cda   : > { %7900 = vset.pattern.permute.xlu0 %v13428_v16  ;;  %v4724_v16 = vmul.f32 %v10663_v56, %v10325_v14  ;;  %v4758_v56 = vmul.f32 %v4755_v19, %v10679_v30 }
0x1d39   : > { %v10728_v20 = vpop.permute.xlu0 %4676 }
0x1d3a   : > { %13429 = vst [vmem:[#allocation31_spill] sm:$0xff] %v10728_v20  ;;  %v4722_v20 = vld [vmem:[#allocation2 + $0x10] sm:$0xf] }
0x1d4a   : > { %v4696_v39 = vpop.permute.xlu0 %4695 }
0x1d4b   : > { %v4703_v45 = vrot.slane %v4696_v39, %v8355_v62  ;;  %v4725_v39 = vmul.f32 %v4722_v20, %v10658_v24  ;;  %v4791_v24 = vld [vmem:[%s12523_s6] sm:$0xf]  ;;  %v10752_v20 = vpop.permute.xlu1 %4678 }
0x1d4c   : > { %13431 = vst [vmem:[#allocation25_spill] sm:$0xff] %v10752_v20 }
0x1d4d   : > { %v4705_v9 = vmul.f32 %v4703_v45, %v4691_v44  ;;  %v4706_v23 = vmul.f32 %v4703_v45, %v4692_v13 }
0x1d4f   : > { %4709 = vrot.lane.b32.xlu1 %v4705_v9, %s8104_s21  ;;  %v4729_v29 = vpop.permute.xlu0 %4728  ;;  %v4757_v9 = vmul.f32 %v10685_v34, %v10325_v14 }
0x1d50   : > { %v4736_v1 = vrot.slane %v4729_v29, %v8355_v62 }
0x1d52   : > { %v4738_v60 = vmul.f32 %v4736_v1, %v4724_v16  ;;  %v4739_v44 = vmul.f32 %v4736_v1, %v4725_v39 }
0x1d53   : > { %4711 = vrot.lane.b32.xlu1 %v4706_v23, %s8104_s21  ;;  %s12963_s21 = smov 84  }
0x1d54   : > { %v4762_v59 = vpop.permute.xlu0 %4761 }
0x1d55   : > { %v4769_v58 = vrot.slane %v4762_v59, %v8355_v62 }
0x1d57   : > { %4742 = vrot.lane.b32.xlu1 %v4738_v60, %s8106_s5  ;;  %v4771_v13 = vmul.f32 %v4769_v58, %v4757_v9  ;;  %v4772_v16 = vmul.f32 %v4769_v58, %v4758_v56  ;;  %v13430_v60 = vmov 12   ;;  %v4790_v58 = vld [vmem:[#allocation2 + $0xc] sm:$0xf] }
0x1d58   : > { %v4803_v23 = vpop.permute.xlu0 %4802 }
0x1d59   : > { %v10764_v1 = vrot.slane %v4803_v23, 4 }
0x1d5b   : > { %4744 = vrot.lane.b32.xlu1 %v4739_v44, %s8106_s5  ;;  %v10769_v39 = vsel %vm4805_vm13, %v10764_v1, %v4803_v23  ;;  %v10771_v44 = vld [vmem:[#allocation2 + $0x4] sm:$0xff]  ;;  %s12954_s5 = smov 118   ;;  %v4842_v23 = vld [vmem:[%s12523_s6] sm:$0xf]  ;;  %vm12928_vm13 = vcmask 818176  }
0x1d5c   : > { %v4809_v19 = vmul.f32 %v10769_v39, %v10771_v44 }
0x1d5f   : > { %4775 = vrot.lane.b32.xlu1 %v4771_v13, %s8107_s13  ;;  %v4810_v13 = vmul.f32 %v10764_v1, %v4790_v58 }
0x1d63   : > { %4777 = vrot.lane.b32.xlu1 %v4772_v16, %s8107_s13  ;;  %s12952_s13 = smov 22  }
0x1d67   : > { %4813 = vperm.xlu1 %7896, %v4791_v24  }
0x1d6b   : > { %7897 = vset.pattern.permute.xlu1 %v13430_v60  ;;  %v13438_v60 = vmov 19  }
0x1dc1   : > { %v10754_v14 = vpop.permute.xlu1 %4709 }
0x1dc2   : > { %13432 = vst [vmem:[#allocation32_spill] sm:$0xff] %v10754_v14 }
0x1dc5   : > { %v10756_v34 = vpop.permute.xlu1 %4711 }
0x1dc6   : > { %13433 = vst [vmem:[#allocation28_spill] sm:$0xff] %v10756_v34 }
0x1dc9   : > { %v10758_v45 = vpop.permute.xlu1 %4742 }
0x1dca   : > { %13434 = vst [vmem:[#allocation34_spill] sm:$0xff] %v10758_v45 }
0x1dcd   : > { %v10760_v30 = vpop.permute.xlu1 %4744 }
0x1dce   : > { %13435 = vst [vmem:[#allocation33_spill] sm:$0xff] %v10760_v30 }
0x1dd1   : > { %v10762_v29 = vpop.permute.xlu1 %4775 }
0x1dd2   : > { %13436 = vst [vmem:[#allocation35_spill] sm:$0xff] %v10762_v29 }
0x1dd5   : > { %v10766_v59 = vpop.permute.xlu1 %4777 }
0x1dd6   : > { %13437 = vst [vmem:[#allocation38_spill] sm:$0xff] %v10766_v59 }
0x1de6   : > { %v4814_v9 = vpop.permute.xlu1 %4813 }
0x1de7   : > { %v4821_v56 = vrot.slane %v4814_v9, %v8355_v62 }
0x1de9   : > { %v4823_v16 = vmul.f32 %v4821_v56, %v4809_v19  ;;  %v4824_v24 = vmul.f32 %v4821_v56, %v4810_v13 }
0x1deb   : > { %4829 = vrot.lane.b32.xlu1 %v4824_v24, %s12954_s5  ;;  %4827 = vrot.lane.b32.xlu0 %v4823_v16, %s12954_s5  ;;  %v4841_v16 = vld [vmem:[#allocation2 + $0xc] sm:$0xf] }
0x1def   : > { %4854 = vperm.xlu1 %7897, %v4842_v23   ;;  %4843 = vrot.lane.b32.xlu0 %v10724_v38, %s12935_s11  ;;  %s13573_s11 = smov 83  }
0x1df3   : > { %7898 = vset.pattern.permute.xlu1 %v13438_v60 }
0x1e5d   : > { %v10785_v58 = vpop.permute.xlu0 %4827  ;;  %v10789_v13 = vpop.permute.xlu1 %4829 }
0x1e5e   : > { %13439 = vst [vmem:[#allocation36_spill] sm:$0xff] %v10785_v58  ;;  %13440 = vst [vmem:[#allocation40_spill] sm:$0xff] %v10789_v13  ;;  %v13441_v13 = vmov 26  }
0x1e61   : > { %v4844_v9 = vpop.permute.xlu0 %4843 }
0x1e62   : > { %v10787_v19 = vrot.slane %v4844_v9, 4 }
0x1e64   : > { %v10793_v56 = vsel %vm12941_vm15, %v10787_v19, %v4844_v9  ;;  %v4851_v29 = vmul.f32 %v10787_v19, %v4841_v16  ;;  %v4883_v9 = vld [vmem:[%s12523_s6] sm:$0xf]  ;;  %vm5120_vm15 = vcmask 572416  }
0x1e65   : > { %v4850_v23 = vmul.f32 %v10793_v56, %v10771_v44 }
0x1e6e   : > { %v4855_v24 = vpop.permute.xlu1 %4854 }
0x1e6f   : > { %v4862_v60 = vrot.slane %v4855_v24, %v8355_v62 }
0x1e71   : > { %v4864_v58 = vmul.f32 %v4862_v60, %v4850_v23  ;;  %v4865_v45 = vmul.f32 %v4862_v60, %v4851_v29 }
0x1e73   : > { %4870 = vrot.lane.b32.xlu1 %v4865_v45, %s12957_s19  ;;  %4868 = vrot.lane.b32.xlu0 %v4864_v58, %s12957_s19  ;;  %v4882_v58 = vld [vmem:[#allocation2 + $0xc] sm:$0xf] }
0x1e77   : > { %4895 = vperm.xlu1 %7898, %v4883_v9   ;;  %4884 = vrot.lane.b32.xlu0 %v10724_v38, %s12933_s16  ;;  %s12956_s16 = smov 6  }
0x1e7b   : > { %7899 = vset.pattern.permute.xlu1 %v13441_v13 }
0x1ee5   : > { %v10807_v16 = vpop.permute.xlu0 %4868  ;;  %v10811_v45 = vpop.permute.xlu1 %4870 }
0x1ee6   : > { %13442 = vst [vmem:[#allocation37_spill] sm:$0xff] %v10807_v16  ;;  %13443 = vst [vmem:[#allocation42_spill] sm:$0xff] %v10811_v45  ;;  %v13444_v45 = vmov 6  }
0x1ee9   : > { %v4885_v24 = vpop.permute.xlu0 %4884 }
0x1eea   : > { %v10809_v60 = vrot.slane %v4885_v24, 4 }
0x1eec   : > { %v10815_v29 = vsel %vm12928_vm13, %v10809_v60, %v4885_v24  ;;  %v4892_v59 = vmul.f32 %v10809_v60, %v4882_v58  ;;  %v4924_v24 = vld [vmem:[%s12523_s6] sm:$0xf]  ;;  %vm12940_vm13 = vcmask 31744  }
0x1eed   : > { %v4891_v9 = vmul.f32 %v10815_v29, %v10771_v44 }
0x1ef6   : > { %v4896_v23 = vpop.permute.xlu1 %4895 }
0x1ef7   : > { %v4903_v13 = vrot.slane %v4896_v23, %v8355_v62 }
0x1ef9   : > { %v4905_v16 = vmul.f32 %v4903_v13, %v4891_v9  ;;  %v4906_v30 = vmul.f32 %v4903_v13, %v4892_v59 }
0x1efb   : > { %4911 = vrot.lane.b32.xlu1 %v4906_v30, %s12955_s24  ;;  %4909 = vrot.lane.b32.xlu0 %v4905_v16, %s12955_s24  ;;  %v4923_v30 = vld [vmem:[#allocation2 + $0x10] sm:$0xf] }
0x1eff   : > { %4936 = vperm.xlu1 %7899, %v4924_v24   ;;  %4925 = vrot.lane.b32.xlu0 %v10724_v38, %s12931_s12  ;;  %s12977_s12 = smov 116  }
0x1f03   : > { %7903 = vset.pattern.permute.xlu1 %v13444_v45  ;;  %v4964_v45 = vld [vmem:[%s12523_s6] sm:$0xf] }
0x1f6d   : > { %v10829_v58 = vpop.permute.xlu0 %4909  ;;  %v10831_v13 = vpop.permute.xlu1 %4911 }
0x1f6e   : > { %13445 = vst [vmem:[#allocation39_spill] sm:$0xff] %v10829_v58  ;;  %13446 = vst [vmem:[#allocation43_spill] sm:$0xff] %v10831_v13 }
0x1f71   : > { %v4926_v23 = vpop.permute.xlu0 %4925 }
0x1f72   : > { %v4927_v59 = vrot.slane %v4926_v23, 4 }
0x1f74   : > { %v4929_v16 = vsel %vm12940_vm13, %v4927_v59, %v4926_v23  ;;  %v4933_v9 = vmul.f32 %v4927_v59, %v4923_v30  ;;  %v4997_v23 = vld [vmem:[%s12523_s6] sm:$0xf]  ;;  %v13447_v59 = vmov 40   ;;  %vm12949_vm13 = vcmask 310272  }
0x1f75   : > { %v4932_v24 = vmul.f32 %v4929_v16, %v10704_v18  ;;  %v5030_v30 = vld [vmem:[%s12523_s6] sm:$0xf] }
0x1f7e   : > { %v4937_v14 = vpop.permute.xlu1 %4936 }
0x1f7f   : > { %v4944_v20 = vrot.slane %v4937_v14, %v8355_v62  ;;  %v7605_v14 = vld [vmem:[%s12518_s1 + $0x13] ss:$8 sm:$0x3] }
0x1f81   : > { %v4946_v34 = vmul.f32 %v4944_v20, %v4932_v24  ;;  %v4947_v38 = vmul.f32 %v4944_v20, %v4933_v9  ;;  %v5070_v20 = vrot.slane %v7605_v14, %v13206_v8  ;;  %v13449_v9 = vmov 34  }
0x1f83   : > { %4952 = vrot.lane.b32.xlu1 %v4947_v38, %s12952_s13  ;;  %4950 = vrot.lane.b32.xlu0 %v4946_v34, %s12952_s13  ;;  %v5074_v34 = vrot.slane %v7605_v14, %v13207_v3  ;;  %s12982_s13 = smov 23  }
0x1f85   : > { %v10854_v16 = vcombine.low %v5070_v20, %v5074_v34 }
0x1f87   : > { %4969 = vperm.xlu0 %7900, %v4964_v45   ;;  %v13448_v45 = vmov 47  }
0x1f8b   : > { %7901 = vset.pattern.permute.xlu0 %v13447_v59  ;;  %v4963_v59 = vld [vmem:[#allocation2 + $0x10] sm:$0xf] }
0x1f8c   : > { %5002 = vperm.xlu0 %7901, %v4997_v23   ;;  %v4965_v23 = vmul.f32 %v10769_v39, %v10704_v18 }
0x1f90   : > { %7902 = vset.pattern.permute.xlu0 %v13448_v45 }
0x1f91   : > { %5035 = vperm.xlu0 %7902, %v5030_v30   ;;  %v4966_v30 = vmul.f32 %v4963_v59, %v10764_v1  ;;  %v5029_v59 = vld [vmem:[#allocation2 + $0x10] sm:$0xf] }
0x1f95   : > { %5076 = vrot.lane.b32.xlu0 %v10854_v16, %s12960_s29  ;;  %s12984_s29 = smov 71  }
0x1f96   : > { %7907 = vset.pattern.permute.xlu0 %v13449_v9  ;;  %v4998_v9 = vmul.f32 %v10793_v56, %v10704_v18  ;;  %v5032_v56 = vmul.f32 %v5029_v59, %v10809_v60 }
0x1ff5   : > { %v10859_v24 = vpop.permute.xlu0 %4950 }
0x1ff6   : > { %13450 = vst [vmem:[#allocation45_spill] sm:$0xff] %v10859_v24  ;;  %v4996_v24 = vld [vmem:[#allocation2 + $0x10] sm:$0xf] }
0x2006   : > { %v4970_v38 = vpop.permute.xlu0 %4969 }
0x2007   : > { %v4977_v14 = vrot.slane %v4970_v38, %v8355_v62  ;;  %v4999_v38 = vmul.f32 %v4996_v24, %v10787_v19  ;;  %v5065_v19 = vld [vmem:[%s12523_s6] sm:$0xf] }
0x2009   : > { %v4979_v58 = vmul.f32 %v4977_v14, %v4965_v23  ;;  %v4980_v34 = vmul.f32 %v4977_v14, %v4966_v30 }
0x200b   : > { %4983 = vrot.lane.b32.xlu1 %v4979_v58, %s12954_s5  ;;  %v5003_v20 = vpop.permute.xlu0 %5002  ;;  %v5031_v58 = vmul.f32 %v10815_v29, %v10704_v18 }
0x200c   : > { %v5010_v45 = vrot.slane %v5003_v20, %v8355_v62 }
0x200e   : > { %v5012_v13 = vmul.f32 %v5010_v45, %v4998_v9  ;;  %v5013_v23 = vmul.f32 %v5010_v45, %v4999_v38  ;;  %v10883_v45 = vpop.permute.xlu1 %4952 }
0x200f   : > { %4985 = vrot.lane.b32.xlu1 %v4980_v34, %s12954_s5  ;;  %13452 = vst [vmem:[#allocation44_spill] sm:$0xff] %v10883_v45  ;;  %s13544_s5 = smov 13  }
0x2010   : > { %v5036_v39 = vpop.permute.xlu0 %5035 }
0x2011   : > { %v5043_v1 = vrot.slane %v5036_v39, %v8355_v62 }
0x2013   : > { %5016 = vrot.lane.b32.xlu1 %v5012_v13, %s12957_s19  ;;  %v5045_v14 = vmul.f32 %v5043_v1, %v5031_v58  ;;  %v5046_v9 = vmul.f32 %v5043_v1, %v5032_v56  ;;  %v13451_v13 = vmov 13   ;;  %v5064_v1 = vld [vmem:[#allocation2 + $0xc] sm:$0xf] }
0x2014   : > { %v5077_v34 = vpop.permute.xlu0 %5076 }
0x2015   : > { %v10895_v39 = vrot.slane %v5077_v34, 4 }
0x2017   : > { %5018 = vrot.lane.b32.xlu1 %v5013_v23, %s12957_s19  ;;  %v10901_v23 = vsel %vm12949_vm13, %v10895_v39, %v5077_v34  ;;  %v5116_v34 = vld [vmem:[%s12523_s6] sm:$0xf]  ;;  %vm12967_vm13 = vcmask 48128   ;;  %s12981_s19 = smov 103  }
0x2018   : > { %v5083_v59 = vmul.f32 %v10901_v23, %v10771_v44 }
0x201b   : > { %5049 = vrot.lane.b32.xlu1 %v5045_v14, %s12955_s24  ;;  %v5084_v14 = vmul.f32 %v10895_v39, %v5064_v1 }
0x201f   : > { %5051 = vrot.lane.b32.xlu1 %v5046_v9, %s12955_s24  ;;  %s12973_s24 = smov 87  }
0x2023   : > { %5087 = vperm.xlu1 %7903, %v5065_v19  }
0x2027   : > { %7904 = vset.pattern.permute.xlu1 %v13451_v13  ;;  %v13458_v13 = vmov 20  }
0x207d   : > { %v10885_v29 = vpop.permute.xlu1 %4983 }
0x207e   : > { %13453 = vst [vmem:[#allocation47_spill] sm:$0xff] %v10885_v29 }
0x2081   : > { %v10887_v24 = vpop.permute.xlu1 %4985 }
0x2085   : > { %v10889_v30 = vpop.permute.xlu1 %5016 }
0x2086   : > { %13454 = vst [vmem:[#allocation46_spill] sm:$0xff] %v10889_v30 }
0x2089   : > { %v10891_v60 = vpop.permute.xlu1 %5018 }
0x208a   : > { %13455 = vst [vmem:[#allocation49_spill] sm:$0xff] %v10891_v60 }
0x208d   : > { %v10893_v20 = vpop.permute.xlu1 %5049 }
0x208e   : > { %13456 = vst [vmem:[#allocation48_spill] sm:$0xff] %v10893_v20 }
0x2091   : > { %v10897_v38 = vpop.permute.xlu1 %5051 }
0x2092   : > { %13457 = vst [vmem:[#allocation50_spill] sm:$0xff] %v10897_v38 }
0x20a2   : > { %v5088_v58 = vpop.permute.xlu1 %5087 }
0x20a3   : > { %v5095_v56 = vrot.slane %v5088_v58, %v8355_v62 }
0x20a5   : > { %v5097_v9 = vmul.f32 %v5095_v56, %v5083_v59  ;;  %v5098_v19 = vmul.f32 %v5095_v56, %v5084_v14 }
0x20a7   : > { %5103 = vrot.lane.b32.xlu1 %v5098_v19, %s12977_s12  ;;  %5101 = vrot.lane.b32.xlu0 %v5097_v9, %s12977_s12  ;;  %v5115_v9 = vld [vmem:[#allocation2 + $0xc] sm:$0xf] }
0x20ab   : > { %5128 = vperm.xlu1 %7904, %v5116_v34   ;;  %5117 = vrot.lane.b32.xlu0 %v10854_v16, %s8119_s17  ;;  %s12958_s17 = smov 20  }
0x20af   : > { %7905 = vset.pattern.permute.xlu1 %v13458_v13 }
0x2119   : > { %v10914_v1 = vpop.permute.xlu0 %5101  ;;  %v10918_v14 = vpop.permute.xlu1 %5103 }
0x211a   : > { %13459 = vst [vmem:[#allocation52_spill] sm:$0xff] %v10914_v1  ;;  %13460 = vst [vmem:[#allocation51_spill] sm:$0xff] %v10918_v14  ;;  %v13461_v14 = vmov 27  }
0x211d   : > { %v5118_v58 = vpop.permute.xlu0 %5117 }
0x211e   : > { %v10916_v59 = vrot.slane %v5118_v58, 4 }
0x2120   : > { %v10921_v56 = vsel %vm5120_vm15, %v10916_v59, %v5118_v58  ;;  %v5125_v20 = vmul.f32 %v10916_v59, %v5115_v9  ;;  %v5157_v58 = vld [vmem:[%s12523_s6] sm:$0xf]  ;;  %vm5161_vm15 = vcmask 834560  }
0x2121   : > { %v5124_v34 = vmul.f32 %v10921_v56, %v10771_v44 }
0x212a   : > { %v5129_v19 = vpop.permute.xlu1 %5128 }
0x212b   : > { %v5136_v13 = vrot.slane %v5129_v19, %v8355_v62 }
0x212d   : > { %v5138_v30 = vmul.f32 %v5136_v13, %v5124_v34  ;;  %v5139_v1 = vmul.f32 %v5136_v13, %v5125_v20 }
0x212f   : > { %5144 = vrot.lane.b32.xlu1 %v5139_v1, %s12963_s21  ;;  %5142 = vrot.lane.b32.xlu0 %v5138_v30, %s12963_s21  ;;  %v5156_v1 = vld [vmem:[#allocation2 + $0xc] sm:$0xf] }
0x2133   : > { %5169 = vperm.xlu1 %7905, %v5157_v58   ;;  %5158 = vrot.lane.b32.xlu0 %v10854_v16, %s12990_s14 }
0x2137   : > { %7906 = vset.pattern.permute.xlu1 %v13461_v14 }
0x21a1   : > { %v10935_v9 = vpop.permute.xlu0 %5142  ;;  %v10939_v20 = vpop.permute.xlu1 %5144 }
0x21a2   : > { %13462 = vst [vmem:[#allocation54_spill] sm:$0xff] %v10935_v9  ;;  %13463 = vst [vmem:[#allocation53_spill] sm:$0xff] %v10939_v20 }
0x21a5   : > { %v5159_v19 = vpop.permute.xlu0 %5158 }
0x21a6   : > { %v10937_v13 = vrot.slane %v5159_v19, 4 }
0x21a8   : > { %v10943_v30 = vsel %vm5161_vm15, %v10937_v13, %v5159_v19  ;;  %v5166_v38 = vmul.f32 %v10937_v13, %v5156_v1  ;;  %v5198_v19 = vld [vmem:[%s12523_s6] sm:$0xf] }
0x21a9   : > { %v5165_v58 = vmul.f32 %v10943_v30, %v10771_v44  ;;  %v13464_v44 = vmov 0  }
0x21b2   : > { %v5170_v34 = vpop.permute.xlu1 %5169 }
0x21b3   : > { %v5177_v14 = vrot.slane %v5170_v34, %v8355_v62 }
0x21b5   : > { %v5179_v9 = vmul.f32 %v5177_v14, %v5165_v58  ;;  %v5180_v60 = vmul.f32 %v5177_v14, %v5166_v38 }
0x21b7   : > { %5185 = vrot.lane.b32.xlu1 %v5180_v60, %s12965_s0  ;;  %5183 = vrot.lane.b32.xlu0 %v5179_v9, %s12965_s0  ;;  %v5197_v60 = vld [vmem:[#allocation2 + $0x10] sm:$0xf] }
0x21bb   : > { %5210 = vperm.xlu1 %7906, %v5198_v19   ;;  %5199 = vrot.lane.b32.xlu0 %v10854_v16, %s12956_s16  ;;  %s12986_s16 = smov 119  }
0x21bf   : > { %7911 = vset.pattern.permute.xlu1 %v13464_v44 }
0x2229   : > { %v10957_v1 = vpop.permute.xlu0 %5183  ;;  %v10959_v14 = vpop.permute.xlu1 %5185 }
0x222a   : > { %13465 = vst [vmem:[#allocation56_spill] sm:$0xff] %v10957_v1  ;;  %v5238_v1 = vld [vmem:[%s12523_s6] sm:$0xf] }
0x222d   : > { %v5200_v34 = vpop.permute.xlu0 %5199 }
0x222e   : > { %v5201_v38 = vrot.slane %v5200_v34, 4 }
0x2230   : > { %v5203_v9 = vsel %vm12967_vm13, %v5201_v38, %v5200_v34  ;;  %v5207_v58 = vmul.f32 %v5201_v38, %v5197_v60  ;;  %v5271_v34 = vld [vmem:[%s12523_s6] sm:$0xf]  ;;  %v13466_v38 = vmov 41   ;;  %vm13472_vm13 = vcmask 785408  }
0x2231   : > { %v5206_v19 = vmul.f32 %v5203_v9, %v10704_v18  ;;  %v5362_v9 = vld [vmem:[%s12518_s1] ss:$8 sm:$0x3] }
0x223a   : > { %v5211_v20 = vpop.permute.xlu1 %5210 }
0x223b   : > { %v5218_v29 = vrot.slane %v5211_v20, %v8355_v62  ;;  %v13467_v20 = vmov 48  }
0x223d   : > { %v5220_v45 = vmul.f32 %v5218_v29, %v5206_v19  ;;  %v5221_v16 = vmul.f32 %v5218_v29, %v5207_v58  ;;  %v5304_v29 = vld [vmem:[%s12523_s6] sm:$0xf]  ;;  %v5239_v58 = vmul.f32 %v10901_v23, %v10704_v18 }
0x223f   : > { %5226 = vrot.lane.b32.xlu1 %v5221_v16, %s12958_s17  ;;  %5224 = vrot.lane.b32.xlu0 %v5220_v45, %s12958_s17  ;;  %v5335_v45 = vld [vmem:[%s12524_s7] sm:$0xf]  ;;  %v5370_v16 = vrot.slane %v5362_v9, %v13206_v8  ;;  %s8129_s17 = smov 39  }
0x2243   : > { %5243 = vperm.xlu0 %7907, %v5238_v1  }
0x2247   : > { %7908 = vset.pattern.permute.xlu0 %v13466_v38 }
0x2248   : > { %5276 = vperm.xlu0 %7908, %v5271_v34   ;;  %v5374_v34 = vrot.slane %v5362_v9, %v13207_v3  ;;  %v5270_v9 = vld [vmem:[#allocation2 + $0x10] sm:$0xf] }
0x224c   : > { %7909 = vset.pattern.permute.xlu0 %v13467_v20 }
0x224d   : > { %5309 = vperm.xlu0 %7909, %v5304_v29   ;;  %v5237_v29 = vld [vmem:[#allocation2 + $0x10] sm:$0xf] }
0x2251   : > { %7910 = vset.pattern.permute.xlu0 %v13464_v44  ;;  %v5375_v44 = vcombine.low %v5370_v16, %v5374_v34  ;;  %v3491_v16 = vld [vmem:[#allocation2 + $0xc] sm:$0xf]  ;;  %v5273_v34 = vmul.f32 %v5270_v9, %v10916_v59  ;;  %v5303_v59 = vld [vmem:[#allocation2 + $0x10] sm:$0xf] }
0x2252   : > { %5338 = vperm.xlu0 %7910, %v5335_v45  }
0x2256   : > { %7930 = vset.pattern.permute.xlu0 %v13304_v21  ;;  %v5240_v21 = vmul.f32 %v5237_v29, %v10895_v39 }
0x2257   : > { %5376 = vrot.lane.b32.xlu0 %v5375_v44, %s12981_s19  ;;  %s13584_s19 = smov 86  }
0x225b   : > { %5404 = vrot.lane.b32.xlu0 %v5375_v44, %s12982_s13  ;;  %s13546_s13 = smov 93  }
0x225f   : > { %5443 = vrot.lane.b32.xlu0 %v5375_v44, %s12984_s29  ;;  %s13553_s29 = smov 112  }
0x2263   : > { %5482 = vrot.lane.b32.xlu0 %v5375_v44, %s12986_s16  ;;  %s13554_s16 = smov 77  }
0x2267   : > { %5522 = vrot.lane.b32.xlu0 %v5375_v44, %s8129_s17  ;;  %s12988_s17 = smov 10  }
0x226b   : > { %5561 = vrot.lane.b32.xlu0 %v5375_v44, %s12973_s24  ;;  %s13576_s24 = smov 115  }
0x22b1   : > { %v10982_v1 = vpop.permute.xlu0 %5224 }
0x22b2   : > { %13468 = vst [vmem:[#allocation55_spill] sm:$0xff] %v10982_v1  ;;  %v5306_v1 = vmul.f32 %v5303_v59, %v10937_v13  ;;  %v5365_v13 = vld [vmem:[%s12525_s8] sm:$0xf]  ;;  %v3598_v59 = vrot.slane %v10546_v22, 4 }
0x22c2   : > { %v5244_v60 = vpop.permute.xlu0 %5243 }
0x22c3   : > { %v5251_v19 = vrot.slane %v5244_v60, %v8355_v62  ;;  %v5272_v60 = vmul.f32 %v10921_v56, %v10704_v18 }
0x22c5   : > { %v5253_v45 = vmul.f32 %v5251_v19, %v5239_v58  ;;  %v5254_v38 = vmul.f32 %v5251_v19, %v5240_v21  ;;  %v13470_v21 = vld [vmem:[#allocation65_spill] sm:$0xff] }
0x22c7   : > { %5257 = vrot.lane.b32.xlu1 %v5253_v45, %s12977_s12  ;;  %v5277_v20 = vpop.permute.xlu0 %5276  ;;  %v5305_v45 = vmul.f32 %v10943_v30, %v10704_v18  ;;  %v3659_v18 = vrot.slane %v10124_v55, %v8355_v62 }
0x22c8   : > { %v5284_v23 = vrot.slane %v5277_v20, %v8355_v62  ;;  %v13469_v20 = vld [vmem:[#allocation68_spill] sm:$0xff] }
0x22c9   : > { %v3505_v19 = vrot.slane %v13469_v20, 4 }
0x22ca   : > { %v5286_v58 = vmul.f32 %v5284_v23, %v5272_v60  ;;  %v5287_v29 = vmul.f32 %v5284_v23, %v5273_v34  ;;  %v3521_v60 = vrot.slane %v13470_v21, %v8355_v62  ;;  %v7606_v21 = vld [vmem:[%s12518_s1 + $0x1] ss:$8 sm:$0x3] }
0x22cb   : > { %5259 = vrot.lane.b32.xlu1 %v5254_v38, %s12977_s12  ;;  %v3510_v38 = vmul.f32 %v3505_v19, %v3491_v16  ;;  %v3506_v55 = vsel %vm3454_vm11, %v3505_v19, %v13469_v20  ;;  %v5403_v20 = vld [vmem:[%s12525_s8] sm:$0xf]  ;;  %s13540_s12 = smov 74  }
0x22cc   : > { %v5310_v39 = vpop.permute.xlu0 %5309 }
0x22cd   : > { %v5317_v56 = vrot.slane %v5310_v39, %v8355_v62  ;;  %v3645_v39 = vld [vmem:[#allocation2 + $0x10] sm:$0xf] }
0x22ce   : > { %v3648_v34 = vmul.f32 %v3645_v39, %v3505_v19 }
0x22cf   : > { %5290 = vrot.lane.b32.xlu1 %v5286_v58, %s12963_s21  ;;  %v5319_v9 = vmul.f32 %v5317_v56, %v5305_v45  ;;  %v3524_v58 = vmul.f32 %v3521_v60, %v3510_v38  ;;  %v5320_v16 = vmul.f32 %v5317_v56, %v5306_v1  ;;  %v3559_v56 = vrot.slane %v10543_v5, 4 }
0x22d0   : > { %v3662_v1 = vmul.f32 %v3659_v18, %v3648_v34  ;;  %v3558_v38 = vrot.slane %v10506_v48, 4  ;;  %v3597_v45 = vrot.slane %v10508_v10, 4  ;;  %v13471_v34 = vmov 7  }
0x22d1   : > { %v3565_v23 = vadd.f32 %v10543_v5, %v3524_v58  ;;  %v5644_v58 = vrot.slane %v7606_v21, %v13206_v8  ;;  %v7968_v5 = vld [vmem:[#allocation2 + $0x4] sm:$0xff] }
0x22d2   : > { %v3509_v39 = vmul.f32 %v7968_v5, %v3506_v55  ;;  %v3560_v19 = vsel %vm416_vm0, %v3558_v38, %v3559_v56  ;;  %v5442_v56 = vld [vmem:[%s12525_s8] sm:$0xf]  ;;  %v3691_v5 = vrot.slane %v10136_v50, 4 }
0x22d3   : > { %5292 = vrot.lane.b32.xlu1 %v5287_v29, %s12963_s21  ;;  %v3604_v30 = vadd.f32 %v10546_v22, %v3565_v23  ;;  %v5648_v23 = vrot.slane %v7606_v21, %v13207_v3  ;;  %v3636_v22 = vrot.slane %v10510_v2, 4  ;;  %s13473_s21 = smov 106  }
0x22d5   : > { %v3643_v29 = vadd.f32 %v10548_v27, %v3604_v30  ;;  %v11041_v30 = vcombine.low %v5644_v58, %v5648_v23  ;;  %v3690_v23 = vrot.slane %v10550_v52, 4 }
0x22d7   : > { %5323 = vrot.lane.b32.xlu1 %v5319_v9, %s12965_s0  ;;  %v3664_v9 = vadd.f32 %v3662_v1, %v3643_v29  ;;  %v3599_v29 = vsel %vm416_vm0, %v3597_v45, %v3598_v59  ;;  %v3561_v1 = vsel %vm13472_vm13, %v10506_v48, %v3560_v19  ;;  %v13475_v59 = vmov 14  }
0x22d8   : > { %v3600_v38 = vsel %vm13474_vm12, %v10508_v10, %v3599_v29  ;;  %vm13476_vm13 = vcmask 261120   ;;  %v13477_v10 = vmov 21   ;;  %vm13478_vm12 = vcmask 785408  }
0x22db   : > { %5325 = vrot.lane.b32.xlu1 %v5320_v16, %s12965_s0  ;;  %s12979_s0 = smov 7   ;;  %v3637_v16 = vrot.slane %v10548_v27, 4 }
0x22dc   : > { %5600 = vrot.lane.b32.xlu0 %v5375_v44, %s12979_s0  ;;  %v3523_v44 = vmul.f32 %v3521_v60, %v3509_v39  ;;  %s13541_s0 = smov 42  }
0x22dd   : > { %v3638_v27 = vsel %vm416_vm0, %v3636_v22, %v3637_v16  ;;  %v3692_v16 = vsel %vm416_vm0, %v3690_v23, %v3691_v5 }
0x22de   : > { %v3564_v45 = vadd.f32 %v3561_v1, %v3523_v44  ;;  %v3639_v48 = vsel %vm13476_vm13, %v10510_v2, %v3638_v27  ;;  %v3723_v2 = vrot.slane %v10512_v6, 4  ;;  %v3693_v29 = vsel %vm13478_vm12, %v10550_v52, %v3692_v16 }
0x22df   : > { %5387 = vperm.xlu1 %7911, %v5365_v13   ;;  %v3697_v13 = vadd.f32 %v10136_v50, %v3664_v9  ;;  %v7969_v9 = vld [vmem:[#allocation2 + $0x8] sm:$0xff]  ;;  %v3724_v50 = vrot.slane %v10315_v12, 4  ;;  %v3774_v1 = vrot.slane %v10514_v32, 4  ;;  %v3852_v52 = vrot.slane %v10518_v25, 4 }
0x22e0   : > { %5650 = vrot.lane.b32.xlu0 %v11041_v30, %s13473_s21  ;;  %v3647_v60 = vmul.f32 %v7969_v9, %v3506_v55  ;;  %v3603_v58 = vadd.f32 %v3600_v38, %v3564_v45  ;;  %v3813_v38 = vrot.slane %v10516_v41, 4  ;;  %vm13479_vm13 = vcmask 523264  }
0x22e1   : > { %v3730_v21 = vadd.f32 %v10315_v12, %v3697_v13  ;;  %v3775_v13 = vrot.slane %v10552_v61, 4  ;;  %v3725_v27 = vsel %vm416_vm0, %v3723_v2, %v3724_v50  ;;  %v3892_v9 = vrot.slane %v10558_v63, 4 }
0x22e2   : > { %v3642_v39 = vadd.f32 %v3639_v48, %v3603_v58  ;;  %v3661_v19 = vmul.f32 %v3659_v18, %v3647_v60  ;;  %vm13480_vm12 = vcmask 506880   ;;  %v4040_v50 = vrot.slane %v10522_v31, 4 }
0x22e3   : > { %7912 = vset.pattern.permute.xlu1 %v13471_v34  ;;  %v3776_v45 = vsel %vm416_vm0, %v3774_v1, %v3775_v13 }
0x22e4   : > { %5415 = vperm.xlu1 %7912, %v5403_v20   ;;  %v3781_v20 = vadd.f32 %v10552_v61, %v3730_v21  ;;  %v3663_v34 = vadd.f32 %v3661_v19, %v3642_v39  ;;  %v3853_v21 = vrot.slane %v10556_v0, 4  ;;  %v3726_v61 = vsel %vm13479_vm13, %v10512_v6, %v3725_v27 }
0x22e5   : > { %v3777_v60 = vsel %vm12969_vm4, %v10514_v32, %v3776_v45  ;;  %v3925_v6 = vrot.slane %v10321_v42, 4  ;;  %vm13481_vm13 = vcmask 244736   ;;  %v4118_v45 = vrot.slane %v10526_v36, 4 }
0x22e6   : > { %v3820_v22 = vadd.f32 %v10554_v7, %v3781_v20  ;;  %v3696_v44 = vadd.f32 %v3693_v29, %v3663_v34  ;;  %v3854_v58 = vsel %vm416_vm0, %v3852_v52, %v3853_v21  ;;  %v4158_v52 = vrot.slane %v10572_v15, 4 }
0x22e7   : > { %v3855_v32 = vsel %vm13480_vm12, %v10518_v25, %v3854_v58  ;;  %v4223_v58 = vrot.slane %v10576_v28, 4 }
0x22e8   : > { %7913 = vset.pattern.permute.xlu1 %v13475_v59  ;;  %v3859_v55 = vadd.f32 %v10556_v0, %v3820_v22  ;;  %v3729_v59 = vadd.f32 %v3726_v61, %v3696_v44  ;;  %v3924_v0 = vrot.slane %v10560_v35, 4  ;;  %v3990_v22 = vrot.slane %v10564_v4, 4 }
0x22e9   : > { %5454 = vperm.xlu1 %7913, %v5442_v56   ;;  %v3814_v56 = vrot.slane %v10554_v7, 4  ;;  %v3891_v7 = vrot.slane %v10520_v37, 4  ;;  %v4079_v44 = vrot.slane %v10524_v33, 4 }
0x22ea   : > { %v3898_v18 = vadd.f32 %v10558_v63, %v3859_v55  ;;  %v3780_v39 = vadd.f32 %v3777_v60, %v3729_v59  ;;  %v3957_v63 = vrot.slane %v10562_v49, 4  ;;  %v3926_v16 = vsel %vm416_vm0, %v3924_v0, %v3925_v6 }
0x22eb   : > { %v3815_v48 = vsel %vm416_vm0, %v3813_v38, %v3814_v56  ;;  %v3893_v20 = vsel %vm416_vm0, %v3891_v7, %v3892_v9  ;;  %v3927_v25 = vsel %vm12969_vm4, %v10560_v35, %v3926_v16  ;;  %v4119_v56 = vrot.slane %v10570_v46, 4 }
0x22ec   : > { %v3931_v12 = vadd.f32 %v10321_v42, %v3898_v18  ;;  %v3816_v5 = vsel %vm12970_vm1, %v10516_v41, %v3815_v48  ;;  %v3991_v41 = vrot.slane %v10346_v53, 4  ;;  %v3894_v42 = vsel %vm13481_vm13, %v10520_v37, %v3893_v20 }
0x22ed   : > { %7914 = vset.pattern.permute.xlu1 %v13477_v10  ;;  %v3958_v10 = vrot.slane %v10333_v57, 4  ;;  %v3819_v19 = vadd.f32 %v3816_v5, %v3780_v39  ;;  %v4157_v59 = vrot.slane %v10528_v47, 4  ;;  %v4190_v48 = vrot.slane %v10574_v26, 4 }
0x22ee   : > { %v3964_v23 = vadd.f32 %v10333_v57, %v3931_v12  ;;  %v4041_v57 = vrot.slane %v10566_v51, 4  ;;  %v3992_v1 = vsel %vm416_vm0, %v3990_v22, %v3991_v41  ;;  %vm13482_vm13 = vcmask 752640   ;;  %v13485_v22 = vld [vmem:[#allocation14_spill] sm:$0xff] }
0x22ef   : > { %v3858_v2 = vadd.f32 %v3855_v32, %v3819_v19  ;;  %v3959_v55 = vsel %vm416_vm0, %v3957_v63, %v3958_v10  ;;  %v3993_v38 = vsel %vm13480_vm12, %v10564_v4, %v3992_v1  ;;  %v4191_v4 = vrot.slane %v10393_v43, 4  ;;  %v13484_v10 = vld [vmem:[#allocation27_spill] sm:$0xff]  ;;  %v13486_v41 = vld [vmem:[#allocation30_spill] sm:$0xff] }
0x22f0   : > { %v3997_v34 = vadd.f32 %v10346_v53, %v3964_v23  ;;  %v4080_v53 = vrot.slane %v10568_v54, 4  ;;  %v3960_v37 = vsel %vm12970_vm1, %v10562_v49, %v3959_v55  ;;  %v4159_v60 = vsel %vm416_vm0, %v4157_v59, %v4158_v52  ;;  %v13495_v59 = vld [vmem:[#allocation20_spill] sm:$0xff] }
0x22f1   : > { %v3897_v13 = vadd.f32 %v3894_v42, %v3858_v2  ;;  %vm13483_vm12 = vcmask 490496   ;;  %v4224_v0 = vrot.slane %v10405_v40, 4  ;;  %v4192_v5 = vsel %vm416_vm0, %v4190_v48, %v4191_v4 }
0x22f2   : > { %v4047_v29 = vadd.f32 %v10566_v51, %v3997_v34  ;;  %v4042_v51 = vsel %vm416_vm0, %v4040_v50, %v4041_v57  ;;  %v4256_v6 = vrot.slane %v10578_v11, 4  ;;  %v4257_v39 = vrot.slane %v10418_v17, 4  ;;  %v13487_v57 = vld [vmem:[#allocation13_spill] sm:$0xff] }
0x22f3   : > { %v3930_v27 = vadd.f32 %v3927_v25, %v3897_v13  ;;  %v4043_v12 = vsel %vm1293_vm7, %v10522_v31, %v4042_v51  ;;  %v4307_v32 = vrot.slane %v13484_v10, 4  ;;  %v4306_v34 = vrot.slane %v13485_v22, 4  ;;  %v13489_v25 = vld [vmem:[#allocation41_spill] sm:$0xff] }
0x22f4   : > { %v4086_v18 = vadd.f32 %v10568_v54, %v4047_v29  ;;  %v4081_v54 = vsel %vm416_vm0, %v4079_v44, %v4080_v53  ;;  %v4258_v16 = vsel %vm416_vm0, %v4256_v6, %v4257_v39  ;;  %v4346_v42 = vrot.slane %v13486_v41, 4  ;;  %v13490_v53 = vld [vmem:[#allocation24_spill] sm:$0xff]  ;;  %v13498_v39 = vld [vmem:[#allocation21_spill] sm:$0xff] }
0x22f5   : > { %v3963_v21 = vadd.f32 %v3960_v37, %v3930_v27  ;;  %v4082_v9 = vsel %vm13482_vm13, %v10524_v33, %v4081_v54  ;;  %v4160_v33 = vsel %vm2870_vm5, %v10528_v47, %v4159_v60  ;;  %vm13488_vm5 = vmmov %vm13483_vm12  ;;  %v4308_v29 = vsel %vm416_vm0, %v4306_v34, %v4307_v32 }
0x22f6   : > { %v4125_v35 = vadd.f32 %v10570_v46, %v4086_v18  ;;  %v4120_v46 = vsel %vm416_vm0, %v4118_v45, %v4119_v56  ;;  %v4385_v50 = vrot.slane %v13489_v25, 4  ;;  %v4384_v18 = vrot.slane %v13490_v53, 4  ;;  %v13492_v56 = vld [vmem:[#allocation18_spill] sm:$0xff] }
0x22f7   : > { %v3996_v61 = vadd.f32 %v3993_v38, %v3963_v21  ;;  %v4121_v31 = vsel %vm13483_vm12, %v10526_v36, %v4120_v46  ;;  %v4193_v36 = vsel %vm1293_vm7, %v10574_v26, %v4192_v5  ;;  %v4259_v26 = vsel %vm13488_vm5, %v10578_v11, %v4258_v16  ;;  %v13491_v11 = vld [vmem:[#allocation17_spill] sm:$0xff]  ;;  %v13493_v38 = vld [vmem:[#allocation10_spill] sm:$0xff] }
0x22f8   : > { %v4164_v49 = vadd.f32 %v10572_v15, %v4125_v35  ;;  %v4386_v27 = vsel %vm416_vm0, %v4384_v18, %v4385_v50  ;;  %v4412_v51 = vrot.slane %v13491_v11, 4  ;;  %v4444_v35 = vrot.slane %v13492_v56, 4 }
0x22f9   : > { %v4046_v7 = vadd.f32 %v4043_v12, %v3996_v61  ;;  %v4443_v45 = vrot.slane %v13493_v38, 4  ;;  %v4387_v61 = vsel %vm12971_vm2, %v13490_v53, %v4386_v27  ;;  %v4510_v46 = vrot.slane %v13495_v59, 4 }
0x22fa   : > { %v4197_v15 = vadd.f32 %v10393_v43, %v4164_v49  ;;  %v4225_v43 = vsel %vm416_vm0, %v4223_v58, %v4224_v0  ;;  %v13494_v49 = vld [vmem:[#allocation15_spill] sm:$0xff]  ;;  %vm4562_vm7 = vcmask 982016   ;;  %vm4603_vm12 = vcmask 719872  }
0x22fb   : > { %v4085_v23 = vadd.f32 %v4082_v9, %v4046_v7  ;;  %v4226_v47 = vsel %vm13482_vm13, %v10576_v28, %v4225_v43  ;;  %v4477_v12 = vrot.slane %v13494_v49, 4  ;;  %v4445_v9 = vsel %vm416_vm0, %v4443_v45, %v4444_v35  ;;  %v13496_v7 = vld [vmem:[#allocation12_spill] sm:$0xff]  ;;  %v13497_v58 = vld [vmem:[#allocation19_spill] sm:$0xff] }
0x22fc   : > { %v4230_v63 = vadd.f32 %v10405_v40, %v4197_v15  ;;  %v4345_v40 = vrot.slane %v13487_v57, 4  ;;  %v4476_v60 = vrot.slane %v13496_v7, 4  ;;  %v4413_v15 = vsel %vm3454_vm11, %v4412_v51, %v13491_v11  ;;  %v13499_v43 = vld [vmem:[#allocation23_spill] sm:$0xff]  ;;  %v13506_v11 = vld [vmem:[#allocation25_spill] sm:$0xff] }
0x22fd   : > { %v4124_v20 = vadd.f32 %v4121_v31, %v4085_v23  ;;  %v4509_v31 = vrot.slane %v13497_v58, 4  ;;  %v4446_v6 = vsel %vm3213_vm6, %v13493_v38, %v4445_v9  ;;  %vm4681_vm13 = vcmask 195584   ;;  %v13507_v38 = vld [vmem:[#allocation32_spill] sm:$0xff] }
0x22fe   : > { %v4263_v55 = vadd.f32 %v10418_v17, %v4230_v63  ;;  %v4347_v28 = vsel %vm416_vm0, %v4345_v40, %v4346_v42  ;;  %v4309_v17 = vsel %vm3213_vm6, %v13485_v22, %v4308_v29  ;;  %v4478_v5 = vsel %vm416_vm0, %v4476_v60, %v4477_v12  ;;  %v13501_v22 = vld [vmem:[#allocation16_spill] sm:$0xff]  ;;  %v13503_v40 = vld [vmem:[#allocation22_spill] sm:$0xff] }
0x22ff   : > { %v4163_v19 = vadd.f32 %v4160_v33, %v4124_v20  ;;  %v4348_v21 = vsel %vm3295_vm10, %v13487_v57, %v4347_v28  ;;  %v4511_v33 = vsel %vm416_vm0, %v4509_v31, %v4510_v46  ;;  %v4560_v20 = vrot.slane %v13498_v39, 4 }
0x2300   : > { %v4313_v1 = vadd.f32 %v13484_v10, %v4263_v55  ;;  %v4559_v63 = vrot.slane %v13499_v43, 4  ;;  %v4479_v32 = vsel %vm3295_vm10, %v13496_v7, %v4478_v5  ;;  %v4600_v34 = vrot.slane %v13501_v22, 4  ;;  %v13502_v55 = vld [vmem:[#allocation29_spill] sm:$0xff]  ;;  %v13511_v7 = vld [vmem:[#allocation35_spill] sm:$0xff]  ;;  %v13512_v5 = vld [vmem:[#allocation40_spill] sm:$0xff] }
0x2301   : > { %v4196_v2 = vadd.f32 %v4193_v36, %v4163_v19  ;;  %v13500_v19 = vld [vmem:[#allocation26_spill] sm:$0xff]  ;;  %v4512_v42 = vsel %vm12971_vm2, %v13497_v58, %v4511_v33  ;;  %v4641_v57 = vrot.slane %v13502_v55, 4  ;;  %vm4643_vm5 = vcmask 457728   ;;  %v13513_v33 = vld [vmem:[#allocation36_spill] sm:$0xff] }
0x2302   : > { %v4352_v44 = vadd.f32 %v13486_v41, %v4313_v1  ;;  %v4601_v16 = vrot.slane %v13500_v19, 4  ;;  %v4713_v45 = vrot.slane %v13507_v38, 4  ;;  %v4779_v60 = vrot.slane %v13511_v7, 4 }
0x2303   : > { %v4229_v13 = vadd.f32 %v4226_v47, %v4196_v2  ;;  %v4561_v2 = vsel %vm416_vm0, %v4559_v63, %v4560_v20  ;;  %vm12992_vm4 = vcmask 949248   ;;  %vm12975_vm1 = vcmask 687104  }
0x2304   : > { %v4391_v54 = vadd.f32 %v13489_v25, %v4352_v44  ;;  %v13504_v25 = vld [vmem:[#allocation31_spill] sm:$0xff]  ;;  %v4602_v1 = vsel %vm416_vm0, %v4600_v34, %v4601_v16  ;;  %v4563_v18 = vsel %vm4562_vm7, %v13499_v43, %v4561_v2  ;;  %vm12991_vm2 = vcmask 162816  }
0x2305   : > { %v4262_v37 = vadd.f32 %v4259_v26, %v4229_v13  ;;  %v4640_v26 = vrot.slane %v13503_v40, 4  ;;  %v4680_v50 = vrot.slane %v13504_v25, 4  ;;  %v4604_v27 = vsel %vm4603_vm12, %v13501_v22, %v4602_v1  ;;  %v13517_v2 = vld [vmem:[#allocation39_spill] sm:$0xff] }
0x2306   : > { %v4417_v4 = vadd.f32 %v4412_v51, %v4391_v54 }
0x2307   : > { %v4312_v52 = vadd.f32 %v4309_v17, %v4262_v37  ;;  %v4642_v37 = vsel %vm416_vm0, %v4640_v26, %v4641_v57  ;;  %v13505_v17 = vld [vmem:[#allocation28_spill] sm:$0xff]  ;;  %v4683_v51 = vsel %vm4681_vm13, %v4680_v50, %v13506_v11  ;;  %v4682_v9 = vsel %vm4681_vm13, %v4680_v50, %v13504_v25 }
0x2308   : > { %v4450_v23 = vadd.f32 %v13492_v56, %v4417_v4  ;;  %v4714_v44 = vrot.slane %v13505_v17, 4  ;;  %vm12972_vm13 = vcmask 179200  }
0x2309   : > { %v4351_v48 = vadd.f32 %v4348_v21, %v4312_v52  ;;  %v13508_v21 = vld [vmem:[#allocation33_spill] sm:$0xff]  ;;  %v4644_v52 = vsel %vm4643_vm5, %v13503_v40, %v4642_v37 }
0x230a   : > { %v4483_v10 = vadd.f32 %v13494_v49, %v4450_v23  ;;  %v4747_v54 = vrot.slane %v13508_v21, 4  ;;  %v13509_v49 = vld [vmem:[#allocation38_spill] sm:$0xff]  ;;  %v4715_v46 = vsel %vm416_vm0, %v4713_v45, %v4714_v44  ;;  %v13518_v40 = vld [vmem:[#allocation45_spill] sm:$0xff] }
0x230b   : > { %v4390_v0 = vadd.f32 %v4387_v61, %v4351_v48  ;;  %v4780_v12 = vrot.slane %v13509_v49, 4  ;;  %v13510_v48 = vld [vmem:[#allocation34_spill] sm:$0xff]  ;;  %v4954_v26 = vrot.slane %v13518_v40, 4 }
0x230c   : > { %v4516_v41 = vadd.f32 %v13495_v59, %v4483_v10  ;;  %v4746_v4 = vrot.slane %v13510_v48, 4 }
0x230d   : > { %v4416_v36 = vadd.f32 %v4413_v15, %v4390_v0  ;;  %v4716_v0 = vsel %vm4562_vm7, %v13507_v38, %v4715_v46  ;;  %v4781_v23 = vsel %vm416_vm0, %v4779_v60, %v4780_v12  ;;  %vm4834_vm7 = vcmask 965632  }
0x230e   : > { %v4567_v13 = vadd.f32 %v13498_v39, %v4516_v41  ;;  %v4748_v31 = vsel %vm416_vm0, %v4746_v4, %v4747_v54  ;;  %v4831_v39 = vrot.slane %v13513_v33, 4  ;;  %v4782_v34 = vsel %vm4643_vm5, %v13511_v7, %v4781_v23  ;;  %v13516_v41 = vld [vmem:[#allocation43_spill] sm:$0xff]  ;;  %v13524_v4 = vld [vmem:[#allocation48_spill] sm:$0xff] }
0x230f   : > { %v4449_v47 = vadd.f32 %v4446_v6, %v4416_v36  ;;  %v4832_v6 = vrot.slane %v13512_v5, 4  ;;  %v4749_v63 = vsel %vm4603_vm12, %v13510_v48, %v4748_v31  ;;  %v13514_v36 = vld [vmem:[#allocation42_spill] sm:$0xff]  ;;  %vm4875_vm12 = vcmask 703488  }
0x2310   : > { %v4608_v28 = vadd.f32 %v13500_v19, %v4567_v13  ;;  %v4873_v10 = vrot.slane %v13514_v36, 4  ;;  %vm4916_vm5 = vcmask 441344   ;;  %v4956_v48 = vsel %vm12972_vm13, %v4954_v26, %v13518_v40 }
0x2311   : > { %v4482_v29 = vadd.f32 %v4479_v32, %v4449_v47  ;;  %v13515_v32 = vld [vmem:[#allocation37_spill] sm:$0xff]  ;;  %v4833_v47 = vsel %vm416_vm0, %v4831_v39, %v4832_v6 }
0x2312   : > { %v4648_v35 = vadd.f32 %v13502_v55, %v4608_v28  ;;  %v4872_v19 = vrot.slane %v13515_v32, 4  ;;  %v4913_v55 = vrot.slane %v13517_v2, 4  ;;  %v4835_v13 = vsel %vm4834_vm7, %v13513_v33, %v4833_v47  ;;  %v5227_v28 = vpop.permute.xlu1 %5226  ;;  %v13529_v47 = vld [vmem:[#allocation56_spill] sm:$0xff] }
0x2313   : > { %v4515_v53 = vadd.f32 %v4512_v42, %v4482_v29  ;;  %v4914_v42 = vrot.slane %v13516_v41, 4 }
0x2314   : > { %v4687_v59 = vadd.f32 %v4683_v51, %v4648_v35  ;;  %v4874_v25 = vsel %vm416_vm0, %v4872_v19, %v4873_v10  ;;  %v13520_v51 = vld [vmem:[#allocation47_spill] sm:$0xff]  ;;  %v13521_v35 = vld [vmem:[#allocation49_spill] sm:$0xff] }
0x2315   : > { %v4566_v56 = vadd.f32 %v4563_v18, %v4515_v53  ;;  %v4915_v53 = vsel %vm416_vm0, %v4913_v55, %v4914_v42  ;;  %v4988_v18 = vrot.slane %v10887_v24, 4  ;;  %v4876_v37 = vsel %vm4875_vm12, %v13515_v32, %v4874_v25 }
0x2316   : > { %v4720_v58 = vadd.f32 %v13505_v17, %v4687_v59  ;;  %v13519_v17 = vld [vmem:[#allocation44_spill] sm:$0xff]  ;;  %v5021_v38 = vrot.slane %v13521_v35, 4  ;;  %v4917_v45 = vsel %vm4916_vm5, %v13517_v2, %v4915_v53  ;;  %v13530_v2 = vld [vmem:[#allocation55_spill] sm:$0xff] }
0x2317   : > { %v4607_v61 = vadd.f32 %v4604_v27, %v4566_v56  ;;  %v4957_v44 = vsel %vm12972_vm13, %v4954_v26, %v13519_v17  ;;  %v4987_v56 = vrot.slane %v13520_v51, 4  ;;  %v5228_v55 = vrot.slane %v13530_v2, 4 }
0x2318   : > { %v4753_v43 = vadd.f32 %v13508_v21, %v4720_v58  ;;  %v13522_v21 = vld [vmem:[#allocation50_spill] sm:$0xff]  ;;  %vm12976_vm13 = vcmask 424960  }
0x2319   : > { %v4647_v15 = vadd.f32 %v4644_v52, %v4607_v61  ;;  %v5054_v54 = vrot.slane %v13522_v21, 4  ;;  %v4989_v12 = vsel %vm416_vm0, %v4987_v56, %v4988_v18  ;;  %v13523_v61 = vld [vmem:[#allocation46_spill] sm:$0xff]  ;;  %v5231_v18 = vsel %vm12991_vm2, %v5228_v55, %v5227_v28 }
0x231a   : > { %v4786_v16 = vadd.f32 %v13509_v49, %v4753_v43  ;;  %v5020_v59 = vrot.slane %v13523_v61, 4  ;;  %v4990_v58 = vsel %vm4834_vm7, %v13520_v51, %v4989_v12 }
0x231b   : > { %v4686_v20 = vadd.f32 %v4682_v9, %v4647_v15  ;;  %v5053_v9 = vrot.slane %v13524_v4, 4 }
0x231c   : > { %v4839_v29 = vadd.f32 %v13512_v5, %v4786_v16  ;;  %v5022_v15 = vsel %vm416_vm0, %v5020_v59, %v5021_v38  ;;  %v13526_v5 = vld [vmem:[#allocation52_spill] sm:$0xff] }
0x231d   : > { %v4719_v22 = vadd.f32 %v4716_v0, %v4686_v20  ;;  %v5055_v31 = vsel %vm416_vm0, %v5053_v9, %v5054_v54  ;;  %v13525_v0 = vld [vmem:[#allocation51_spill] sm:$0xff]  ;;  %v5105_v6 = vrot.slane %v13526_v5, 4  ;;  %v5023_v43 = vsel %vm4875_vm12, %v13523_v61, %v5022_v15 }
0x231e   : > { %v4880_v1 = vadd.f32 %v13514_v36, %v4839_v29  ;;  %v5106_v23 = vrot.slane %v13525_v0, 4  ;;  %v13528_v36 = vld [vmem:[#allocation54_spill] sm:$0xff]  ;;  %v5056_v16 = vsel %vm4916_vm5, %v13524_v4, %v5055_v31 }
0x231f   : > { %v4752_v57 = vadd.f32 %v4749_v63, %v4719_v22  ;;  %v13527_v63 = vld [vmem:[#allocation53_spill] sm:$0xff]  ;;  %v5146_v10 = vrot.slane %v13528_v36, 4 }
0x2320   : > { %v4921_v11 = vadd.f32 %v13516_v41, %v4880_v1  ;;  %v5107_v22 = vsel %vm416_vm0, %v5105_v6, %v5106_v23  ;;  %v5187_v41 = vrot.slane %v13529_v47, 4 }
0x2321   : > { %v4785_v50 = vadd.f32 %v4782_v34, %v4752_v57  ;;  %v5188_v34 = vrot.slane %v10959_v14, 4  ;;  %v5109_v25 = vsel %vm12992_vm4, %v13526_v5, %v5107_v22 }
0x2322   : > { %v4961_v49 = vadd.f32 %v4957_v44, %v4921_v11 }
0x2323   : > { %v4838_v27 = vadd.f32 %v4835_v13, %v4785_v50  ;;  %v5189_v13 = vsel %vm416_vm0, %v5187_v41, %v5188_v34 }
0x2324   : > { %v4994_v60 = vadd.f32 %v10887_v24, %v4961_v49  ;;  %v5147_v24 = vrot.slane %v13527_v63, 4  ;;  %v5191_v51 = vsel %vm12976_vm13, %v13529_v47, %v5189_v13 }
0x2325   : > { %v4879_v52 = vadd.f32 %v4876_v37, %v4838_v27 }
0x2326   : > { %v5027_v39 = vadd.f32 %v13521_v35, %v4994_v60  ;;  %v5148_v26 = vsel %vm416_vm0, %v5146_v10, %v5147_v24 }
0x2327   : > { %v4920_v7 = vadd.f32 %v4917_v45, %v4879_v52  ;;  %v5150_v53 = vsel %vm12975_vm1, %v13528_v36, %v5148_v26  ;;  %v5339_v52 = vpop.permute.xlu0 %5338  ;;  %v5520_v26 = vld [vmem:[#allocation2 + $0x10] sm:$0xf] }
0x2328   : > { %v5060_v32 = vadd.f32 %v13522_v21, %v5027_v39  ;;  %v5230_v21 = vsel %vm12991_vm2, %v5228_v55, %v13530_v2  ;;  %v5521_v39 = vld [vmem:[%s12525_s8] sm:$0xf]  ;;  %vm12995_vm2 = vcmask 187392  }
0x2329   : > { %v4960_v33 = vadd.f32 %v4956_v48, %v4920_v7  ;;  %v5346_v48 = vrot.slane %v5339_v52, %v8355_v62 }
0x232a   : > { %v5113_v40 = vadd.f32 %v13525_v0, %v5060_v32 }
0x232b   : > { %v4993_v19 = vadd.f32 %v4990_v58, %v4960_v33  ;;  %v5481_v33 = vld [vmem:[%s12525_s8] sm:$0xf]  ;;  %v11321_v10 = vpop.permute.xlu0 %5376 }
0x232c   : > { %v5154_v50 = vadd.f32 %v13527_v63, %v5113_v40 }
0x232d   : > { %v5026_v42 = vadd.f32 %v5023_v43, %v4993_v19  ;;  %v13532_v43 = vmov 35  }
0x232e   : > { %v5195_v44 = vadd.f32 %v10959_v14, %v5154_v50 }
0x232f   : > { %v5059_v29 = vadd.f32 %v5056_v16, %v5026_v42  ;;  %v11323_v19 = vpop.permute.xlu0 %5404 }
0x2330   : > { %v5235_v35 = vadd.f32 %v5231_v18, %v5195_v44 }
0x2331   : > { %v5112_v17 = vadd.f32 %v5109_v25, %v5059_v29 }
0x2333   : > { %v5153_v56 = vadd.f32 %v5150_v53, %v5112_v17  ;;  %v11325_v47 = vpop.permute.xlu0 %5443  ;;  %v13533_v17 = vmov 42  }
0x2335   : > { %v5194_v28 = vadd.f32 %v5191_v51, %v5153_v56 }
0x2337   : > { %v5234_v61 = vadd.f32 %v5230_v21, %v5194_v28  ;;  %v11332_v2 = vpop.permute.xlu0 %5482  ;;  %v5599_v28 = vld [vmem:[%s12525_s8] sm:$0xf] }
0x2339   : > { %v5258_v46 = vpop.permute.xlu1 %5257 }
0x233a   : > { %v5261_v27 = vrot.slane %v5258_v46, 4 }
0x233b   : > { %v5523_v55 = vpop.permute.xlu0 %5522 }
0x233d   : > { %v5260_v20 = vpop.permute.xlu1 %5259 }
0x233e   : > { %v5262_v1 = vrot.slane %v5260_v20, 4  ;;  %v5268_v49 = vadd.f32 %v5260_v20, %v5235_v35  ;;  %v13531_v20 = vmov 28  }
0x233f   : > { %v5562_v44 = vpop.permute.xlu0 %5561 }
0x2340   : > { %v5263_v38 = vsel %vm416_vm0, %v5261_v27, %v5262_v1  ;;  %v5563_v27 = vrot.slane %v5562_v44, 4 }
0x2341   : > { %v5291_v57 = vpop.permute.xlu1 %5290  ;;  %v5264_v14 = vsel %vm12992_vm4, %v5258_v46, %v5263_v38  ;;  %vm13006_vm4 = vcmask 580608  }
0x2342   : > { %v5294_v45 = vrot.slane %v5291_v57, 4  ;;  %v5267_v58 = vadd.f32 %v5264_v14, %v5234_v61  ;;  %v5598_v61 = vld [vmem:[#allocation2 + $0x14] sm:$0xf] }
0x2345   : > { %v5293_v37 = vpop.permute.xlu1 %5292 }
0x2346   : > { %v5295_v11 = vrot.slane %v5293_v37, 4  ;;  %v5301_v59 = vadd.f32 %v5293_v37, %v5268_v49  ;;  %v5560_v37 = vld [vmem:[%s12525_s8] sm:$0xf]  ;;  %v13534_v49 = vmov 1  }
0x2348   : > { %v5296_v12 = vsel %vm416_vm0, %v5294_v45, %v5295_v11  ;;  %v5559_v11 = vld [vmem:[#allocation2 + $0x10] sm:$0xf] }
0x2349   : > { %v5324_v54 = vpop.permute.xlu1 %5323  ;;  %v5297_v9 = vsel %vm12975_vm1, %v5291_v57, %v5296_v12  ;;  %v5524_v57 = vrot.slane %v5523_v55, 4  ;;  %vm5525_vm1 = vcmask 318464   ;;  %v5569_v35 = vmul.f32 %v5563_v27, %v5559_v11 }
0x234a   : > { %v5327_v7 = vrot.slane %v5324_v54, 4  ;;  %v5300_v0 = vadd.f32 %v5297_v9, %v5267_v58 }
0x234b   : > { %v5526_v29 = vsel %vm5525_vm1, %v5524_v57, %v5523_v55  ;;  %v5530_v25 = vmul.f32 %v5524_v57, %v5520_v26  ;;  %vm12993_vm1 = vcmask 711680   ;;  %v11396_v57 = vld [vmem:[#allocation2] sm:$0xff] }
0x234c   : > { %v5565_v56 = vsel %vm12993_vm1, %v5563_v27, %v5562_v44  ;;  %vm5485_vm1 = vcmask 973824  }
0x234d   : > { %v5326_v4 = vpop.permute.xlu1 %5325 }
0x234e   : > { %v5328_v60 = vrot.slane %v5326_v4, 4  ;;  %v5334_v15 = vadd.f32 %v5326_v4, %v5301_v59  ;;  %v5601_v12 = vpop.permute.xlu0 %5600 }
0x234f   : > { %v5602_v14 = vrot.slane %v5601_v12, 4 }
0x2350   : > { %v5329_v31 = vsel %vm416_vm0, %v5327_v7, %v5328_v60  ;;  %v5349_v23 = vadd.f32 %v5346_v48, %v5334_v15 }
0x2351   : > { %v5330_v5 = vsel %vm12976_vm13, %v5324_v54, %v5329_v31  ;;  %vm12994_vm13 = vcmask 56320   ;;  %v5608_v9 = vmul.f32 %v5602_v14, %v5598_v61 }
0x2352   : > { %v5333_v6 = vadd.f32 %v5330_v5, %v5300_v0  ;;  %5354 = vrot.lane.b32.xlu1 %v5349_v23, %s12990_s14  ;;  %v5604_v4 = vsel %vm12994_vm13, %v5602_v14, %v5601_v12  ;;  %v5639_v0 = vld [vmem:[%s12525_s8] sm:$0xf]  ;;  %v13535_v5 = vmov 8   ;;  %vm13558_vm13 = vcmask 236544  }
0x2353   : > { %v5688_v23 = vld [vmem:[%s12525_s8] sm:$0xf] }
0x2354   : > { %v5348_v46 = vadd.f32 %v5346_v48, %v5333_v6  ;;  %v5726_v6 = vld [vmem:[%s12525_s8] sm:$0xf] }
0x2356   : > { %5352 = vrot.lane.b32.xlu1 %v5348_v46, %s12990_s14  ;;  %v13536_v46 = vmov 15   ;;  %s13551_s14 = smov 80  }
0x235a   : > { %5493 = vperm.xlu1 %7914, %v5481_v33   ;;  %v5764_v33 = vld [vmem:[%s12525_s8] sm:$0xf] }
0x235e   : > { %7915 = vset.pattern.permute.xlu1 %v13531_v20  ;;  %v11315_v63 = vpop.permute.xlu1 %5387  ;;  %v5803_v20 = vld [vmem:[%s12525_s8] sm:$0xf] }
0x235f   : > { %5533 = vperm.xlu1 %7915, %v5521_v39   ;;  %v13537_v39 = vmov 22  }
0x2363   : > { %7916 = vset.pattern.permute.xlu1 %v13532_v43  ;;  %v11317_v24 = vpop.permute.xlu1 %5415  ;;  %v13538_v43 = vmov 29  }
0x2368   : > { %v11319_v36 = vpop.permute.xlu1 %5454 }
0x23c4   : > { %v5355_v32 = vpop.permute.xlu1 %5354 }
0x23c5   : > { %v5357_v22 = vrot.slane %v5355_v32, 4  ;;  %v13539_v32 = vmov 36  }
0x23c8   : > { %v5353_v16 = vpop.permute.xlu1 %5352 }
0x23c9   : > { %v5356_v34 = vrot.slane %v5353_v16, 4 }
0x23cb   : > { %v5358_v41 = vsel %vm416_vm0, %v5356_v34, %v5357_v22 }
0x23cc   : > { %v11329_v42 = vsel %vm5161_vm15, %v5353_v16, %v5358_v41  ;;  %v11387_v16 = vpop.permute.xlu0 %5650 }
0x23cd   : > { %5361 = vst [vmem:[#allocation2 + $0x8] sm:$0xff] %v11329_v42  ;;  %v5529_v13 = vmul.f32 %v5526_v29, %v11329_v42  ;;  %v5568_v45 = vmul.f32 %v5565_v56, %v11329_v42  ;;  %v5652_v22 = vrot.slane %v11387_v16, 4 }
0x23cf   : > { %v5653_v41 = vsel %vm3254_vm3, %v5652_v22, %v11387_v16 }
0x23d0   : > { %v5656_v26 = vmul.f32 %v11396_v57, %v5653_v41 }
0x23d4   : > { %v11359_v48 = vld [vmem:[#allocation2 + $0xc] sm:$0xff]  ;;  %v11430_v56 = vld [vmem:[#allocation2 + $0x4] sm:$0xff] }
0x23d5   : > { %v5607_v60 = vmul.f32 %v5604_v4, %v11359_v48  ;;  %v5763_v16 = vld [vmem:[#allocation2 + $0xc] sm:$0xf] }
0x23d9   : > { %v11334_v40 = vpop.permute.xlu1 %5493 }
0x23de   : > { %v5534_v50 = vpop.permute.xlu1 %5533 }
0x23df   : > { %v5541_v1 = vrot.slane %v5534_v50, %v8355_v62  ;;  %v7607_v50 = vld [vmem:[%s12518_s1 + $0x3] ss:$8 sm:$0x3] }
0x23e1   : > { %v11338_v53 = vmul.f32 %v5541_v1, %v5529_v13  ;;  %v5544_v18 = vmul.f32 %v5541_v1, %v5530_v25  ;;  %v5924_v13 = vrot.slane %v7607_v50, %v13206_v8  ;;  %v5928_v1 = vrot.slane %v7607_v50, %v13207_v3 }
0x23e3   : > { %5549 = vrot.lane.b32.xlu1 %v5544_v18, %s13108_s28  ;;  %v11421_v18 = vcombine.low %v5924_v13, %v5928_v1  ;;  %v5840_v13 = vld [vmem:[#allocation2 + $0x10] sm:$0xf] }
0x23e7   : > { %5572 = vperm.xlu1 %7916, %v5560_v37  }
0x23eb   : > { %7917 = vset.pattern.permute.xlu1 %v13533_v17 }
0x2455   : > { %v11345_v51 = vpop.permute.xlu1 %5549 }
0x2466   : > { %v5573_v38 = vpop.permute.xlu1 %5572 }
0x2467   : > { %v5580_v21 = vrot.slane %v5573_v38, %v8355_v62 }
0x2469   : > { %v11350_v54 = vmul.f32 %v5580_v21, %v5568_v45  ;;  %v5583_v52 = vmul.f32 %v5580_v21, %v5569_v35 }
0x246b   : > { %5588 = vrot.lane.b32.xlu1 %v5583_v52, %s13142_s9 }
0x246f   : > { %5611 = vperm.xlu1 %7917, %v5599_v28  }
0x2473   : > { %7918 = vset.pattern.permute.xlu1 %v13534_v49 }
0x24dd   : > { %v11357_v59 = vpop.permute.xlu1 %5588 }
0x24ee   : > { %v5612_v7 = vpop.permute.xlu1 %5611 }
0x24ef   : > { %v5619_v15 = vrot.slane %v5612_v7, %v8355_v62 }
0x24f1   : > { %v11364_v58 = vmul.f32 %v5619_v15, %v5607_v60  ;;  %v5622_v31 = vmul.f32 %v5619_v15, %v5608_v9 }
0x24f3   : > { %5627 = vrot.lane.b32.xlu1 %v5622_v31, %s13081_s30 }
0x24f7   : > { %5660 = vperm.xlu1 %7918, %v5639_v0  }
0x24fb   : > { %7919 = vset.pattern.permute.xlu1 %v13535_v5 }
0x24fc   : > { %5699 = vperm.xlu1 %7919, %v5688_v23   ;;  %v5802_v23 = vld [vmem:[#allocation2 + $0x10] sm:$0xf] }
0x2500   : > { %7920 = vset.pattern.permute.xlu1 %v13536_v46 }
0x2501   : > { %5737 = vperm.xlu1 %7920, %v5726_v6  }
0x2505   : > { %7921 = vset.pattern.permute.xlu1 %v13537_v39 }
0x2506   : > { %5775 = vperm.xlu1 %7921, %v5764_v33  }
0x250a   : > { %7922 = vset.pattern.permute.xlu1 %v13538_v43 }
0x250b   : > { %5814 = vperm.xlu1 %7922, %v5803_v20  }
0x250f   : > { %7923 = vset.pattern.permute.xlu1 %v13539_v32 }
0x2565   : > { %v11390_v34 = vpop.permute.xlu1 %5627 }
0x2576   : > { %v5661_v55 = vpop.permute.xlu1 %5660 }
0x2577   : > { %v11400_v29 = vrot.slane %v5661_v55, %v8355_v62  ;;  %v5841_v55 = vld [vmem:[%s12525_s8] sm:$0xf] }
0x2579   : > { %v5670_v25 = vmul.f32 %v11400_v29, %v5656_v26  ;;  %v13543_v26 = vmov 43  }
0x257b   : > { %5674 = vrot.lane.b32.xlu0 %v5670_v25, %s13146_s3  ;;  %v5700_v37 = vpop.permute.xlu1 %5699 }
0x257c   : > { %v11437_v35 = vrot.slane %v5700_v37, %v8355_v62 }
0x257f   : > { %5689 = vrot.lane.b32.xlu0 %v11041_v30, %s13399_s26 }
0x2580   : > { %v5738_v44 = vpop.permute.xlu1 %5737 }
0x2581   : > { %v11451_v14 = vrot.slane %v5738_v44, %v8355_v62 }
0x2583   : > { %5727 = vrot.lane.b32.xlu0 %v11041_v30, %s13540_s12 }
0x2585   : > { %v5776_v21 = vpop.permute.xlu1 %5775 }
0x2586   : > { %v11466_v0 = vrot.slane %v5776_v21, %v8355_v62 }
0x2587   : > { %5765 = vrot.lane.b32.xlu0 %v11041_v30, %s13257_s23 }
0x258a   : > { %v5815_v60 = vpop.permute.xlu1 %5814 }
0x258b   : > { %5804 = vrot.lane.b32.xlu0 %v11041_v30, %s13541_s0  ;;  %v5822_v46 = vrot.slane %v5815_v60, %v8355_v62  ;;  %v5879_v60 = vld [vmem:[%s12525_s8] sm:$0xf]  ;;  %s13569_s0 = smov 48  }
0x258f   : > { %5842 = vrot.lane.b32.xlu0 %v11041_v30, %s13255_s18 }
0x2593   : > { %5880 = vrot.lane.b32.xlu0 %v11041_v30, %s12988_s17  ;;  %s13555_s17 = smov 29  }
0x2597   : > { %5930 = vrot.lane.b32.xlu0 %v11421_v18, %s13148_s10 }
0x25ed   : > { %v11425_v17 = vpop.permute.xlu0 %5674 }
0x25ee   : > { %13542 = vst [vmem:[#allocation57_spill] sm:$0xff] %v11425_v17  ;;  %v6120_v17 = vld [vmem:[#allocation2 + $0x10] sm:$0xf] }
0x25f1   : > { %v11427_v27 = vpop.permute.xlu0 %5689 }
0x25f2   : > { %v5691_v11 = vrot.slane %v11427_v27, 4 }
0x25f4   : > { %v5692_v30 = vsel %vm3454_vm11, %v5691_v11, %v11427_v27 }
0x25f5   : > { %v5695_v38 = vmul.f32 %v5692_v30, %v11430_v56  ;;  %v11440_v45 = vpop.permute.xlu0 %5727 }
0x25f6   : > { %v5729_v52 = vrot.slane %v11440_v45, 4 }
0x25f7   : > { %v11444_v28 = vmul.f32 %v11437_v35, %v5695_v38 }
0x25f8   : > { %v5730_v12 = vsel %vm3334_vm8, %v5729_v52, %v11440_v45 }
0x25f9   : > { %v5733_v61 = vmul.f32 %v5730_v12, %v11430_v56  ;;  %v11454_v4 = vpop.permute.xlu0 %5765 }
0x25fa   : > { %v5767_v9 = vrot.slane %v11454_v4, 4 }
0x25fb   : > { %v11458_v7 = vmul.f32 %v11451_v14, %v5733_v61 }
0x25fc   : > { %v5768_v15 = vsel %vm3213_vm6, %v5767_v9, %v11454_v4 }
0x25fd   : > { %v5771_v31 = vmul.f32 %v5768_v15, %v11430_v56  ;;  %v5805_v5 = vpop.permute.xlu0 %5804  ;;  %v13545_v15 = vmov 2  }
0x25fe   : > { %v5806_v6 = vrot.slane %v5805_v5, 4 }
0x25ff   : > { %v11470_v33 = vmul.f32 %v11466_v0, %v5771_v31 }
0x2600   : > { %v5807_v39 = vsel %vm3414_vm14, %v5806_v6, %v5805_v5  ;;  %v5811_v20 = vmul.f32 %v5806_v6, %v5802_v23  ;;  %vm5883_vm14 = vcmask 80896   ;;  %v5878_v5 = vld [vmem:[#allocation2 + $0x14] sm:$0xf] }
0x2601   : > { %v5810_v43 = vmul.f32 %v5807_v39, %v11329_v42  ;;  %v5843_v25 = vpop.permute.xlu0 %5842 }
0x2602   : > { %v5825_v32 = vmul.f32 %v5822_v46, %v5811_v20  ;;  %v5844_v50 = vrot.slane %v5843_v25, 4 }
0x2603   : > { %v11474_v41 = vmul.f32 %v5822_v46, %v5810_v43 }
0x2604   : > { %5830 = vrot.lane.b32.xlu1 %v5825_v32, %s13151_s22  ;;  %v5845_v37 = vsel %vm3295_vm10, %v5844_v50, %v5843_v25  ;;  %v5849_v44 = vmul.f32 %v5844_v50, %v5840_v13  ;;  %v5919_v25 = vld [vmem:[%s12525_s8] sm:$0xf]  ;;  %v13547_v13 = vmov 9  }
0x2605   : > { %v5848_v38 = vmul.f32 %v5845_v37, %v11329_v42  ;;  %v5881_v31 = vpop.permute.xlu0 %5880  ;;  %v5968_v50 = vld [vmem:[%s12525_s8] sm:$0xf]  ;;  %v13548_v37 = vmov 16  }
0x2606   : > { %v5882_v23 = vrot.slane %v5881_v31, 4 }
0x2608   : > { %5852 = vperm.xlu1 %7923, %v5841_v55   ;;  %v5884_v46 = vsel %vm5883_vm14, %v5882_v23, %v5881_v31  ;;  %v5888_v39 = vmul.f32 %v5882_v23, %v5878_v5  ;;  %v5441_v23 = vld [vmem:[#allocation2 + $0xc] sm:$0xf]  ;;  %v13550_v5 = vmov 30  }
0x2609   : > { %v5887_v43 = vmul.f32 %v5884_v46, %v11359_v48  ;;  %v6006_v48 = vld [vmem:[%s12525_s8] sm:$0xf]  ;;  %v5423_v46 = vrot.slane %v11317_v24, %v8355_v62  ;;  %v5638_v24 = vld [vmem:[#allocation2 + $0x8] sm:$0xf]  ;;  %v5931_v27 = vpop.permute.xlu0 %5930 }
0x260c   : > { %7924 = vset.pattern.permute.xlu1 %v13543_v26 }
0x2676   : > { %v11481_v1 = vpop.permute.xlu1 %5830 }
0x2687   : > { %v5853_v30 = vpop.permute.xlu1 %5852 }
0x2688   : > { %v5860_v21 = vrot.slane %v5853_v30, %v8355_v62  ;;  %v13549_v30 = vmov 23  }
0x268a   : > { %v11486_v12 = vmul.f32 %v5860_v21, %v5848_v38  ;;  %v5863_v61 = vmul.f32 %v5860_v21, %v5849_v44  ;;  %v6044_v44 = vld [vmem:[%s12525_s8] sm:$0xf]  ;;  %v5402_v38 = vld [vmem:[#allocation2 + $0xc] sm:$0xf]  ;;  %v5406_v21 = vrot.slane %v11323_v19, 4 }
0x268c   : > { %5868 = vrot.lane.b32.xlu1 %v5863_v61, %s13544_s5  ;;  %v6083_v61 = vld [vmem:[%s12525_s8] sm:$0xf]  ;;  %v5412_v31 = vmul.f32 %v5406_v21, %v5402_v38 }
0x2690   : > { %5891 = vperm.xlu1 %7924, %v5879_v60   ;;  %v5445_v60 = vrot.slane %v11325_v47, 4 }
0x2694   : > { %7925 = vset.pattern.permute.xlu1 %v13545_v15  ;;  %v6082_v15 = vld [vmem:[#allocation2 + $0x10] sm:$0xf] }
0x26fe   : > { %v11493_v6 = vpop.permute.xlu1 %5868 }
0x270f   : > { %v5892_v20 = vpop.permute.xlu1 %5891 }
0x2710   : > { %v5899_v32 = vrot.slane %v5892_v20, %v8355_v62  ;;  %v5426_v20 = vmul.f32 %v5423_v46, %v5412_v31 }
0x2712   : > { %v11498_v55 = vmul.f32 %v5899_v32, %v5887_v43  ;;  %v5902_v26 = vmul.f32 %v5899_v32, %v5888_v39  ;;  %v5451_v39 = vmul.f32 %v5445_v60, %v5441_v23  ;;  %v5462_v43 = vrot.slane %v11319_v36, %v8355_v62  ;;  %v5687_v36 = vld [vmem:[#allocation2 + $0xc] sm:$0xf] }
0x2713   : > { %v5484_v32 = vrot.slane %v11332_v2, 4  ;;  %v5696_v38 = vmul.f32 %v5691_v11, %v5687_v36  ;;  %v5932_v11 = vrot.slane %v5931_v27, 4 }
0x2714   : > { %5907 = vrot.lane.b32.xlu1 %v5902_v26, %s13546_s13  ;;  %v5480_v26 = vld [vmem:[#allocation2 + $0xc] sm:$0xf] }
0x2715   : > { %v5710_v31 = vmul.f32 %v11437_v35, %v5696_v38  ;;  %v5933_v35 = vsel %vm1120_vm9, %v5932_v11, %v5931_v27 }
0x2718   : > { %5940 = vperm.xlu1 %7925, %v5919_v25   ;;  %v13552_v25 = vmov 44  }
0x271c   : > { %7926 = vset.pattern.permute.xlu1 %v13547_v13  ;;  %v5501_v13 = vrot.slane %v11334_v40, %v8355_v62 }
0x271d   : > { %5979 = vperm.xlu1 %7926, %v5968_v50   ;;  %v5465_v50 = vmul.f32 %v5462_v43, %v5451_v39  ;;  %v5936_v39 = vmul.f32 %v11396_v57, %v5933_v35 }
0x2721   : > { %7927 = vset.pattern.permute.xlu1 %v13548_v37 }
0x2722   : > { %6017 = vperm.xlu1 %7927, %v6006_v48   ;;  %v5490_v48 = vmul.f32 %v5484_v32, %v5480_v26 }
0x2724   : > { %v5504_v37 = vmul.f32 %v5501_v13, %v5490_v48 }
0x2726   : > { %7928 = vset.pattern.permute.xlu1 %v13549_v30 }
0x2727   : > { %6055 = vperm.xlu1 %7928, %v6044_v44   ;;  %v5657_v44 = vmul.f32 %v5652_v22, %v5638_v24  ;;  %v5772_v22 = vmul.f32 %v5767_v9, %v5763_v16  ;;  %v5486_v24 = vsel %vm5485_vm1, %v5484_v32, %v11332_v2 }
0x2729   : > { %v5671_v30 = vmul.f32 %v11400_v29, %v5657_v44  ;;  %v5786_v29 = vmul.f32 %v11466_v0, %v5772_v22  ;;  %v5408_v0 = vsel %vm12995_vm2, %v5406_v21, %v11323_v19  ;;  %v5489_v19 = vmul.f32 %v5486_v24, %v11430_v56 }
0x272a   : > { %v5411_v26 = vmul.f32 %v5408_v0, %v11430_v56  ;;  %vm13559_vm2 = vcmask 629760   ;;  %v13564_v24 = vmov 38  }
0x272b   : > { %7929 = vset.pattern.permute.xlu1 %v13550_v5  ;;  %v5503_v21 = vmul.f32 %v5501_v13, %v5489_v19  ;;  %v6005_v13 = vld [vmem:[#allocation2 + $0xc] sm:$0xf]  ;;  %v13565_v19 = vmov 24  }
0x272c   : > { %6094 = vperm.xlu1 %7929, %v6083_v61   ;;  %v5725_v61 = vld [vmem:[#allocation2 + $0xc] sm:$0xf]  ;;  %v5425_v48 = vmul.f32 %v5423_v46, %v5411_v26 }
0x272d   : > { %v5734_v40 = vmul.f32 %v5729_v52, %v5725_v61  ;;  %v5918_v52 = vld [vmem:[#allocation2 + $0x8] sm:$0xf] }
0x272e   : > { %v5937_v4 = vmul.f32 %v5932_v11, %v5918_v52 }
0x272f   : > { %v5748_v23 = vmul.f32 %v11451_v14, %v5734_v40 }
0x2730   : > { %5431 = vrot.lane.b32.xlu1 %v5426_v20, %s13551_s14 }
0x2731   : > { %7931 = vset.pattern.permute.xlu1 %v13552_v25  ;;  %v5447_v25 = vsel %vm13006_vm4, %v5445_v60, %v11325_v47  ;;  %vm13626_vm4 = vcmask 941056  }
0x2734   : > { %5470 = vrot.lane.b32.xlu1 %v5465_v50, %s13053_s27  ;;  %v5450_v50 = vmul.f32 %v5447_v25, %v11430_v56  ;;  %v13563_v25 = vmov 17  }
0x2738   : > { %5509 = vrot.lane.b32.xlu1 %v5504_v37, %s13553_s29  ;;  %v5464_v37 = vmul.f32 %v5462_v43, %v5450_v50 }
0x273c   : > { %5676 = vrot.lane.b32.xlu1 %v5671_v30, %s13146_s3 }
0x2740   : > { %5715 = vrot.lane.b32.xlu1 %v5710_v31, %s13554_s16 }
0x2744   : > { %5753 = vrot.lane.b32.xlu1 %v5748_v23, %s13555_s17  ;;  %v6043_v23 = vld [vmem:[#allocation2 + $0xc] sm:$0xf] }
0x2748   : > { %5791 = vrot.lane.b32.xlu1 %v5786_v29, %s13148_s10 }
0x2786   : > { %v11549_v45 = vpop.permute.xlu1 %5907 }
0x2797   : > { %v5941_v5 = vpop.permute.xlu1 %5940 }
0x2798   : > { %v5948_v9 = vrot.slane %v5941_v5, %v8355_v62  ;;  %v6159_v5 = vld [vmem:[%s12525_s8] sm:$0xf] }
0x279a   : > { %v5950_v14 = vmul.f32 %v5948_v9, %v5936_v39  ;;  %v5951_v20 = vmul.f32 %v5948_v9, %v5937_v4  ;;  %v6121_v39 = vld [vmem:[%s12525_s8] sm:$0xf]  ;;  %v13561_v4 = vmov 3   ;;  %v7608_v9 = vld [vmem:[%s12518_s1 + $0x6] ss:$8 sm:$0x3] }
0x279b   : > { %v6203_v0 = vrot.slane %v7608_v9, %v13206_v8  ;;  %v6207_v26 = vrot.slane %v7608_v9, %v13207_v3  ;;  %v13585_v9 = vmov 39  }
0x279c   : > { %5956 = vrot.lane.b32.xlu1 %v5951_v20, %s13257_s23  ;;  %5954 = vrot.lane.b32.xlu0 %v5950_v14, %s13257_s23  ;;  %s13556_s23 = smov 45   ;;  %v5980_v47 = vpop.permute.xlu1 %5979  ;;  %v13562_v14 = vmov 10   ;;  %v6247_v20 = vld [vmem:[%s12525_s8] sm:$0xf] }
0x279d   : > { %v11635_v50 = vcombine.low %v6203_v0, %v6207_v26  ;;  %v6704_v0 = vld [vmem:[%s12525_s8] sm:$0xf]  ;;  %v13587_v26 = vmov 46  }
0x27a0   : > { %5969 = vrot.lane.b32.xlu0 %v11421_v18, %s13555_s17 }
0x27a4   : > { %6007 = vrot.lane.b32.xlu0 %v11421_v18, %s13554_s16 }
0x27a8   : > { %6045 = vrot.lane.b32.xlu0 %v11421_v18, %s13146_s3  ;;  %s13642_s3 = smov 113  }
0x27ac   : > { %6084 = vrot.lane.b32.xlu0 %v11421_v18, %s13556_s23  ;;  %s13589_s23 = smov 99  }
0x27b0   : > { %5429 = vrot.lane.b32.xlu0 %v5425_v48, %s13551_s14  ;;  %v6285_v48 = vld [vmem:[%s12525_s8] sm:$0xf] }
0x27b4   : > { %5468 = vrot.lane.b32.xlu0 %v5464_v37, %s13053_s27  ;;  %v6322_v37 = vld [vmem:[%s12525_s8] sm:$0xf] }
0x27b8   : > { %5507 = vrot.lane.b32.xlu0 %v5503_v21, %s13553_s29  ;;  %v6465_v21 = vld [vmem:[%s12525_s8] sm:$0xf] }
0x27bc   : > { %5547 = vrot.lane.b32.xlu0 %v11338_v53, %s13108_s28  ;;  %s13593_s28 = smov 118  }
0x27c0   : > { %5586 = vrot.lane.b32.xlu0 %v11350_v54, %s13142_s9 }
0x27c4   : > { %5625 = vrot.lane.b32.xlu0 %v11364_v58, %s13081_s30  ;;  %v6018_v58 = vpop.permute.xlu1 %6017 }
0x27c8   : > { %5713 = vrot.lane.b32.xlu0 %v11444_v28, %s13554_s16  ;;  %v5967_v28 = vld [vmem:[#allocation2 + $0xc] sm:$0xf]  ;;  %v6056_v30 = vpop.permute.xlu1 %6055  ;;  %s13627_s16 = smov 116  }
0x27c9   : > { %v6063_v40 = vrot.slane %v6056_v30, %v8355_v62  ;;  %v6743_v30 = vld [vmem:[%s12525_s8] sm:$0xf] }
0x27cc   : > { %5751 = vrot.lane.b32.xlu0 %v11458_v7, %s13555_s17  ;;  %v5987_v7 = vrot.slane %v5980_v47, %v8355_v62  ;;  %v6349_v47 = vld [vmem:[%s12525_s8] sm:$0xf]  ;;  %s13629_s17 = smov 87  }
0x27d0   : > { %5789 = vrot.lane.b32.xlu0 %v11470_v33, %s13148_s10  ;;  %s8133_s10 = smov 41  }
0x27d4   : > { %5828 = vrot.lane.b32.xlu0 %v11474_v41, %s13151_s22  ;;  %s8134_s22 = smov 89  }
0x27d8   : > { %5866 = vrot.lane.b32.xlu0 %v11486_v12, %s13544_s5  ;;  %v6025_v12 = vrot.slane %v6018_v58, %v8355_v62  ;;  %v13567_v58 = vmov 31  }
0x27dc   : > { %5905 = vrot.lane.b32.xlu0 %v11498_v55, %s13546_s13 }
0x280e   : > { %v11594_v2 = vpop.permute.xlu0 %5954 }
0x280f   : > { %13557 = vst [vmem:[#allocation59_spill] sm:$0xff] %v11594_v2 }
0x2812   : > { %v5970_v53 = vpop.permute.xlu0 %5969 }
0x2813   : > { %v5971_v54 = vrot.slane %v5970_v53, 4 }
0x2815   : > { %v5972_v33 = vsel %vm13558_vm13, %v5971_v54, %v5970_v53  ;;  %v5976_v60 = vmul.f32 %v5971_v54, %v5967_v28  ;;  %vm13560_vm13 = vcmask 1022976   ;;  %v7609_v53 = vld [vmem:[%s12518_s1 + $0x11] ss:$8 sm:$0x3]  ;;  %v13566_v54 = vmov 4  }
0x2816   : > { %v5975_v41 = vmul.f32 %v5972_v33, %v11430_v56  ;;  %v6008_v46 = vpop.permute.xlu0 %6007  ;;  %v6470_v28 = vrot.slane %v7609_v53, %v13206_v8  ;;  %v6514_v33 = vld [vmem:[%s12525_s8] sm:$0xf] }
0x2817   : > { %v6009_v43 = vrot.slane %v6008_v46, 4  ;;  %v5990_v32 = vmul.f32 %v5987_v7, %v5976_v60  ;;  %v13568_v60 = vmov 11  }
0x2818   : > { %v5989_v55 = vmul.f32 %v5987_v7, %v5975_v41  ;;  %v6474_v7 = vrot.slane %v7609_v53, %v13207_v3  ;;  %v7073_v53 = vld [vmem:[%s12525_s8] sm:$0xf] }
0x2819   : > { %v6010_v44 = vsel %vm13559_vm2, %v6009_v43, %v6008_v46  ;;  %v6014_v36 = vmul.f32 %v6009_v43, %v6005_v13  ;;  %5995 = vrot.lane.b32.xlu1 %v5990_v32, %s13540_s12  ;;  %v13570_v46 = vmov 45   ;;  %v13572_v32 = vmov 5  }
0x281a   : > { %v6013_v38 = vmul.f32 %v6010_v44, %v11430_v56  ;;  %5993 = vrot.lane.b32.xlu0 %v5989_v55, %s13540_s12  ;;  %v6046_v61 = vpop.permute.xlu0 %6045  ;;  %v6475_v41 = vcombine.low %v6470_v28, %v6474_v7  ;;  %v13574_v55 = vmov 18   ;;  %s13582_s12 = smov 38   ;;  %vm13597_vm2 = vcmask 367616  }
0x281b   : > { %v6047_v31 = vrot.slane %v6046_v61, 4  ;;  %v6028_v16 = vmul.f32 %v6025_v12, %v6014_v36  ;;  %v6552_v36 = vld [vmem:[%s12525_s8] sm:$0xf] }
0x281c   : > { %v6027_v22 = vmul.f32 %v6025_v12, %v6013_v38  ;;  %v6426_v12 = vld [vmem:[%s12525_s8] sm:$0xf]  ;;  %v7610_v38 = vld [vmem:[%s12518_s1 + $0x13] ss:$8 sm:$0x3] }
0x281d   : > { %v6048_v29 = vsel %vm13560_vm13, %v6047_v31, %v6046_v61  ;;  %v6052_v27 = vmul.f32 %v6047_v31, %v6043_v23  ;;  %6033 = vrot.lane.b32.xlu1 %v6028_v16, %s13399_s26  ;;  %v6748_v61 = vrot.slane %v7610_v38, %v13206_v8  ;;  %v6590_v31 = vld [vmem:[%s12525_s8] sm:$0xf]  ;;  %v13579_v23 = vmov 25  }
0x281e   : > { %v6051_v11 = vmul.f32 %v6048_v29, %v11430_v56  ;;  %6031 = vrot.lane.b32.xlu0 %v6027_v22, %s13399_s26  ;;  %v6198_v56 = vld [vmem:[%s12525_s8] sm:$0xf]  ;;  %v11678_v43 = vpop.permute.xlu0 %6084  ;;  %v13580_v29 = vmov 12   ;;  %vm13611_vm13 = vcmask 760832   ;;  %s8137_s26 = smov 57  }
0x281f   : > { %v6066_v35 = vmul.f32 %v6063_v40, %v6052_v27  ;;  %v6792_v16 = vld [vmem:[%s12525_s8] sm:$0xf] }
0x2820   : > { %v6065_v52 = vmul.f32 %v6063_v40, %v6051_v11  ;;  %v6752_v40 = vrot.slane %v7610_v38, %v13207_v3  ;;  %v6628_v11 = vld [vmem:[%s12525_s8] sm:$0xf] }
0x2821   : > { %6071 = vrot.lane.b32.xlu1 %v6066_v35, %s13473_s21 }
0x2822   : > { %6069 = vrot.lane.b32.xlu0 %v6065_v52, %s13473_s21  ;;  %s13571_s21 = smov 35   ;;  %v11685_v13 = vpop.permute.xlu0 %5429  ;;  %v11715_v27 = vcombine.low %v6748_v61, %v6752_v40  ;;  %v13581_v52 = vmov 32   ;;  %v6907_v61 = vld [vmem:[%s12525_s8] sm:$0xf] }
0x2823   : > { %v7269_v40 = vld [vmem:[%s12525_s8] sm:$0xf] }
0x2825   : > { %6170 = vperm.xlu1 %7931, %v6159_v5   ;;  %v6095_v5 = vpop.permute.xlu1 %6094 }
0x2826   : > { %6132 = vperm.xlu0 %7930, %v6121_v39   ;;  %v11692_v44 = vpop.permute.xlu0 %5468  ;;  %v13583_v39 = vmov 6  }
0x2829   : > { %7932 = vset.pattern.permute.xlu1 %v13561_v4 }
0x282a   : > { %6219 = vperm.xlu1 %7932, %v6198_v56   ;;  %6122 = vrot.lane.b32.xlu0 %v11421_v18, %s13546_s13  ;;  %s13575_s13 = smov 3   ;;  %v11711_v22 = vpop.permute.xlu0 %5507  ;;  %v6666_v56 = vld [vmem:[%s12525_s8] sm:$0xf] }
0x282b   : > { %7933 = vset.pattern.permute.xlu0 %v13562_v14  ;;  %13578 = vst [vmem:[#allocation58_spill] sm:$0xff] %v11711_v22 }
0x282e   : > { %6160 = vrot.lane.b32.xlu1 %v11421_v18, %s13544_s5  ;;  %6258 = vperm.xlu0 %7933, %v6247_v20   ;;  %v6388_v18 = vld [vmem:[%s12525_s8] sm:$0xf]  ;;  %s13577_s5 = smov 51   ;;  %v11720_v35 = vpop.permute.xlu0 %5547  ;;  %v11734_v20 = vpop.permute.xlu1 %5431 }
0x282f   : > { %7934 = vset.pattern.permute.xlu1 %v13563_v25 }
0x2832   : > { %6209 = vrot.lane.b32.xlu1 %v11635_v50, %s13553_s29  ;;  %6248 = vrot.lane.b32.xlu0 %v11635_v50, %s13053_s27  ;;  %v11732_v14 = vpop.permute.xlu0 %5586  ;;  %s13605_s27 = smov 22   ;;  %s8135_s29 = smov 121  }
0x2833   : > { %7937 = vset.pattern.permute.xlu0 %v13564_v24  ;;  %v7023_v24 = vld [vmem:[%s12525_s8] sm:$0xf] }
0x2836   : > { %6296 = vperm.xlu1 %7934, %v6285_v48   ;;  %6286 = vrot.lane.b32.xlu0 %v11635_v50, %s13551_s14  ;;  %v11742_v25 = vpop.permute.xlu0 %5625  ;;  %v11746_v48 = vpop.permute.xlu1 %5470  ;;  %s8141_s14 = smov 65  }
0x283a   : > { %7935 = vset.pattern.permute.xlu1 %v13565_v19  ;;  %6399 = vperm.xlu0 %7937, %v6388_v18   ;;  %v7611_v18 = vld [vmem:[%s12518_s1 + $0x14] ss:$8 sm:$0x3] }
0x283b   : > { %6327 = vperm.xlu1 %7935, %v6322_v37   ;;  %v13590_v37 = vmov 19   ;;  %v7028_v19 = vrot.slane %v7611_v18, %v13206_v8 }
0x283e   : > { %7939 = vset.pattern.permute.xlu0 %v13566_v54  ;;  %v11763_v54 = vpop.permute.xlu1 %5509 }
0x283f   : > { %7936 = vset.pattern.permute.xlu1 %v13567_v58  ;;  %6486 = vperm.xlu0 %7939, %v6465_v21   ;;  %v7032_v21 = vrot.slane %v7611_v18, %v13207_v3  ;;  %v13592_v58 = vmov 13  }
0x2840   : > { %6360 = vperm.xlu1 %7936, %v6349_v47   ;;  %v11758_v47 = vpop.permute.xlu0 %5713 }
0x2841   : > { %v11767_v28 = vcombine.low %v7028_v19, %v7032_v21 }
0x2843   : > { %7940 = vset.pattern.permute.xlu0 %v13568_v60  ;;  %v11776_v60 = vpop.permute.xlu1 %5676 }
0x2844   : > { %6350 = vrot.lane.b32.xlu1 %v11635_v50, %s13569_s0  ;;  %6525 = vperm.xlu0 %7940, %v6514_v33   ;;  %v11771_v7 = vpop.permute.xlu0 %5751  ;;  %v6831_v33 = vld [vmem:[%s12525_s8] sm:$0xf]  ;;  %s13613_s0 = smov 10  }
0x2845   : > { %7938 = vset.pattern.permute.xlu1 %v13570_v46  ;;  %v12996_v46 = vrot.slane %v11678_v43, 4 }
0x2847   : > { %v6087_v38 = vsel %vm13597_vm2, %v12996_v46, %v11678_v43  ;;  %vm13612_vm2 = vcmask 105472  }
0x2848   : > { %6437 = vperm.xlu1 %7938, %v6426_v12   ;;  %6515 = vrot.lane.b32.xlu0 %v6475_v41, %s13571_s21  ;;  %s13586_s21 = smov 6   ;;  %v6869_v12 = vld [vmem:[%s12525_s8] sm:$0xf] }
0x2849   : > { %7946 = vset.pattern.permute.xlu0 %v13572_v32  ;;  %v11785_v32 = vpop.permute.xlu0 %5789 }
0x284a   : > { %13595 = vst [vmem:[#allocation61_spill] sm:$0xff] %v11785_v32 }
0x284c   : > { %6389 = vrot.lane.b32.xlu1 %v11635_v50, %s13081_s30  ;;  %6553 = vrot.lane.b32.xlu0 %v6475_v41, %s13573_s11  ;;  %s8139_s11 = smov 25   ;;  %s13631_s30 = smov 68  }
0x284d   : > { %7941 = vset.pattern.permute.xlu1 %v13574_v55  ;;  %v7229_v55 = vld [vmem:[%s12525_s8] sm:$0xf] }
0x2850   : > { %6427 = vrot.lane.b32.xlu1 %v11635_v50, %s13142_s9  ;;  %6591 = vrot.lane.b32.xlu0 %v6475_v41, %s13575_s13  ;;  %s13591_s9 = smov 19   ;;  %s13619_s13 = smov 71  }
0x2854   : > { %6476 = vrot.lane.b32.xlu1 %v6475_v41, %s13576_s24  ;;  %6629 = vrot.lane.b32.xlu0 %v6475_v41, %s13577_s5  ;;  %s13588_s24 = smov 54   ;;  %s8140_s5 = smov 55  }
0x2858   : > { %6563 = vperm.xlu1 %7941, %v6552_v36   ;;  %6764 = vperm.xlu0 %7946, %v6743_v30   ;;  %v11790_v36 = vpop.permute.xlu1 %5715  ;;  %v13596_v30 = vmov 26  }
0x285c   : > { %7942 = vset.pattern.permute.xlu1 %v13579_v23  ;;  %7947 = vset.pattern.permute.xlu0 %v13580_v29  ;;  %v11807_v23 = vpop.permute.xlu0 %5828  ;;  %v13598_v29 = vmov 33  }
0x285d   : > { %6601 = vperm.xlu1 %7942, %v6590_v31   ;;  %6803 = vperm.xlu0 %7947, %v6792_v16   ;;  %v11804_v31 = vrot.slane %v6095_v5, %v8355_v62  ;;  %v6090_v16 = vmul.f32 %v6087_v38, %v11329_v42  ;;  %v13600_v5 = vmov 40  }
0x2861   : > { %7943 = vset.pattern.permute.xlu1 %v13581_v52  ;;  %6793 = vrot.lane.b32.xlu0 %v11715_v27, %s13582_s12  ;;  %v13599_v52 = vmov 48   ;;  %s8136_s12 = smov 9  }
0x2862   : > { %6639 = vperm.xlu1 %7943, %v6628_v11   ;;  %7953 = vset.pattern.permute.xlu0 %v13583_v39  ;;  %v11810_v11 = vpop.permute.xlu1 %5753  ;;  %v6945_v39 = vld [vmem:[%s12525_s8] sm:$0xf] }
0x2865   : > { %6832 = vrot.lane.b32.xlu0 %v11715_v27, %s13584_s19  ;;  %s8138_s19 = smov 105  }
0x2866   : > { %7944 = vset.pattern.permute.xlu1 %v13585_v9  ;;  %v11818_v9 = vpop.permute.xlu0 %5866  ;;  %v11821_v42 = vpop.permute.xlu1 %5791 }
0x2867   : > { %6677 = vperm.xlu1 %7944, %v6666_v56   ;;  %v6104_v56 = vmul.f32 %v11804_v31, %v6090_v16  ;;  %v13610_v16 = vmov 34  }
0x2869   : > { %6870 = vrot.lane.b32.xlu0 %v11715_v27, %s13586_s21  ;;  %s13617_s21 = smov 119  }
0x286a   : > { %v11828_v18 = vpop.permute.xlu1 %5956 }
0x286b   : > { %7945 = vset.pattern.permute.xlu1 %v13587_v26  ;;  %v6983_v26 = vld [vmem:[%s12525_s8] sm:$0xf] }
0x286c   : > { %6715 = vperm.xlu1 %7945, %v6704_v0   ;;  %v13601_v0 = vmov 0  }
0x286d   : > { %6908 = vrot.lane.b32.xlu0 %v11715_v27, %s13588_s24  ;;  %s13620_s24 = smov 23  }
0x2870   : > { %6667 = vrot.lane.b32.xlu1 %v6475_v41, %s13589_s23  ;;  %s13603_s23 = smov 102  }
0x2871   : > { %7045 = vperm.xlu0 %7953, %v7023_v24   ;;  %7948 = vset.pattern.permute.xlu1 %v13590_v37  ;;  %v13602_v24 = vmov 47   ;;  %v11830_v37 = vpop.permute.xlu0 %5905 }
0x2874   : > { %6705 = vrot.lane.b32.xlu1 %v6475_v41, %s13591_s9  ;;  %v13594_v41 = vmov 41   ;;  %s13639_s9 = smov 4  }
0x2875   : > { %7954 = vset.pattern.permute.xlu0 %v13592_v58 }
0x2876   : > { %7085 = vperm.xlu0 %7954, %v7073_v53   ;;  %v13604_v53 = vmov 20  }
0x2878   : > { %6754 = vrot.lane.b32.xlu1 %v11715_v27, %s13593_s28  ;;  %s13641_s28 = smov 84  }
0x287a   : > { %7074 = vrot.lane.b32.xlu0 %v11767_v28, %s8133_s10  ;;  %s13644_s10 = smov 17  }
0x287b   : > { %7958 = vset.pattern.permute.xlu0 %v13594_v41  ;;  %v7112_v41 = vld [vmem:[%s12525_s8] sm:$0xf] }
0x287c   : > { %6842 = vperm.xlu1 %7948, %v6831_v33  }
0x287e   : > { %7113 = vrot.lane.b32.xlu0 %v11767_v28, %s8134_s22  ;;  %s13645_s22 = smov 97  }
0x2880   : > { %7949 = vset.pattern.permute.xlu1 %v13596_v30  ;;  %v13609_v30 = vmov 27  }
0x2881   : > { %6880 = vperm.xlu1 %7949, %v6869_v12  }
0x2882   : > { %7241 = vperm.xlu0 %7958, %v7229_v55  }
0x2885   : > { %7950 = vset.pattern.permute.xlu1 %v13598_v29 }
0x2886   : > { %6918 = vperm.xlu1 %7950, %v6907_v61   ;;  %7959 = vset.pattern.permute.xlu0 %v13599_v52 }
0x2887   : > { %7281 = vperm.xlu0 %7959, %v7269_v40   ;;  %v7190_v40 = vld [vmem:[%s12525_s8] sm:$0xf] }
0x288a   : > { %7951 = vset.pattern.permute.xlu1 %v13600_v5  ;;  %v11862_v5 = vld [vmem:[#allocation2 + $0x8] sm:$0xff] }
0x288b   : > { %6956 = vperm.xlu1 %7951, %v6945_v39   ;;  %6108 = vrot.lane.b32.xlu0 %v6104_v56, %s13253_s4  ;;  %v11832_v19 = vpop.permute.xlu1 %5995 }
0x288c   : > { %7960 = vset.pattern.permute.xlu0 %v13601_v0  ;;  %v11836_v21 = vpop.permute.xlu0 %5993 }
0x288f   : > { %7952 = vset.pattern.permute.xlu1 %v13602_v24  ;;  %v11841_v58 = vpop.permute.xlu1 %6033 }
0x2890   : > { %6994 = vperm.xlu1 %7952, %v6983_v26   ;;  %13606 = vst [vmem:[#allocation60_spill] sm:$0xff] %v11841_v58  ;;  %v11843_v33 = vpop.permute.xlu0 %6031 }
0x2893   : > { %v11849_v12 = vpop.permute.xlu1 %6071 }
0x2894   : > { %6946 = vrot.lane.b32.xlu1 %v11715_v27, %s13603_s23  ;;  %13607 = vst [vmem:[#allocation64_spill] sm:$0xff] %v11849_v12  ;;  %v11851_v55 = vpop.permute.xlu0 %6069  ;;  %s13633_s23 = smov 20  }
0x2895   : > { %7955 = vset.pattern.permute.xlu1 %v13604_v53  ;;  %13608 = vst [vmem:[#allocation62_spill] sm:$0xff] %v11851_v55 }
0x2898   : > { %6984 = vrot.lane.b32.xlu1 %v11715_v27, %s13605_s27  ;;  %v7151_v27 = vld [vmem:[%s12525_s8] sm:$0xf]  ;;  %s13635_s27 = smov 100  }
0x289c   : > { %7034 = vrot.lane.b32.xlu1 %v11767_v28, %s8135_s29  ;;  %s13636_s29 = smov 52  }
0x28a0   : > { %7124 = vperm.xlu1 %7955, %v7112_v41  }
0x28a4   : > { %7956 = vset.pattern.permute.xlu1 %v13609_v30  ;;  %v6171_v38 = vpop.permute.xlu1 %6170 }
0x28a5   : > { %7163 = vperm.xlu1 %7956, %v7151_v27   ;;  %v6133_v61 = vpop.permute.xlu0 %6132 }
0x28a6   : > { %v6140_v56 = vrot.slane %v6133_v61, %v8355_v62 }
0x28a9   : > { %7957 = vset.pattern.permute.xlu1 %v13610_v16  ;;  %v6220_v29 = vpop.permute.xlu1 %6219  ;;  %v6123_v52 = vpop.permute.xlu0 %6122  ;;  %v11876_v16 = vrot.slane %v6171_v38, %v8355_v62 }
0x28aa   : > { %v6124_v39 = vrot.slane %v6123_v52, 4  ;;  %7202 = vperm.xlu1 %7957, %v7190_v40   ;;  %v11871_v40 = vld [vmem:[#allocation2 + $0xc] sm:$0xff]  ;;  %v6227_v4 = vrot.slane %v6220_v29, %v8355_v62 }
0x28ac   : > { %v6125_v26 = vsel %vm13611_vm13, %v6124_v39, %v6123_v52  ;;  %vm13614_vm13 = vcmask 261120   ;;  %v6129_v12 = vmul.f32 %v6124_v39, %v6120_v17 }
0x28ad   : > { %v6128_v24 = vmul.f32 %v6125_v26, %v11862_v5  ;;  %v11866_v53 = vpop.permute.xlu1 %6160  ;;  %v6259_v41 = vpop.permute.xlu0 %6258 }
0x28ae   : > { %v6162_v27 = vrot.slane %v11866_v53, 4  ;;  %7152 = vrot.lane.b32.xlu1 %v11767_v28, %s8136_s12  ;;  %s13647_s12 = smov 49  }
0x28af   : > { %v6142_v30 = vmul.f32 %v6140_v56, %v6128_v24  ;;  %7961 = vset.pattern.permute.xlu1 %v13601_v0  ;;  %v6197_v0 = vld [vmem:[#allocation2 + $0x8] sm:$0xf] }
0x28b0   : > { %v6163_v61 = vsel %vm13612_vm2, %v6162_v27, %v11866_v53  ;;  %vm13616_vm2 = vcmask 654336  }
0x28b1   : > { %v6166_v52 = vmul.f32 %v6163_v61, %v11871_v40  ;;  %v6210_v26 = vpop.permute.xlu1 %6209  ;;  %6146 = vrot.lane.b32.xlu0 %v6142_v30, %s13613_s0  ;;  %v6249_v46 = vpop.permute.xlu0 %6248  ;;  %v11885_v30 = vld [vmem:[#allocation2 + $0x4] sm:$0xff] }
0x28b2   : > { %v6211_v3 = vrot.slane %v6210_v26, 4  ;;  %v6250_v8 = vrot.slane %v6249_v46, 4  ;;  %7191 = vrot.lane.b32.xlu1 %v11767_v28, %s8137_s26  ;;  %s13654_s26 = smov 81  }
0x28b3   : > { %v6180_v24 = vmul.f32 %v11876_v16, %v6166_v52  ;;  %v6266_v52 = vrot.slane %v6259_v41, %v8355_v62 }
0x28b4   : > { %v6216_v53 = vmul.f32 %v6211_v3, %v6197_v0  ;;  %v6251_v38 = vsel %vm13614_vm13, %v6250_v8, %v6249_v46  ;;  %v13615_v0 = vrot.slane %v11678_v43, 4  ;;  %vm13618_vm13 = vcmask 916480  }
0x28b5   : > { %v6297_v55 = vpop.permute.xlu1 %6296  ;;  %6184 = vrot.lane.b32.xlu0 %v6180_v24, %s13255_s18  ;;  %v6287_v61 = vpop.permute.xlu0 %6286  ;;  %v6254_v29 = vmul.f32 %v6251_v38, %v11885_v30  ;;  %v6212_v38 = vsel %vm13618_vm13, %v6211_v3, %v6210_v26  ;;  %vm13623_vm13 = vcmask 785408  }
0x28b6   : > { %v6288_v2 = vrot.slane %v6287_v61, 4  ;;  %7230 = vrot.lane.b32.xlu1 %v11767_v28, %s8138_s19  ;;  %v6230_v32 = vmul.f32 %v6227_v4, %v6216_v53  ;;  %v6091_v46 = vmul.f32 %v13615_v0, %v6082_v15  ;;  %v6304_v43 = vrot.slane %v6297_v55, %v8355_v62  ;;  %s13655_s19 = smov 110  }
0x28b7   : > { %v6268_v58 = vmul.f32 %v6266_v52, %v6254_v29  ;;  %v6158_v29 = vld [vmem:[#allocation2 + $0x14] sm:$0xf] }
0x28b8   : > { %v6289_v22 = vsel %vm13616_vm2, %v6288_v2, %v6287_v61  ;;  %v6105_v41 = vmul.f32 %v11804_v31, %v6091_v46  ;;  %v6215_v61 = vmul.f32 %v11396_v57, %v6212_v38  ;;  %v6348_v31 = vld [vmem:[#allocation2 + $0x10] sm:$0xf]  ;;  %vm13622_vm2 = vcmask 392192  }
0x28b9   : > { %6235 = vrot.lane.b32.xlu0 %v6230_v32, %s13617_s21  ;;  %v6400_v24 = vpop.permute.xlu0 %6399  ;;  %v6292_v53 = vmul.f32 %v6289_v22, %v11885_v30  ;;  %v6143_v32 = vmul.f32 %v6140_v56, %v6129_v12  ;;  %v6324_v22 = vmul.f32 %v11635_v50, %v11862_v5  ;;  %v6167_v12 = vmul.f32 %v6162_v27, %v6158_v29  ;;  %v6246_v50 = vld [vmem:[#allocation2 + $0xc] sm:$0xf]  ;;  %v6387_v27 = vld [vmem:[#allocation2 + $0x10] sm:$0xf] }
0x28ba   : > { %7270 = vrot.lane.b32.xlu1 %v11767_v28, %s8139_s11  ;;  %v6328_v49 = vpop.permute.xlu1 %6327  ;;  %v6229_v56 = vmul.f32 %v6227_v4, %v6215_v61  ;;  %v6284_v4 = vld [vmem:[#allocation2 + $0xc] sm:$0xf]  ;;  %v6407_v61 = vrot.slane %v6400_v24, %v8355_v62  ;;  %s13658_s11 = smov 14  }
0x28bb   : > { %v6306_v17 = vmul.f32 %v6304_v43, %v6292_v53  ;;  %v6335_v39 = vrot.slane %v6328_v49, %v8355_v62  ;;  %v6181_v38 = vmul.f32 %v11876_v16, %v6167_v12 }
0x28bd   : > { %6272 = vrot.lane.b32.xlu0 %v6268_v58, %s13619_s13  ;;  %v6337_v3 = vmul.f32 %v6335_v39, %v6324_v22 }
0x28be   : > { %6110 = vrot.lane.b32.xlu1 %v6105_v41, %s13253_s4  ;;  %v6487_v15 = vpop.permute.xlu0 %6486  ;;  %s13621_s4 = smov 103   ;;  %v6255_v41 = vmul.f32 %v6250_v8, %v6246_v50 }
0x28bf   : > { %v6361_v28 = vpop.permute.xlu1 %6360 }
0x28c0   : > { %v6368_v49 = vrot.slane %v6361_v28, %v8355_v62  ;;  %v6293_v28 = vmul.f32 %v6288_v2, %v6284_v4  ;;  %v6269_v22 = vmul.f32 %v6266_v52, %v6255_v41  ;;  %v6494_v41 = vrot.slane %v6487_v15, %v8355_v62 }
0x28c1   : > { %6310 = vrot.lane.b32.xlu0 %v6306_v17, %s13620_s24 }
0x28c2   : > { %6148 = vrot.lane.b32.xlu1 %v6143_v32, %s13613_s0  ;;  %s13652_s0 = smov 1  }
0x28c3   : > { %v6351_v58 = vpop.permute.xlu1 %6350  ;;  %v11907_v55 = vpop.permute.xlu0 %6525 }
0x28c4   : > { %v6352_v26 = vrot.slane %v6351_v58, 4 }
0x28c5   : > { %6339 = vrot.lane.b32.xlu0 %v6337_v3, %s13621_s4  ;;  %s13664_s4 = smov 46  }
0x28c6   : > { %v6357_v0 = vmul.f32 %v6352_v26, %v6348_v31  ;;  %6233 = vrot.lane.b32.xlu1 %v6229_v56, %s13617_s21  ;;  %v6353_v3 = vsel %vm13622_vm2, %v6352_v26, %v6351_v58  ;;  %v6307_v56 = vmul.f32 %v6304_v43, %v6293_v28  ;;  %vm13625_vm2 = vcmask 130048   ;;  %v6425_v43 = vld [vmem:[#allocation2 + $0x14] sm:$0xf] }
0x28c7   : > { %v6438_v46 = vpop.permute.xlu1 %6437  ;;  %v6516_v53 = vpop.permute.xlu0 %6515  ;;  %v6356_v12 = vmul.f32 %v6353_v3, %v11862_v5 }
0x28c8   : > { %v6371_v32 = vmul.f32 %v6368_v49, %v6357_v0  ;;  %v6445_v15 = vrot.slane %v6438_v46, %v8355_v62 }
0x28c9   : > { %v6370_v24 = vmul.f32 %v6368_v49, %v6356_v12  ;;  %v6513_v12 = vld [vmem:[#allocation2 + $0xc] sm:$0xf] }
0x28ca   : > { %6186 = vrot.lane.b32.xlu1 %v6181_v38, %s13255_s18  ;;  %6376 = vrot.lane.b32.xlu0 %v6371_v32, %s8140_s5  ;;  %s13624_s18 = smov 7  }
0x28cb   : > { %v6390_v17 = vpop.permute.xlu1 %6389  ;;  %v6554_v39 = vpop.permute.xlu0 %6553 }
0x28cc   : > { %v6391_v29 = vrot.slane %v6390_v17, 4  ;;  %v6555_v46 = vrot.slane %v6554_v39, 4 }
0x28ce   : > { %v6396_v8 = vmul.f32 %v6391_v29, %v6387_v27  ;;  %6274 = vrot.lane.b32.xlu1 %v6269_v22, %s13619_s13  ;;  %v6392_v50 = vsel %vm13623_vm13, %v6391_v29, %v6390_v17  ;;  %v6517_v22 = vrot.slane %v6516_v53, 4  ;;  %vm13630_vm13 = vcmask 678912  }
0x28cf   : > { %v6428_v16 = vpop.permute.xlu1 %6427  ;;  %v11918_v31 = vpop.permute.xlu0 %6591  ;;  %v6395_v58 = vmul.f32 %v6392_v50, %v11862_v5  ;;  %v6533_v50 = vrot.slane %v11907_v55, %v8355_v62  ;;  %v6589_v55 = vld [vmem:[#allocation2 + $0x10] sm:$0xf] }
0x28d0   : > { %v6410_v0 = vmul.f32 %v6407_v61, %v6396_v8  ;;  %v6429_v38 = vrot.slane %v6428_v16, 4 }
0x28d1   : > { %v6409_v29 = vmul.f32 %v6407_v61, %v6395_v58 }
0x28d2   : > { %6312 = vrot.lane.b32.xlu1 %v6307_v56, %s13620_s24  ;;  %6415 = vrot.lane.b32.xlu0 %v6410_v0, %s13624_s18  ;;  %v6430_v32 = vsel %vm13625_vm2, %v6429_v38, %v6428_v16  ;;  %v6434_v3 = vmul.f32 %v6429_v38, %v6425_v43  ;;  %v6464_v16 = vld [vmem:[#allocation2 + $0x8] sm:$0xf]  ;;  %vm13632_vm2 = vcmask 23552   ;;  %s13662_s24 = sld [smem:[#allocation82_spill]] }
0x28d3   : > { %v6477_v2 = vpop.permute.xlu1 %6476  ;;  %v11924_v52 = vpop.permute.xlu0 %6629  ;;  %v6433_v49 = vmul.f32 %v6430_v32, %v11871_v40 }
0x28d4   : > { %v6478_v26 = vrot.slane %v6477_v2, 4  ;;  %v6448_v38 = vmul.f32 %v6445_v15, %v6434_v3 }
0x28d5   : > { %v6447_v56 = vmul.f32 %v6445_v15, %v6433_v49  ;;  %v6593_v49 = vrot.slane %v11918_v31, 4 }
0x28d6   : > { %v6479_v4 = vsel %vm13626_vm4, %v6478_v26, %v6477_v2  ;;  %6374 = vrot.lane.b32.xlu1 %v6370_v24, %s8140_s5  ;;  %v6483_v0 = vmul.f32 %v6478_v26, %v6464_v16  ;;  %vm13628_vm4 = vcmask 285696   ;;  %v6522_v2 = vmul.f32 %v6517_v22, %v6513_v12  ;;  %v6627_v16 = vld [vmem:[#allocation2 + $0x10] sm:$0xf]  ;;  %s13669_s5 = smov 78  }
0x28d7   : > { %v6482_v27 = vmul.f32 %v11396_v57, %v6479_v4  ;;  %v6564_v17 = vpop.permute.xlu1 %6563  ;;  %v11932_v28 = vpop.permute.xlu0 %6764  ;;  %v6518_v61 = vsel %vm13628_vm4, %v6517_v22, %v6516_v53  ;;  %v6556_v53 = vsel %vm13630_vm13, %v6555_v46, %v6554_v39  ;;  %v6594_v39 = vsel %vm13632_vm2, %v6593_v49, %v11918_v31 }
0x28d8   : > { %v6521_v58 = vmul.f32 %v6518_v61, %v11885_v30  ;;  %v6497_v32 = vmul.f32 %v6494_v41, %v6483_v0  ;;  %v6571_v26 = vrot.slane %v6564_v17, %v8355_v62  ;;  %v6536_v4 = vmul.f32 %v6533_v50, %v6522_v2 }
0x28d9   : > { %v6496_v8 = vmul.f32 %v6494_v41, %v6482_v27  ;;  %v6551_v27 = vld [vmem:[#allocation2 + $0xc] sm:$0xf]  ;;  %v6559_v15 = vmul.f32 %v6556_v53, %v11885_v30  ;;  %vm13634_vm4 = vcmask 416768   ;;  %vm13637_vm13 = vcmask 809984  }
0x28da   : > { %6413 = vrot.lane.b32.xlu1 %v6409_v29, %s13624_s18  ;;  %v6560_v29 = vmul.f32 %v6555_v46, %v6551_v27  ;;  %v6535_v3 = vmul.f32 %v6533_v50, %v6521_v58  ;;  %vm13638_vm2 = vcmask 154624  }
0x28db   : > { %6500 = vrot.lane.b32.xlu0 %v6496_v8, %s13627_s16  ;;  %v6598_v8 = vmul.f32 %v6593_v49, %v6589_v55  ;;  %v6573_v0 = vmul.f32 %v6571_v26, %v6559_v15 }
0x28dc   : > { %v6602_v57 = vpop.permute.xlu1 %6601  ;;  %v11941_v24 = vpop.permute.xlu0 %6803  ;;  %v6574_v41 = vmul.f32 %v6571_v26, %v6560_v29 }
0x28dd   : > { %v6609_v17 = vrot.slane %v6602_v57, %v8355_v62  ;;  %v6597_v57 = vmul.f32 %v6594_v39, %v11862_v5 }
0x28de   : > { %6451 = vrot.lane.b32.xlu1 %v6447_v56, %s13629_s17  ;;  %v6631_v56 = vrot.slane %v11924_v52, 4 }
0x28df   : > { %6453 = vrot.lane.b32.xlu0 %v6448_v38, %s13629_s17  ;;  %v6612_v50 = vmul.f32 %v6609_v17, %v6598_v8  ;;  %v6611_v31 = vmul.f32 %v6609_v17, %v6597_v57 }
0x28e0   : > { %v11950_v22 = vpop.permute.xlu0 %6793  ;;  %v6636_v61 = vmul.f32 %v6631_v56, %v6627_v16  ;;  %v6632_v46 = vsel %vm13634_vm4, %v6631_v56, %v11924_v52  ;;  %vm13640_vm4 = vcmask 310272  }
0x28e1   : > { %v6640_v43 = vpop.permute.xlu1 %6639  ;;  %v6635_v26 = vmul.f32 %v6632_v46, %v11862_v5  ;;  %v6795_v39 = vrot.slane %v11950_v22, 4  ;;  %v6742_v46 = vld [vmem:[#allocation2 + $0x8] sm:$0xf] }
0x28e2   : > { %6502 = vrot.lane.b32.xlu1 %v6497_v32, %s13627_s16  ;;  %v6647_v2 = vrot.slane %v6640_v43, %v8355_v62  ;;  %v6665_v43 = vld [vmem:[#allocation2 + $0x10] sm:$0xf]  ;;  %s13731_s16 = sld [smem:[#allocation83_spill]] }
0x28e3   : > { %6541 = vrot.lane.b32.xlu0 %v6536_v4, %s13631_s30 }
0x28e4   : > { %v11961_v38 = vpop.permute.xlu0 %6832  ;;  %v6650_v32 = vmul.f32 %v6647_v2, %v6636_v61  ;;  %v6649_v55 = vmul.f32 %v6647_v2, %v6635_v26 }
0x28e6   : > { %v6678_v12 = vpop.permute.xlu1 %6677  ;;  %6539 = vrot.lane.b32.xlu1 %v6535_v3, %s13631_s30 }
0x28e7   : > { %6579 = vrot.lane.b32.xlu0 %v6574_v41, %s13633_s23  ;;  %v6685_v29 = vrot.slane %v6678_v12, %v8355_v62 }
0x28e8   : > { %v11970_v4 = vpop.permute.xlu0 %6870 }
0x28ea   : > { %6577 = vrot.lane.b32.xlu1 %v6573_v0, %s13633_s23  ;;  %s13733_s23 = sld [smem:[#allocation84_spill]] }
0x28eb   : > { %v6716_v58 = vpop.permute.xlu1 %6715  ;;  %6617 = vrot.lane.b32.xlu0 %v6612_v50, %s13635_s27  ;;  %v6772_v50 = vrot.slane %v11932_v28, %v8355_v62  ;;  %v6834_v28 = vrot.slane %v11961_v38, 4 }
0x28ec   : > { %v11977_v15 = vpop.permute.xlu0 %6908  ;;  %v6723_v12 = vrot.slane %v6716_v58, %v8355_v62  ;;  %v11992_v58 = vld [vmem:[#allocation2] sm:$0xff] }
0x28ee   : > { %6615 = vrot.lane.b32.xlu1 %v6611_v31, %s13635_s27  ;;  %v6796_v31 = vsel %vm13640_vm4, %v6795_v39, %v11950_v22  ;;  %vm7077_vm4 = vcmask 334848  }
0x28ef   : > { %v6668_v27 = vpop.permute.xlu1 %6667  ;;  %6655 = vrot.lane.b32.xlu0 %v6650_v32, %s13636_s29  ;;  %v6703_v32 = vld [vmem:[#allocation2 + $0x14] sm:$0xf]  ;;  %v6799_v22 = vmul.f32 %v6796_v31, %v11885_v30 }
0x28f0   : > { %v6669_v53 = vrot.slane %v6668_v27, 4 }
0x28f2   : > { %v6670_v52 = vsel %vm13637_vm13, %v6669_v53, %v6668_v27  ;;  %v6674_v49 = vmul.f32 %v6669_v53, %v6665_v43  ;;  %6653 = vrot.lane.b32.xlu1 %v6649_v55, %s13636_s29  ;;  %v11990_v27 = vpop.permute.xlu0 %7045  ;;  %vm13649_vm13 = vcmask 523264  }
0x28f3   : > { %v6673_v3 = vmul.f32 %v6670_v52, %v11862_v5  ;;  %v6706_v8 = vpop.permute.xlu1 %6705  ;;  %v6811_v52 = vrot.slane %v11941_v24, %v8355_v62 }
0x28f4   : > { %v6707_v41 = vrot.slane %v6706_v8, 4  ;;  %v6688_v17 = vmul.f32 %v6685_v29, %v6674_v49 }
0x28f5   : > { %v6687_v16 = vmul.f32 %v6685_v29, %v6673_v3 }
0x28f6   : > { %v6708_v56 = vsel %vm13638_vm2, %v6707_v41, %v6706_v8  ;;  %6693 = vrot.lane.b32.xlu0 %v6688_v17, %s13639_s9  ;;  %v6712_v49 = vmul.f32 %v6707_v41, %v6703_v32  ;;  %v6791_v8 = vld [vmem:[#allocation2 + $0xc] sm:$0xf]  ;;  %v6835_v17 = vsel %vm4875_vm12, %v6834_v28, %v11961_v38  ;;  %v6910_v38 = vrot.slane %v11977_v15, 4 }
0x28f7   : > { %v6711_v0 = vmul.f32 %v6708_v56, %v11871_v40  ;;  %v6755_v61 = vpop.permute.xlu1 %6754  ;;  %6691 = vrot.lane.b32.xlu1 %v6687_v16, %s13639_s9  ;;  %v6872_v16 = vrot.slane %v11970_v4, 4  ;;  %v6838_v41 = vmul.f32 %v6835_v17, %v11885_v30  ;;  %v6906_v17 = vld [vmem:[#allocation2 + $0x10] sm:$0xf]  ;;  %vm13646_vm12 = vcmask 654336   ;;  %s13745_s9 = sld [smem:[#allocation85_spill]] }
0x28f8   : > { %v6756_v2 = vrot.slane %v6755_v61, 4  ;;  %vm13651_vm2 = vcmask 179200  }
0x28f9   : > { %v6725_v57 = vmul.f32 %v6723_v12, %v6711_v0  ;;  %v6800_v0 = vmul.f32 %v6795_v39, %v6791_v8  ;;  %v5378_v8 = vrot.slane %v11321_v10, 4 }
0x28fa   : > { %v6757_v26 = vsel %vm4834_vm7, %v6756_v2, %v6755_v61  ;;  %v6761_v43 = vmul.f32 %v6756_v2, %v6742_v46  ;;  %v6813_v61 = vmul.f32 %v6811_v52, %v6799_v22  ;;  %v12005_v2 = vpop.permute.xlu0 %7085  ;;  %vm13643_vm7 = vcmask 48128  }
0x28fb   : > { %v6760_v55 = vmul.f32 %v11992_v58, %v6757_v26  ;;  %v6843_v53 = vpop.permute.xlu1 %6842  ;;  %6729 = vrot.lane.b32.xlu1 %v6725_v57, %s13641_s28  ;;  %v6726_v57 = vmul.f32 %v6723_v12, %v6712_v49  ;;  %v6814_v46 = vmul.f32 %v6811_v52, %v6800_v0  ;;  %v6830_v26 = vld [vmem:[#allocation2 + $0xc] sm:$0xf] }
0x28fc   : > { %v6775_v29 = vmul.f32 %v6772_v50, %v6761_v43  ;;  %v6850_v24 = vrot.slane %v6843_v53, %v8355_v62  ;;  %v6868_v43 = vld [vmem:[#allocation2 + $0x10] sm:$0xf] }
0x28fd   : > { %v6774_v3 = vmul.f32 %v6772_v50, %v6760_v55  ;;  %v6873_v50 = vsel %vm13643_vm7, %v6872_v16, %v11970_v4  ;;  %v6839_v55 = vmul.f32 %v6834_v28, %v6830_v26  ;;  %v6911_v4 = vsel %vm4916_vm5, %v6910_v38, %v11977_v15 }
0x28fe   : > { %v6852_v31 = vmul.f32 %v6850_v24, %v6838_v41  ;;  %v6876_v12 = vmul.f32 %v6873_v50, %v11862_v5  ;;  %v12015_v53 = vpop.permute.xlu0 %7074  ;;  %v6877_v22 = vmul.f32 %v6872_v16, %v6868_v43  ;;  %v6914_v0 = vmul.f32 %v6911_v4, %v11862_v5 }
0x28ff   : > { %6780 = vrot.lane.b32.xlu1 %v6775_v29, %s13642_s3  ;;  %6778 = vrot.lane.b32.xlu0 %v6774_v3, %s13642_s3  ;;  %v5364_v29 = vld [vmem:[#allocation2 + $0x8] sm:$0xf]  ;;  %v6853_v52 = vmul.f32 %v6850_v24, %v6839_v55  ;;  %v5472_v16 = vrot.slane %v11692_v44, 4  ;;  %v12033_v50 = vrot.slane %v11315_v63, %v8355_v62  ;;  %vm13648_vm5 = vcmask 261120   ;;  %v6944_v55 = vld [vmem:[#allocation2 + $0x10] sm:$0xf] }
0x2900   : > { %v6881_v56 = vpop.permute.xlu1 %6880  ;;  %v5384_v15 = vmul.f32 %v5378_v8, %v5364_v29  ;;  %v5551_v26 = vrot.slane %v11720_v35, 4  ;;  %v5590_v29 = vrot.slane %v11732_v14, 4  ;;  %vm7037_vm7 = vcmask 990208  }
0x2901   : > { %v6888_v39 = vrot.slane %v6881_v56, %v8355_v62  ;;  %v5433_v56 = vrot.slane %v11685_v13, 4 }
0x2902   : > { %v12029_v24 = vpop.permute.xlu0 %7113 }
0x2903   : > { %6731 = vrot.lane.b32.xlu0 %v6726_v57, %s13641_s28  ;;  %6817 = vrot.lane.b32.xlu1 %v6813_v61, %s8141_s14  ;;  %v6890_v49 = vmul.f32 %v6888_v39, %v6876_v12  ;;  %v6915_v61 = vmul.f32 %v6910_v38, %v6906_v17  ;;  %v6891_v57 = vmul.f32 %v6888_v39, %v6877_v22 }
0x2904   : > { %v5398_v38 = vmul.f32 %v12033_v50, %v5384_v15  ;;  %v5474_v39 = vsel %vm13648_vm5, %v5472_v16, %v11746_v48  ;;  %v5553_v48 = vsel %vm13649_vm13, %v5551_v26, %v11345_v51  ;;  %v5629_v15 = vrot.slane %v11742_v25, 4 }
0x2905   : > { %v6919_v32 = vpop.permute.xlu1 %6918  ;;  %v7076_v51 = vrot.slane %v12015_v53, 4  ;;  %vm7116_vm5 = vcmask 728064   ;;  %vm13656_vm13 = vcmask 629760  }
0x2906   : > { %v6926_v3 = vrot.slane %v6919_v32, %v8355_v62  ;;  %v12047_v43 = vpop.permute.xlu0 %7241 }
0x2907   : > { %6819 = vrot.lane.b32.xlu0 %v6814_v46, %s8141_s14  ;;  %6856 = vrot.lane.b32.xlu1 %v6852_v31, %s13644_s10  ;;  %v5435_v46 = vsel %vm13646_vm12, %v5433_v56, %v11734_v20  ;;  %vm13653_vm12 = vcmask 785408  }
0x2908   : > { %v6928_v41 = vmul.f32 %v6926_v3, %v6914_v0  ;;  %v6929_v32 = vmul.f32 %v6926_v3, %v6915_v61  ;;  %v5439_v63 = vadd.f32 %v5435_v46, %v5398_v38 }
0x290a   : > { %v6957_v28 = vpop.permute.xlu1 %6956  ;;  %v5478_v12 = vadd.f32 %v5474_v39, %v5439_v63 }
0x290b   : > { %6858 = vrot.lane.b32.xlu0 %v6853_v52, %s13644_s10  ;;  %6894 = vrot.lane.b32.xlu1 %v6890_v49, %s13645_s22  ;;  %v6964_v22 = vrot.slane %v6957_v28, %v8355_v62 }
0x290c   : > { %v5518_v0 = vadd.f32 %v11763_v54, %v5478_v12 }
0x290e   : > { %v5557_v46 = vadd.f32 %v5553_v48, %v5518_v0 }
0x290f   : > { %v6995_v31 = vpop.permute.xlu1 %6994  ;;  %6896 = vrot.lane.b32.xlu0 %v6891_v57, %s13645_s22  ;;  %6932 = vrot.lane.b32.xlu1 %v6928_v41, %s13647_s12  ;;  %v12060_v41 = vpop.permute.xlu0 %7281 }
0x2913   : > { %v6947_v20 = vpop.permute.xlu1 %6946  ;;  %6934 = vrot.lane.b32.xlu0 %v6929_v32, %s13647_s12  ;;  %v7002_v32 = vrot.slane %v6995_v31, %v8355_v62  ;;  %v7078_v31 = vsel %vm7077_vm4, %v7076_v51, %v12015_v53  ;;  %v12079_v0 = vpop.permute.xlu0 %6108  ;;  %v7093_v53 = vrot.slane %v12005_v2, %v8355_v62  ;;  %v7072_v2 = vld [vmem:[#allocation2 + $0xc] sm:$0xf]  ;;  %vm7155_vm4 = vcmask 72704  }
0x2914   : > { %v6948_v4 = vrot.slane %v6947_v20, 4 }
0x2916   : > { %v6949_v52 = vsel %vm5161_vm15, %v6948_v4, %v6947_v20  ;;  %v6953_v49 = vmul.f32 %v6948_v4, %v6944_v55  ;;  %vm13650_vm15 = vcmask 130048   ;;  %v7053_v20 = vrot.slane %v11990_v27, %v8355_v62 }
0x2917   : > { %v6952_v3 = vmul.f32 %v6949_v52, %v11862_v5  ;;  %v6985_v17 = vpop.permute.xlu1 %6984  ;;  %v5592_v38 = vsel %vm13650_vm15, %v5590_v29, %v11357_v59  ;;  %v5631_v59 = vsel %vm13653_vm12, %v5629_v15, %v11390_v34  ;;  %v7022_v52 = vld [vmem:[#allocation2 + $0x8] sm:$0xf]  ;;  %v5717_v34 = vrot.slane %v11758_v47, 4 }
0x2918   : > { %v6967_v61 = vmul.f32 %v6964_v22, %v6953_v49  ;;  %v6986_v57 = vrot.slane %v6985_v17, 4  ;;  %v5596_v4 = vadd.f32 %v5592_v38, %v5557_v46  ;;  %v6982_v49 = vld [vmem:[#allocation2 + $0x14] sm:$0xf]  ;;  %v7115_v27 = vrot.slane %v12029_v24, 4 }
0x2919   : > { %v6966_v28 = vmul.f32 %v6964_v22, %v6952_v3  ;;  %v7081_v38 = vmul.f32 %v7078_v31, %v11885_v30  ;;  %vm13657_vm15 = vcmask 236544   ;;  %vm13661_vm12 = vcmask 760832  }
0x291a   : > { %v6987_v39 = vsel %vm13651_vm2, %v6986_v57, %v6985_v17  ;;  %6972 = vrot.lane.b32.xlu0 %v6967_v61, %s13652_s0  ;;  %v5635_v17 = vadd.f32 %v5631_v59, %v5596_v4  ;;  %v5719_v4 = vsel %vm13656_vm13, %v5717_v34, %v11790_v36  ;;  %v5832_v36 = vrot.slane %v11807_v23, 4 }
0x291b   : > { %v6990_v63 = vmul.f32 %v6987_v39, %v11871_v40  ;;  %v7035_v55 = vpop.permute.xlu1 %7034  ;;  %6970 = vrot.lane.b32.xlu1 %v6966_v28, %s13652_s0  ;;  %v6991_v39 = vmul.f32 %v6986_v57, %v6982_v49  ;;  %vm13659_vm2 = vcmask 498688   ;;  %vm7233_vm13 = vcmask 859136  }
0x291c   : > { %v7036_v12 = vrot.slane %v7035_v55, 4  ;;  %v5685_v59 = vadd.f32 %v11776_v60, %v5635_v17 }
0x291d   : > { %v7004_v22 = vmul.f32 %v7002_v32, %v6990_v63  ;;  %v7005_v31 = vmul.f32 %v7002_v32, %v6991_v39 }
0x291e   : > { %v7038_v48 = vsel %vm7037_vm7, %v7036_v12, %v7035_v55  ;;  %v7042_v3 = vmul.f32 %v7036_v12, %v7022_v52  ;;  %v5755_v55 = vrot.slane %v11771_v7, 4  ;;  %v7095_v52 = vmul.f32 %v7093_v53, %v7081_v38  ;;  %v7111_v38 = vld [vmem:[#allocation2 + $0xc] sm:$0xf] }
0x291f   : > { %v7041_v61 = vmul.f32 %v11992_v58, %v7038_v48  ;;  %v7125_v28 = vpop.permute.xlu1 %7124  ;;  %7008 = vrot.lane.b32.xlu1 %v7004_v22, %s13654_s26  ;;  %v7117_v22 = vsel %vm7116_vm5, %v7115_v27, %v12029_v24  ;;  %v7121_v39 = vmul.f32 %v7115_v27, %v7111_v38  ;;  %vm13660_vm7 = vcmask 105472  }
0x2920   : > { %v7056_v46 = vmul.f32 %v7053_v20, %v7042_v3  ;;  %v7132_v49 = vrot.slane %v7125_v28, %v8355_v62  ;;  %v5757_v48 = vsel %vm13657_vm15, %v5755_v55, %v11810_v11  ;;  %v5723_v3 = vadd.f32 %v5719_v4, %v5685_v59  ;;  %v7150_v59 = vld [vmem:[#allocation2 + $0x10] sm:$0xf] }
0x2921   : > { %v7055_v63 = vmul.f32 %v7053_v20, %v7041_v61  ;;  %v7082_v20 = vmul.f32 %v7076_v51, %v7072_v2  ;;  %v7120_v17 = vmul.f32 %v7117_v22, %v11885_v30  ;;  %v5834_v11 = vsel %vm13659_vm2, %v5832_v36, %v11481_v1 }
0x2922   : > { %v5761_v24 = vadd.f32 %v5757_v48, %v5723_v3  ;;  %v5909_v30 = vrot.slane %v11830_v37, 4  ;;  %vm7194_vm5 = vcmask 465920   ;;  %vm7273_vm15 = vcmask 203776  }
0x2923   : > { %7061 = vrot.lane.b32.xlu1 %v7056_v46, %s13655_s19  ;;  %7059 = vrot.lane.b32.xlu0 %v7055_v63, %s13655_s19  ;;  %v12092_v12 = vpop.permute.xlu0 %6146  ;;  %v7096_v51 = vmul.f32 %v7093_v53, %v7082_v20  ;;  %v7134_v61 = vmul.f32 %v7132_v49, %v7120_v17  ;;  %v5870_v46 = vrot.slane %v11818_v9, 4  ;;  %v7135_v63 = vmul.f32 %v7132_v49, %v7121_v39  ;;  %v7189_v39 = vld [vmem:[#allocation2 + $0x10] sm:$0xf] }
0x2924   : > { %v7164_v57 = vpop.permute.xlu1 %7163  ;;  %v5800_v53 = vadd.f32 %v11821_v42, %v5761_v24  ;;  %v5911_v1 = vsel %vm13661_vm12, %v5909_v30, %v11549_v45  ;;  %v5997_v17 = vrot.slane %v11836_v21, 4  ;;  %vm5379_vm2 = vcmask 842752  }
0x2925   : > { %v5872_v27 = vsel %vm13660_vm7, %v5870_v46, %v11493_v6  ;;  %vm13670_vm7 = vcmask 654336   ;;  %vm13671_vm12 = vcmask 261120  }
0x2926   : > { %v5838_v22 = vadd.f32 %v5834_v11, %v5800_v53  ;;  %v6035_v11 = vrot.slane %v11843_v33, 4 }
0x2927   : > { %7010 = vrot.lane.b32.xlu0 %v7005_v31, %s13654_s26  ;;  %7099 = vrot.lane.b32.xlu1 %v7095_v52, %s13096_s15  ;;  %v12108_v32 = vpop.permute.xlu0 %6184  ;;  %v7171_v52 = vrot.slane %v7164_v57, %v8355_v62 }
0x2928   : > { %v5876_v48 = vadd.f32 %v5872_v27, %v5838_v22  ;;  %v5999_v27 = vsel %vm3334_vm8, %v5997_v17, %v11832_v19  ;;  %v7268_v19 = vld [vmem:[#allocation2 + $0x14] sm:$0xf] }
0x2929   : > { %v7203_v28 = vpop.permute.xlu1 %7202 }
0x292a   : > { %v7210_v45 = vrot.slane %v7203_v28, %v8355_v62 }
0x292b   : > { %7101 = vrot.lane.b32.xlu0 %v7096_v51, %s13096_s15  ;;  %7138 = vrot.lane.b32.xlu1 %v7134_v61, %s13658_s11  ;;  %v12123_v20 = vpop.permute.xlu0 %6235  ;;  %v5915_v61 = vadd.f32 %v5911_v1, %v5876_v48  ;;  %v7249_v1 = vrot.slane %v12047_v43, %v8355_v62  ;;  %v7228_v48 = vld [vmem:[#allocation2 + $0x10] sm:$0xf]  ;;  %v7289_v43 = vrot.slane %v12060_v41, %v8355_v62  ;;  %v13665_v41 = vmov 1  }
0x292d   : > { %v7153_v4 = vpop.permute.xlu1 %7152  ;;  %v5965_v28 = vadd.f32 %v11828_v18, %v5915_v61 }
0x292e   : > { %v7154_v2 = vrot.slane %v7153_v4, 4 }
0x292f   : > { %7140 = vrot.lane.b32.xlu0 %v7135_v63, %s13658_s11  ;;  %v12136_v57 = vpop.permute.xlu0 %6272 }
0x2930   : > { %v7156_v31 = vsel %vm7155_vm4, %v7154_v2, %v7153_v4  ;;  %v7160_v49 = vmul.f32 %v7154_v2, %v7150_v59  ;;  %v7306_v4 = vld [vmem:[%s13662_s24] sm:$0xf]  ;;  %vm13666_vm4 = vcmask 474112  }
0x2931   : > { %v7159_v3 = vmul.f32 %v7156_v31, %v11862_v5  ;;  %v7192_v6 = vpop.permute.xlu1 %7191  ;;  %v13663_v31 = vld [vmem:[#allocation60_spill] sm:$0xff] }
0x2932   : > { %v7174_v24 = vmul.f32 %v7171_v52, %v7160_v49  ;;  %v7193_v51 = vrot.slane %v7192_v6, 4  ;;  %v6037_v49 = vsel %vm3454_vm11, %v6035_v11, %v13663_v31 }
0x2933   : > { %v7173_v38 = vmul.f32 %v7171_v52, %v7159_v3 }
0x2934   : > { %v7195_v53 = vsel %vm7194_vm5, %v7193_v51, %v7192_v6  ;;  %7179 = vrot.lane.b32.xlu0 %v7174_v24, %s13135_s25  ;;  %v7199_v2 = vmul.f32 %v7193_v51, %v7189_v39  ;;  %v6003_v6 = vadd.f32 %v5999_v27, %v5965_v28  ;;  %v5380_v28 = vsel %vm5379_vm2, %v5378_v8, %v11321_v10 }
0x2935   : > { %v7198_v63 = vmul.f32 %v7195_v53, %v11862_v5  ;;  %v7231_v59 = vpop.permute.xlu1 %7230  ;;  %7177 = vrot.lane.b32.xlu1 %v7173_v38, %s13135_s25  ;;  %v12158_v53 = vpop.permute.xlu0 %6310  ;;  %v6150_v10 = vrot.slane %v12092_v12, 4  ;;  %vm13672_vm5 = vcmask 916480  }
0x2936   : > { %v7232_v22 = vrot.slane %v7231_v59, 4  ;;  %v7213_v61 = vmul.f32 %v7210_v45, %v7199_v2  ;;  %v6041_v39 = vadd.f32 %v6037_v49, %v6003_v6  ;;  %v13668_v6 = vld [vmem:[#allocation58_spill] sm:$0xff] }
0x2937   : > { %v7212_v52 = vmul.f32 %v7210_v45, %v7198_v63 }
0x2938   : > { %v7234_v3 = vsel %vm7233_vm13, %v7232_v22, %v7231_v59  ;;  %7309 = vperm.xlu0 %7960, %v7306_v4   ;;  %v7238_v63 = vmul.f32 %v7232_v22, %v7228_v48  ;;  %v6112_v4 = vrot.slane %v12079_v0, 4  ;;  %v13667_v22 = vld [vmem:[#allocation64_spill] sm:$0xff]  ;;  %vm13673_vm13 = vcmask 523264  }
0x2939   : > { %v7237_v24 = vmul.f32 %v7234_v3, %v11862_v5  ;;  %v7271_v51 = vpop.permute.xlu1 %7270  ;;  %7216 = vrot.lane.b32.xlu1 %v7212_v52, %s13664_s4  ;;  %v6080_v31 = vadd.f32 %v13667_v22, %v6041_v39  ;;  %v5383_v3 = vmul.f32 %v11992_v58, %v5380_v28  ;;  %v12177_v8 = vpop.permute.xlu0 %6339  ;;  %v5434_v58 = vsel %vm13670_vm7, %v5433_v56, %v11685_v13 }
0x293a   : > { %v7272_v38 = vrot.slane %v7271_v51, 4  ;;  %v7252_v49 = vmul.f32 %v7249_v1, %v7238_v63  ;;  %v5552_v28 = vsel %vm13673_vm13, %v5551_v26, %v11720_v35  ;;  %v13676_v35 = vld [vmem:[#allocation57_spill] sm:$0xff]  ;;  %vm13678_vm7 = vcmask 1022976  }
0x293b   : > { %v7251_v59 = vmul.f32 %v7249_v1, %v7237_v24  ;;  %v5511_v24 = vrot.slane %v13668_v6, 4  ;;  %v5397_v39 = vmul.f32 %v12033_v50, %v5383_v3  ;;  %v5678_v26 = vrot.slane %v13676_v35, 4 }
0x293c   : > { %v7274_v27 = vsel %vm7273_vm15, %v7272_v38, %v7271_v51  ;;  %v7278_v5 = vmul.f32 %v7272_v38, %v7268_v19  ;;  %7218 = vrot.lane.b32.xlu0 %v7213_v61, %s13664_s4  ;;  %v5512_v61 = vrot.slane %v11763_v54, 4  ;;  %v5473_v54 = vsel %vm13671_vm12, %v5472_v16, %v11692_v44 }
0x293d   : > { %v6111_v52 = vpop.permute.xlu1 %6110  ;;  %7255 = vrot.lane.b32.xlu1 %v7251_v59, %s13131_s20  ;;  %7962 = vset.pattern.permute.xlu0 %v13665_v41  ;;  %v7277_v48 = vmul.f32 %v7274_v27, %v11871_v40  ;;  %v5438_v27 = vadd.f32 %v5434_v58, %v5397_v39  ;;  %v12201_v56 = vpop.permute.xlu0 %6376  ;;  %vm13674_vm15 = vcmask 130048   ;;  %v5679_v41 = vrot.slane %v11776_v60, 4 }
0x293e   : > { %v7292_v45 = vmul.f32 %v7289_v43, %v7278_v5  ;;  %v6114_v2 = vsel %vm13666_vm4, %v6112_v4, %v6111_v52  ;;  %v5513_v63 = vsel %vm416_vm0, %v5511_v24, %v5512_v61  ;;  %v5591_v16 = vsel %vm13674_vm15, %v5590_v29, %v11732_v14  ;;  %v13677_v29 = vld [vmem:[#allocation61_spill] sm:$0xff] }
0x293f   : > { %v6118_v19 = vadd.f32 %v6114_v2, %v6080_v31  ;;  %v7291_v1 = vmul.f32 %v7289_v43, %v7277_v48  ;;  %v5514_v13 = vsel %vm13672_vm5, %v13668_v6, %v5513_v63  ;;  %v5477_v43 = vadd.f32 %v5473_v54, %v5438_v27 }
0x2940   : > { %7297 = vrot.lane.b32.xlu0 %v7292_v45, %s13669_s5  ;;  %vm13675_vm4 = vcmask 785408   ;;  %v5680_v3 = vsel %vm416_vm0, %v5678_v26, %v5679_v41  ;;  %v5793_v6 = vrot.slane %v13677_v29, 4  ;;  %vm13679_vm12 = vcmask 629760  }
0x2941   : > { %v6149_v51 = vpop.permute.xlu1 %6148  ;;  %7257 = vrot.lane.b32.xlu1 %v7252_v49, %s13131_s20  ;;  %v5517_v50 = vadd.f32 %v5514_v13, %v5477_v43  ;;  %v5630_v2 = vsel %vm13675_vm4, %v5629_v15, %v11742_v25  ;;  %v5681_v60 = vsel %vm13678_vm7, %v13676_v35, %v5680_v3  ;;  %v5794_v25 = vrot.slane %v11821_v42, 4  ;;  %v13683_v43 = vld [vmem:[#allocation59_spill] sm:$0xff] }
0x2942   : > { %v6152_v40 = vsel %vm5883_vm14, %v6150_v10, %v6149_v51  ;;  %v5718_v51 = vsel %vm13679_vm12, %v5717_v34, %v11758_v47  ;;  %vm13680_vm5 = vcmask 236544   ;;  %vm13681_vm13 = vcmask 498688  }
0x2943   : > { %v12188_v38 = vadd.f32 %v6152_v40, %v6118_v19  ;;  %v5556_v45 = vadd.f32 %v5552_v28, %v5517_v50  ;;  %v5795_v61 = vsel %vm416_vm0, %v5793_v6, %v5794_v25  ;;  %v5756_v40 = vsel %vm13680_vm5, %v5755_v55, %v11771_v7 }
0x2944   : > { %v12209_v44 = vpop.permute.xlu0 %6415  ;;  %v5796_v39 = vsel %vm1120_vm9, %v13677_v29, %v5795_v61  ;;  %v5833_v47 = vsel %vm13681_vm13, %v5832_v36, %v11807_v23  ;;  %vm13682_vm15 = vcmask 105472   ;;  %v5959_v13 = vrot.slane %v11828_v18, 4 }
0x2945   : > { %v12196_v59 = vpop.permute.xlu1 %6233  ;;  %7295 = vrot.lane.b32.xlu1 %v7291_v1, %s13669_s5  ;;  %v5595_v49 = vadd.f32 %v5591_v16, %v5556_v45  ;;  %v5871_v7 = vsel %vm13682_vm15, %v5870_v46, %v11818_v9  ;;  %v5958_v50 = vrot.slane %v13683_v43, 4  ;;  %vm13684_vm9 = vcmask 760832   ;;  %v13685_v45 = vld [vmem:[#allocation62_spill] sm:$0xff] }
0x2946   : > { %v5910_v16 = vsel %vm13684_vm9, %v5909_v30, %v11830_v37  ;;  %v6074_v46 = vrot.slane %v13667_v22, 4  ;;  %v5998_v37 = vsel %vm3334_vm8, %v5997_v17, %v11836_v21  ;;  %v6036_v22 = vsel %vm3454_vm11, %v6035_v11, %v11843_v33 }
0x2947   : > { %v5634_v14 = vadd.f32 %v5630_v2, %v5595_v49  ;;  %v5960_v41 = vsel %vm416_vm0, %v5958_v50, %v5959_v13  ;;  %v6073_v2 = vrot.slane %v13685_v45, 4  ;;  %v6237_v21 = vrot.slane %v12196_v59, 4 }
0x2948   : > { %v5961_v18 = vsel %vm3213_vm6, %v13683_v43, %v5960_v41  ;;  %vm13686_vm6 = vcmask 474112   ;;  %v6188_v25 = vrot.slane %v12108_v32, 4  ;;  %v6238_v33 = vrot.slane %v12123_v20, 4 }
0x2949   : > { %v12203_v5 = vpop.permute.xlu1 %6186  ;;  %v5684_v15 = vadd.f32 %v5681_v60, %v5634_v14  ;;  %v6075_v49 = vsel %vm416_vm0, %v6073_v2, %v6074_v46  ;;  %v6113_v17 = vsel %vm13686_vm6, %v6112_v4, %v12079_v0  ;;  %v6151_v11 = vsel %vm5883_vm14, %v6150_v10, %v12092_v12 }
0x294a   : > { %v6076_v14 = vsel %vm3254_vm3, %v13685_v45, %v6075_v49  ;;  %v6189_v0 = vsel %vm3295_vm10, %v6188_v25, %v12108_v32  ;;  %v6276_v12 = vrot.slane %v12136_v57, 4  ;;  %v6190_v13 = vsel %vm3295_vm10, %v6188_v25, %v12203_v5 }
0x294b   : > { %v5722_v1 = vadd.f32 %v5718_v51, %v5684_v15  ;;  %vm13687_vm11 = vcmask 580608   ;;  %v6314_v43 = vrot.slane %v12158_v53, 4  ;;  %vm13688_vm3 = vcmask 187392  }
0x294c   : > { %v6277_v32 = vsel %vm13687_vm11, %v6276_v12, %v12136_v57  ;;  %v6341_v41 = vrot.slane %v12177_v8, 4  ;;  %vm6379_vm8 = vcmask 449536   ;;  %vm13689_vm10 = vmmov %vm13687_vm11  ;;  %vm13691_vm4 = vcmask 56320  }
0x294d   : > { %v12215_v52 = vpop.permute.xlu1 %6274  ;;  %v12222_v31 = vpop.permute.xlu0 %6500  ;;  %v5760_v63 = vadd.f32 %v5756_v40, %v5722_v1  ;;  %v6239_v1 = vsel %vm416_vm0, %v6237_v21, %v6238_v33  ;;  %vm13690_vm14 = vmmov %vm13688_vm3  ;;  %vm13693_vm7 = vcmask 949248   ;;  %vm13695_vm5 = vcmask 556032  }
0x294e   : > { %vm13694_vm12 = vmmov %vm13691_vm4  ;;  %vm13697_vm15 = vcmask 162816   ;;  %vm13698_vm9 = vcmask 818176   ;;  %vm13699_vm6 = vcmask 424960  }
0x294f   : > { %v5799_v27 = vadd.f32 %v5796_v39, %v5760_v63  ;;  %v6240_v39 = vsel %vm5485_vm1, %v12196_v59, %v6239_v1  ;;  %vm13700_vm11 = vmmov %vm13695_vm5 }
0x2951   : > { %v12225_v48 = vpop.permute.xlu1 %6312  ;;  %v12231_v24 = vpop.permute.xlu0 %6453  ;;  %v5837_v28 = vadd.f32 %v5833_v47, %v5799_v27 }
0x2952   : > { %v6316_v49 = vsel %vm13690_vm14, %v6314_v43, %v12225_v48  ;;  %vm13704_vm14 = vmmov %vm13698_vm9 }
0x2953   : > { %v5875_v23 = vadd.f32 %v5871_v7, %v5837_v28  ;;  %v6194_v28 = vadd.f32 %v6190_v13, %v12188_v38  ;;  %v6278_v38 = vsel %vm13689_vm10, %v6276_v12, %v12215_v52  ;;  %vm13703_vm10 = vcmask 687104  }
0x2955   : > { %v12233_v19 = vpop.permute.xlu1 %6374  ;;  %v12249_v42 = vpop.permute.xlu0 %6541  ;;  %v5914_v9 = vadd.f32 %v5910_v16, %v5875_v23  ;;  %v6315_v23 = vsel %vm13688_vm3, %v6314_v43, %v12158_v53  ;;  %v6244_v57 = vadd.f32 %v12123_v20, %v6194_v28  ;;  %v6342_v53 = vsel %vm5379_vm2, %v6341_v41, %v12177_v8 }
0x2956   : > { %v6504_v20 = vrot.slane %v12222_v31, 4  ;;  %vm13692_vm2 = vcmask 711680   ;;  %vm13701_vm3 = vcmask 31744  }
0x2957   : > { %v5964_v26 = vadd.f32 %v5961_v18, %v5914_v9  ;;  %v6378_v9 = vrot.slane %v12233_v19, 4  ;;  %vm13696_vm13 = vmmov %vm13692_vm2 }
0x2959   : > { %v12245_v58 = vpop.permute.xlu1 %6413  ;;  %v12261_v34 = vpop.permute.xlu0 %6579  ;;  %v6002_v3 = vadd.f32 %v5998_v37, %v5964_v26  ;;  %v6380_v37 = vsel %vm6379_vm8, %v6378_v9, %v12233_v19 }
0x295a   : > { %v6417_v46 = vrot.slane %v12245_v58, 4 }
0x295b   : > { %v6040_v60 = vadd.f32 %v6036_v22, %v6002_v3  ;;  %v6282_v3 = vadd.f32 %v6278_v38, %v6244_v57 }
0x295c   : > { %v6418_v52 = vsel %vm13691_vm4, %v6417_v46, %v12245_v58  ;;  %v6381_v58 = vsel %vm6379_vm8, %v6378_v9, %v12201_v56  ;;  %vm13702_vm8 = vmmov %vm13697_vm15  ;;  %vm13705_vm4 = vcmask 924672  }
0x295d   : > { %v12251_v54 = vpop.permute.xlu1 %6451  ;;  %v12276_v35 = vpop.permute.xlu0 %6617  ;;  %v6079_v15 = vadd.f32 %v6076_v14, %v6040_v60  ;;  %v6320_v21 = vadd.f32 %v6316_v49, %v6282_v3 }
0x295e   : > { %v6455_v26 = vrot.slane %v12251_v54, 4 }
0x295f   : > { %v6117_v40 = vadd.f32 %v6113_v17, %v6079_v15 }
0x2960   : > { %v6456_v19 = vsel %vm13692_vm2, %v6455_v26, %v12251_v54  ;;  %v6419_v54 = vsel %vm13694_vm12, %v6417_v46, %v12209_v44  ;;  %v6457_v56 = vsel %vm13696_vm13, %v6455_v26, %v12231_v24  ;;  %vm13706_vm2 = vmmov %vm13699_vm6  ;;  %vm13709_vm13 = vcmask 138240  }
0x2961   : > { %v12263_v55 = vpop.permute.xlu1 %6502  ;;  %v12293_v29 = vpop.permute.xlu0 %6655  ;;  %v6155_v4 = vadd.f32 %v6151_v11, %v6117_v40  ;;  %v6346_v40 = vadd.f32 %v6341_v41, %v6320_v21  ;;  %vm13707_vm12 = vmmov %vm13701_vm3 }
0x2962   : > { %v6505_v18 = vrot.slane %v12263_v55, 4 }
0x2963   : > { %v6193_v47 = vadd.f32 %v6189_v0, %v6155_v4  ;;  %v6385_v4 = vadd.f32 %v6381_v58, %v6346_v40 }
0x2964   : > { %v6506_v8 = vsel %vm416_vm0, %v6504_v20, %v6505_v18 }
0x2965   : > { %v12271_v36 = vpop.permute.xlu1 %6539  ;;  %v6243_v10 = vadd.f32 %v6240_v39, %v6193_v47  ;;  %v6507_v48 = vsel %vm13693_vm7, %v12222_v31, %v6506_v8  ;;  %vm6822_vm7 = vcmask 531456  }
0x2966   : > { %v6543_v15 = vrot.slane %v12271_v36, 4 }
0x2967   : > { %v6281_v59 = vadd.f32 %v6277_v32, %v6243_v10  ;;  %v6423_v10 = vadd.f32 %v6419_v54, %v6385_v4 }
0x2968   : > { %v12308_v51 = vpop.permute.xlu0 %6693  ;;  %v6544_v39 = vsel %vm13695_vm5, %v6543_v15, %v12271_v36  ;;  %vm13708_vm5 = vmmov %vm13703_vm10 }
0x2969   : > { %v12284_v30 = vpop.permute.xlu1 %6577  ;;  %v6319_v5 = vadd.f32 %v6315_v23, %v6281_v59  ;;  %v6461_v43 = vadd.f32 %v6457_v56, %v6423_v10 }
0x296a   : > { %v6581_v1 = vrot.slane %v12284_v30, 4 }
0x296b   : > { %v6345_v22 = vadd.f32 %v6342_v53, %v6319_v5  ;;  %v6545_v5 = vsel %vm13700_vm11, %v6543_v15, %v12249_v42  ;;  %v6511_v46 = vadd.f32 %v12263_v55, %v6461_v43  ;;  %vm13713_vm11 = vmmov %vm13709_vm13 }
0x296c   : > { %v6582_v13 = vsel %vm13697_vm15, %v6581_v1, %v12284_v30  ;;  %vm13710_vm15 = vcmask 793600  }
0x296d   : > { %v12295_v6 = vpop.permute.xlu1 %6615  ;;  %v6384_v60 = vadd.f32 %v6380_v37, %v6345_v22  ;;  %v6549_v26 = vadd.f32 %v6545_v5, %v6511_v46 }
0x296e   : > { %v6619_v31 = vrot.slane %v12295_v6, 4 }
0x296f   : > { %v6422_v25 = vadd.f32 %v6418_v52, %v6384_v60 }
0x2970   : > { %v6620_v36 = vsel %vm13698_vm9, %v6619_v31, %v12295_v6  ;;  %v6621_v49 = vsel %vm13704_vm14, %v6619_v31, %v12276_v35  ;;  %vm13711_vm9 = vcmask 400384  }
0x2971   : > { %v12310_v61 = vpop.permute.xlu1 %6653  ;;  %v12317_v63 = vpop.permute.xlu0 %6778  ;;  %v6460_v11 = vadd.f32 %v6456_v19, %v6422_v25  ;;  %vm13717_vm14 = vmmov %vm13711_vm9 }
0x2972   : > { %v6657_v44 = vrot.slane %v12310_v61, 4  ;;  %v6782_v6 = vrot.slane %v12317_v63, 4 }
0x2973   : > { %v6510_v0 = vadd.f32 %v6507_v48, %v6460_v11 }
0x2974   : > { %v6658_v24 = vsel %vm13699_vm6, %v6657_v44, %v12310_v61  ;;  %v6583_v61 = vsel %vm13702_vm8, %v6581_v1, %v12261_v34  ;;  %v6659_v34 = vsel %vm13706_vm2, %v6657_v44, %v12293_v29  ;;  %vm13712_vm6 = vcmask 7168   ;;  %vm13715_vm8 = vmmov %vm13710_vm15 }
0x2975   : > { %v12319_v27 = vpop.permute.xlu1 %6691  ;;  %v12329_v50 = vpop.permute.xlu0 %6731  ;;  %v6548_v32 = vadd.f32 %v6544_v39, %v6510_v0  ;;  %v6587_v22 = vadd.f32 %v6583_v61, %v6549_v26  ;;  %vm13719_vm2 = vcmask 506880  }
0x2976   : > { %v6695_v59 = vrot.slane %v12319_v27, 4 }
0x2977   : > { %v6586_v23 = vadd.f32 %v6582_v13, %v6548_v32  ;;  %v6625_v8 = vadd.f32 %v6621_v49, %v6587_v22 }
0x2978   : > { %v6696_v38 = vsel %vm13701_vm3, %v6695_v59, %v12319_v27  ;;  %v6697_v35 = vsel %vm13707_vm12, %v6695_v59, %v12308_v51  ;;  %vm13714_vm3 = vcmask 662528   ;;  %vm13721_vm12 = vcmask 113664  }
0x2979   : > { %v12322_v7 = vpop.permute.xlu1 %6729  ;;  %v12340_v45 = vpop.permute.xlu0 %6819  ;;  %v6624_v57 = vadd.f32 %v6620_v36, %v6586_v23  ;;  %v6663_v25 = vadd.f32 %v6659_v34, %v6625_v8 }
0x297a   : > { %v6733_v9 = vrot.slane %v12322_v7, 4 }
0x297b   : > { %v6662_v53 = vadd.f32 %v6658_v24, %v6624_v57  ;;  %v6701_v58 = vadd.f32 %v6697_v35, %v6663_v25 }
0x297c   : > { %v6734_v42 = vsel %vm13703_vm10, %v6733_v9, %v12322_v7  ;;  %v6735_v29 = vsel %vm13708_vm5, %v6733_v9, %v12329_v50  ;;  %vm13716_vm10 = vcmask 900096   ;;  %vm13722_vm5 = vcmask 769024  }
0x297d   : > { %v12332_v16 = vpop.permute.xlu1 %6780  ;;  %v12362_v17 = vpop.permute.xlu0 %6858  ;;  %v6700_v55 = vadd.f32 %v6696_v38, %v6662_v53  ;;  %v6739_v54 = vadd.f32 %v6735_v29, %v6701_v58 }
0x297e   : > { %v6783_v41 = vrot.slane %v12332_v16, 4 }
0x297f   : > { %v6738_v60 = vadd.f32 %v6734_v42, %v6700_v55  ;;  %v6789_v44 = vadd.f32 %v12332_v16, %v6739_v54 }
0x2980   : > { %v6784_v37 = vsel %vm416_vm0, %v6782_v6, %v6783_v41 }
0x2981   : > { %v12342_v2 = vpop.permute.xlu1 %6817  ;;  %v12377_v47 = vpop.permute.xlu0 %6896  ;;  %v6785_v27 = vsel %vm13705_vm4, %v12317_v63, %v6784_v37  ;;  %vm13718_vm4 = vmmov %vm13712_vm6 }
0x2982   : > { %v6821_v3 = vrot.slane %v12342_v2, 4  ;;  %v6788_v19 = vadd.f32 %v6785_v27, %v6738_v60 }
0x2984   : > { %v6823_v63 = vsel %vm6822_vm7, %v6821_v3, %v12342_v2 }
0x2985   : > { %v12357_v14 = vpop.permute.xlu1 %6856  ;;  %v12395_v30 = vpop.permute.xlu0 %6934  ;;  %v6827_v1 = vadd.f32 %v6823_v63, %v6788_v19 }
0x2986   : > { %v6860_v7 = vrot.slane %v12357_v14, 4 }
0x2988   : > { %v6861_v11 = vsel %vm13709_vm13, %v6860_v7, %v12357_v14  ;;  %v6824_v14 = vsel %vm6822_vm7, %v6821_v3, %v12340_v45  ;;  %v6862_v32 = vsel %vm13713_vm11, %v6860_v7, %v12362_v17  ;;  %vm13720_vm7 = vmmov %vm13714_vm3  ;;  %vm13723_vm13 = vcmask 375808  }
0x2989   : > { %v12367_v33 = vpop.permute.xlu1 %6894  ;;  %v6865_v4 = vadd.f32 %v6861_v11, %v6827_v1  ;;  %vm13727_vm11 = vmmov %vm13722_vm5 }
0x298a   : > { %v6898_v48 = vrot.slane %v12367_v33, 4 }
0x298c   : > { %v6973_v20 = vpop.permute.xlu0 %6972  ;;  %v6899_v51 = vsel %vm13710_vm15, %v6898_v48, %v12367_v33  ;;  %v6900_v45 = vsel %vm13715_vm8, %v6898_v48, %v12377_v47  ;;  %vm13724_vm15 = vmmov %vm13719_vm2 }
0x298d   : > { %v12379_v12 = vpop.permute.xlu1 %6932  ;;  %v6903_v10 = vadd.f32 %v6899_v51, %v6865_v4  ;;  %vm13729_vm8 = vmmov %vm13723_vm13 }
0x298e   : > { %v6936_v40 = vrot.slane %v12379_v12, 4 }
0x2990   : > { %v6937_v50 = vsel %vm13711_vm9, %v6936_v40, %v12379_v12  ;;  %v6828_v12 = vadd.f32 %v6824_v14, %v6789_v44  ;;  %v6938_v17 = vsel %vm13717_vm14, %v6936_v40, %v12395_v30  ;;  %vm13725_vm9 = vmmov %vm13721_vm12  ;;  %vm13746_vm14 = vcmask 277504  }
0x2991   : > { %v12389_v28 = vpop.permute.xlu1 %6970  ;;  %v6941_v43 = vadd.f32 %v6937_v50, %v6903_v10 }
0x2992   : > { %v6974_v0 = vrot.slane %v12389_v28, 4  ;;  %v6866_v16 = vadd.f32 %v6862_v32, %v6828_v12  ;;  %v13734_v12 = vmov 3  }
0x2994   : > { %v6975_v33 = vsel %vm13712_vm6, %v6974_v0, %v12389_v28  ;;  %v6904_v57 = vadd.f32 %v6900_v45, %v6866_v16  ;;  %v6976_v38 = vsel %vm13718_vm4, %v6974_v0, %v6973_v20  ;;  %vm13726_vm6 = vcmask 1031168  }
0x2995   : > { %v12403_v18 = vpop.permute.xlu1 %7008  ;;  %v7060_v21 = vpop.permute.xlu0 %7059  ;;  %v6979_v24 = vadd.f32 %v6975_v33, %v6941_v43  ;;  %v7335_v33 = vld [vmem:[%s13731_s16] sm:$0xf]  ;;  %v13732_v43 = vmov 2  }
0x2996   : > { %v7012_v31 = vrot.slane %v12403_v18, 4  ;;  %v7063_v13 = vrot.slane %v7060_v21, 4  ;;  %v6942_v61 = vadd.f32 %v6938_v17, %v6904_v57 }
0x2998   : > { %v7013_v59 = vsel %vm13714_vm3, %v7012_v31, %v12403_v18  ;;  %v6980_v42 = vadd.f32 %v6976_v38, %v6942_v61  ;;  %vm13728_vm3 = vcmask 637952   ;;  %v13739_v38 = vld [vmem:[#allocation11_spill] sm:$0xff] }
0x2999   : > { %v12415_v52 = vpop.permute.xlu1 %7061  ;;  %v7011_v2 = vpop.permute.xlu0 %7010  ;;  %v7017_v5 = vadd.f32 %v7013_v59, %v6979_v24  ;;  %v13735_v59 = vmov 0  }
0x299a   : > { %v7064_v39 = vrot.slane %v12415_v52, 4  ;;  %v7014_v26 = vsel %vm13720_vm7, %v7012_v31, %v7011_v2 }
0x299b   : > { %v7018_v27 = vadd.f32 %v7014_v26, %v6980_v42 }
0x299c   : > { %v7065_v36 = vsel %vm416_vm0, %v7063_v13, %v7064_v39 }
0x299d   : > { %v7100_v15 = vpop.permute.xlu1 %7099  ;;  %v7102_v23 = vpop.permute.xlu0 %7101  ;;  %v7066_v9 = vsel %vm13716_vm10, %v7060_v21, %v7065_v36  ;;  %v7070_v25 = vadd.f32 %v12415_v52, %v7018_v27  ;;  %vm13730_vm10 = vmmov %vm13728_vm3  ;;  %v7487_v36 = vld [vmem:[%s13733_s23] sm:$0xf]  ;;  %v13741_v27 = vld [vmem:[#allocation6_spill] sm:$0xff] }
0x299e   : > { %v7103_v28 = vrot.slane %v7100_v15, 4  ;;  %v7069_v18 = vadd.f32 %v7066_v9, %v7017_v5  ;;  %v13737_v5 = vld [vmem:[#allocation9_spill] sm:$0xff] }
0x29a0   : > { %v7104_v53 = vsel %vm13719_vm2, %v7103_v28, %v7100_v15  ;;  %v7105_v7 = vsel %vm13724_vm15, %v7103_v28, %v7102_v23  ;;  %v13736_v23 = vld [vmem:[#allocation8_spill] sm:$0xff] }
0x29a1   : > { %v7139_v56 = vpop.permute.xlu1 %7138  ;;  %v7141_v37 = vpop.permute.xlu0 %7140  ;;  %v7108_v30 = vadd.f32 %v7104_v53, %v7069_v18  ;;  %v7109_v29 = vadd.f32 %v7105_v7, %v7070_v25  ;;  %v13740_v53 = vld [vmem:[#allocation5_spill] sm:$0xff] }
0x29a2   : > { %v7142_v6 = vrot.slane %v7139_v56, 4 }
0x29a4   : > { %v7143_v49 = vsel %vm13721_vm12, %v7142_v6, %v7139_v56  ;;  %v7144_v63 = vsel %vm13725_vm9, %v7142_v6, %v7141_v37  ;;  %v13738_v6 = vld [vmem:[#allocation4_spill] sm:$0xff] }
0x29a5   : > { %v7147_v34 = vadd.f32 %v7143_v49, %v7108_v30  ;;  %v7148_v0 = vadd.f32 %v7144_v63, %v7109_v29  ;;  %v7386_v61 = vsub.s32 5, %v13738_v6  ;;  %v7419_v26 = vsub.s32 2, %v13738_v6 }
0x29a6   : > { %v7180_v60 = vpop.permute.xlu0 %7179  ;;  %v7423_v49 = vsub.s32 6, %v13738_v6 }
0x29a7   : > { %v7178_v41 = vpop.permute.xlu1 %7177 }
0x29a8   : > { %v7181_v47 = vrot.slane %v7178_v41, 4 }
0x29aa   : > { %v7182_v3 = vsel %vm13722_vm5, %v7181_v47, %v7178_v41  ;;  %v7183_v51 = vsel %vm13727_vm11, %v7181_v47, %v7180_v60  ;;  %v7497_v41 = vcombine.high %v13736_v23, %v13736_v23 }
0x29ab   : > { %v7217_v46 = vpop.permute.xlu1 %7216  ;;  %v7186_v21 = vadd.f32 %v7182_v3, %v7147_v34  ;;  %v7187_v39 = vadd.f32 %v7183_v51, %v7148_v0 }
0x29ac   : > { %v7220_v55 = vrot.slane %v7217_v46, 4 }
0x29ae   : > { %v7221_v20 = vsel %vm13723_vm13, %v7220_v55, %v7217_v46  ;;  %v7349_v46 = vsub.s32 4, %v13738_v6 }
0x29af   : > { %v7256_v22 = vpop.permute.xlu1 %7255  ;;  %v7225_v48 = vadd.f32 %v7221_v20, %v7186_v21 }
0x29b0   : > { %v7259_v35 = vrot.slane %v7256_v22, 4 }
0x29b3   : > { %v7258_v8 = vpop.permute.xlu1 %7257 }
0x29b4   : > { %v7260_v19 = vrot.slane %v7258_v8, 4 }
0x29b6   : > { %v7261_v15 = vsel %vm416_vm0, %v7259_v35, %v7260_v19 }
0x29b7   : > { %v7262_v58 = vsel %vm13726_vm6, %v7256_v22, %v7261_v15  ;;  %v7296_v11 = vpop.permute.xlu1 %7295  ;;  %v7310_v40 = vpop.permute.xlu0 %7309  ;;  %v7460_v22 = vsub.s32 7, %v13738_v6 }
0x29b8   : > { %v7265_v1 = vadd.f32 %v7262_v58, %v7225_v48  ;;  %v7299_v54 = vrot.slane %v7296_v11, 4  ;;  %v7317_v2 = vrot.slane %v7310_v40, %v8355_v62 }
0x29ba   : > { %v7300_v4 = vsel %vm13728_vm3, %v7299_v54, %v7296_v11 }
0x29bb   : > { %v7304_v52 = vadd.f32 %v7300_v4, %v7265_v1  ;;  %v7219_v50 = vpop.permute.xlu0 %7218 }
0x29bc   : > { %v7222_v31 = vsel %vm13729_vm8, %v7220_v55, %v7219_v50  ;;  %v7456_v55 = vsub.s32 3, %v13738_v6 }
0x29bd   : > { %v7319_v56 = vadd.f32 %v7317_v2, %v7304_v52  ;;  %v7226_v14 = vadd.f32 %v7222_v31, %v7187_v39 }
0x29bf   : > { %7323 = vrot.lane.b32.xlu1 %v7319_v56, %s13617_s21  ;;  %v7266_v10 = vadd.f32 %v7258_v8, %v7226_v14  ;;  %v7298_v13 = vpop.permute.xlu0 %7297 }
0x29c0   : > { %v7301_v44 = vsel %vm13730_vm10, %v7299_v54, %v7298_v13 }
0x29c1   : > { %v7305_v62 = vadd.f32 %v7301_v44, %v7266_v10 }
0x29c3   : > { %v7320_v32 = vadd.f32 %v7317_v2, %v7305_v62  ;;  %7338 = vperm.xlu1 %7961, %v7335_v33  }
0x29c5   : > { %7325 = vrot.lane.b32.xlu0 %v7320_v32, %s13617_s21 }
0x29c7   : > { %7963 = vset.pattern.permute.xlu1 %v13732_v43 }
0x29c8   : > { %7414 = vperm.xlu1 %7963, %v7335_v33  }
0x29c9   : > { %7377 = vperm.xlu0 %7962, %v7335_v33  }
0x29cc   : > { %7964 = vset.pattern.permute.xlu1 %v13734_v12 }
0x29cd   : > { %7451 = vperm.xlu1 %7964, %v7335_v33   ;;  %7965 = vset.pattern.permute.xlu0 %v13735_v59 }
0x29ce   : > { %7490 = vperm.xlu0 %7965, %v7487_v36  }
0x29d1   : > { %7498 = vrot.lane.b32.xlu1 %v13736_v23, %s13135_s25 }
0x29d5   : > { %7500 = vrot.lane.b32.xlu1 %v7497_v41, %s13135_s25  ;;  %s13742_s25 = sld [smem:[#allocation7_spill]] }
0x29db   : > { %s13744_s21 = sshll.u32 %s13742_s25, 3 }
0x29dc   : > { %s413_s28 = scalar_lea.vmem %s13745_s9, %s13744_s21 }
0x2a31   : > { %v7324_v45 = vpop.permute.xlu1 %7323 }
0x2a32   : > { %v7327_v16 = vrot.slane %v7324_v45, 4 }
0x2a37   : > { %v7326_v24 = vpop.permute.xlu0 %7325 }
0x2a38   : > { %v7328_v9 = vrot.slane %v7326_v24, 4  ;;  %v7334_v18 = vadd.f32 %v7326_v24, %v13739_v38 }
0x2a3a   : > { %v7329_v28 = vsel %vm416_vm0, %v7327_v16, %v7328_v9  ;;  %v7354_v30 = vrot.slane %v7334_v18, %v13740_v53  ;;  %v7391_v60 = vrot.slane %v7334_v18, %v13741_v27  ;;  %v7428_v21 = vrot.slane %v7334_v18, %v7419_v26 }
0x2a3b   : > { %v7330_v17 = vsel %vm5485_vm1, %v7324_v45, %v7329_v28  ;;  %v7465_v63 = vrot.slane %v7334_v18, %v7456_v55  ;;  %vm13743_vm1 = vmmov %vm13722_vm5 }
0x2a3c   : > { %v7333_v57 = vadd.f32 %v7330_v17, %v13737_v5  ;;  %v7369_v48 = vrot.slane %v7354_v30, %v13740_v53  ;;  %v7406_v11 = vrot.slane %v7391_v60, %v13741_v27  ;;  %v7443_v51 = vrot.slane %v7428_v21, %v7419_v26 }
0x2a3d   : > { %v7480_v14 = vrot.slane %v7465_v63, %v7456_v55 }
0x2a3e   : > { %v7346_v37 = vrot.slane %v7333_v57, %v13740_v53  ;;  %v7350_v47 = vrot.slane %v7333_v57, %v7349_v46  ;;  %v7383_v3 = vrot.slane %v7333_v57, %v13741_v27  ;;  %v7387_v34 = vrot.slane %v7333_v57, %v7386_v61 }
0x2a3f   : > { %v7420_v7 = vrot.slane %v7333_v57, %v7419_v26  ;;  %v7424_v35 = vrot.slane %v7333_v57, %v7423_v49  ;;  %v7457_v19 = vrot.slane %v7333_v57, %v7456_v55  ;;  %v7461_v25 = vrot.slane %v7333_v57, %v7460_v22 }
0x2a40   : > { %v7361_v20 = vrot.slane %v7346_v37, %v13740_v53  ;;  %v7365_v8 = vrot.slane %v7350_v47, %v13740_v53  ;;  %v7398_v29 = vrot.slane %v7383_v3, %v13741_v27  ;;  %v7402_v58 = vrot.slane %v7387_v34, %v13741_v27 }
0x2a41   : > { %v7435_v54 = vrot.slane %v7420_v7, %v7419_v26  ;;  %v7439_v50 = vrot.slane %v7424_v35, %v7419_v26  ;;  %v7472_v31 = vrot.slane %v7457_v19, %v7456_v55  ;;  %v7476_v56 = vrot.slane %v7461_v25, %v7456_v55 }
0x2a42   : > { %v7339_v42 = vpop.permute.xlu1 %7338 }
0x2a43   : > { %v7370_v40 = vmul.f32 %v7361_v20, %v7339_v42  ;;  %v7371_v1 = vmul.f32 %v7365_v8, %v7339_v42  ;;  %v7372_v2 = vmul.f32 %v7369_v48, %v7339_v42 }
0x2a47   : > { %v7415_v15 = vpop.permute.xlu1 %7414 }
0x2a48   : > { %v7378_v0 = vpop.permute.xlu0 %7377  ;;  %v7444_v10 = vmul.f32 %v7435_v54, %v7415_v15  ;;  %v7445_v62 = vmul.f32 %v7439_v50, %v7415_v15  ;;  %v7446_v32 = vmul.f32 %v7443_v51, %v7415_v15 }
0x2a49   : > { %v7407_v4 = vmul.f32 %v7398_v29, %v7378_v0  ;;  %v7408_v52 = vmul.f32 %v7402_v58, %v7378_v0  ;;  %v7409_v39 = vmul.f32 %v7406_v11, %v7378_v0 }
0x2a4b   : > { %v7410_v13 = vadd.f32 %v7407_v4, %v7370_v40  ;;  %v7411_v44 = vadd.f32 %v7408_v52, %v7371_v1  ;;  %v7412_v33 = vadd.f32 %v7409_v39, %v7372_v2 }
0x2a4c   : > { %v7452_v43 = vpop.permute.xlu1 %7451 }
0x2a4d   : > { %v7481_v36 = vmul.f32 %v7472_v31, %v7452_v43  ;;  %v7482_v12 = vmul.f32 %v7476_v56, %v7452_v43  ;;  %v7483_v59 = vmul.f32 %v7480_v14, %v7452_v43  ;;  %v7447_v23 = vadd.f32 %v7444_v10, %v7410_v13  ;;  %v7491_v16 = vpop.permute.xlu0 %7490 }
0x2a4e   : > { %v7448_v41 = vadd.f32 %v7445_v62, %v7411_v44  ;;  %v7449_v45 = vadd.f32 %v7446_v32, %v7412_v33 }
0x2a4f   : > { %v7484_v24 = vadd.f32 %v7481_v36, %v7447_v23 }
0x2a50   : > { %v7499_v9 = vpop.permute.xlu1 %7498  ;;  %v7485_v28 = vadd.f32 %v7482_v12, %v7448_v41  ;;  %v7486_v17 = vadd.f32 %v7483_v59, %v7449_v45 }
0x2a51   : > { %v7493_v5 = vadd.f32 %v7491_v16, %v7484_v24 }
0x2a52   : > { %v7495_v57 = vadd.f32 %v7491_v16, %v7486_v17  ;;  %v7494_v6 = vadd.f32 %v7491_v16, %v7485_v28 }
0x2a53   : > { %v7506_v61 = vmul.f32 %v7499_v9, %v7493_v5 }
0x2a54   : > { %v7501_v46 = vpop.permute.xlu1 %7500 }
0x2a55   : > { %v7502_v38 = vsel %vm13743_vm1, %v7499_v9, %v7501_v46  ;;  %v7508_v18 = vmul.f32 %v7501_v46, %v7495_v57 }
0x2a56   : > { %v7507_v53 = vmul.f32 %v7502_v38, %v7494_v6 }
0x2a57   : > { %7515 = vrot.lane.b32.xlu1 %v7508_v18, %s13094_s2 }
0x2a58   : > { %v7512_v37 = vcombine.low %v7506_v61, %v7507_v53 }
0x2a5a   : > { %7513 = vrot.lane.b32.xlu0 %v7512_v37, %s13094_s2 }
0x2ac9   : > { %v7516_v47 = vpop.permute.xlu1 %7515 }
0x2aca   : > { %v7518_v42 = vrot.slane %v7516_v47, 4 }
0x2acc   : > { %v7514_v26 = vpop.permute.xlu0 %7513 }
0x2acd   : > { %v7517_v49 = vrot.slane %v7514_v26, 4 }
0x2acf   : > { %v7519_v55 = vsel %vm416_vm0, %v7517_v49, %v7518_v42 }
0x2ad0   : > { %v7520_v22 = vsel %vm13746_vm14, %v7514_v26, %v7519_v55 }
0x2ad1   : > { %7522 = vst [vmem:[%s413_s28] sm:$0xff] %v7520_v22 }
0x2ad2 PF: > { %s13747_s3 = sld [smem:[#allocation3_spill]] }
0x2ad8   : > { %s22_s21 = sadd.s32 1, %s13747_s3  }
0x2ad9   : > { %p19_p4 = scmp.ge.s32.totalorder %s22_s21, 4  }
0x2adb   :  { %21 = sbr.rel (!%p19_p4) target bundleno = 10 (0xa), region = 110 }

</bundles_post_ra>
